<compile_context>
chip_gen: v6e
topology: v6e:2x2x1
jax: 0.10.0
libtpu: 0.0.40
codegen_flags: <defaults>
</compile_context>

<pallas_src>
import jax
import jax.numpy as jnp
from jax.experimental import pallas as pl
from jax.experimental.pallas import tpu as pltpu

EPS = 1e-5                                    # nn.BatchNorm2d default eps
TAPS = tuple((kh, kw) for kh in range(3) for kw in range(3))
MXU_DTYPE = jnp.bfloat16                      # MXU-native on v5e/v6e/v7x


def _conv3x3_taps(pad_ref, w_ref, N, H, W, C):
    """3x3 'SAME' conv as 9 accumulating MXU matmuls over tap slices of the
    zero-padded activation.  Operands bf16, accumulation f32."""
    M = N * H * W
    cout = w_ref.shape[-1]
    acc = jnp.zeros((M, cout), jnp.float32)
    for t, (kh, kw) in enumerate(TAPS):
        tap = pad_ref[:, kh:kh + H, kw:kw + W, :].reshape(M, C)
        acc = acc + jnp.dot(tap.astype(MXU_DTYPE), w_ref[t],
                            preferred_element_type=jnp.float32)
    return acc


def _batchnorm(out, gamma, beta):
    """Training-mode BN over an (M, C) f32 slab.  Sums run on the MXU
    (ones-row matmul) so the XLU stays free; variance is two-pass (no
    E[x^2]-E[x]^2 cancellation)."""
    M = out.shape[0]
    inv_m = 1.0 / M
    ones_row = jnp.ones((1, M), jnp.float32)
    mean = jnp.dot(ones_row, out, preferred_element_type=jnp.float32) * inv_m
    centered = out - mean
    var = jnp.dot(ones_row, centered * centered,
                  preferred_element_type=jnp.float32) * inv_m
    scale = jax.lax.rsqrt(var + EPS) * gamma      # fold gamma into the scale
    return centered * scale + beta


def basic_block_kernel(x_ref, w1_ref, w2_ref, g1_ref, b1_ref, g2_ref, b2_ref,
                       o_ref, pad_ref):
    N, H, W, C = o_ref.shape

    # Zero ONLY the 1-px halo, ONCE.  The interior is fully overwritten below
    # (for conv1 and again for conv2) and neither conv touches the border, so
    # the zero halo remains valid for both convs.  NOTE: this is only correct
    # for stride=1 / padding=1 3x3 convs — revisit if that ever changes.
    pad_ref[:, 0:1, :, :] = jnp.zeros((N, 1, W + 2, C), pad_ref.dtype)
    pad_ref[:, H + 1:H + 2, :, :] = jnp.zeros((N, 1, W + 2, C), pad_ref.dtype)
    pad_ref[:, :, 0:1, :] = jnp.zeros((N, H + 2, 1, C), pad_ref.dtype)
    pad_ref[:, :, W + 1:W + 2, :] = jnp.zeros((N, H + 2, 1, C), pad_ref.dtype)

    # ---- conv1 (9-tap MXU accumulation) + bn1 + relu; y never leaves VMEM ----
    pad_ref[:, 1:H + 1, 1:W + 1, :] = x_ref[...]
    y = jnp.maximum(
        _batchnorm(_conv3x3_taps(pad_ref, w1_ref, N, H, W, C),
                   g1_ref[...], b1_ref[...]), 0.0)

    # ---- conv2 (reuse pad buffer; halo is still zero — no re-memset) + bn2 ----
    pad_ref[:, 1:H + 1, 1:W + 1, :] = y.reshape(N, H, W, C)
    out = _batchnorm(_conv3x3_taps(pad_ref, w2_ref, N, H, W, C),
                     g2_ref[...], b2_ref[...])

    # ---- residual add (identity in natural NHWC layout) + relu ----
    o_ref[...] = jnp.maximum(out.reshape(N, H, W, C) + x_ref[...], 0.0)


def _vmem_limit_bytes(N, H, W, C):
    """Derive the scoped-VMEM request from the actual buffer footprint,
    capped by the device's VMEM capacity (per-generation, not hard-coded)."""
    f32, bf16 = 4, 2
    act = N * H * W * C * f32                       # x in / out, each
    pad = N * (H + 2) * (W + 2) * C * f32           # padded-activation scratch
    wts = 2 * 9 * C * C * bf16 + 4 * C * f32        # tap-major weights + BN
    footprint = 2 * act + pad + wts
    limit = max(4 * footprint, 8 << 20)             # generous compiler headroom
    try:
        cap = pltpu.get_tpu_info().vmem_capacity_bytes // 2
    except Exception:                               # pragma: no cover
        cap = 32 << 20                              # safe on v5e / v6e / v7x
    return int(min(limit, cap))


def basic_block_forward_nhwc(x, params):
    """Fused BasicBlock forward on an NHWC activation (preferred entry point:
    zero layout transposes).  x: (N, H, W, C) f32."""
    w1, g1, b1, w2, g2, b2 = params
    N, H, W, C = x.shape
    assert w1.shape == (3, 3, C, C) and w2.shape == (3, 3, C, C), \
        "stride=1 / no-downsample BasicBlock requires inplanes == planes"

    # HWIO (3,3,Cin,Cout) -> tap-major (9, Cin, Cout), bf16 MXU operands
    # (tap order kh-major then kw, matching TAPS).
    w1_t = w1.reshape(9, C, C).astype(MXU_DTYPE)
    w2_t = w2.reshape(9, C, C).astype(MXU_DTYPE)

    vmem = pl.BlockSpec(memory_space=pltpu.MemorySpace.VMEM)
    return pl.pallas_call(
        basic_block_kernel,
        out_shape=jax.ShapeDtypeStruct((N, H, W, C), jnp.float32),
        in_specs=[vmem] * 7,
        out_specs=vmem,
        scratch_shapes=[
            pltpu.VMEM((N, H + 2, W + 2, C), jnp.float32),  # padded activation
        ],
        compiler_params=pltpu.CompilerParams(
            vmem_limit_bytes=_vmem_limit_bytes(N, H, W, C)),
    )(x, w1_t, w2_t,
      g1.reshape(1, -1).astype(jnp.float32),
      b1.reshape(1, -1).astype(jnp.float32),
      g2.reshape(1, -1).astype(jnp.float32),
      b2.reshape(1, -1).astype(jnp.float32))


def basic_block_forward(x_nchw, params):
    """NCHW compatibility shim matching the PyTorch module interface.  The two
    transposes are pure layout plumbing; a model that keeps activations NHWC
    end-to-end should call basic_block_forward_nhwc directly and pay nothing."""
    x = jnp.transpose(x_nchw, (0, 2, 3, 1))          # NCHW -> NHWC
    out = basic_block_forward_nhwc(x, params)
    return jnp.transpose(out, (0, 3, 1, 2))          # NHWC -> NCHW


if __name__ == "__main__":
    key = jax.random.PRNGKey(0)
    k1, k2, kx = jax.random.split(key, 3)

    N, C, H, W = 2, 4, 16, 16      # inplanes == planes, stride=1, no downsample
    planes = C

    x = jax.random.normal(kx, (N, C, H, W), jnp.float32)
    w1 = jax.random.normal(k1, (3, 3, C, planes), jnp.float32) * 0.1
    w2 = jax.random.normal(k2, (3, 3, planes, planes), jnp.float32) * 0.1
    g1 = jnp.ones((planes,), jnp.float32)    # BatchNorm2d default weight
    b1 = jnp.zeros((planes,), jnp.float32)   # BatchNorm2d default bias
    g2 = jnp.ones((planes,), jnp.float32)
    b2 = jnp.zeros((planes,), jnp.float32)
    params = (w1, g1, b1, w2, g2, b2)

    out = jax.block_until_ready(basic_block_forward(x, params))
    assert out.shape == (N, C, H, W)

    # Pure-JAX references (training-mode BN, same semantics as the PyTorch
    # module).  conv_dtype selects the precision of the conv operands.
    def make_ref(conv_dtype):
        def conv(v, w):
            return jax.lax.conv_general_dilated(
                v.astype(conv_dtype), w.astype(conv_dtype), (1, 1), "SAME",
                dimension_numbers=("NHWC", "HWIO", "NHWC"),
                preferred_element_type=jnp.float32)

        def bn(v, g, b):
            m = jnp.mean(v, axis=(0, 1, 2), keepdims=True)
            var = jnp.mean((v - m) ** 2, axis=(0, 1, 2), keepdims=True)
            return (v - m) * jax.lax.rsqrt(var + EPS) * g + b

        def ref(x_nchw):
            xh = jnp.transpose(x_nchw, (0, 2, 3, 1))
            y = jnp.maximum(bn(conv(xh, w1), g1, b1), 0.0)
            o = bn(conv(y, w2), g2, b2) + xh
            return jnp.transpose(jnp.maximum(o, 0.0), (0, 3, 1, 2))
        return ref

    # Tight check vs a reference that mirrors the kernel's bf16 MXU operands
    # (f32 accumulation / BN) — only accumulation-order level differences.
    ref_bf16 = make_ref(jnp.bfloat16)(x)
    err_bf16 = float(jnp.max(jnp.abs(out - ref_bf16)))
    assert jnp.allclose(out, ref_bf16, atol=1e-2, rtol=1e-2), err_bf16

    # Looser check vs the exact f32 PyTorch-equivalent reference; tolerance
    # reflects bf16 rounding of conv operands (~2^-9 relative per operand,
    # two conv layers, amplified by BN normalisation).
    ref_f32 = make_ref(jnp.float32)(x)
    err_f32 = float(jnp.max(jnp.abs(out - ref_f32)))
    assert jnp.allclose(out, ref_f32, atol=5e-2, rtol=5e-2), err_f32

    print("KERNEL_OK")
</pallas_src>

<mosaic_0001>
module attributes {stable_mosaic.version = 11 : i64} {
  func.func @basic_block_kernel(%arg0: memref<2x16x16x4xf32, #tpu.memory_space<vmem>>, %arg1: memref<9x4x4xbf16, #tpu.memory_space<vmem>>, %arg2: memref<9x4x4xbf16, #tpu.memory_space<vmem>>, %arg3: memref<1x4xf32, #tpu.memory_space<vmem>>, %arg4: memref<1x4xf32, #tpu.memory_space<vmem>>, %arg5: memref<1x4xf32, #tpu.memory_space<vmem>>, %arg6: memref<1x4xf32, #tpu.memory_space<vmem>>, %arg7: memref<2x16x16x4xf32, #tpu.memory_space<vmem>>, %arg8: memref<2x18x18x4xf32, #tpu.memory_space<vmem>>) attributes {dimension_semantics = [], scalar_prefetch = 0 : i64, scratch_operands = 1 : i64, tpu.core_type = #tpu.core_type<tc>} {
    %cst = arith.constant 0.000000e+00 : f32
    %0 = vector.broadcast %cst : f32 to vector<2x1x18x4xf32>
    %c0 = arith.constant 0 : index
    %c0_0 = arith.constant 0 : index
    %c0_1 = arith.constant 0 : index
    %c0_2 = arith.constant 0 : index
    %1 = vector.load %arg8[%c0, %c0_0, %c0_1, %c0_2] : memref<2x18x18x4xf32, #tpu.memory_space<vmem>>, vector<2x1x18x4xf32>
    tpu.vector_store %arg8[%c0, %c0_0, %c0_1, %c0_2], %0 {strides = array<i32>} : memref<2x18x18x4xf32, #tpu.memory_space<vmem>>, vector<2x1x18x4xf32>,
    %cst_3 = arith.constant 0.000000e+00 : f32
    %2 = vector.broadcast %cst_3 : f32 to vector<2x1x18x4xf32>
    %c0_4 = arith.constant 0 : index
    %c17 = arith.constant 17 : index
    %c0_5 = arith.constant 0 : index
    %c0_6 = arith.constant 0 : index
    %3 = vector.load %arg8[%c0_4, %c17, %c0_5, %c0_6] : memref<2x18x18x4xf32, #tpu.memory_space<vmem>>, vector<2x1x18x4xf32>
    tpu.vector_store %arg8[%c0_4, %c17, %c0_5, %c0_6], %2 {strides = array<i32>} : memref<2x18x18x4xf32, #tpu.memory_space<vmem>>, vector<2x1x18x4xf32>,
    %cst_7 = arith.constant 0.000000e+00 : f32
    %4 = vector.broadcast %cst_7 : f32 to vector<2x18x1x4xf32>
    %c0_8 = arith.constant 0 : index
    %c0_9 = arith.constant 0 : index
    %c0_10 = arith.constant 0 : index
    %c0_11 = arith.constant 0 : index
    %5 = vector.load %arg8[%c0_8, %c0_9, %c0_10, %c0_11] : memref<2x18x18x4xf32, #tpu.memory_space<vmem>>, vector<2x18x1x4xf32>
    tpu.vector_store %arg8[%c0_8, %c0_9, %c0_10, %c0_11], %4 {strides = array<i32>} : memref<2x18x18x4xf32, #tpu.memory_space<vmem>>, vector<2x18x1x4xf32>,
    %cst_12 = arith.constant 0.000000e+00 : f32
    %6 = vector.broadcast %cst_12 : f32 to vector<2x18x1x4xf32>
    %c0_13 = arith.constant 0 : index
    %c0_14 = arith.constant 0 : index
    %c17_15 = arith.constant 17 : index
    %c0_16 = arith.constant 0 : index
    %7 = vector.load %arg8[%c0_13, %c0_14, %c17_15, %c0_16] : memref<2x18x18x4xf32, #tpu.memory_space<vmem>>, vector<2x18x1x4xf32>
    tpu.vector_store %arg8[%c0_13, %c0_14, %c17_15, %c0_16], %6 {strides = array<i32>} : memref<2x18x18x4xf32, #tpu.memory_space<vmem>>, vector<2x18x1x4xf32>,
    %c0_17 = arith.constant 0 : index
    %c0_18 = arith.constant 0 : index
    %c0_19 = arith.constant 0 : index
    %c0_20 = arith.constant 0 : index
    %8 = vector.load %arg0[%c0_17, %c0_18, %c0_19, %c0_20] : memref<2x16x16x4xf32, #tpu.memory_space<vmem>>, vector<2x16x16x4xf32>
    %c0_21 = arith.constant 0 : index
    %c1 = arith.constant 1 : index
    %c1_22 = arith.constant 1 : index
    %c0_23 = arith.constant 0 : index
    %9 = vector.load %arg8[%c0_21, %c1, %c1_22, %c0_23] : memref<2x18x18x4xf32, #tpu.memory_space<vmem>>, vector<2x16x16x4xf32>
    tpu.vector_store %arg8[%c0_21, %c1, %c1_22, %c0_23], %8 {strides = array<i32>} : memref<2x18x18x4xf32, #tpu.memory_space<vmem>>, vector<2x16x16x4xf32>,
    %cst_24 = arith.constant 0.000000e+00 : f32
    %10 = vector.broadcast %cst_24 : f32 to vector<512x4xf32>
    %c0_25 = arith.constant 0 : index
    %c0_26 = arith.constant 0 : index
    %c0_27 = arith.constant 0 : index
    %c0_28 = arith.constant 0 : index
    %11 = vector.load %arg8[%c0_25, %c0_26, %c0_27, %c0_28] : memref<2x18x18x4xf32, #tpu.memory_space<vmem>>, vector<2x16x16x4xf32>
    %12 = vector.shape_cast %11 : vector<2x16x16x4xf32> to vector<512x4xf32>
    %13 = arith.truncf %12 : vector<512x4xf32> to vector<512x4xbf16>
    %c0_29 = arith.constant 0 : index
    %c0_30 = arith.constant 0 : index
    %c0_31 = arith.constant 0 : index
    %14 = vector.load %arg1[%c0_29, %c0_30, %c0_31] : memref<9x4x4xbf16, #tpu.memory_space<vmem>>, vector<1x4x4xbf16>
    %15 = vector.shape_cast %14 : vector<1x4x4xbf16> to vector<4x4xbf16>
    %cst_32 = arith.constant dense<0.000000e+00> : vector<512x4xf32>
    %16 = tpu.matmul %13, %15, %cst_32 {dimension_numbers = #tpu.dot_dimension_numbers<[1], [0], [0], [1], [0, 0, 1, 1], [], []>} : vector<512x4xbf16>, vector<4x4xbf16>, vector<512x4xf32> -> vector<512x4xf32>
    %17 = arith.addf %10, %16 : vector<512x4xf32>
    %c0_33 = arith.constant 0 : index
    %c0_34 = arith.constant 0 : index
    %c1_35 = arith.constant 1 : index
    %c0_36 = arith.constant 0 : index
    %18 = vector.load %arg8[%c0_33, %c0_34, %c1_35, %c0_36] : memref<2x18x18x4xf32, #tpu.memory_space<vmem>>, vector<2x16x16x4xf32>
    %19 = vector.shape_cast %18 : vector<2x16x16x4xf32> to vector<512x4xf32>
    %20 = arith.truncf %19 : vector<512x4xf32> to vector<512x4xbf16>
    %c1_37 = arith.constant 1 : index
    %c0_38 = arith.constant 0 : index
    %c0_39 = arith.constant 0 : index
    %21 = vector.load %arg1[%c1_37, %c0_38, %c0_39] : memref<9x4x4xbf16, #tpu.memory_space<vmem>>, vector<1x4x4xbf16>
    %22 = vector.shape_cast %21 : vector<1x4x4xbf16> to vector<4x4xbf16>
    %cst_40 = arith.constant dense<0.000000e+00> : vector<512x4xf32>
    %23 = tpu.matmul %20, %22, %cst_40 {dimension_numbers = #tpu.dot_dimension_numbers<[1], [0], [0], [1], [0, 0, 1, 1], [], []>} : vector<512x4xbf16>, vector<4x4xbf16>, vector<512x4xf32> -> vector<512x4xf32>
    %24 = arith.addf %17, %23 : vector<512x4xf32>
    %c0_41 = arith.constant 0 : index
    %c0_42 = arith.constant 0 : index
    %c2 = arith.constant 2 : index
    %c0_43 = arith.constant 0 : index
    %25 = vector.load %arg8[%c0_41, %c0_42, %c2, %c0_43] : memref<2x18x18x4xf32, #tpu.memory_space<vmem>>, vector<2x16x16x4xf32>
    %26 = vector.shape_cast %25 : vector<2x16x16x4xf32> to vector<512x4xf32>
    %27 = arith.truncf %26 : vector<512x4xf32> to vector<512x4xbf16>
    %c2_44 = arith.constant 2 : index
    %c0_45 = arith.constant 0 : index
    %c0_46 = arith.constant 0 : index
    %28 = vector.load %arg1[%c2_44, %c0_45, %c0_46] : memref<9x4x4xbf16, #tpu.memory_space<vmem>>, vector<1x4x4xbf16>
    %29 = vector.shape_cast %28 : vector<1x4x4xbf16> to vector<4x4xbf16>
    %cst_47 = arith.constant dense<0.000000e+00> : vector<512x4xf32>
    %30 = tpu.matmul %27, %29, %cst_47 {dimension_numbers = #tpu.dot_dimension_numbers<[1], [0], [0], [1], [0, 0, 1, 1], [], []>} : vector<512x4xbf16>, vector<4x4xbf16>, vector<512x4xf32> -> vector<512x4xf32>
    %31 = arith.addf %24, %30 : vector<512x4xf32>
    %c0_48 = arith.constant 0 : index
    %c1_49 = arith.constant 1 : index
    %c0_50 = arith.constant 0 : index
    %c0_51 = arith.constant 0 : index
    %32 = vector.load %arg8[%c0_48, %c1_49, %c0_50, %c0_51] : memref<2x18x18x4xf32, #tpu.memory_space<vmem>>, vector<2x16x16x4xf32>
    %33 = vector.shape_cast %32 : vector<2x16x16x4xf32> to vector<512x4xf32>
    %34 = arith.truncf %33 : vector<512x4xf32> to vector<512x4xbf16>
    %c3 = arith.constant 3 : index
    %c0_52 = arith.constant 0 : index
    %c0_53 = arith.constant 0 : index
    %35 = vector.load %arg1[%c3, %c0_52, %c0_53] : memref<9x4x4xbf16, #tpu.memory_space<vmem>>, vector<1x4x4xbf16>
    %36 = vector.shape_cast %35 : vector<1x4x4xbf16> to vector<4x4xbf16>
    %cst_54 = arith.constant dense<0.000000e+00> : vector<512x4xf32>
    %37 = tpu.matmul %34, %36, %cst_54 {dimension_numbers = #tpu.dot_dimension_numbers<[1], [0], [0], [1], [0, 0, 1, 1], [], []>} : vector<512x4xbf16>, vector<4x4xbf16>, vector<512x4xf32> -> vector<512x4xf32>
    %38 = arith.addf %31, %37 : vector<512x4xf32>
    %c0_55 = arith.constant 0 : index
    %c1_56 = arith.constant 1 : index
    %c1_57 = arith.constant 1 : index
    %c0_58 = arith.constant 0 : index
    %39 = vector.load %arg8[%c0_55, %c1_56, %c1_57, %c0_58] : memref<2x18x18x4xf32, #tpu.memory_space<vmem>>, vector<2x16x16x4xf32>
    %40 = vector.shape_cast %39 : vector<2x16x16x4xf32> to vector<512x4xf32>
    %41 = arith.truncf %40 : vector<512x4xf32> to vector<512x4xbf16>
    %c4 = arith.constant 4 : index
    %c0_59 = arith.constant 0 : index
    %c0_60 = arith.constant 0 : index
    %42 = vector.load %arg1[%c4, %c0_59, %c0_60] : memref<9x4x4xbf16, #tpu.memory_space<vmem>>, vector<1x4x4xbf16>
    %43 = vector.shape_cast %42 : vector<1x4x4xbf16> to vector<4x4xbf16>
    %cst_61 = arith.constant dense<0.000000e+00> : vector<512x4xf32>
    %44 = tpu.matmul %41, %43, %cst_61 {dimension_numbers = #tpu.dot_dimension_numbers<[1], [0], [0], [1], [0, 0, 1, 1], [], []>} : vector<512x4xbf16>, vector<4x4xbf16>, vector<512x4xf32> -> vector<512x4xf32>
    %45 = arith.addf %38, %44 : vector<512x4xf32>
    %c0_62 = arith.constant 0 : index
    %c1_63 = arith.constant 1 : index
    %c2_64 = arith.constant 2 : index
    %c0_65 = arith.constant 0 : index
    %46 = vector.load %arg8[%c0_62, %c1_63, %c2_64, %c0_65] : memref<2x18x18x4xf32, #tpu.memory_space<vmem>>, vector<2x16x16x4xf32>
    %47 = vector.shape_cast %46 : vector<2x16x16x4xf32> to vector<512x4xf32>
    %48 = arith.truncf %47 : vector<512x4xf32> to vector<512x4xbf16>
    %c5 = arith.constant 5 : index
    %c0_66 = arith.constant 0 : index
    %c0_67 = arith.constant 0 : index
    %49 = vector.load %arg1[%c5, %c0_66, %c0_67] : memref<9x4x4xbf16, #tpu.memory_space<vmem>>, vector<1x4x4xbf16>
    %50 = vector.shape_cast %49 : vector<1x4x4xbf16> to vector<4x4xbf16>
    %cst_68 = arith.constant dense<0.000000e+00> : vector<512x4xf32>
    %51 = tpu.matmul %48, %50, %cst_68 {dimension_numbers = #tpu.dot_dimension_numbers<[1], [0], [0], [1], [0, 0, 1, 1], [], []>} : vector<512x4xbf16>, vector<4x4xbf16>, vector<512x4xf32> -> vector<512x4xf32>
    %52 = arith.addf %45, %51 : vector<512x4xf32>
    %c0_69 = arith.constant 0 : index
    %c2_70 = arith.constant 2 : index
    %c0_71 = arith.constant 0 : index
    %c0_72 = arith.constant 0 : index
    %53 = vector.load %arg8[%c0_69, %c2_70, %c0_71, %c0_72] : memref<2x18x18x4xf32, #tpu.memory_space<vmem>>, vector<2x16x16x4xf32>
    %54 = vector.shape_cast %53 : vector<2x16x16x4xf32> to vector<512x4xf32>
    %55 = arith.truncf %54 : vector<512x4xf32> to vector<512x4xbf16>
    %c6 = arith.constant 6 : index
    %c0_73 = arith.constant 0 : index
    %c0_74 = arith.constant 0 : index
    %56 = vector.load %arg1[%c6, %c0_73, %c0_74] : memref<9x4x4xbf16, #tpu.memory_space<vmem>>, vector<1x4x4xbf16>
    %57 = vector.shape_cast %56 : vector<1x4x4xbf16> to vector<4x4xbf16>
    %cst_75 = arith.constant dense<0.000000e+00> : vector<512x4xf32>
    %58 = tpu.matmul %55, %57, %cst_75 {dimension_numbers = #tpu.dot_dimension_numbers<[1], [0], [0], [1], [0, 0, 1, 1], [], []>} : vector<512x4xbf16>, vector<4x4xbf16>, vector<512x4xf32> -> vector<512x4xf32>
    %59 = arith.addf %52, %58 : vector<512x4xf32>
    %c0_76 = arith.constant 0 : index
    %c2_77 = arith.constant 2 : index
    %c1_78 = arith.constant 1 : index
    %c0_79 = arith.constant 0 : index
    %60 = vector.load %arg8[%c0_76, %c2_77, %c1_78, %c0_79] : memref<2x18x18x4xf32, #tpu.memory_space<vmem>>, vector<2x16x16x4xf32>
    %61 = vector.shape_cast %60 : vector<2x16x16x4xf32> to vector<512x4xf32>
    %62 = arith.truncf %61 : vector<512x4xf32> to vector<512x4xbf16>
    %c7 = arith.constant 7 : index
    %c0_80 = arith.constant 0 : index
    %c0_81 = arith.constant 0 : index
    %63 = vector.load %arg1[%c7, %c0_80, %c0_81] : memref<9x4x4xbf16, #tpu.memory_space<vmem>>, vector<1x4x4xbf16>
    %64 = vector.shape_cast %63 : vector<1x4x4xbf16> to vector<4x4xbf16>
    %cst_82 = arith.constant dense<0.000000e+00> : vector<512x4xf32>
    %65 = tpu.matmul %62, %64, %cst_82 {dimension_numbers = #tpu.dot_dimension_numbers<[1], [0], [0], [1], [0, 0, 1, 1], [], []>} : vector<512x4xbf16>, vector<4x4xbf16>, vector<512x4xf32> -> vector<512x4xf32>
    %66 = arith.addf %59, %65 : vector<512x4xf32>
    %c0_83 = arith.constant 0 : index
    %c2_84 = arith.constant 2 : index
    %c2_85 = arith.constant 2 : index
    %c0_86 = arith.constant 0 : index
    %67 = vector.load %arg8[%c0_83, %c2_84, %c2_85, %c0_86] : memref<2x18x18x4xf32, #tpu.memory_space<vmem>>, vector<2x16x16x4xf32>
    %68 = vector.shape_cast %67 : vector<2x16x16x4xf32> to vector<512x4xf32>
    %69 = arith.truncf %68 : vector<512x4xf32> to vector<512x4xbf16>
    %c8 = arith.constant 8 : index
    %c0_87 = arith.constant 0 : index
    %c0_88 = arith.constant 0 : index
    %70 = vector.load %arg1[%c8, %c0_87, %c0_88] : memref<9x4x4xbf16, #tpu.memory_space<vmem>>, vector<1x4x4xbf16>
    %71 = vector.shape_cast %70 : vector<1x4x4xbf16> to vector<4x4xbf16>
    %cst_89 = arith.constant dense<0.000000e+00> : vector<512x4xf32>
    %72 = tpu.matmul %69, %71, %cst_89 {dimension_numbers = #tpu.dot_dimension_numbers<[1], [0], [0], [1], [0, 0, 1, 1], [], []>} : vector<512x4xbf16>, vector<4x4xbf16>, vector<512x4xf32> -> vector<512x4xf32>
    %73 = arith.addf %66, %72 : vector<512x4xf32>
    %c0_90 = arith.constant 0 : index
    %c0_91 = arith.constant 0 : index
    %74 = vector.load %arg3[%c0_90, %c0_91] : memref<1x4xf32, #tpu.memory_space<vmem>>, vector<1x4xf32>
    %c0_92 = arith.constant 0 : index
    %c0_93 = arith.constant 0 : index
    %75 = vector.load %arg4[%c0_92, %c0_93] : memref<1x4xf32, #tpu.memory_space<vmem>>, vector<1x4xf32>
    %cst_94 = arith.constant 1.000000e+00 : f32
    %76 = vector.broadcast %cst_94 : f32 to vector<1x512xf32>
    %cst_95 = arith.constant dense<0.000000e+00> : vector<1x4xf32>
    %77 = tpu.matmul %76, %73, %cst_95 {dimension_numbers = #tpu.dot_dimension_numbers<[1], [0], [0], [1], [0, 0, 1, 1], [], []>} : vector<1x512xf32>, vector<512x4xf32>, vector<1x4xf32> -> vector<1x4xf32>
    %cst_96 = arith.constant 0.001953125 : f32
    %78 = vector.broadcast %cst_96 : f32 to vector<1x4xf32>
    %79 = arith.mulf %77, %78 : vector<1x4xf32>
    %80 = vector.broadcast %79 : vector<1x4xf32> to vector<512x4xf32>
    %81 = arith.subf %73, %80 : vector<512x4xf32>
    %82 = arith.mulf %81, %81 : vector<512x4xf32>
    %cst_97 = arith.constant dense<0.000000e+00> : vector<1x4xf32>
    %83 = tpu.matmul %76, %82, %cst_97 {dimension_numbers = #tpu.dot_dimension_numbers<[1], [0], [0], [1], [0, 0, 1, 1], [], []>} : vector<1x512xf32>, vector<512x4xf32>, vector<1x4xf32> -> vector<1x4xf32>
    %cst_98 = arith.constant 0.001953125 : f32
    %84 = vector.broadcast %cst_98 : f32 to vector<1x4xf32>
    %85 = arith.mulf %83, %84 : vector<1x4xf32>
    %cst_99 = arith.constant 9.99999974E-6 : f32
    %86 = vector.broadcast %cst_99 : f32 to vector<1x4xf32>
    %87 = arith.addf %85, %86 : vector<1x4xf32>
    %88 = math.rsqrt %87 : vector<1x4xf32>
    %89 = arith.mulf %88, %74 : vector<1x4xf32>
    %90 = vector.broadcast %89 : vector<1x4xf32> to vector<512x4xf32>
    %91 = arith.mulf %81, %90 : vector<512x4xf32>
    %92 = vector.broadcast %75 : vector<1x4xf32> to vector<512x4xf32>
    %93 = arith.addf %91, %92 : vector<512x4xf32>
    %cst_100 = arith.constant 0.000000e+00 : f32
    %94 = vector.broadcast %cst_100 : f32 to vector<512x4xf32>
    %95 = arith.maximumf %93, %94 : vector<512x4xf32>
    %96 = vector.shape_cast %95 : vector<512x4xf32> to vector<2x16x16x4xf32>
    %c0_101 = arith.constant 0 : index
    %c1_102 = arith.constant 1 : index
    %c1_103 = arith.constant 1 : index
    %c0_104 = arith.constant 0 : index
    %97 = vector.load %arg8[%c0_101, %c1_102, %c1_103, %c0_104] : memref<2x18x18x4xf32, #tpu.memory_space<vmem>>, vector<2x16x16x4xf32>
    tpu.vector_store %arg8[%c0_101, %c1_102, %c1_103, %c0_104], %96 {strides = array<i32>} : memref<2x18x18x4xf32, #tpu.memory_space<vmem>>, vector<2x16x16x4xf32>,
    %cst_105 = arith.constant 0.000000e+00 : f32
    %98 = vector.broadcast %cst_105 : f32 to vector<512x4xf32>
    %c0_106 = arith.constant 0 : index
    %c0_107 = arith.constant 0 : index
    %c0_108 = arith.constant 0 : index
    %c0_109 = arith.constant 0 : index
    %99 = vector.load %arg8[%c0_106, %c0_107, %c0_108, %c0_109] : memref<2x18x18x4xf32, #tpu.memory_space<vmem>>, vector<2x16x16x4xf32>
    %100 = vector.shape_cast %99 : vector<2x16x16x4xf32> to vector<512x4xf32>
    %101 = arith.truncf %100 : vector<512x4xf32> to vector<512x4xbf16>
    %c0_110 = arith.constant 0 : index
    %c0_111 = arith.constant 0 : index
    %c0_112 = arith.constant 0 : index
    %102 = vector.load %arg2[%c0_110, %c0_111, %c0_112] : memref<9x4x4xbf16, #tpu.memory_space<vmem>>, vector<1x4x4xbf16>
    %103 = vector.shape_cast %102 : vector<1x4x4xbf16> to vector<4x4xbf16>
    %cst_113 = arith.constant dense<0.000000e+00> : vector<512x4xf32>
    %104 = tpu.matmul %101, %103, %cst_113 {dimension_numbers = #tpu.dot_dimension_numbers<[1], [0], [0], [1], [0, 0, 1, 1], [], []>} : vector<512x4xbf16>, vector<4x4xbf16>, vector<512x4xf32> -> vector<512x4xf32>
    %105 = arith.addf %98, %104 : vector<512x4xf32>
    %c0_114 = arith.constant 0 : index
    %c0_115 = arith.constant 0 : index
    %c1_116 = arith.constant 1 : index
    %c0_117 = arith.constant 0 : index
    %106 = vector.load %arg8[%c0_114, %c0_115, %c1_116, %c0_117] : memref<2x18x18x4xf32, #tpu.memory_space<vmem>>, vector<2x16x16x4xf32>
    %107 = vector.shape_cast %106 : vector<2x16x16x4xf32> to vector<512x4xf32>
    %108 = arith.truncf %107 : vector<512x4xf32> to vector<512x4xbf16>
    %c1_118 = arith.constant 1 : index
    %c0_119 = arith.constant 0 : index
    %c0_120 = arith.constant 0 : index
    %109 = vector.load %arg2[%c1_118, %c0_119, %c0_120] : memref<9x4x4xbf16, #tpu.memory_space<vmem>>, vector<1x4x4xbf16>
    %110 = vector.shape_cast %109 : vector<1x4x4xbf16> to vector<4x4xbf16>
    %cst_121 = arith.constant dense<0.000000e+00> : vector<512x4xf32>
    %111 = tpu.matmul %108, %110, %cst_121 {dimension_numbers = #tpu.dot_dimension_numbers<[1], [0], [0], [1], [0, 0, 1, 1], [], []>} : vector<512x4xbf16>, vector<4x4xbf16>, vector<512x4xf32> -> vector<512x4xf32>
    %112 = arith.addf %105, %111 : vector<512x4xf32>
    %c0_122 = arith.constant 0 : index
    %c0_123 = arith.constant 0 : index
    %c2_124 = arith.constant 2 : index
    %c0_125 = arith.constant 0 : index
    %113 = vector.load %arg8[%c0_122, %c0_123, %c2_124, %c0_125] : memref<2x18x18x4xf32, #tpu.memory_space<vmem>>, vector<2x16x16x4xf32>
    %114 = vector.shape_cast %113 : vector<2x16x16x4xf32> to vector<512x4xf32>
    %115 = arith.truncf %114 : vector<512x4xf32> to vector<512x4xbf16>
    %c2_126 = arith.constant 2 : index
    %c0_127 = arith.constant 0 : index
    %c0_128 = arith.constant 0 : index
    %116 = vector.load %arg2[%c2_126, %c0_127, %c0_128] : memref<9x4x4xbf16, #tpu.memory_space<vmem>>, vector<1x4x4xbf16>
    %117 = vector.shape_cast %116 : vector<1x4x4xbf16> to vector<4x4xbf16>
    %cst_129 = arith.constant dense<0.000000e+00> : vector<512x4xf32>
    %118 = tpu.matmul %115, %117, %cst_129 {dimension_numbers = #tpu.dot_dimension_numbers<[1], [0], [0], [1], [0, 0, 1, 1], [], []>} : vector<512x4xbf16>, vector<4x4xbf16>, vector<512x4xf32> -> vector<512x4xf32>
    %119 = arith.addf %112, %118 : vector<512x4xf32>
    %c0_130 = arith.constant 0 : index
    %c1_131 = arith.constant 1 : index
    %c0_132 = arith.constant 0 : index
    %c0_133 = arith.constant 0 : index
    %120 = vector.load %arg8[%c0_130, %c1_131, %c0_132, %c0_133] : memref<2x18x18x4xf32, #tpu.memory_space<vmem>>, vector<2x16x16x4xf32>
    %121 = vector.shape_cast %120 : vector<2x16x16x4xf32> to vector<512x4xf32>
    %122 = arith.truncf %121 : vector<512x4xf32> to vector<512x4xbf16>
    %c3_134 = arith.constant 3 : index
    %c0_135 = arith.constant 0 : index
    %c0_136 = arith.constant 0 : index
    %123 = vector.load %arg2[%c3_134, %c0_135, %c0_136] : memref<9x4x4xbf16, #tpu.memory_space<vmem>>, vector<1x4x4xbf16>
    %124 = vector.shape_cast %123 : vector<1x4x4xbf16> to vector<4x4xbf16>
    %cst_137 = arith.constant dense<0.000000e+00> : vector<512x4xf32>
    %125 = tpu.matmul %122, %124, %cst_137 {dimension_numbers = #tpu.dot_dimension_numbers<[1], [0], [0], [1], [0, 0, 1, 1], [], []>} : vector<512x4xbf16>, vector<4x4xbf16>, vector<512x4xf32> -> vector<512x4xf32>
    %126 = arith.addf %119, %125 : vector<512x4xf32>
    %c0_138 = arith.constant 0 : index
    %c1_139 = arith.constant 1 : index
    %c1_140 = arith.constant 1 : index
    %c0_141 = arith.constant 0 : index
    %127 = vector.load %arg8[%c0_138, %c1_139, %c1_140, %c0_141] : memref<2x18x18x4xf32, #tpu.memory_space<vmem>>, vector<2x16x16x4xf32>
    %128 = vector.shape_cast %127 : vector<2x16x16x4xf32> to vector<512x4xf32>
    %129 = arith.truncf %128 : vector<512x4xf32> to vector<512x4xbf16>
    %c4_142 = arith.constant 4 : index
    %c0_143 = arith.constant 0 : index
    %c0_144 = arith.constant 0 : index
    %130 = vector.load %arg2[%c4_142, %c0_143, %c0_144] : memref<9x4x4xbf16, #tpu.memory_space<vmem>>, vector<1x4x4xbf16>
    %131 = vector.shape_cast %130 : vector<1x4x4xbf16> to vector<4x4xbf16>
    %cst_145 = arith.constant dense<0.000000e+00> : vector<512x4xf32>
    %132 = tpu.matmul %129, %131, %cst_145 {dimension_numbers = #tpu.dot_dimension_numbers<[1], [0], [0], [1], [0, 0, 1, 1], [], []>} : vector<512x4xbf16>, vector<4x4xbf16>, vector<512x4xf32> -> vector<512x4xf32>
    %133 = arith.addf %126, %132 : vector<512x4xf32>
    %c0_146 = arith.constant 0 : index
    %c1_147 = arith.constant 1 : index
    %c2_148 = arith.constant 2 : index
    %c0_149 = arith.constant 0 : index
    %134 = vector.load %arg8[%c0_146, %c1_147, %c2_148, %c0_149] : memref<2x18x18x4xf32, #tpu.memory_space<vmem>>, vector<2x16x16x4xf32>
    %135 = vector.shape_cast %134 : vector<2x16x16x4xf32> to vector<512x4xf32>
    %136 = arith.truncf %135 : vector<512x4xf32> to vector<512x4xbf16>
    %c5_150 = arith.constant 5 : index
    %c0_151 = arith.constant 0 : index
    %c0_152 = arith.constant 0 : index
    %137 = vector.load %arg2[%c5_150, %c0_151, %c0_152] : memref<9x4x4xbf16, #tpu.memory_space<vmem>>, vector<1x4x4xbf16>
    %138 = vector.shape_cast %137 : vector<1x4x4xbf16> to vector<4x4xbf16>
    %cst_153 = arith.constant dense<0.000000e+00> : vector<512x4xf32>
    %139 = tpu.matmul %136, %138, %cst_153 {dimension_numbers = #tpu.dot_dimension_numbers<[1], [0], [0], [1], [0, 0, 1, 1], [], []>} : vector<512x4xbf16>, vector<4x4xbf16>, vector<512x4xf32> -> vector<512x4xf32>
    %140 = arith.addf %133, %139 : vector<512x4xf32>
    %c0_154 = arith.constant 0 : index
    %c2_155 = arith.constant 2 : index
    %c0_156 = arith.constant 0 : index
    %c0_157 = arith.constant 0 : index
    %141 = vector.load %arg8[%c0_154, %c2_155, %c0_156, %c0_157] : memref<2x18x18x4xf32, #tpu.memory_space<vmem>>, vector<2x16x16x4xf32>
    %142 = vector.shape_cast %141 : vector<2x16x16x4xf32> to vector<512x4xf32>
    %143 = arith.truncf %142 : vector<512x4xf32> to vector<512x4xbf16>
    %c6_158 = arith.constant 6 : index
    %c0_159 = arith.constant 0 : index
    %c0_160 = arith.constant 0 : index
    %144 = vector.load %arg2[%c6_158, %c0_159, %c0_160] : memref<9x4x4xbf16, #tpu.memory_space<vmem>>, vector<1x4x4xbf16>
    %145 = vector.shape_cast %144 : vector<1x4x4xbf16> to vector<4x4xbf16>
    %cst_161 = arith.constant dense<0.000000e+00> : vector<512x4xf32>
    %146 = tpu.matmul %143, %145, %cst_161 {dimension_numbers = #tpu.dot_dimension_numbers<[1], [0], [0], [1], [0, 0, 1, 1], [], []>} : vector<512x4xbf16>, vector<4x4xbf16>, vector<512x4xf32> -> vector<512x4xf32>
    %147 = arith.addf %140, %146 : vector<512x4xf32>
    %c0_162 = arith.constant 0 : index
    %c2_163 = arith.constant 2 : index
    %c1_164 = arith.constant 1 : index
    %c0_165 = arith.constant 0 : index
    %148 = vector.load %arg8[%c0_162, %c2_163, %c1_164, %c0_165] : memref<2x18x18x4xf32, #tpu.memory_space<vmem>>, vector<2x16x16x4xf32>
    %149 = vector.shape_cast %148 : vector<2x16x16x4xf32> to vector<512x4xf32>
    %150 = arith.truncf %149 : vector<512x4xf32> to vector<512x4xbf16>
    %c7_166 = arith.constant 7 : index
    %c0_167 = arith.constant 0 : index
    %c0_168 = arith.constant 0 : index
    %151 = vector.load %arg2[%c7_166, %c0_167, %c0_168] : memref<9x4x4xbf16, #tpu.memory_space<vmem>>, vector<1x4x4xbf16>
    %152 = vector.shape_cast %151 : vector<1x4x4xbf16> to vector<4x4xbf16>
    %cst_169 = arith.constant dense<0.000000e+00> : vector<512x4xf32>
    %153 = tpu.matmul %150, %152, %cst_169 {dimension_numbers = #tpu.dot_dimension_numbers<[1], [0], [0], [1], [0, 0, 1, 1], [], []>} : vector<512x4xbf16>, vector<4x4xbf16>, vector<512x4xf32> -> vector<512x4xf32>
    %154 = arith.addf %147, %153 : vector<512x4xf32>
    %c0_170 = arith.constant 0 : index
    %c2_171 = arith.constant 2 : index
    %c2_172 = arith.constant 2 : index
    %c0_173 = arith.constant 0 : index
    %155 = vector.load %arg8[%c0_170, %c2_171, %c2_172, %c0_173] : memref<2x18x18x4xf32, #tpu.memory_space<vmem>>, vector<2x16x16x4xf32>
    %156 = vector.shape_cast %155 : vector<2x16x16x4xf32> to vector<512x4xf32>
    %157 = arith.truncf %156 : vector<512x4xf32> to vector<512x4xbf16>
    %c8_174 = arith.constant 8 : index
    %c0_175 = arith.constant 0 : index
    %c0_176 = arith.constant 0 : index
    %158 = vector.load %arg2[%c8_174, %c0_175, %c0_176] : memref<9x4x4xbf16, #tpu.memory_space<vmem>>, vector<1x4x4xbf16>
    %159 = vector.shape_cast %158 : vector<1x4x4xbf16> to vector<4x4xbf16>
    %cst_177 = arith.constant dense<0.000000e+00> : vector<512x4xf32>
    %160 = tpu.matmul %157, %159, %cst_177 {dimension_numbers = #tpu.dot_dimension_numbers<[1], [0], [0], [1], [0, 0, 1, 1], [], []>} : vector<512x4xbf16>, vector<4x4xbf16>, vector<512x4xf32> -> vector<512x4xf32>
    %161 = arith.addf %154, %160 : vector<512x4xf32>
    %c0_178 = arith.constant 0 : index
    %c0_179 = arith.constant 0 : index
    %162 = vector.load %arg5[%c0_178, %c0_179] : memref<1x4xf32, #tpu.memory_space<vmem>>, vector<1x4xf32>
    %c0_180 = arith.constant 0 : index
    %c0_181 = arith.constant 0 : index
    %163 = vector.load %arg6[%c0_180, %c0_181] : memref<1x4xf32, #tpu.memory_space<vmem>>, vector<1x4xf32>
    %cst_182 = arith.constant 1.000000e+00 : f32
    %164 = vector.broadcast %cst_182 : f32 to vector<1x512xf32>
    %cst_183 = arith.constant dense<0.000000e+00> : vector<1x4xf32>
    %165 = tpu.matmul %164, %161, %cst_183 {dimension_numbers = #tpu.dot_dimension_numbers<[1], [0], [0], [1], [0, 0, 1, 1], [], []>} : vector<1x512xf32>, vector<512x4xf32>, vector<1x4xf32> -> vector<1x4xf32>
    %cst_184 = arith.constant 0.001953125 : f32
    %166 = vector.broadcast %cst_184 : f32 to vector<1x4xf32>
    %167 = arith.mulf %165, %166 : vector<1x4xf32>
    %168 = vector.broadcast %167 : vector<1x4xf32> to vector<512x4xf32>
    %169 = arith.subf %161, %168 : vector<512x4xf32>
    %170 = arith.mulf %169, %169 : vector<512x4xf32>
    %cst_185 = arith.constant dense<0.000000e+00> : vector<1x4xf32>
    %171 = tpu.matmul %164, %170, %cst_185 {dimension_numbers = #tpu.dot_dimension_numbers<[1], [0], [0], [1], [0, 0, 1, 1], [], []>} : vector<1x512xf32>, vector<512x4xf32>, vector<1x4xf32> -> vector<1x4xf32>
    %cst_186 = arith.constant 0.001953125 : f32
    %172 = vector.broadcast %cst_186 : f32 to vector<1x4xf32>
    %173 = arith.mulf %171, %172 : vector<1x4xf32>
    %cst_187 = arith.constant 9.99999974E-6 : f32
    %174 = vector.broadcast %cst_187 : f32 to vector<1x4xf32>
    %175 = arith.addf %173, %174 : vector<1x4xf32>
    %176 = math.rsqrt %175 : vector<1x4xf32>
    %177 = arith.mulf %176, %162 : vector<1x4xf32>
    %178 = vector.broadcast %177 : vector<1x4xf32> to vector<512x4xf32>
    %179 = arith.mulf %169, %178 : vector<512x4xf32>
    %180 = vector.broadcast %163 : vector<1x4xf32> to vector<512x4xf32>
    %181 = arith.addf %179, %180 : vector<512x4xf32>
    %182 = vector.shape_cast %181 : vector<512x4xf32> to vector<2x16x16x4xf32>
    %c0_188 = arith.constant 0 : index
    %c0_189 = arith.constant 0 : index
    %c0_190 = arith.constant 0 : index
    %c0_191 = arith.constant 0 : index
    %183 = vector.load %arg0[%c0_188, %c0_189, %c0_190, %c0_191] : memref<2x16x16x4xf32, #tpu.memory_space<vmem>>, vector<2x16x16x4xf32>
    %184 = arith.addf %182, %183 : vector<2x16x16x4xf32>
    %cst_192 = arith.constant 0.000000e+00 : f32
    %185 = vector.broadcast %cst_192 : f32 to vector<2x16x16x4xf32>
    %186 = arith.maximumf %184, %185 : vector<2x16x16x4xf32>
    %c0_193 = arith.constant 0 : index
    %c0_194 = arith.constant 0 : index
    %c0_195 = arith.constant 0 : index
    %c0_196 = arith.constant 0 : index
    %187 = vector.load %arg7[%c0_193, %c0_194, %c0_195, %c0_196] : memref<2x16x16x4xf32, #tpu.memory_space<vmem>>, vector<2x16x16x4xf32>
    tpu.vector_store %arg7[%c0_193, %c0_194, %c0_195, %c0_196], %186 {strides = array<i32>} : memref<2x16x16x4xf32, #tpu.memory_space<vmem>>, vector<2x16x16x4xf32>,
    return
  }
}

</mosaic_0001>

<bundles_post_ra>
// kernel: tpu_custom_call.1
= control target key start
LH: loop header
LB: loop body
LE: loop exit
PB: predicated region body
PF: predicated region fallthrough
CT: control target
= control target key end

     0   :  { %vm535_vm0 = vcmask 1041408   ;;  %vm27_vm1 = vcmask 31744   ;;  %vm30_vm2 = vcmask 25600   ;;  %v14070_v2 = vmov 0.0   ;;  %s20945_s1 = inlined_call_operand.vmem [shape: bf16[9,4,4], index: 1, kind: input, shape index: {}]   ;;  %s20946_s0 = inlined_call_operand.vmem [shape: f32[2,16,16,4], index: 0, kind: input, shape index: {}]   ;;  %s20947_s2 = inlined_call_operand.vmem [shape: bf16[9,4,4], index: 2, kind: input, shape index: {}]   ;;  %s20948_s3 = inlined_call_operand.vmem [shape: f32[1,4], index: 3, kind: input, shape index: {}]   ;;  %s20949_s4 = inlined_call_operand.vmem [shape: f32[1,4], index: 4, kind: input, shape index: {}]   ;;  %s20950_s5 = inlined_call_operand.vmem [shape: f32[1,4], index: 5, kind: input, shape index: {}]   ;;  %s20951_s6 = inlined_call_operand.vmem [shape: f32[1,4], index: 6, kind: input, shape index: {}]   ;;  %s20952_s7 = inlined_call_operand.vmem [shape: f32[2,16,16,4], index: 7, kind: output, shape index: {}]  }
   0x1   :  { %v11390_v0 = vld [vmem:[%s20945_s1 + $0x2] sm:$0x3]  ;;  %v340_v1 = vld [vmem:[%s20945_s1] sm:$0x3]  ;;  %28 = vst.msk [vmem:[#allocation2] sm:$0xff] %vm27_vm1, %v14070_v2  ;;  %29 = vst.msk [vmem:[#allocation2 + $0x8] sm:$0xff] %vm27_vm1, %v14070_v2 }
   0x2   :  { %31 = vst.msk [vmem:[#allocation2 + $0x10] sm:$0x3] %vm30_vm2, %v14070_v2  ;;  %38 = vst.msk [vmem:[#allocation2 + $0x1a8] sm:$0x3] %vm30_vm2, %v14070_v2  ;;  %v115_v3 = vld [vmem:[%s20946_s0] sm:$0xff]  ;;  %vm42_vm3 = vcmask 24576   ;;  %14046 = vmatprep.subr.msk.bf16.mxu0 %vm535_vm0, %v11390_v0  ;;  %14047 = vmatprep.subr.msk.bf16.mxu1 %vm535_vm0, %v340_v1 }
   0x3   :  { %41 = vst.msk [vmem:[#allocation2 + $0x358] sm:$0x3] %vm30_vm2, %v14070_v2  ;;  %34 = vst.msk [vmem:[#allocation2 + $0x1c0] sm:$0x3] %vm30_vm2, %v14070_v2  ;;  %v14143_v4 = vsel %vm535_vm0, %v11390_v0, 0  ;;  %v14147_v5 = vsel %vm535_vm0, %v340_v1, 0 }
   0x4   :  { %32 = vst.msk [vmem:[#allocation2 + $0x1b0] sm:$0xff] %vm27_vm1, %v14070_v2  ;;  %33 = vst.msk [vmem:[#allocation2 + $0x1b8] sm:$0xff] %vm27_vm1, %v14070_v2  ;;  %v14152_v6 = vld [vmem:[%s20946_s0 + $0x8] sm:$0xff]  ;;  %v117_v7 = vld [vmem:[%s20946_s0 + $0x10] sm:$0xff]  ;;  %12859 = vmatpush3.bf16.msra.mxu0 %v14143_v4  ;;  %12925 = vmatpush3.bf16.msra.mxu1 %v14147_v5 }
   0x5   :  { %36 = vst.msk [vmem:[#allocation2 + $0x198] sm:$0xff] %vm27_vm1, %v14070_v2  ;;  %37 = vst.msk [vmem:[#allocation2 + $0x1a0] sm:$0xff] %vm27_vm1, %v14070_v2  ;;  %v118_v8 = vld [vmem:[%s20946_s0 + $0x18] sm:$0xff]  ;;  %v119_v9 = vld [vmem:[%s20946_s0 + $0x20] sm:$0xff] }
   0x6   :  { %39 = vst.msk [vmem:[#allocation2 + $0x348] sm:$0xff] %vm27_vm1, %v14070_v2  ;;  %40 = vst.msk [vmem:[#allocation2 + $0x350] sm:$0xff] %vm27_vm1, %v14070_v2  ;;  %v120_v10 = vld [vmem:[%s20946_s0 + $0x28] sm:$0xff]  ;;  %v121_v11 = vld [vmem:[%s20946_s0 + $0x30] sm:$0xff] }
   0x7   :  { %180 = vst.msk [vmem:[#allocation2 + $0x19] sm:$0xff] %vm27_vm1, %v115_v3  ;;  %181 = vst.msk [vmem:[#allocation2 + $0x21] sm:$0xff] %vm27_vm1, %v14152_v6  ;;  %v122_v12 = vld [vmem:[%s20946_s0 + $0x38] sm:$0xff]  ;;  %v123_v13 = vld [vmem:[%s20946_s0 + $0x40] sm:$0xff] }
   0x8   :  { %43 = vst.msk [vmem:[#allocation2] sm:$0x1] %vm42_vm3, %v14070_v2  ;;  %44 = vst.msk [vmem:[#allocation2 + $0x18] sm:$0x1] %vm42_vm3, %v14070_v2  ;;  %v124_v14 = vld [vmem:[%s20946_s0 + $0x48] sm:$0xff]  ;;  %v125_v15 = vld [vmem:[%s20946_s0 + $0x50] sm:$0xff] }
   0x9   :  { %45 = vst.msk [vmem:[#allocation2 + $0x30] sm:$0x1] %vm42_vm3, %v14070_v2  ;;  %46 = vst.msk [vmem:[#allocation2 + $0x48] sm:$0x1] %vm42_vm3, %v14070_v2  ;;  %v126_v16 = vld [vmem:[%s20946_s0 + $0x58] sm:$0xff]  ;;  %v127_v17 = vld [vmem:[%s20946_s0 + $0x60] sm:$0xff] }
   0xa   :  { %47 = vst.msk [vmem:[#allocation2 + $0x60] sm:$0x1] %vm42_vm3, %v14070_v2  ;;  %48 = vst.msk [vmem:[#allocation2 + $0x78] sm:$0x1] %vm42_vm3, %v14070_v2  ;;  %v128_v18 = vld [vmem:[%s20946_s0 + $0x68] sm:$0xff]  ;;  %v129_v19 = vld [vmem:[%s20946_s0 + $0x70] sm:$0xff] }
   0xb   :  { %49 = vst.msk [vmem:[#allocation2 + $0x90] sm:$0x1] %vm42_vm3, %v14070_v2  ;;  %50 = vst.msk [vmem:[#allocation2 + $0xa8] sm:$0x1] %vm42_vm3, %v14070_v2  ;;  %v130_v20 = vld [vmem:[%s20946_s0 + $0x78] sm:$0xff]  ;;  %v131_v21 = vld [vmem:[%s20946_s0 + $0x80] sm:$0xff] }
   0xc   :  { %51 = vst.msk [vmem:[#allocation2 + $0xc0] sm:$0x1] %vm42_vm3, %v14070_v2  ;;  %52 = vst.msk [vmem:[#allocation2 + $0xd8] sm:$0x1] %vm42_vm3, %v14070_v2  ;;  %v132_v22 = vld [vmem:[%s20946_s0 + $0x88] sm:$0xff]  ;;  %v133_v23 = vld [vmem:[%s20946_s0 + $0x90] sm:$0xff] }
   0xd   :  { %53 = vst.msk [vmem:[#allocation2 + $0xf0] sm:$0x1] %vm42_vm3, %v14070_v2  ;;  %54 = vst.msk [vmem:[#allocation2 + $0x108] sm:$0x1] %vm42_vm3, %v14070_v2  ;;  %v341_v24 = vld [vmem:[#allocation2 + $0x1] sm:$0xff]  ;;  %v342_v25 = vld [vmem:[#allocation2 + $0x9] sm:$0xff] }
   0xe   :  { %55 = vst.msk [vmem:[#allocation2 + $0x120] sm:$0x1] %vm42_vm3, %v14070_v2  ;;  %56 = vst.msk [vmem:[#allocation2 + $0x138] sm:$0x1] %vm42_vm3, %v14070_v2  ;;  %v245_v26 = vld [vmem:[#allocation2 + $0x8] sm:$0xff]  ;;  %v405_v27 = vpack.c.bf16 %v342_v25, %v341_v24  ;;  %v343_v28 = vld [vmem:[#allocation2 + $0x19] sm:$0xff] }
   0xf   :  { %57 = vst.msk [vmem:[#allocation2 + $0x150] sm:$0x1] %vm42_vm3, %v14070_v2  ;;  %58 = vst.msk [vmem:[#allocation2 + $0x168] sm:$0x1] %vm42_vm3, %v14070_v2  ;;  %v244_v29 = vld [vmem:[#allocation2] sm:$0xff]  ;;  %v246_v30 = vld [vmem:[#allocation2 + $0x18] sm:$0xff] }
  0x10   :  { %59 = vst.msk [vmem:[#allocation2 + $0x180] sm:$0x1] %vm42_vm3, %v14070_v2  ;;  %60 = vst.msk [vmem:[#allocation2 + $0x198] sm:$0x1] %vm42_vm3, %v14070_v2  ;;  %v344_v31 = vld [vmem:[#allocation2 + $0x21] sm:$0xff]  ;;  %v308_v32 = vpack.c.bf16 %v245_v26, %v244_v29  ;;  %12860 = vmatprep.mubr.msk.bf16.mxu0 %vm27_vm1, %v405_v27  ;;  %v134_v61 = vld [vmem:[%s20946_s0 + $0x98] sm:$0xff] }
  0x11   :  { %61 = vst.msk [vmem:[#allocation2 + $0x1b0] sm:$0x1] %vm42_vm3, %v14070_v2  ;;  %62 = vst.msk [vmem:[#allocation2 + $0x1c8] sm:$0x1] %vm42_vm3, %v14070_v2  ;;  %v247_v33 = vld [vmem:[#allocation2 + $0x20] sm:$0xff]  ;;  %v406_v35 = vpack.c.bf16 %v344_v31, %v343_v28  ;;  %v136_v0 = vld [vmem:[%s20946_s0 + $0xa8] sm:$0xff] }
  0x12   :  { %63 = vst.msk [vmem:[#allocation2 + $0x1e0] sm:$0x1] %vm42_vm3, %v14070_v2  ;;  %64 = vst.msk [vmem:[#allocation2 + $0x1f8] sm:$0x1] %vm42_vm3, %v14070_v2  ;;  %v14372_v36 = vpack.c.bf16 %v247_v33, %v246_v30  ;;  %12926 = vmatprep.mubr.msk.bf16.mxu1 %vm27_vm1, %v308_v32  ;;  %v135_v63 = vld [vmem:[%s20946_s0 + $0xa0] sm:$0xff]  ;;  %v137_v1 = vld [vmem:[%s20946_s0 + $0xb0] sm:$0xff] }
  0x13   :  { %65 = vst.msk [vmem:[#allocation2 + $0x210] sm:$0x1] %vm42_vm3, %v14070_v2  ;;  %66 = vst.msk [vmem:[#allocation2 + $0x228] sm:$0x1] %vm42_vm3, %v14070_v2  ;;  %12861 = vmatmul.mubr.msk.bf16.vlgmr.msra.gmra.mxu0 %vm27_vm1, %v406_v35  ;;  %v139_v3 = vld [vmem:[%s20946_s0 + $0xc0] sm:$0xff]  ;;  %v140_v4 = vld [vmem:[%s20946_s0 + $0xc8] sm:$0xff] }
  0x14   :  { %67 = vst.msk [vmem:[#allocation2 + $0x240] sm:$0x1] %vm42_vm3, %v14070_v2  ;;  %68 = vst.msk [vmem:[#allocation2 + $0x258] sm:$0x1] %vm42_vm3, %v14070_v2  ;;  %12927 = vmatmul.mubr.msk.bf16.vlgmr.msra.gmra.mxu1 %vm27_vm1, %v14372_v36  ;;  %v141_v5 = vld [vmem:[%s20946_s0 + $0xd0] sm:$0xff]  ;;  %v142_v6 = vld [vmem:[%s20946_s0 + $0xd8] sm:$0xff] }
  0x15   :  { %69 = vst.msk [vmem:[#allocation2 + $0x270] sm:$0x1] %vm42_vm3, %v14070_v2  ;;  %70 = vst.msk [vmem:[#allocation2 + $0x288] sm:$0x1] %vm42_vm3, %v14070_v2 }
  0x16   :  { %71 = vst.msk [vmem:[#allocation2 + $0x2a0] sm:$0x1] %vm42_vm3, %v14070_v2  ;;  %72 = vst.msk [vmem:[#allocation2 + $0x2b8] sm:$0x1] %vm42_vm3, %v14070_v2 }
  0x17   :  { %73 = vst.msk [vmem:[#allocation2 + $0x2d0] sm:$0x1] %vm42_vm3, %v14070_v2  ;;  %74 = vst.msk [vmem:[#allocation2 + $0x2e8] sm:$0x1] %vm42_vm3, %v14070_v2 }
  0x18   :  { %75 = vst.msk [vmem:[#allocation2 + $0x300] sm:$0x1] %vm42_vm3, %v14070_v2  ;;  %76 = vst.msk [vmem:[#allocation2 + $0x318] sm:$0x1] %vm42_vm3, %v14070_v2 }
  0x19   :  { %77 = vst.msk [vmem:[#allocation2 + $0x330] sm:$0x1] %vm42_vm3, %v14070_v2  ;;  %78 = vst.msk [vmem:[#allocation2 + $0x348] sm:$0x1] %vm42_vm3, %v14070_v2 }
  0x1a   :  { %79 = vst.msk [vmem:[#allocation2 + $0x11] sm:$0x1] %vm42_vm3, %v14070_v2  ;;  %80 = vst.msk [vmem:[#allocation2 + $0x29] sm:$0x1] %vm42_vm3, %v14070_v2 }
  0x1b   :  { %81 = vst.msk [vmem:[#allocation2 + $0x41] sm:$0x1] %vm42_vm3, %v14070_v2  ;;  %82 = vst.msk [vmem:[#allocation2 + $0x59] sm:$0x1] %vm42_vm3, %v14070_v2 }
  0x1c   :  { %83 = vst.msk [vmem:[#allocation2 + $0x71] sm:$0x1] %vm42_vm3, %v14070_v2  ;;  %84 = vst.msk [vmem:[#allocation2 + $0x89] sm:$0x1] %vm42_vm3, %v14070_v2 }
  0x1d   :  { %85 = vst.msk [vmem:[#allocation2 + $0xa1] sm:$0x1] %vm42_vm3, %v14070_v2  ;;  %86 = vst.msk [vmem:[#allocation2 + $0xb9] sm:$0x1] %vm42_vm3, %v14070_v2 }
  0x1e   :  { %87 = vst.msk [vmem:[#allocation2 + $0xd1] sm:$0x1] %vm42_vm3, %v14070_v2  ;;  %88 = vst.msk [vmem:[#allocation2 + $0xe9] sm:$0x1] %vm42_vm3, %v14070_v2 }
  0x1f   :  { %89 = vst.msk [vmem:[#allocation2 + $0x101] sm:$0x1] %vm42_vm3, %v14070_v2  ;;  %90 = vst.msk [vmem:[#allocation2 + $0x119] sm:$0x1] %vm42_vm3, %v14070_v2 }
  0x20   :  { %91 = vst.msk [vmem:[#allocation2 + $0x131] sm:$0x1] %vm42_vm3, %v14070_v2  ;;  %92 = vst.msk [vmem:[#allocation2 + $0x149] sm:$0x1] %vm42_vm3, %v14070_v2 }
  0x21   :  { %93 = vst.msk [vmem:[#allocation2 + $0x161] sm:$0x1] %vm42_vm3, %v14070_v2  ;;  %94 = vst.msk [vmem:[#allocation2 + $0x179] sm:$0x1] %vm42_vm3, %v14070_v2 }
  0x22   :  { %95 = vst.msk [vmem:[#allocation2 + $0x191] sm:$0x1] %vm42_vm3, %v14070_v2  ;;  %96 = vst.msk [vmem:[#allocation2 + $0x1a9] sm:$0x1] %vm42_vm3, %v14070_v2 }
  0x23   :  { %97 = vst.msk [vmem:[#allocation2 + $0x1c1] sm:$0x1] %vm42_vm3, %v14070_v2  ;;  %98 = vst.msk [vmem:[#allocation2 + $0x1d9] sm:$0x1] %vm42_vm3, %v14070_v2 }
  0x24   :  { %99 = vst.msk [vmem:[#allocation2 + $0x1f1] sm:$0x1] %vm42_vm3, %v14070_v2  ;;  %100 = vst.msk [vmem:[#allocation2 + $0x209] sm:$0x1] %vm42_vm3, %v14070_v2 }
  0x25   :  { %101 = vst.msk [vmem:[#allocation2 + $0x221] sm:$0x1] %vm42_vm3, %v14070_v2  ;;  %102 = vst.msk [vmem:[#allocation2 + $0x239] sm:$0x1] %vm42_vm3, %v14070_v2 }
  0x26   :  { %103 = vst.msk [vmem:[#allocation2 + $0x251] sm:$0x1] %vm42_vm3, %v14070_v2  ;;  %104 = vst.msk [vmem:[#allocation2 + $0x269] sm:$0x1] %vm42_vm3, %v14070_v2 }
  0x27   :  { %105 = vst.msk [vmem:[#allocation2 + $0x281] sm:$0x1] %vm42_vm3, %v14070_v2  ;;  %106 = vst.msk [vmem:[#allocation2 + $0x299] sm:$0x1] %vm42_vm3, %v14070_v2 }
  0x28   :  { %107 = vst.msk [vmem:[#allocation2 + $0x2b1] sm:$0x1] %vm42_vm3, %v14070_v2  ;;  %108 = vst.msk [vmem:[#allocation2 + $0x2c9] sm:$0x1] %vm42_vm3, %v14070_v2 }
  0x29   :  { %109 = vst.msk [vmem:[#allocation2 + $0x2e1] sm:$0x1] %vm42_vm3, %v14070_v2  ;;  %110 = vst.msk [vmem:[#allocation2 + $0x2f9] sm:$0x1] %vm42_vm3, %v14070_v2 }
  0x2a   :  { %111 = vst.msk [vmem:[#allocation2 + $0x311] sm:$0x1] %vm42_vm3, %v14070_v2  ;;  %112 = vst.msk [vmem:[#allocation2 + $0x329] sm:$0x1] %vm42_vm3, %v14070_v2 }
  0x2b   :  { %113 = vst.msk [vmem:[#allocation2 + $0x341] sm:$0x1] %vm42_vm3, %v14070_v2  ;;  %114 = vst.msk [vmem:[#allocation2 + $0x359] sm:$0x1] %vm42_vm3, %v14070_v2  ;;  %v138_v2 = vld [vmem:[%s20946_s0 + $0xb8] sm:$0xff] }
  0x2c   :  { %182 = vst.msk [vmem:[#allocation2 + $0x31] sm:$0xff] %vm27_vm1, %v117_v7  ;;  %183 = vst.msk [vmem:[#allocation2 + $0x39] sm:$0xff] %vm27_vm1, %v118_v8 }
  0x2d   :  { %184 = vst.msk [vmem:[#allocation2 + $0x49] sm:$0xff] %vm27_vm1, %v119_v9  ;;  %185 = vst.msk [vmem:[#allocation2 + $0x51] sm:$0xff] %vm27_vm1, %v120_v10  ;;  %v143_v9 = vld [vmem:[%s20946_s0 + $0xe0] sm:$0xff]  ;;  %v144_v10 = vld [vmem:[%s20946_s0 + $0xe8] sm:$0xff] }
  0x2e   :  { %186 = vst.msk [vmem:[#allocation2 + $0x61] sm:$0xff] %vm27_vm1, %v121_v11  ;;  %187 = vst.msk [vmem:[#allocation2 + $0x69] sm:$0xff] %vm27_vm1, %v122_v12 }
  0x2f   :  { %188 = vst.msk [vmem:[#allocation2 + $0x79] sm:$0xff] %vm27_vm1, %v123_v13  ;;  %189 = vst.msk [vmem:[#allocation2 + $0x81] sm:$0xff] %vm27_vm1, %v124_v14  ;;  %v11455_v13 = vld [vmem:[%s20945_s1 + $0x4] sm:$0x3] }
  0x30   :  { %190 = vst.msk [vmem:[#allocation2 + $0x91] sm:$0xff] %vm27_vm1, %v125_v15  ;;  %191 = vst.msk [vmem:[#allocation2 + $0x99] sm:$0xff] %vm27_vm1, %v126_v16  ;;  %v147_v14 = vld [vmem:[%s20946_s0 + $0x100] sm:$0xff]  ;;  %14048 = vmatprep.subr.msk.bf16.mxu0 %vm535_vm0, %v11455_v13  ;;  %v148_v15 = vld [vmem:[%s20946_s0 + $0x108] sm:$0xff]  ;;  %v1411_v16 = vsel %vm535_vm0, %v11455_v13, 0 }
  0x31   :  { %192 = vst.msk [vmem:[#allocation2 + $0xa9] sm:$0xff] %vm27_vm1, %v127_v17  ;;  %193 = vst.msk [vmem:[#allocation2 + $0xb1] sm:$0xff] %vm27_vm1, %v128_v18  ;;  %12991 = vmatpush3.bf16.msra.mxu0 %v1411_v16  ;;  %v149_v17 = vld [vmem:[%s20946_s0 + $0x110] sm:$0xff]  ;;  %v150_v18 = vld [vmem:[%s20946_s0 + $0x118] sm:$0xff] }
  0x32   :  { %194 = vst.msk [vmem:[#allocation2 + $0xc1] sm:$0xff] %vm27_vm1, %v129_v19  ;;  %195 = vst.msk [vmem:[#allocation2 + $0xc9] sm:$0xff] %vm27_vm1, %v130_v20  ;;  %v151_v19 = vld [vmem:[%s20946_s0 + $0x120] sm:$0xff]  ;;  %v174_v16 = vld [vmem:[%s20946_s0 + $0x1d8] sm:$0xff] }
  0x33   :  { %196 = vst.msk [vmem:[#allocation2 + $0xd9] sm:$0xff] %vm27_vm1, %v131_v21  ;;  %197 = vst.msk [vmem:[#allocation2 + $0xe1] sm:$0xff] %vm27_vm1, %v132_v22  ;;  %v345_v34 = vld [vmem:[#allocation2 + $0x31] sm:$0xff]  ;;  %v346_v37 = vld [vmem:[#allocation2 + $0x39] sm:$0xff] }
  0x34   :  { %198 = vst.msk [vmem:[#allocation2 + $0xf1] sm:$0xff] %vm27_vm1, %v133_v23  ;;  %v407_v38 = vpack.c.bf16 %v346_v37, %v345_v34  ;;  %v248_v39 = vld [vmem:[#allocation2 + $0x30] sm:$0xff]  ;;  %v249_v40 = vld [vmem:[#allocation2 + $0x38] sm:$0xff]  ;;  %v250_v44 = vld [vmem:[#allocation2 + $0x48] sm:$0xff] }
  0x35   :  { %v347_v41 = vld [vmem:[#allocation2 + $0x49] sm:$0xff]  ;;  %v348_v42 = vld [vmem:[#allocation2 + $0x51] sm:$0xff]  ;;  %v14378_v43 = vpack.c.bf16 %v249_v40, %v248_v39  ;;  %v349_v46 = vld [vmem:[#allocation2 + $0x61] sm:$0xff]  ;;  %199 = vst.msk [vmem:[#allocation2 + $0xf9] sm:$0xff] %vm27_vm1, %v134_v61 }
  0x36   :  { %12864 = vmatprep.mubr.msk.bf16.mxu0 %vm27_vm1, %v407_v38  ;;  %v251_v45 = vld [vmem:[#allocation2 + $0x50] sm:$0xff]  ;;  %v252_v48 = vld [vmem:[#allocation2 + $0x60] sm:$0xff]  ;;  %v253_v49 = vld [vmem:[#allocation2 + $0x68] sm:$0xff]  ;;  %v408_v50 = vpack.c.bf16 %v348_v42, %v347_v41  ;;  %200 = vst.msk [vmem:[#allocation2 + $0x109] sm:$0xff] %vm27_vm1, %v135_v63 }
  0x37   :  { %12930 = vmatprep.mubr.msk.bf16.mxu1 %vm27_vm1, %v14378_v43  ;;  %v350_v47 = vld [vmem:[#allocation2 + $0x69] sm:$0xff]  ;;  %v14383_v51 = vpack.c.bf16 %v251_v45, %v250_v44  ;;  %v14385_v53 = vpack.c.bf16 %v253_v49, %v252_v48  ;;  %v351_v54 = vld [vmem:[#allocation2 + $0x79] sm:$0xff]  ;;  %v352_v55 = vld [vmem:[#allocation2 + $0x81] sm:$0xff]  ;;  %201 = vst.msk [vmem:[#allocation2 + $0x111] sm:$0xff] %vm27_vm1, %v136_v0 }
  0x38   :  { %v409_v52 = vpack.c.bf16 %v350_v47, %v349_v46  ;;  %v254_v56 = vld [vmem:[#allocation2 + $0x78] sm:$0xff]  ;;  %v255_v57 = vld [vmem:[#allocation2 + $0x80] sm:$0xff]  ;;  %12865 = vmatmul.mubr.msk.bf16.gmra.mxu0 %vm27_vm1, %v408_v50  ;;  %v256_v60 = vld [vmem:[#allocation2 + $0x90] sm:$0xff]  ;;  %202 = vst.msk [vmem:[#allocation2 + $0x121] sm:$0xff] %vm27_vm1, %v137_v1  ;;  %v410_v7 = vpack.c.bf16 %v352_v55, %v351_v54 }
  0x39   :  { %12931 = vmatmul.mubr.msk.bf16.gmra.mxu1 %vm27_vm1, %v14383_v51  ;;  %v353_v58 = vld [vmem:[#allocation2 + $0x91] sm:$0xff]  ;;  %v354_v59 = vld [vmem:[#allocation2 + $0x99] sm:$0xff]  ;;  %203 = vst.msk [vmem:[#allocation2 + $0x129] sm:$0xff] %vm27_vm1, %v138_v2  ;;  %204 = vst.msk [vmem:[#allocation2 + $0x139] sm:$0xff] %vm27_vm1, %v139_v3  ;;  %v14426_v8 = vpack.c.bf16 %v255_v57, %v254_v56 }
  0x3a   :  { %12868 = vmatprep.mubr.msk.bf16.mxu0 %vm27_vm1, %v409_v52  ;;  %12934 = vmatprep.mubr.msk.bf16.mxu1 %vm27_vm1, %v14385_v53  ;;  %v257_v62 = vld [vmem:[#allocation2 + $0x98] sm:$0xff]  ;;  %205 = vst.msk [vmem:[#allocation2 + $0x141] sm:$0xff] %vm27_vm1, %v140_v4  ;;  %206 = vst.msk [vmem:[#allocation2 + $0x151] sm:$0xff] %vm27_vm1, %v141_v5  ;;  %v411_v11 = vpack.c.bf16 %v354_v59, %v353_v58  ;;  %v355_v20 = vld [vmem:[#allocation2 + $0xa9] sm:$0xff] }
  0x3b   :  { %207 = vst.msk [vmem:[#allocation2 + $0x159] sm:$0xff] %vm27_vm1, %v142_v6  ;;  %v14437_v12 = vpack.c.bf16 %v257_v62, %v256_v60  ;;  %208 = vst.msk [vmem:[#allocation2 + $0x169] sm:$0xff] %vm27_vm1, %v143_v9  ;;  %v356_v21 = vld [vmem:[#allocation2 + $0xb1] sm:$0xff]  ;;  %v152_v22 = vld [vmem:[%s20946_s0 + $0x128] sm:$0xff] }
  0x3c   :  { %209 = vst.msk [vmem:[#allocation2 + $0x171] sm:$0xff] %vm27_vm1, %v144_v10  ;;  %212 = vst.msk [vmem:[#allocation2 + $0x1c9] sm:$0xff] %vm27_vm1, %v147_v14  ;;  %v258_v23 = vld [vmem:[#allocation2 + $0xa8] sm:$0xff]  ;;  %v259_v24 = vld [vmem:[#allocation2 + $0xb0] sm:$0xff]  ;;  %v412_v29 = vpack.c.bf16 %v356_v21, %v355_v20 }
  0x3d   :  { %213 = vst.msk [vmem:[#allocation2 + $0x1d1] sm:$0xff] %vm27_vm1, %v148_v15  ;;  %214 = vst.msk [vmem:[#allocation2 + $0x1e1] sm:$0xff] %vm27_vm1, %v149_v17  ;;  %v357_v25 = vld [vmem:[#allocation2 + $0xc1] sm:$0xff]  ;;  %v358_v26 = vld [vmem:[#allocation2 + $0xc9] sm:$0xff]  ;;  %v14476_v30 = vpack.c.bf16 %v259_v24, %v258_v23 }
  0x3e   :  { %215 = vst.msk [vmem:[#allocation2 + $0x1e9] sm:$0xff] %vm27_vm1, %v150_v18  ;;  %216 = vst.msk [vmem:[#allocation2 + $0x1f9] sm:$0xff] %vm27_vm1, %v151_v19  ;;  %v260_v27 = vld [vmem:[#allocation2 + $0xc0] sm:$0xff]  ;;  %v261_v28 = vld [vmem:[#allocation2 + $0xc8] sm:$0xff]  ;;  %v413_v31 = vpack.c.bf16 %v358_v26, %v357_v25 }
  0x3f   :  { %217 = vst.msk [vmem:[#allocation2 + $0x201] sm:$0xff] %vm27_vm1, %v152_v22  ;;  %v14478_v32 = vpack.c.bf16 %v261_v28, %v260_v27  ;;  %v359_v33 = vld [vmem:[#allocation2 + $0xd9] sm:$0xff]  ;;  %v360_v34 = vld [vmem:[#allocation2 + $0xe1] sm:$0xff]  ;;  %v361_v38 = vld [vmem:[#allocation2 + $0xf1] sm:$0xff] }
  0x40   :  { %12869 = vmatmul.mubr.msk.bf16.gmra.mxu0 %vm27_vm1, %v410_v7  ;;  %v262_v35 = vld [vmem:[#allocation2 + $0xd8] sm:$0xff]  ;;  %v263_v37 = vld [vmem:[#allocation2 + $0xe0] sm:$0xff]  ;;  %v264_v40 = vld [vmem:[#allocation2 + $0xf0] sm:$0xff]  ;;  %v414_v44 = vpack.c.bf16 %v360_v34, %v359_v33  ;;  %239 = vst.msk [vmem:[#allocation2 + $0x309] sm:$0xff] %vm27_vm1, %v174_v16 }
  0x41   :  { %12935 = vmatmul.mubr.msk.bf16.gmra.mxu1 %vm27_vm1, %v14426_v8  ;;  %12872 = vmatprep.mubr.msk.bf16.mxu0 %vm27_vm1, %v411_v11  ;;  %v362_v39 = vld [vmem:[#allocation2 + $0xf9] sm:$0xff]  ;;  %v153_v42 = vld [vmem:[%s20946_s0 + $0x130] sm:$0xff]  ;;  %v14489_v45 = vpack.c.bf16 %v263_v37, %v262_v35  ;;  %v156_v48 = vld [vmem:[%s20946_s0 + $0x148] sm:$0xff] }
  0x42   :  { %12938 = vmatprep.mubr.msk.bf16.mxu1 %vm27_vm1, %v14437_v12  ;;  %v265_v41 = vld [vmem:[#allocation2 + $0xf8] sm:$0xff]  ;;  %218 = vst.msk [vmem:[#allocation2 + $0x211] sm:$0xff] %vm27_vm1, %v153_v42  ;;  %v155_v47 = vld [vmem:[%s20946_s0 + $0x140] sm:$0xff]  ;;  %v415_v49 = vpack.c.bf16 %v362_v39, %v361_v38  ;;  %221 = vst.msk [vmem:[#allocation2 + $0x231] sm:$0xff] %vm27_vm1, %v156_v48 }
  0x43   :  { %v154_v46 = vld [vmem:[%s20946_s0 + $0x138] sm:$0xff]  ;;  %v14501_v50 = vpack.c.bf16 %v265_v41, %v264_v40  ;;  %220 = vst.msk [vmem:[#allocation2 + $0x229] sm:$0xff] %vm27_vm1, %v155_v47  ;;  %v157_v52 = vld [vmem:[%s20946_s0 + $0x150] sm:$0xff]  ;;  %v159_v55 = vld [vmem:[%s20946_s0 + $0x160] sm:$0xff] }
  0x44   :  { %219 = vst.msk [vmem:[#allocation2 + $0x219] sm:$0xff] %vm27_vm1, %v154_v46  ;;  %v158_v54 = vld [vmem:[%s20946_s0 + $0x158] sm:$0xff]  ;;  %222 = vst.msk [vmem:[#allocation2 + $0x241] sm:$0xff] %vm27_vm1, %v157_v52  ;;  %v160_v56 = vld [vmem:[%s20946_s0 + $0x168] sm:$0xff] }
  0x45   :  { %223 = vst.msk [vmem:[#allocation2 + $0x249] sm:$0xff] %vm27_vm1, %v158_v54  ;;  %224 = vst.msk [vmem:[#allocation2 + $0x259] sm:$0xff] %vm27_vm1, %v159_v55  ;;  %v161_v57 = vld [vmem:[%s20946_s0 + $0x170] sm:$0xff]  ;;  %v162_v58 = vld [vmem:[%s20946_s0 + $0x178] sm:$0xff] }
  0x46   :  { %v363_v59 = vld [vmem:[#allocation2 + $0x109] sm:$0xff]  ;;  %v364_v60 = vld [vmem:[#allocation2 + $0x111] sm:$0xff]  ;;  %225 = vst.msk [vmem:[#allocation2 + $0x261] sm:$0xff] %vm27_vm1, %v160_v56  ;;  %226 = vst.msk [vmem:[#allocation2 + $0x271] sm:$0xff] %vm27_vm1, %v161_v57 }
  0x47   :  { %v266_v61 = vld [vmem:[#allocation2 + $0x108] sm:$0xff]  ;;  %v267_v62 = vld [vmem:[#allocation2 + $0x110] sm:$0xff]  ;;  %227 = vst.msk [vmem:[#allocation2 + $0x279] sm:$0xff] %vm27_vm1, %v162_v58  ;;  %v163_v63 = vld [vmem:[%s20946_s0 + $0x180] sm:$0xff]  ;;  %v416_v18 = vpack.c.bf16 %v364_v60, %v363_v59 }
  0x48   :  { %12873 = vmatmul.mubr.msk.bf16.gmra.mxu0 %vm27_vm1, %v412_v29  ;;  %v164_v0 = vld [vmem:[%s20946_s0 + $0x188] sm:$0xff]  ;;  %v165_v1 = vld [vmem:[%s20946_s0 + $0x190] sm:$0xff]  ;;  %v268_v4 = vld [vmem:[#allocation2 + $0x120] sm:$0xff]  ;;  %228 = vst.msk [vmem:[#allocation2 + $0x289] sm:$0xff] %vm27_vm1, %v163_v63  ;;  %v14587_v19 = vpack.c.bf16 %v267_v62, %v266_v61 }
  0x49   :  { %12939 = vmatmul.mubr.msk.bf16.gmra.mxu1 %vm27_vm1, %v14476_v30  ;;  %12876 = vmatprep.mubr.msk.bf16.mxu0 %vm27_vm1, %v413_v31  ;;  %v365_v2 = vld [vmem:[#allocation2 + $0x121] sm:$0xff]  ;;  %v366_v3 = vld [vmem:[#allocation2 + $0x129] sm:$0xff]  ;;  %229 = vst.msk [vmem:[#allocation2 + $0x291] sm:$0xff] %vm27_vm1, %v164_v0  ;;  %v166_v6 = vld [vmem:[%s20946_s0 + $0x198] sm:$0xff] }
  0x4a   :  { %12942 = vmatprep.mubr.msk.bf16.mxu1 %vm27_vm1, %v14478_v32  ;;  %v269_v5 = vld [vmem:[#allocation2 + $0x128] sm:$0xff]  ;;  %230 = vst.msk [vmem:[#allocation2 + $0x2a1] sm:$0xff] %vm27_vm1, %v165_v1  ;;  %v167_v7 = vld [vmem:[%s20946_s0 + $0x1a0] sm:$0xff]  ;;  %231 = vst.msk [vmem:[#allocation2 + $0x2a9] sm:$0xff] %vm27_vm1, %v166_v6  ;;  %v417_v20 = vpack.c.bf16 %v366_v3, %v365_v2 }
  0x4b   :  { %v168_v9 = vld [vmem:[%s20946_s0 + $0x1a8] sm:$0xff]  ;;  %232 = vst.msk [vmem:[#allocation2 + $0x2b9] sm:$0xff] %vm27_vm1, %v167_v7  ;;  %v169_v10 = vld [vmem:[%s20946_s0 + $0x1b0] sm:$0xff]  ;;  %v170_v11 = vld [vmem:[%s20946_s0 + $0x1b8] sm:$0xff]  ;;  %v14590_v21 = vpack.c.bf16 %v269_v5, %v268_v4 }
  0x4c   :  { %233 = vst.msk [vmem:[#allocation2 + $0x2c1] sm:$0xff] %vm27_vm1, %v168_v9  ;;  %v171_v13 = vld [vmem:[%s20946_s0 + $0x1c0] sm:$0xff]  ;;  %234 = vst.msk [vmem:[#allocation2 + $0x2d1] sm:$0xff] %vm27_vm1, %v169_v10  ;;  %v172_v14 = vld [vmem:[%s20946_s0 + $0x1c8] sm:$0xff] }
  0x4d   :  { %235 = vst.msk [vmem:[#allocation2 + $0x2d9] sm:$0xff] %vm27_vm1, %v170_v11  ;;  %236 = vst.msk [vmem:[#allocation2 + $0x2e9] sm:$0xff] %vm27_vm1, %v171_v13  ;;  %v173_v15 = vld [vmem:[%s20946_s0 + $0x1d0] sm:$0xff]  ;;  %v175_v17 = vld [vmem:[%s20946_s0 + $0x1e0] sm:$0xff] }
  0x4e   :  { %237 = vst.msk [vmem:[#allocation2 + $0x2f1] sm:$0xff] %vm27_vm1, %v172_v14  ;;  %238 = vst.msk [vmem:[#allocation2 + $0x301] sm:$0xff] %vm27_vm1, %v173_v15  ;;  %v367_v22 = vld [vmem:[#allocation2 + $0x139] sm:$0xff]  ;;  %v368_v23 = vld [vmem:[#allocation2 + $0x141] sm:$0xff] }
  0x4f   :  { %240 = vst.msk [vmem:[#allocation2 + $0x319] sm:$0xff] %vm27_vm1, %v175_v17  ;;  %v270_v24 = vld [vmem:[#allocation2 + $0x138] sm:$0xff]  ;;  %v271_v25 = vld [vmem:[#allocation2 + $0x140] sm:$0xff]  ;;  %v272_v28 = vld [vmem:[#allocation2 + $0x150] sm:$0xff]  ;;  %v418_v31 = vpack.c.bf16 %v368_v23, %v367_v22 }
  0x50   :  { %12877 = vmatmul.mubr.msk.bf16.gmra.mxu0 %vm27_vm1, %v414_v44  ;;  %v369_v26 = vld [vmem:[#allocation2 + $0x151] sm:$0xff]  ;;  %v370_v27 = vld [vmem:[#allocation2 + $0x159] sm:$0xff]  ;;  %v14598_v33 = vpack.c.bf16 %v271_v25, %v270_v24  ;;  %v371_v37 = vld [vmem:[#allocation2 + $0x169] sm:$0xff] }
  0x51   :  { %12943 = vmatmul.mubr.msk.bf16.gmra.mxu1 %vm27_vm1, %v14489_v45  ;;  %12880 = vmatprep.mubr.msk.bf16.mxu0 %vm27_vm1, %v415_v49  ;;  %v273_v29 = vld [vmem:[#allocation2 + $0x158] sm:$0xff]  ;;  %v419_v34 = vpack.c.bf16 %v370_v27, %v369_v26  ;;  %v274_v40 = vld [vmem:[#allocation2 + $0x168] sm:$0xff]  ;;  %v275_v41 = vld [vmem:[#allocation2 + $0x170] sm:$0xff] }
  0x52   :  { %12946 = vmatprep.mubr.msk.bf16.mxu1 %vm27_vm1, %v14501_v50  ;;  %v14600_v35 = vpack.c.bf16 %v273_v29, %v272_v28  ;;  %v372_v38 = vld [vmem:[#allocation2 + $0x171] sm:$0xff]  ;;  %v176_v42 = vld [vmem:[%s20946_s0 + $0x1e8] sm:$0xff]  ;;  %v374_v44 = vld [vmem:[#allocation2 + $0x1b9] sm:$0xff]  ;;  %v14615_v52 = vpack.c.bf16 %v275_v41, %v274_v40 }
  0x53   :  { %v373_v39 = vld [vmem:[#allocation2 + $0x1b1] sm:$0xff]  ;;  %241 = vst.msk [vmem:[#allocation2 + $0x321] sm:$0xff] %vm27_vm1, %v176_v42  ;;  %v11488_v48 = vld [vmem:[%s20945_s1 + $0x6] sm:$0x3]  ;;  %v420_v49 = vpack.c.bf16 %v372_v38, %v371_v37  ;;  %v375_v57 = vld [vmem:[#allocation2 + $0x1c9] sm:$0xff] }
  0x54   :  { %v276_v46 = vld [vmem:[#allocation2 + $0x1b0] sm:$0xff]  ;;  %v277_v47 = vld [vmem:[#allocation2 + $0x1b8] sm:$0xff]  ;;  %14049 = vmatprep.subr.msk.bf16.mxu1 %vm535_vm0, %v11488_v48  ;;  %v1961_v54 = vsel %vm535_vm0, %v11488_v48, 0  ;;  %v421_v55 = vpack.c.bf16 %v374_v44, %v373_v39  ;;  %v278_v59 = vld [vmem:[#allocation2 + $0x1c8] sm:$0xff] }
  0x55   :  { %v324_v56 = vpack.c.bf16 %v277_v47, %v276_v46  ;;  %13057 = vmatpush3.bf16.msra.mxu1 %v1961_v54  ;;  %v376_v58 = vld [vmem:[#allocation2 + $0x1d1] sm:$0xff]  ;;  %v377_v61 = vld [vmem:[#allocation2 + $0x1e1] sm:$0xff]  ;;  %v378_v62 = vld [vmem:[#allocation2 + $0x1e9] sm:$0xff] }
  0x56   :  { %v279_v60 = vld [vmem:[#allocation2 + $0x1d0] sm:$0xff]  ;;  %v280_v63 = vld [vmem:[#allocation2 + $0x1e0] sm:$0xff]  ;;  %v281_v0 = vld [vmem:[#allocation2 + $0x1e8] sm:$0xff]  ;;  %v422_v1 = vpack.c.bf16 %v376_v58, %v375_v57  ;;  %v423_v3 = vpack.c.bf16 %v378_v62, %v377_v61 }
  0x57   :  { %v14624_v2 = vpack.c.bf16 %v279_v60, %v278_v59  ;;  %v14626_v4 = vpack.c.bf16 %v281_v0, %v280_v63  ;;  %v145_v5 = vld [vmem:[%s20946_s0 + $0xf0] sm:$0xff]  ;;  %v146_v6 = vld [vmem:[%s20946_s0 + $0xf8] sm:$0xff]  ;;  %v380_v9 = vld [vmem:[#allocation2 + $0x201] sm:$0xff] }
  0x58   :  { %12881 = vmatmul.mubr.msk.bf16.gmra.mxu0 %vm27_vm1, %v416_v18  ;;  %210 = vst.msk [vmem:[#allocation2 + $0x181] sm:$0xff] %vm27_vm1, %v145_v5  ;;  %v379_v7 = vld [vmem:[#allocation2 + $0x1f9] sm:$0xff]  ;;  %211 = vst.msk [vmem:[#allocation2 + $0x189] sm:$0xff] %vm27_vm1, %v146_v6  ;;  %v14642_v10 = vld [vmem:[%s20945_s1 + $0x8] sm:$0x3] }
  0x59   :  { %12947 = vmatmul.mubr.msk.bf16.gmra.mxu1 %vm27_vm1, %v14587_v19  ;;  %12884 = vmatprep.mubr.msk.bf16.mxu0 %vm27_vm1, %v417_v20  ;;  %v282_v11 = vld [vmem:[#allocation2 + $0x1f8] sm:$0xff]  ;;  %v283_v13 = vld [vmem:[#allocation2 + $0x200] sm:$0xff]  ;;  %v284_v16 = vld [vmem:[#allocation2 + $0x210] sm:$0xff]  ;;  %v424_v18 = vpack.c.bf16 %v380_v9, %v379_v7 }
  0x5a   :  { %12950 = vmatprep.mubr.msk.bf16.mxu1 %vm27_vm1, %v14590_v21  ;;  %v381_v14 = vld [vmem:[#allocation2 + $0x211] sm:$0xff]  ;;  %v382_v15 = vld [vmem:[#allocation2 + $0x219] sm:$0xff]  ;;  %14050 = vmatprep.subr.msk.bf16.mxu0 %vm535_vm0, %v14642_v10  ;;  %v14649_v20 = vpack.c.bf16 %v283_v13, %v282_v11  ;;  %v383_v24 = vld [vmem:[#allocation2 + $0x229] sm:$0xff] }
  0x5b   :  { %v285_v17 = vld [vmem:[#allocation2 + $0x218] sm:$0xff]  ;;  %v425_v22 = vpack.c.bf16 %v382_v15, %v381_v14  ;;  %v286_v26 = vld [vmem:[#allocation2 + $0x228] sm:$0xff]  ;;  %v287_v27 = vld [vmem:[#allocation2 + $0x230] sm:$0xff] }
  0x5c   :  { %v14651_v23 = vpack.c.bf16 %v285_v17, %v284_v16  ;;  %v384_v25 = vld [vmem:[#allocation2 + $0x231] sm:$0xff]  ;;  %v385_v28 = vld [vmem:[#allocation2 + $0x241] sm:$0xff]  ;;  %v386_v29 = vld [vmem:[#allocation2 + $0x249] sm:$0xff]  ;;  %v14659_v38 = vpack.c.bf16 %v287_v27, %v286_v26 }
  0x5d   :  { %v426_v37 = vpack.c.bf16 %v384_v25, %v383_v24  ;;  %v427_v39 = vpack.c.bf16 %v386_v29, %v385_v28  ;;  %v387_v41 = vld [vmem:[#allocation2 + $0x259] sm:$0xff]  ;;  %v388_v42 = vld [vmem:[#allocation2 + $0x261] sm:$0xff]  ;;  %v389_v47 = vld [vmem:[#allocation2 + $0x271] sm:$0xff] }
  0x5e   :  { %v290_v44 = vld [vmem:[#allocation2 + $0x258] sm:$0xff]  ;;  %v291_v46 = vld [vmem:[#allocation2 + $0x260] sm:$0xff]  ;;  %v391_v59 = vld [vmem:[#allocation2 + $0x289] sm:$0xff] }
  0x5f   :  { %v390_v48 = vld [vmem:[#allocation2 + $0x279] sm:$0xff]  ;;  %v392_v60 = vld [vmem:[#allocation2 + $0x291] sm:$0xff]  ;;  %v294_v61 = vld [vmem:[#allocation2 + $0x288] sm:$0xff] }
  0x60   :  { %12885 = vmatmul.mubr.msk.bf16.gmra.mxu0 %vm27_vm1, %v418_v31  ;;  %v288_v31 = vld [vmem:[#allocation2 + $0x240] sm:$0xff]  ;;  %v293_v54 = vld [vmem:[#allocation2 + $0x278] sm:$0xff]  ;;  %v429_v57 = vpack.c.bf16 %v390_v48, %v389_v47  ;;  %v295_v62 = vld [vmem:[#allocation2 + $0x290] sm:$0xff]  ;;  %v430_v5 = vpack.c.bf16 %v392_v60, %v391_v59 }
  0x61   :  { %12951 = vmatmul.mubr.msk.bf16.gmra.mxu1 %vm27_vm1, %v14598_v33  ;;  %12888 = vmatprep.mubr.msk.bf16.mxu0 %vm27_vm1, %v419_v34  ;;  %v289_v34 = vld [vmem:[#allocation2 + $0x248] sm:$0xff]  ;;  %v14679_v6 = vpack.c.bf16 %v295_v62, %v294_v61  ;;  %v395_v11 = vld [vmem:[#allocation2 + $0x2b9] sm:$0xff]  ;;  %v397_v16 = vld [vmem:[#allocation2 + $0x2d1] sm:$0xff] }
  0x62   :  { %12954 = vmatprep.mubr.msk.bf16.mxu1 %vm27_vm1, %v14600_v35  ;;  %v14661_v40 = vpack.c.bf16 %v289_v34, %v288_v31  ;;  %v393_v63 = vld [vmem:[#allocation2 + $0x2a1] sm:$0xff]  ;;  %v394_v0 = vld [vmem:[#allocation2 + $0x2a9] sm:$0xff]  ;;  %v298_v14 = vld [vmem:[#allocation2 + $0x2b8] sm:$0xff] }
  0x63   :  { %v431_v7 = vpack.c.bf16 %v394_v0, %v393_v63  ;;  %v396_v13 = vld [vmem:[#allocation2 + $0x2c1] sm:$0xff]  ;;  %v398_v17 = vld [vmem:[#allocation2 + $0x2d9] sm:$0xff]  ;;  %v399_v28 = vld [vmem:[#allocation2 + $0x2e9] sm:$0xff] }
  0x64   :  { %v299_v15 = vld [vmem:[#allocation2 + $0x2c0] sm:$0xff]  ;;  %v432_v24 = vpack.c.bf16 %v396_v13, %v395_v11  ;;  %v433_v26 = vpack.c.bf16 %v398_v17, %v397_v16  ;;  %v400_v29 = vld [vmem:[#allocation2 + $0x2f1] sm:$0xff]  ;;  %v302_v31 = vld [vmem:[#allocation2 + $0x2e8] sm:$0xff]  ;;  %v2511_v16 = vsel %vm535_vm0, %v14642_v10, 0 }
  0x65   :  { %v14689_v25 = vpack.c.bf16 %v299_v15, %v298_v14  ;;  %v303_v34 = vld [vmem:[#allocation2 + $0x2f0] sm:$0xff]  ;;  %v306_v59 = vld [vmem:[#allocation2 + $0x318] sm:$0xff]  ;;  %v307_v60 = vld [vmem:[#allocation2 + $0x320] sm:$0xff] }
  0x66   :  { %v1216_v61 = vld [vmem:[#allocation2 + $0x2] sm:$0xff]  ;;  %v1217_v62 = vld [vmem:[#allocation2 + $0xa] sm:$0xff]  ;;  %v14717_v0 = vpack.c.bf16 %v307_v60, %v306_v59  ;;  %v1221_v11 = vld [vmem:[#allocation2 + $0x3a] sm:$0xff] }
  0x67   :  { %v11554_v15 = vld [vmem:[%s20945_s1 + $0xa] sm:$0x3] }
  0x68   :  { %12889 = vmatmul.mubr.msk.bf16.gmra.mxu0 %vm27_vm1, %v420_v49  ;;  %v292_v49 = vld [vmem:[#allocation2 + $0x270] sm:$0xff]  ;;  %14051 = vmatprep.subr.msk.bf16.mxu1 %vm535_vm0, %v11554_v15  ;;  %v3061_v17 = vsel %vm535_vm0, %v11554_v15, 0 }
  0x69   :  { %12955 = vmatmul.mubr.msk.bf16.gmra.mxu1 %vm27_vm1, %v14615_v52  ;;  %12892 = vmatprep.mubr.msk.bf16.mxu0 %vm27_vm1, %v421_v55  ;;  %v428_v55 = vpack.c.bf16 %v388_v42, %v387_v41  ;;  %v14671_v58 = vpack.c.bf16 %v293_v54, %v292_v49  ;;  %v304_v41 = vld [vmem:[#allocation2 + $0x300] sm:$0xff]  ;;  %v305_v42 = vld [vmem:[#allocation2 + $0x308] sm:$0xff]  ;;  %v177_v49 = vld [vmem:[%s20946_s0 + $0x1f0] sm:$0xff] }
  0x6a   :  { %12958 = vmatprep.mubr.msk.bf16.mxu1 %vm27_vm1, %v324_v56  ;;  %v14669_v56 = vpack.c.bf16 %v291_v46, %v290_v44  ;;  %v434_v44 = vpack.c.bf16 %v400_v29, %v399_v28  ;;  %v14699_v46 = vpack.c.bf16 %v303_v34, %v302_v31  ;;  %v14701_v48 = vpack.c.bf16 %v305_v42, %v304_v41  ;;  %v178_v54 = vld [vmem:[%s20946_s0 + $0x1f8] sm:$0xff]  ;;  %v1227_v28 = vld [vmem:[#allocation2 + $0x82] sm:$0xff] }
  0x6b   :  { %242 = vst.msk [vmem:[#allocation2 + $0x331] sm:$0xff] %vm27_vm1, %v177_v49  ;;  %243 = vst.msk [vmem:[#allocation2 + $0x339] sm:$0xff] %vm27_vm1, %v178_v54  ;;  %v1229_v29 = vld [vmem:[#allocation2 + $0x9a] sm:$0xff] }
  0x70   :  { %12893 = vmatmul.mubr.msk.bf16.gmra.mxu0 %vm27_vm1, %v422_v1  ;;  %v296_v1 = vld [vmem:[#allocation2 + $0x2a0] sm:$0xff] }
  0x71   :  { %12959 = vmatmul.mubr.msk.bf16.gmra.mxu1 %vm27_vm1, %v14624_v2  ;;  %12896 = vmatprep.mubr.msk.bf16.mxu0 %vm27_vm1, %v423_v3  ;;  %v297_v3 = vld [vmem:[#allocation2 + $0x2a8] sm:$0xff] }
  0x72   :  { %12962 = vmatprep.mubr.msk.bf16.mxu1 %vm27_vm1, %v14626_v4  ;;  %v14681_v9 = vpack.c.bf16 %v297_v3, %v296_v1  ;;  %v1280_v1 = vpack.c.bf16 %v1217_v62, %v1216_v61  ;;  %v1218_v3 = vld [vmem:[#allocation2 + $0x1a] sm:$0xff]  ;;  %v1243_v61 = vld [vmem:[#allocation2 + $0x142] sm:$0xff] }
  0x73   :  { %v1245_v62 = vld [vmem:[#allocation2 + $0x15a] sm:$0xff] }
  0x78   :  { %12897 = vmatmul.mubr.msk.bf16.gmra.mxu0 %vm27_vm1, %v424_v18  ;;  %v300_v18 = vld [vmem:[#allocation2 + $0x2d0] sm:$0xff] }
  0x79   :  { %12963 = vmatmul.mubr.msk.bf16.gmra.mxu1 %vm27_vm1, %v14649_v20  ;;  %12900 = vmatprep.mubr.msk.bf16.mxu0 %vm27_vm1, %v425_v22  ;;  %v301_v22 = vld [vmem:[#allocation2 + $0x2d8] sm:$0xff] }
  0x7a   :  { %12966 = vmatprep.mubr.msk.bf16.mxu1 %vm27_vm1, %v14651_v23  ;;  %v14691_v27 = vpack.c.bf16 %v301_v22, %v300_v18  ;;  %v1223_v18 = vld [vmem:[#allocation2 + $0x52] sm:$0xff]  ;;  %v1224_v22 = vld [vmem:[#allocation2 + $0x62] sm:$0xff] }
  0x80   :  { %12901 = vmatmul.mubr.msk.bf16.gmra.mxu0 %vm27_vm1, %v426_v37  ;;  %v401_v37 = vld [vmem:[#allocation2 + $0x301] sm:$0xff] }
  0x81   :  { %12967 = vmatmul.mubr.msk.bf16.gmra.mxu1 %vm27_vm1, %v14659_v38  ;;  %12904 = vmatprep.mubr.msk.bf16.mxu0 %vm27_vm1, %v427_v39  ;;  %v402_v39 = vld [vmem:[#allocation2 + $0x309] sm:$0xff] }
  0x82   :  { %12970 = vmatprep.mubr.msk.bf16.mxu1 %vm27_vm1, %v14661_v40  ;;  %v435_v47 = vpack.c.bf16 %v402_v39, %v401_v37  ;;  %v1231_v37 = vld [vmem:[#allocation2 + $0xb2] sm:$0xff]  ;;  %v1233_v39 = vld [vmem:[#allocation2 + $0xca] sm:$0xff] }
  0x88   :  { %12905 = vmatmul.mubr.msk.bf16.gmra.mxu0 %vm27_vm1, %v428_v55  ;;  %v403_v55 = vld [vmem:[#allocation2 + $0x319] sm:$0xff] }
  0x89   :  { %12971 = vmatmul.mubr.msk.bf16.gmra.mxu1 %vm27_vm1, %v14669_v56  ;;  %12908 = vmatprep.mubr.msk.bf16.mxu0 %vm27_vm1, %v429_v57  ;;  %v404_v57 = vld [vmem:[#allocation2 + $0x321] sm:$0xff] }
  0x8a   :  { %12974 = vmatprep.mubr.msk.bf16.mxu1 %vm27_vm1, %v14671_v58  ;;  %v436_v63 = vpack.c.bf16 %v404_v57, %v403_v55  ;;  %v1239_v55 = vld [vmem:[#allocation2 + $0x112] sm:$0xff]  ;;  %v1241_v57 = vld [vmem:[#allocation2 + $0x12a] sm:$0xff] }
  0x90   :  { %12909 = vmatmul.mubr.msk.bf16.gmra.mxu0 %vm27_vm1, %v430_v5  ;;  %v1219_v5 = vld [vmem:[#allocation2 + $0x22] sm:$0xff] }
  0x91   :  { %12975 = vmatmul.mubr.msk.bf16.gmra.mxu1 %vm27_vm1, %v14679_v6  ;;  %12912 = vmatprep.mubr.msk.bf16.mxu0 %vm27_vm1, %v431_v7  ;;  %v1220_v7 = vld [vmem:[#allocation2 + $0x32] sm:$0xff]  ;;  %v14725_v13 = vpack.c.bf16 %v1219_v5, %v1218_v3  ;;  %v1797_v5 = vld [vmem:[#allocation2 + $0x188] sm:$0xff] }
  0x92   :  { %12978 = vmatprep.mubr.msk.bf16.mxu1 %vm27_vm1, %v14681_v9  ;;  %v14727_v14 = vpack.c.bf16 %v1221_v11, %v1220_v7  ;;  %v1247_v3 = vld [vmem:[#allocation2 + $0x172] sm:$0xff]  ;;  %v1249_v11 = vld [vmem:[#allocation2 + $0x1ba] sm:$0xff] }
  0x93   :  { %v1248_v7 = vld [vmem:[#allocation2 + $0x1b2] sm:$0xff] }
  0x98   :  { %12913 = vmatmul.mubr.msk.bf16.gmra.mxu0 %vm27_vm1, %v432_v24  ;;  %v1225_v24 = vld [vmem:[#allocation2 + $0x6a] sm:$0xff] }
  0x99   :  { %12979 = vmatmul.mubr.msk.bf16.gmra.mxu1 %vm27_vm1, %v14689_v25  ;;  %12916 = vmatprep.mubr.msk.bf16.mxu0 %vm27_vm1, %v433_v26  ;;  %v14746_v26 = vpack.c.bf16 %v1225_v24, %v1224_v22 }
  0x9a   :  { %12982 = vmatprep.mubr.msk.bf16.mxu1 %vm27_vm1, %v14691_v27 }
  0xa0   :  { %12917 = vmatmul.mubr.msk.bf16.gmra.mxu0 %vm27_vm1, %v434_v44  ;;  %v1235_v44 = vld [vmem:[#allocation2 + $0xe2] sm:$0xff] }
  0xa1   :  { %12983 = vmatmul.mubr.msk.bf16.gmra.mxu1 %vm27_vm1, %v14699_v46  ;;  %12920 = vmatprep.mubr.msk.bf16.mxu0 %vm27_vm1, %v435_v47  ;;  %v1237_v47 = vld [vmem:[#allocation2 + $0xfa] sm:$0xff] }
  0xa2   :  { %12986 = vmatprep.mubr.msk.bf16.mxu1 %vm27_vm1, %v14701_v48 }
  0xa8   :  { %12921 = vmatmul.mubr.msk.bf16.gmra.mxu0 %vm27_vm1, %v436_v63 }
  0xa9   :  { %12987 = vmatmul.mubr.msk.bf16.gmra.mxu1 %vm27_vm1, %v14717_v0  ;;  %12992 = vmatprep.mubr.msk.bf16.mxu0 %vm27_vm1, %v1280_v1 }
  0xaa   :  { %13058 = vmatprep.mubr.msk.bf16.mxu1 %vm27_vm1, %v14372_v36  ;;  %v1222_v36 = vld [vmem:[#allocation2 + $0x4a] sm:$0xff] }
  0xab   :  { %v14744_v10 = vpack.c.bf16 %v1223_v18, %v1222_v36  ;;  %v1251_v36 = vld [vmem:[#allocation2 + $0x1d2] sm:$0xff]  ;;  %v1253_v18 = vld [vmem:[#allocation2 + $0x1ea] sm:$0xff] }
  0xb0   :  { %12993 = vmatmul.mubr.msk.bf16.vlgmr.msra.gmra.mxu0 %vm27_vm1, %v14725_v13 }
  0xb1   :  { %13059 = vmatmul.mubr.msk.bf16.vlgmr.msra.gmra.mxu1 %vm27_vm1, %v14378_v43  ;;  %12996 = vmatprep.mubr.msk.bf16.mxu0 %vm27_vm1, %v14727_v14  ;;  %v1226_v43 = vld [vmem:[#allocation2 + $0x7a] sm:$0xff] }
  0xb2   :  { %13062 = vmatprep.mubr.msk.bf16.mxu1 %vm27_vm1, %v14383_v51  ;;  %13123 = vmatpush3.bf16.msra.mxu0 %v2511_v16  ;;  %v1228_v51 = vld [vmem:[#allocation2 + $0x92] sm:$0xff]  ;;  %v14756_v31 = vpack.c.bf16 %v1227_v28, %v1226_v43  ;;  %v14831_v43 = vld [vmem:[%s20945_s1 + $0xc] sm:$0x3] }
  0xb3   :  { %13189 = vmatpush3.bf16.msra.mxu1 %v3061_v17  ;;  %v14758_v34 = vpack.c.bf16 %v1229_v29, %v1228_v51  ;;  %v1296_v17 = vpack.c.bf16 %v1249_v11, %v1248_v7  ;;  %v1254_v29 = vld [vmem:[#allocation2 + $0x1fa] sm:$0xff]  ;;  %14052 = vmatprep.subr.msk.bf16.mxu0 %vm535_vm0, %v14831_v43  ;;  %v1261_v7 = vld [vmem:[#allocation2 + $0x24a] sm:$0xff] }
  0xb8   :  { %12997 = vmatmul.mubr.msk.bf16.gmra.mxu0 %vm27_vm1, %v14744_v10 }
  0xb9   :  { %13063 = vmatmul.mubr.msk.bf16.gmra.mxu1 %vm27_vm1, %v14385_v53  ;;  %13000 = vmatprep.mubr.msk.bf16.mxu0 %vm27_vm1, %v14746_v26  ;;  %v1230_v53 = vld [vmem:[#allocation2 + $0xaa] sm:$0xff] }
  0xba   :  { %13066 = vmatprep.mubr.msk.bf16.mxu1 %vm27_vm1, %v14426_v8  ;;  %v1232_v8 = vld [vmem:[#allocation2 + $0xc2] sm:$0xff]  ;;  %v14768_v41 = vpack.c.bf16 %v1231_v37, %v1230_v53 }
  0xbb   :  { %v14770_v42 = vpack.c.bf16 %v1233_v39, %v1232_v8  ;;  %v1255_v53 = vld [vmem:[#allocation2 + $0x202] sm:$0xff]  ;;  %v1256_v39 = vld [vmem:[#allocation2 + $0x212] sm:$0xff] }
  0xc0   :  { %13001 = vmatmul.mubr.msk.bf16.gmra.mxu0 %vm27_vm1, %v14756_v31 }
  0xc1   :  { %13067 = vmatmul.mubr.msk.bf16.gmra.mxu1 %vm27_vm1, %v14437_v12  ;;  %13004 = vmatprep.mubr.msk.bf16.mxu0 %vm27_vm1, %v14758_v34  ;;  %v1234_v12 = vld [vmem:[#allocation2 + $0xda] sm:$0xff] }
  0xc2   :  { %13070 = vmatprep.mubr.msk.bf16.mxu1 %vm27_vm1, %v14476_v30  ;;  %v1236_v30 = vld [vmem:[#allocation2 + $0xf2] sm:$0xff]  ;;  %v14780_v49 = vpack.c.bf16 %v1235_v44, %v1234_v12  ;;  %v1257_v12 = vld [vmem:[#allocation2 + $0x21a] sm:$0xff] }
  0xc3   :  { %v14782_v54 = vpack.c.bf16 %v1237_v47, %v1236_v30  ;;  %v14847_v47 = vpack.c.bf16 %v1255_v53, %v1254_v29  ;;  %v1262_v53 = vld [vmem:[#allocation2 + $0x25a] sm:$0xff] }
  0xc8   :  { %13005 = vmatmul.mubr.msk.bf16.gmra.mxu0 %vm27_vm1, %v14768_v41 }
  0xc9   :  { %13071 = vmatmul.mubr.msk.bf16.gmra.mxu1 %vm27_vm1, %v14478_v32  ;;  %13008 = vmatprep.mubr.msk.bf16.mxu0 %vm27_vm1, %v14770_v42  ;;  %v1238_v32 = vld [vmem:[#allocation2 + $0x10a] sm:$0xff] }
  0xca   :  { %13074 = vmatprep.mubr.msk.bf16.mxu1 %vm27_vm1, %v14489_v45  ;;  %v1240_v45 = vld [vmem:[#allocation2 + $0x122] sm:$0xff]  ;;  %v14792_v59 = vpack.c.bf16 %v1239_v55, %v1238_v32  ;;  %v14851_v55 = vpack.c.bf16 %v1257_v12, %v1256_v39  ;;  %v1264_v12 = vld [vmem:[#allocation2 + $0x272] sm:$0xff] }
  0xcb   :  { %v14794_v60 = vpack.c.bf16 %v1241_v57, %v1240_v45 }
  0xd0   :  { %13009 = vmatmul.mubr.msk.bf16.gmra.mxu0 %vm27_vm1, %v14780_v49 }
  0xd1   :  { %13075 = vmatmul.mubr.msk.bf16.gmra.mxu1 %vm27_vm1, %v14501_v50  ;;  %13012 = vmatprep.mubr.msk.bf16.mxu0 %vm27_vm1, %v14782_v54  ;;  %v1242_v50 = vld [vmem:[#allocation2 + $0x13a] sm:$0xff] }
  0xd2   :  { %13078 = vmatprep.mubr.msk.bf16.mxu1 %vm27_vm1, %v14587_v19  ;;  %v1244_v19 = vld [vmem:[#allocation2 + $0x152] sm:$0xff]  ;;  %v14804_v63 = vpack.c.bf16 %v1243_v61, %v1242_v50 }
  0xd3   :  { %v14806_v1 = vpack.c.bf16 %v1245_v62, %v1244_v19  ;;  %v12862_v28 = vpop.f32.mrf.mxu0  ;;  %v1258_v62 = vld [vmem:[#allocation2 + $0x22a] sm:$0xff] }
  0xd4   :  { %v12928_v51 = vpop.f32.mrf.mxu1 }
  0xd5   :  { %v573_v37 = vpop.f32.mrf.mxu0 }
  0xd6   :  { %v961_v8 = vpop.f32.mrf.mxu1 }
  0xd7   :  { %v14845_v44 = vadd.f32 %v961_v8, %v573_v37  ;;  %v1263_v37 = vld [vmem:[#allocation2 + $0x262] sm:$0xff] }
  0xd8   :  { %13013 = vmatmul.mubr.msk.bf16.gmra.mxu0 %vm27_vm1, %v14792_v59  ;;  %v12929_v30 = vpop.f32.mrf.mxu1 }
  0xd9   :  { %13079 = vmatmul.mubr.msk.bf16.gmra.mxu1 %vm27_vm1, %v14590_v21  ;;  %13016 = vmatprep.mubr.msk.bf16.mxu0 %vm27_vm1, %v14794_v60  ;;  %v1246_v21 = vld [vmem:[#allocation2 + $0x16a] sm:$0xff] }
  0xda   :  { %13082 = vmatprep.mubr.msk.bf16.mxu1 %vm27_vm1, %v14598_v33  ;;  %v1796_v33 = vld [vmem:[#allocation2 + $0x180] sm:$0xff]  ;;  %v14816_v15 = vpack.c.bf16 %v1247_v3, %v1246_v21  ;;  %v964_v57 = vpop.f32.mrf.mxu1  ;;  %v1259_v21 = vld [vmem:[#allocation2 + $0x232] sm:$0xff] }
  0xdb   :  { %v1845_v16 = vpack.c.bf16 %v1797_v5, %v1796_v33  ;;  %v1260_v5 = vld [vmem:[#allocation2 + $0x242] sm:$0xff] }
  0xe0   :  { %13017 = vmatmul.mubr.msk.bf16.gmra.mxu0 %vm27_vm1, %v14804_v63 }
  0xe1   :  { %13083 = vmatmul.mubr.msk.bf16.gmra.mxu1 %vm27_vm1, %v14600_v35  ;;  %13020 = vmatprep.mubr.msk.bf16.mxu0 %vm27_vm1, %v14806_v1  ;;  %v1250_v35 = vld [vmem:[#allocation2 + $0x1ca] sm:$0xff] }
  0xe2   :  { %13086 = vmatprep.mubr.msk.bf16.mxu1 %vm27_vm1, %v14615_v52  ;;  %v1252_v52 = vld [vmem:[#allocation2 + $0x1e2] sm:$0xff]  ;;  %v14824_v22 = vpack.c.bf16 %v1251_v36, %v1250_v35  ;;  %v14867_v35 = vpack.c.bf16 %v1259_v21, %v1258_v62  ;;  %v14871_v36 = vpack.c.bf16 %v1261_v7, %v1260_v5  ;;  %v1266_v7 = vld [vmem:[#allocation2 + $0x28a] sm:$0xff] }
  0xe3   :  { %v14826_v24 = vpack.c.bf16 %v1253_v18, %v1252_v52 }
  0xe8   :  { %13021 = vmatmul.mubr.msk.bf16.gmra.mxu0 %vm27_vm1, %v14816_v15 }
  0xe9   :  { %13087 = vmatmul.mubr.msk.bf16.gmra.mxu1 %vm27_vm1, %v1845_v16  ;;  %13024 = vmatprep.mubr.msk.bf16.mxu0 %vm27_vm1, %v1296_v17 }
  0xea   :  { %13090 = vmatprep.mubr.msk.bf16.mxu1 %vm27_vm1, %v14624_v2  ;;  %v14837_v2 = vadd.f32 %v12928_v51, %v12862_v28 }
  0xf0   :  { %13025 = vmatmul.mubr.msk.bf16.gmra.mxu0 %vm27_vm1, %v14824_v22 }
  0xf1   :  { %13091 = vmatmul.mubr.msk.bf16.gmra.mxu1 %vm27_vm1, %v14626_v4  ;;  %13028 = vmatprep.mubr.msk.bf16.mxu0 %vm27_vm1, %v14826_v24  ;;  %v12863_v4 = vpop.f32.mrf.mxu0 }
  0xf2   :  { %13094 = vmatprep.mubr.msk.bf16.mxu1 %vm27_vm1, %v14649_v20  ;;  %v14849_v32 = vadd.f32 %v12929_v30, %v12863_v4  ;;  %v1265_v4 = vld [vmem:[#allocation2 + $0x27a] sm:$0xff] }
  0xf3   :  { %v576_v45 = vpop.f32.mrf.mxu0 }
  0xf4   :  { %v14853_v20 = vadd.f32 %v964_v57, %v576_v45 }
  0xf8   :  { %v12866_v50 = vpop.f32.mrf.mxu0  ;;  %13029 = vmatmul.mubr.msk.bf16.gmra.mxu0 %vm27_vm1, %v14847_v47 }
  0xf9   :  { %v12932_v61 = vpop.f32.mrf.mxu1  ;;  %13095 = vmatmul.mubr.msk.bf16.gmra.mxu1 %vm27_vm1, %v14651_v23  ;;  %13032 = vmatprep.mubr.msk.bf16.mxu0 %vm27_vm1, %v14851_v55 }
  0xfa   :  { %v14859_v19 = vadd.f32 %v12932_v61, %v12866_v50  ;;  %13098 = vmatprep.mubr.msk.bf16.mxu1 %vm27_vm1, %v14659_v38  ;;  %v589_v3 = vpop.f32.mrf.mxu0  ;;  %v14887_v50 = vpack.c.bf16 %v1263_v37, %v1262_v53  ;;  %v14891_v61 = vpack.c.bf16 %v1265_v4, %v1264_v12 }
  0xfb   :  { %v977_v33 = vpop.f32.mrf.mxu1 }
  0xfc   :  { %v14865_v11 = vadd.f32 %v977_v33, %v589_v3  ;;  %v12867_v16 = vpop.f32.mrf.mxu0 }
  0xfd   :  { %v12933_v17 = vpop.f32.mrf.mxu1 }
  0xfe   :  { %v14869_v23 = vadd.f32 %v12933_v17, %v12867_v16  ;;  %v592_v52 = vpop.f32.mrf.mxu0  ;;  %v1267_v16 = vld [vmem:[#allocation2 + $0x292] sm:$0xff] }
  0xff   :  { %v980_v18 = vpop.f32.mrf.mxu1 }
 0x100   :  { %v14873_v28 = vadd.f32 %v980_v18, %v592_v52  ;;  %v12870_v51 = vpop.f32.mrf.mxu0  ;;  %13033 = vmatmul.mubr.msk.bf16.gmra.mxu0 %vm27_vm1, %v14867_v35  ;;  %v1268_v18 = vld [vmem:[#allocation2 + $0x2a2] sm:$0xff] }
 0x101   :  { %v12936_v38 = vpop.f32.mrf.mxu1  ;;  %13099 = vmatmul.mubr.msk.bf16.gmra.mxu1 %vm27_vm1, %v14661_v40  ;;  %13036 = vmatprep.mubr.msk.bf16.mxu0 %vm27_vm1, %v14871_v36 }
 0x102   :  { %v14879_v29 = vadd.f32 %v12936_v38, %v12870_v51  ;;  %13102 = vmatprep.mubr.msk.bf16.mxu1 %vm27_vm1, %v14669_v56  ;;  %v605_v8 = vpop.f32.mrf.mxu0  ;;  %v1269_v51 = vld [vmem:[#allocation2 + $0x2aa] sm:$0xff] }
 0x103   :  { %v993_v39 = vpop.f32.mrf.mxu1 }
 0x104   :  { %v14885_v30 = vadd.f32 %v993_v39, %v605_v8  ;;  %v12871_v45 = vpop.f32.mrf.mxu0  ;;  %v14907_v8 = vpack.c.bf16 %v1267_v16, %v1266_v7  ;;  %v14911_v39 = vpack.c.bf16 %v1269_v51, %v1268_v18  ;;  %v1272_v16 = vld [vmem:[#allocation2 + $0x2d2] sm:$0xff] }
 0x105   :  { %v12937_v57 = vpop.f32.mrf.mxu1 }
 0x106   :  { %v14889_v40 = vadd.f32 %v12937_v57, %v12871_v45  ;;  %v608_v62 = vpop.f32.mrf.mxu0 }
 0x107   :  { %v996_v21 = vpop.f32.mrf.mxu1 }
 0x108   :  { %v14893_v3 = vadd.f32 %v996_v21, %v608_v62  ;;  %v12874_v33 = vpop.f32.mrf.mxu0  ;;  %13037 = vmatmul.mubr.msk.bf16.gmra.mxu0 %vm27_vm1, %v14887_v50  ;;  %v1270_v21 = vld [vmem:[#allocation2 + $0x2ba] sm:$0xff] }
 0x109   :  { %v12940_v56 = vpop.f32.mrf.mxu1  ;;  %13103 = vmatmul.mubr.msk.bf16.gmra.mxu1 %vm27_vm1, %v14671_v58  ;;  %13040 = vmatprep.mubr.msk.bf16.mxu0 %vm27_vm1, %v14891_v61 }
 0x10a   :  { %v14899_v5 = vadd.f32 %v12940_v56, %v12874_v33  ;;  %13106 = vmatprep.mubr.msk.bf16.mxu1 %vm27_vm1, %v14679_v6  ;;  %v621_v17 = vpop.f32.mrf.mxu0  ;;  %v1271_v33 = vld [vmem:[#allocation2 + $0x2c2] sm:$0xff] }
 0x10b   :  { %v1009_v52 = vpop.f32.mrf.mxu1 }
 0x10c   :  { %v14905_v38 = vadd.f32 %v1009_v52, %v621_v17  ;;  %v12875_v53 = vpop.f32.mrf.mxu0  ;;  %v1273_v17 = vld [vmem:[#allocation2 + $0x2da] sm:$0xff] }
 0x10d   :  { %v12941_v37 = vpop.f32.mrf.mxu1 }
 0x10e   :  { %v14909_v58 = vadd.f32 %v12941_v37, %v12875_v53  ;;  %v624_v12 = vpop.f32.mrf.mxu0  ;;  %v14927_v53 = vpack.c.bf16 %v1271_v33, %v1270_v21  ;;  %v14931_v37 = vpack.c.bf16 %v1273_v17, %v1272_v16  ;;  %v1274_v21 = vld [vmem:[#allocation2 + $0x2ea] sm:$0xff]  ;;  %v1275_v33 = vld [vmem:[#allocation2 + $0x2f2] sm:$0xff]  ;;  %v1276_v17 = vld [vmem:[#allocation2 + $0x302] sm:$0xff] }
 0x10f   :  { %v1012_v4 = vpop.f32.mrf.mxu1 }
 0x110   :  { %v14913_v45 = vadd.f32 %v1012_v4, %v624_v12  ;;  %v12878_v57 = vpop.f32.mrf.mxu0  ;;  %13041 = vmatmul.mubr.msk.bf16.gmra.mxu0 %vm27_vm1, %v14907_v8  ;;  %21087 = vst [vmem:[#allocation5_spill] sm:$0xff] %v14931_v37 }
 0x111   :  { %v12944_v6 = vpop.f32.mrf.mxu1  ;;  %13107 = vmatmul.mubr.msk.bf16.gmra.mxu1 %vm27_vm1, %v14681_v9  ;;  %13044 = vmatprep.mubr.msk.bf16.mxu0 %vm27_vm1, %v14911_v39 }
 0x112   :  { %v14919_v62 = vadd.f32 %v12944_v6, %v12878_v57  ;;  %13110 = vmatprep.mubr.msk.bf16.mxu1 %vm27_vm1, %v14689_v25  ;;  %v637_v56 = vpop.f32.mrf.mxu0 }
 0x113   :  { %v1025_v7 = vpop.f32.mrf.mxu1 }
 0x114   :  { %v14925_v52 = vadd.f32 %v1025_v7, %v637_v56  ;;  %v12879_v18 = vpop.f32.mrf.mxu0 }
 0x115   :  { %v12945_v51 = vpop.f32.mrf.mxu1 }
 0x116   :  { %21085 = vst [vmem:[#allocation3_spill] sm:$0xff] %v14925_v52  ;;  %v14929_v9 = vadd.f32 %v12945_v51, %v12879_v18  ;;  %v640_v12 = vpop.f32.mrf.mxu0  ;;  %v1277_v18 = vld [vmem:[#allocation2 + $0x30a] sm:$0xff] }
 0x117   :  { %v1028_v4 = vpop.f32.mrf.mxu1 }
 0x118   :  { %21086 = vst [vmem:[#allocation4_spill] sm:$0xff] %v14929_v9  ;;  %v14933_v57 = vadd.f32 %v1028_v4, %v640_v12  ;;  %v12882_v6 = vpop.f32.mrf.mxu0  ;;  %13045 = vmatmul.mubr.msk.bf16.gmra.mxu0 %vm27_vm1, %v14927_v53 }
 0x119   :  { %v12948_v25 = vpop.f32.mrf.mxu1  ;;  %13111 = vmatmul.mubr.msk.bf16.gmra.mxu1 %vm27_vm1, %v14691_v27  ;;  %13048 = vmatprep.mubr.msk.bf16.mxu0 %vm27_vm1, %v14931_v37 }
 0x11a   :  { %21088 = vst [vmem:[#allocation6_spill] sm:$0xff] %v14933_v57  ;;  %v14939_v56 = vadd.f32 %v12948_v25, %v12882_v6  ;;  %13114 = vmatprep.mubr.msk.bf16.mxu1 %vm27_vm1, %v14699_v46  ;;  %v653_v7 = vpop.f32.mrf.mxu0  ;;  %v14947_v57 = vpack.c.bf16 %v1275_v33, %v1274_v21  ;;  %v14951_v6 = vpack.c.bf16 %v1277_v18, %v1276_v17  ;;  %v1279_v21 = vld [vmem:[#allocation2 + $0x322] sm:$0xff]  ;;  %v1829_v33 = vld [vmem:[#allocation2 + $0x338] sm:$0xff] }
 0x11b   :  { %v1041_v16 = vpop.f32.mrf.mxu1 }
 0x11c   :  { %21089 = vst [vmem:[#allocation7_spill] sm:$0xff] %v14939_v56  ;;  %v14945_v51 = vadd.f32 %v1041_v16, %v653_v7  ;;  %v12883_v12 = vpop.f32.mrf.mxu0  ;;  %21091 = vst [vmem:[#allocation9_spill] sm:$0xff] %v14947_v57  ;;  %v1278_v7 = vld [vmem:[#allocation2 + $0x31a] sm:$0xff] }
 0x11d   :  { %v12949_v4 = vpop.f32.mrf.mxu1  ;;  %21093 = vst [vmem:[#allocation11_spill] sm:$0xff] %v14951_v6 }
 0x11e   :  { %21090 = vst [vmem:[#allocation8_spill] sm:$0xff] %v14945_v51  ;;  %v14949_v27 = vadd.f32 %v12949_v4, %v12883_v12  ;;  %v656_v25 = vpop.f32.mrf.mxu0  ;;  %v2316_v12 = vld [vmem:[#allocation2 + $0x19] sm:$0xff]  ;;  %v2317_v4 = vld [vmem:[#allocation2 + $0x21] sm:$0xff] }
 0x11f   :  { %v1044_v56 = vpop.f32.mrf.mxu1 }
 0x120   :  { %21092 = vst [vmem:[#allocation10_spill] sm:$0xff] %v14949_v27  ;;  %v14953_v37 = vadd.f32 %v1044_v56, %v656_v25  ;;  %v12886_v9 = vpop.f32.mrf.mxu0  ;;  %13049 = vmatmul.mubr.msk.bf16.gmra.mxu0 %vm27_vm1, %v14947_v57  ;;  %v1828_v56 = vld [vmem:[#allocation2 + $0x330] sm:$0xff]  ;;  %v14967_v27 = vpack.c.bf16 %v1279_v21, %v1278_v7  ;;  %v2319_v21 = vld [vmem:[#allocation2 + $0x39] sm:$0xff] }
 0x121   :  { %v12952_v46 = vpop.f32.mrf.mxu1  ;;  %13115 = vmatmul.mubr.msk.bf16.gmra.mxu1 %vm27_vm1, %v14701_v48  ;;  %13052 = vmatprep.mubr.msk.bf16.mxu0 %vm27_vm1, %v14951_v6  ;;  %v2318_v7 = vld [vmem:[#allocation2 + $0x31] sm:$0xff] }
 0x122   :  { %21094 = vst [vmem:[#allocation12_spill] sm:$0xff] %v14953_v37  ;;  %v14959_v16 = vadd.f32 %v12952_v46, %v12886_v9  ;;  %13118 = vmatprep.mubr.msk.bf16.mxu1 %vm27_vm1, %v14717_v0  ;;  %v669_v17 = vpop.f32.mrf.mxu0  ;;  %v1861_v9 = vpack.c.bf16 %v1829_v33, %v1828_v56 }
 0x123   :  { %v1057_v18 = vpop.f32.mrf.mxu1 }
 0x124   :  { %21095 = vst [vmem:[#allocation13_spill] sm:$0xff] %v14959_v16  ;;  %v14965_v25 = vadd.f32 %v1057_v18, %v669_v17  ;;  %v12887_v37 = vpop.f32.mrf.mxu0  ;;  %v2380_v16 = vpack.c.bf16 %v2317_v4, %v2316_v12  ;;  %v14983_v4 = vpack.c.bf16 %v2319_v21, %v2318_v7 }
 0x125   :  { %v12953_v48 = vpop.f32.mrf.mxu1 }
 0x126   :  { %v14969_v46 = vadd.f32 %v12953_v48, %v12887_v37  ;;  %v672_v6 = vpop.f32.mrf.mxu0 }
 0x127   :  { %v1060_v51 = vpop.f32.mrf.mxu1 }
 0x128   :  { %v14971_v57 = vadd.f32 %v1060_v51, %v672_v6  ;;  %v12890_v0 = vpop.f32.mrf.mxu0  ;;  %13053 = vmatmul.mubr.msk.bf16.gmra.mxu0 %vm27_vm1, %v14967_v27  ;;  %v2320_v51 = vld [vmem:[#allocation2 + $0x49] sm:$0xff]  ;;  %v2321_v6 = vld [vmem:[#allocation2 + $0x51] sm:$0xff] }
 0x129   :  { %v12956_v52 = vpop.f32.mrf.mxu1  ;;  %13119 = vmatmul.mubr.msk.bf16.gmra.mxu1 %vm27_vm1, %v1861_v9  ;;  %13124 = vmatprep.mubr.msk.bf16.mxu0 %vm27_vm1, %v2380_v16  ;;  %v11620_v16 = vld [vmem:[%s20945_s1 + $0xe] sm:$0x3] }
 0x12a   :  { %v14976_v17 = vadd.f32 %v12956_v52, %v12890_v0  ;;  %13190 = vmatprep.mubr.msk.bf16.mxu1 %vm27_vm1, %v14725_v13  ;;  %v685_v37 = vpop.f32.mrf.mxu0  ;;  %v14987_v52 = vpack.c.bf16 %v2321_v6, %v2320_v51  ;;  %14053 = vmatprep.subr.msk.bf16.mxu1 %vm535_vm0, %v11620_v16  ;;  %v4162_v7 = vsel %vm535_vm0, %v11620_v16, 0  ;;  %v2322_v6 = vld [vmem:[#allocation2 + $0x61] sm:$0xff]  ;;  %v2324_v16 = vld [vmem:[#allocation2 + $0x79] sm:$0xff] }
 0x12b   :  { %v1073_v56 = vpop.f32.mrf.mxu1 }
 0x12c   :  { %v14981_v33 = vadd.f32 %v1073_v56, %v685_v37  ;;  %v12891_v18 = vpop.f32.mrf.mxu0  ;;  %21098 = vst [vmem:[#allocation16_spill] sm:$0xff] %v14987_v52  ;;  %v3612_v37 = vsel %vm535_vm0, %v14831_v43, 0 }
 0x12d   :  { %v12957_v12 = vpop.f32.mrf.mxu1 }
 0x12e   :  { %21096 = vst [vmem:[#allocation14_spill] sm:$0xff] %v14981_v33  ;;  %v14985_v48 = vadd.f32 %v12957_v12, %v12891_v18  ;;  %v688_v9 = vpop.f32.mrf.mxu0  ;;  %v2323_v18 = vld [vmem:[#allocation2 + $0x69] sm:$0xff] }
 0x12f   :  { %v1076_v13 = vpop.f32.mrf.mxu1 }
 0x130   :  { %21097 = vst [vmem:[#allocation15_spill] sm:$0xff] %v14985_v48  ;;  %v14993_v0 = vadd.f32 %v1076_v13, %v688_v9  ;;  %v12894_v21 = vpop.f32.mrf.mxu0  ;;  %13125 = vmatmul.mubr.msk.bf16.vlgmr.msra.gmra.mxu0 %vm27_vm1, %v14983_v4  ;;  %v2325_v9 = vld [vmem:[#allocation2 + $0x81] sm:$0xff] }
 0x131   :  { %v12960_v56 = vpop.f32.mrf.mxu1  ;;  %13191 = vmatmul.mubr.msk.bf16.vlgmr.msra.gmra.mxu1 %vm27_vm1, %v14727_v14  ;;  %13128 = vmatprep.mubr.msk.bf16.mxu0 %vm27_vm1, %v14987_v52 }
 0x132   :  { %21099 = vst [vmem:[#allocation17_spill] sm:$0xff] %v14993_v0  ;;  %v15002_v51 = vadd.f32 %v12960_v56, %v12894_v21  ;;  %13194 = vmatprep.mubr.msk.bf16.mxu1 %vm27_vm1, %v14744_v10  ;;  %v701_v43 = vpop.f32.mrf.mxu0  ;;  %13255 = vmatpush3.bf16.msra.mxu0 %v3612_v37  ;;  %v15010_v21 = vpack.c.bf16 %v2323_v18, %v2322_v6  ;;  %v2327_v6 = vld [vmem:[#allocation2 + $0x99] sm:$0xff]  ;;  %v2328_v18 = vld [vmem:[#allocation2 + $0xa9] sm:$0xff] }
 0x133   :  { %v1089_v12 = vpop.f32.mrf.mxu1  ;;  %13321 = vmatpush3.bf16.msra.mxu1 %v4162_v7 }
 0x134   :  { %21100 = vst [vmem:[#allocation18_spill] sm:$0xff] %v15002_v51  ;;  %v15008_v13 = vadd.f32 %v1089_v12, %v701_v43  ;;  %v12895_v0 = vpop.f32.mrf.mxu0  ;;  %v15014_v51 = vpack.c.bf16 %v2325_v9, %v2324_v16  ;;  %v2329_v43 = vld [vmem:[#allocation2 + $0xb1] sm:$0xff] }
 0x135   :  { %v12961_v14 = vpop.f32.mrf.mxu1 }
 0x136   :  { %v15012_v56 = vadd.f32 %v12961_v14, %v12895_v0  ;;  %21101 = vst [vmem:[#allocation19_spill] sm:$0xff] %v15014_v51  ;;  %v704_v52 = vpop.f32.mrf.mxu0  ;;  %v2326_v0 = vld [vmem:[#allocation2 + $0x91] sm:$0xff] }
 0x137   :  { %v1092_v48 = vpop.f32.mrf.mxu1  ;;  %v15030_v14 = vpack.c.bf16 %v2327_v6, %v2326_v0  ;;  %v2330_v0 = vld [vmem:[#allocation2 + $0xc1] sm:$0xff]  ;;  %v2331_v6 = vld [vmem:[#allocation2 + $0xc9] sm:$0xff] }
 0x138   :  { %v15016_v33 = vadd.f32 %v1092_v48, %v704_v52  ;;  %v12898_v10 = vpop.f32.mrf.mxu0  ;;  %13129 = vmatmul.mubr.msk.bf16.gmra.mxu0 %vm27_vm1, %v15010_v21 }
 0x139   :  { %v12964_v37 = vpop.f32.mrf.mxu1  ;;  %13195 = vmatmul.mubr.msk.bf16.gmra.mxu1 %vm27_vm1, %v14746_v26  ;;  %13132 = vmatprep.mubr.msk.bf16.mxu0 %vm27_vm1, %v15014_v51 }
 0x13a   :  { %21102 = vst [vmem:[#allocation20_spill] sm:$0xff] %v15016_v33  ;;  %v15022_v7 = vadd.f32 %v12964_v37, %v12898_v10  ;;  %13198 = vmatprep.mubr.msk.bf16.mxu1 %vm27_vm1, %v14756_v31  ;;  %v717_v48 = vpop.f32.mrf.mxu0  ;;  %v15034_v10 = vpack.c.bf16 %v2329_v43, %v2328_v18  ;;  %v2332_v18 = vld [vmem:[#allocation2 + $0xd9] sm:$0xff]  ;;  %v2333_v43 = vld [vmem:[#allocation2 + $0xe1] sm:$0xff] }
 0x13b   :  { %v1105_v52 = vpop.f32.mrf.mxu1 }
 0x13c   :  { %21103 = vst [vmem:[#allocation21_spill] sm:$0xff] %v15022_v7  ;;  %v15028_v12 = vadd.f32 %v1105_v52, %v717_v48  ;;  %v12899_v16 = vpop.f32.mrf.mxu0  ;;  %21105 = vst [vmem:[#allocation23_spill] sm:$0xff] %v15034_v10 }
 0x13d   :  { %v12965_v9 = vpop.f32.mrf.mxu1 }
 0x13e   :  { %v15032_v26 = vadd.f32 %v12965_v9, %v12899_v16  ;;  %v720_v37 = vpop.f32.mrf.mxu0 }
 0x13f   :  { %v1108_v7 = vpop.f32.mrf.mxu1 }
 0x140   :  { %21104 = vst [vmem:[#allocation22_spill] sm:$0xff] %v15032_v26  ;;  %v15036_v51 = vadd.f32 %v1108_v7, %v720_v37  ;;  %v12902_v33 = vpop.f32.mrf.mxu0  ;;  %13133 = vmatmul.mubr.msk.bf16.gmra.mxu0 %vm27_vm1, %v15030_v14 }
 0x141   :  { %v12968_v31 = vpop.f32.mrf.mxu1  ;;  %13199 = vmatmul.mubr.msk.bf16.gmra.mxu1 %vm27_vm1, %v14758_v34  ;;  %13136 = vmatprep.mubr.msk.bf16.mxu0 %vm27_vm1, %v15034_v10 }
 0x142   :  { %21106 = vst [vmem:[#allocation24_spill] sm:$0xff] %v15036_v51  ;;  %v15042_v48 = vadd.f32 %v12968_v31, %v12902_v33  ;;  %13202 = vmatprep.mubr.msk.bf16.mxu1 %vm27_vm1, %v14768_v41  ;;  %v733_v7 = vpop.f32.mrf.mxu0  ;;  %v15050_v51 = vpack.c.bf16 %v2331_v6, %v2330_v0  ;;  %v15054_v33 = vpack.c.bf16 %v2333_v43, %v2332_v18  ;;  %v2334_v0 = vld [vmem:[#allocation2 + $0xf1] sm:$0xff]  ;;  %v2335_v6 = vld [vmem:[#allocation2 + $0xf9] sm:$0xff]  ;;  %v2336_v18 = vld [vmem:[#allocation2 + $0x109] sm:$0xff] }
 0x143   :  { %v1121_v52 = vpop.f32.mrf.mxu1  ;;  %v2337_v43 = vld [vmem:[#allocation2 + $0x111] sm:$0xff] }
 0x144   :  { %21107 = vst [vmem:[#allocation25_spill] sm:$0xff] %v15042_v48  ;;  %v15048_v16 = vadd.f32 %v1121_v52, %v733_v7  ;;  %v12903_v9 = vpop.f32.mrf.mxu0  ;;  %21109 = vst [vmem:[#allocation27_spill] sm:$0xff] %v15054_v33 }
 0x145   :  { %v12969_v37 = vpop.f32.mrf.mxu1 }
 0x146   :  { %v15052_v34 = vadd.f32 %v12969_v37, %v12903_v9  ;;  %v736_v31 = vpop.f32.mrf.mxu0 }
 0x147   :  { %v1124_v48 = vpop.f32.mrf.mxu1 }
 0x148   :  { %21108 = vst [vmem:[#allocation26_spill] sm:$0xff] %v15052_v34  ;;  %v15056_v10 = vadd.f32 %v1124_v48, %v736_v31  ;;  %v12906_v26 = vpop.f32.mrf.mxu0  ;;  %13137 = vmatmul.mubr.msk.bf16.gmra.mxu0 %vm27_vm1, %v15050_v51 }
 0x149   :  { %v12972_v41 = vpop.f32.mrf.mxu1  ;;  %13203 = vmatmul.mubr.msk.bf16.gmra.mxu1 %vm27_vm1, %v14770_v42  ;;  %13140 = vmatprep.mubr.msk.bf16.mxu0 %vm27_vm1, %v15054_v33 }
 0x14a   :  { %21110 = vst [vmem:[#allocation28_spill] sm:$0xff] %v15056_v10  ;;  %v15062_v7 = vadd.f32 %v12972_v41, %v12906_v26  ;;  %13206 = vmatprep.mubr.msk.bf16.mxu1 %vm27_vm1, %v14780_v49  ;;  %v749_v48 = vpop.f32.mrf.mxu0  ;;  %v15070_v10 = vpack.c.bf16 %v2335_v6, %v2334_v0  ;;  %v15074_v26 = vpack.c.bf16 %v2337_v43, %v2336_v18  ;;  %v2338_v0 = vld [vmem:[#allocation2 + $0x121] sm:$0xff]  ;;  %v2339_v6 = vld [vmem:[#allocation2 + $0x129] sm:$0xff]  ;;  %v2340_v18 = vld [vmem:[#allocation2 + $0x139] sm:$0xff] }
 0x14b   :  { %v1137_v52 = vpop.f32.mrf.mxu1  ;;  %v2341_v43 = vld [vmem:[#allocation2 + $0x141] sm:$0xff] }
 0x14c   :  { %21111 = vst [vmem:[#allocation29_spill] sm:$0xff] %v15062_v7  ;;  %v15068_v9 = vadd.f32 %v1137_v52, %v749_v48  ;;  %v12907_v37 = vpop.f32.mrf.mxu0  ;;  %21113 = vst [vmem:[#allocation31_spill] sm:$0xff] %v15074_v26 }
 0x14d   :  { %v12973_v31 = vpop.f32.mrf.mxu1 }
 0x14e   :  { %v15072_v42 = vadd.f32 %v12973_v31, %v12907_v37  ;;  %v752_v41 = vpop.f32.mrf.mxu0 }
 0x14f   :  { %v1140_v7 = vpop.f32.mrf.mxu1 }
 0x150   :  { %21112 = vst [vmem:[#allocation30_spill] sm:$0xff] %v15072_v42  ;;  %v15076_v33 = vadd.f32 %v1140_v7, %v752_v41  ;;  %v12910_v34 = vpop.f32.mrf.mxu0  ;;  %13141 = vmatmul.mubr.msk.bf16.gmra.mxu0 %vm27_vm1, %v15070_v10 }
 0x151   :  { %v12976_v49 = vpop.f32.mrf.mxu1  ;;  %13207 = vmatmul.mubr.msk.bf16.gmra.mxu1 %vm27_vm1, %v14782_v54  ;;  %13144 = vmatprep.mubr.msk.bf16.mxu0 %vm27_vm1, %v15074_v26 }
 0x152   :  { %21114 = vst [vmem:[#allocation32_spill] sm:$0xff] %v15076_v33  ;;  %v15082_v48 = vadd.f32 %v12976_v49, %v12910_v34  ;;  %13210 = vmatprep.mubr.msk.bf16.mxu1 %vm27_vm1, %v14792_v59  ;;  %v765_v7 = vpop.f32.mrf.mxu0  ;;  %v2391_v33 = vpack.c.bf16 %v2339_v6, %v2338_v0  ;;  %v15092_v34 = vpack.c.bf16 %v2341_v43, %v2340_v18  ;;  %v2342_v0 = vld [vmem:[#allocation2 + $0x151] sm:$0xff]  ;;  %v2343_v6 = vld [vmem:[#allocation2 + $0x159] sm:$0xff]  ;;  %v2344_v18 = vld [vmem:[#allocation2 + $0x169] sm:$0xff] }
 0x153   :  { %v1153_v52 = vpop.f32.mrf.mxu1  ;;  %v2345_v43 = vld [vmem:[#allocation2 + $0x171] sm:$0xff] }
 0x154   :  { %21115 = vst [vmem:[#allocation33_spill] sm:$0xff] %v15082_v48  ;;  %v15088_v37 = vadd.f32 %v1153_v52, %v765_v7  ;;  %v12911_v31 = vpop.f32.mrf.mxu0  ;;  %21118 = vst [vmem:[#allocation36_spill] sm:$0xff] %v15092_v34 }
 0x155   :  { %v12977_v41 = vpop.f32.mrf.mxu1 }
 0x156   :  { %21116 = vst [vmem:[#allocation34_spill] sm:$0xff] %v15088_v37  ;;  %v15090_v54 = vadd.f32 %v12977_v41, %v12911_v31  ;;  %v768_v49 = vpop.f32.mrf.mxu0 }
 0x157   :  { %v1156_v48 = vpop.f32.mrf.mxu1 }
 0x158   :  { %21117 = vst [vmem:[#allocation35_spill] sm:$0xff] %v15090_v54  ;;  %v15094_v26 = vadd.f32 %v1156_v48, %v768_v49  ;;  %v12914_v42 = vpop.f32.mrf.mxu0  ;;  %13145 = vmatmul.mubr.msk.bf16.gmra.mxu0 %vm27_vm1, %v2391_v33  ;;  %v2393_v49 = vpack.c.bf16 %v2343_v6, %v2342_v0  ;;  %v2347_v0 = vld [vmem:[#allocation2 + $0x189] sm:$0xff] }
 0x159   :  { %v12980_v59 = vpop.f32.mrf.mxu1  ;;  %13211 = vmatmul.mubr.msk.bf16.gmra.mxu1 %vm27_vm1, %v14794_v60  ;;  %13148 = vmatprep.mubr.msk.bf16.mxu0 %vm27_vm1, %v15092_v34  ;;  %v2896_v6 = vld [vmem:[#allocation2 + $0x182] sm:$0xff] }
 0x15a   :  { %21119 = vst [vmem:[#allocation37_spill] sm:$0xff] %v15094_v26  ;;  %v15099_v7 = vadd.f32 %v12980_v59, %v12914_v42  ;;  %13214 = vmatprep.mubr.msk.bf16.mxu1 %vm27_vm1, %v14804_v63  ;;  %v781_v52 = vpop.f32.mrf.mxu0  ;;  %v15109_v42 = vpack.c.bf16 %v2345_v43, %v2344_v18 }
 0x15b   :  { %v1169_v48 = vpop.f32.mrf.mxu1 }
 0x15c   :  { %21120 = vst [vmem:[#allocation38_spill] sm:$0xff] %v15099_v7  ;;  %v15105_v31 = vadd.f32 %v1169_v48, %v781_v52  ;;  %v12915_v33 = vpop.f32.mrf.mxu0  ;;  %21123 = vst [vmem:[#allocation41_spill] sm:$0xff] %v15109_v42  ;;  %v2346_v52 = vld [vmem:[#allocation2 + $0x181] sm:$0xff] }
 0x15d   :  { %v12981_v41 = vpop.f32.mrf.mxu1 }
 0x15e   :  { %21121 = vst [vmem:[#allocation39_spill] sm:$0xff] %v15105_v31  ;;  %v15107_v60 = vadd.f32 %v12981_v41, %v12915_v33  ;;  %v784_v59 = vpop.f32.mrf.mxu0  ;;  %v2348_v33 = vld [vmem:[#allocation2 + $0x1c9] sm:$0xff]  ;;  %v2349_v41 = vld [vmem:[#allocation2 + $0x1d1] sm:$0xff] }
 0x15f   :  { %v1172_v7 = vpop.f32.mrf.mxu1 }
 0x160   :  { %21122 = vst [vmem:[#allocation40_spill] sm:$0xff] %v15107_v60  ;;  %v15111_v34 = vadd.f32 %v1172_v7, %v784_v59  ;;  %v12918_v26 = vpop.f32.mrf.mxu0  ;;  %13149 = vmatmul.mubr.msk.bf16.gmra.mxu0 %vm27_vm1, %v2393_v49  ;;  %v2897_v7 = vld [vmem:[#allocation2 + $0x18a] sm:$0xff] }
 0x161   :  { %v12984_v63 = vpop.f32.mrf.mxu1  ;;  %13215 = vmatmul.mubr.msk.bf16.gmra.mxu1 %vm27_vm1, %v14806_v1  ;;  %13152 = vmatprep.mubr.msk.bf16.mxu0 %vm27_vm1, %v15109_v42 }
 0x162   :  { %21124 = vst [vmem:[#allocation42_spill] sm:$0xff] %v15111_v34  ;;  %v15116_v48 = vadd.f32 %v12984_v63, %v12918_v26  ;;  %13218 = vmatprep.mubr.msk.bf16.mxu1 %vm27_vm1, %v14816_v15  ;;  %v797_v18 = vpop.f32.mrf.mxu0  ;;  %v2395_v34 = vpack.c.bf16 %v2347_v0, %v2346_v52  ;;  %v2945_v26 = vpack.c.bf16 %v2897_v7, %v2896_v6  ;;  %v2351_v52 = vld [vmem:[#allocation2 + $0x1e9] sm:$0xff]  ;;  %v2352_v7 = vld [vmem:[#allocation2 + $0x1f9] sm:$0xff] }
 0x163   :  { %v1185_v43 = vpop.f32.mrf.mxu1 }
 0x164   :  { %21125 = vst [vmem:[#allocation43_spill] sm:$0xff] %v15116_v48  ;;  %v15122_v49 = vadd.f32 %v1185_v43, %v797_v18  ;;  %v12919_v59 = vpop.f32.mrf.mxu0  ;;  %v2396_v48 = vpack.c.bf16 %v2349_v41, %v2348_v33  ;;  %v2350_v18 = vld [vmem:[#allocation2 + $0x1e1] sm:$0xff] }
 0x165   :  { %v12985_v1 = vpop.f32.mrf.mxu1  ;;  %v2397_v33 = vpack.c.bf16 %v2351_v52, %v2350_v18  ;;  %v2354_v52 = vld [vmem:[#allocation2 + $0x211] sm:$0xff] }
 0x166   :  { %v15124_v63 = vadd.f32 %v12985_v1, %v12919_v59  ;;  %v800_v42 = vpop.f32.mrf.mxu0 }
 0x167   :  { %v1188_v60 = vpop.f32.mrf.mxu1 }
 0x168   :  { %v15126_v31 = vadd.f32 %v1188_v60, %v800_v42  ;;  %v12922_v15 = vpop.f32.mrf.mxu0  ;;  %13153 = vmatmul.mubr.msk.bf16.gmra.mxu0 %vm27_vm1, %v2395_v34  ;;  %v2353_v60 = vld [vmem:[#allocation2 + $0x201] sm:$0xff] }
 0x169   :  { %v12988_v54 = vpop.f32.mrf.mxu1  ;;  %13219 = vmatmul.mubr.msk.bf16.gmra.mxu1 %vm27_vm1, %v2945_v26  ;;  %13156 = vmatprep.mubr.msk.bf16.mxu0 %vm27_vm1, %v2396_v48 }
 0x16a   :  { %v15130_v37 = vadd.f32 %v12988_v54, %v12922_v15  ;;  %13222 = vmatprep.mubr.msk.bf16.mxu1 %vm27_vm1, %v14824_v22  ;;  %v813_v0 = vpop.f32.mrf.mxu0  ;;  %v15139_v54 = vpack.c.bf16 %v2353_v60, %v2352_v7  ;;  %v15146_v22 = vld [vmem:[%s20945_s1 + $0x10] sm:$0x3] }
 0x16b   :  { %v1201_v6 = vpop.f32.mrf.mxu1  ;;  %v2356_v60 = vld [vmem:[#allocation2 + $0x229] sm:$0xff]  ;;  %14054 = vmatprep.subr.msk.bf16.mxu0 %vm535_vm0, %v15146_v22 }
 0x16c   :  { %21126 = vst [vmem:[#allocation44_spill] sm:$0xff] %v15130_v37  ;;  %v15135_v42 = vadd.f32 %v1201_v6, %v813_v0  ;;  %v12923_v43 = vpop.f32.mrf.mxu0  ;;  %21129 = vst [vmem:[#allocation47_spill] sm:$0xff] %v15139_v54  ;;  %v2355_v0 = vld [vmem:[#allocation2 + $0x219] sm:$0xff] }
 0x16d   :  { %v12989_v34 = vpop.f32.mrf.mxu1 }
 0x16e   :  { %21127 = vst [vmem:[#allocation45_spill] sm:$0xff] %v15135_v42  ;;  %v15137_v41 = vadd.f32 %v12989_v34, %v12923_v43  ;;  %v816_v59 = vpop.f32.mrf.mxu0  ;;  %v2357_v43 = vld [vmem:[#allocation2 + $0x231] sm:$0xff] }
 0x16f   :  { %v1204_v48 = vpop.f32.mrf.mxu1 }
 0x170   :  { %21128 = vst [vmem:[#allocation46_spill] sm:$0xff] %v15137_v41  ;;  %v15141_v1 = vadd.f32 %v1204_v48, %v816_v59  ;;  %v12994_v26 = vpop.f32.mrf.mxu0  ;;  %13157 = vmatmul.mubr.msk.bf16.gmra.mxu0 %vm27_vm1, %v2397_v33  ;;  %v2399_v59 = vpack.c.bf16 %v2355_v0, %v2354_v52  ;;  %v2359_v52 = vld [vmem:[#allocation2 + $0x249] sm:$0xff] }
 0x171   :  { %v13060_v15 = vpop.f32.mrf.mxu1  ;;  %13223 = vmatmul.mubr.msk.bf16.gmra.mxu1 %vm27_vm1, %v14826_v24  ;;  %v1704_v18 = vadd.f32 %v12994_v26, %v14837_v2  ;;  %13160 = vmatprep.mubr.msk.bf16.mxu0 %vm27_vm1, %v15139_v54  ;;  %v15164_v54 = vpack.c.bf16 %v2357_v43, %v2356_v60 }
 0x172   :  { %21130 = vst [vmem:[#allocation48_spill] sm:$0xff] %v15141_v1  ;;  %13226 = vmatprep.mubr.msk.bf16.mxu1 %vm27_vm1, %v14847_v47  ;;  %v1447_v6 = vpop.f32.mrf.mxu0 }
 0x173   :  { %v1997_v7 = vpop.f32.mrf.mxu1  ;;  %v1702_v34 = vadd.f32 %v1447_v6, %v14845_v44  ;;  %v15159_v24 = vadd.f32 %v13060_v15, %v1704_v18  ;;  %v2358_v18 = vld [vmem:[#allocation2 + $0x241] sm:$0xff]  ;;  %v2360_v6 = vld [vmem:[#allocation2 + $0x259] sm:$0xff] }
 0x174   :  { %v12995_v2 = vpop.f32.mrf.mxu0 }
 0x175   :  { %v13061_v33 = vpop.f32.mrf.mxu1  ;;  %v1705_v48 = vadd.f32 %v12995_v2, %v14849_v32  ;;  %v15162_v26 = vadd.f32 %v1997_v7, %v1702_v34  ;;  %v2361_v7 = vld [vmem:[#allocation2 + $0x261] sm:$0xff] }
 0x176   :  { %v1450_v47 = vpop.f32.mrf.mxu0  ;;  %v15185_v34 = vpack.c.bf16 %v2361_v7, %v2360_v6 }
 0x177   :  { %v2000_v1 = vpop.f32.mrf.mxu1  ;;  %v1703_v41 = vadd.f32 %v1450_v47, %v14853_v20  ;;  %v15167_v42 = vadd.f32 %v13061_v33, %v1705_v48 }
 0x178   :  { %v12998_v37 = vpop.f32.mrf.mxu0  ;;  %13161 = vmatmul.mubr.msk.bf16.gmra.mxu0 %vm27_vm1, %v2399_v59 }
 0x179   :  { %v13064_v44 = vpop.f32.mrf.mxu1  ;;  %13227 = vmatmul.mubr.msk.bf16.gmra.mxu1 %vm27_vm1, %v14851_v55  ;;  %v1708_v15 = vadd.f32 %v12998_v37, %v14859_v19  ;;  %v15173_v32 = vadd.f32 %v2000_v1, %v1703_v41  ;;  %13164 = vmatprep.mubr.msk.bf16.mxu0 %vm27_vm1, %v15164_v54  ;;  %v2401_v37 = vpack.c.bf16 %v2359_v52, %v2358_v18  ;;  %v2364_v52 = vld [vmem:[#allocation2 + $0x289] sm:$0xff] }
 0x17a   :  { %13230 = vmatprep.mubr.msk.bf16.mxu1 %vm27_vm1, %v14867_v35  ;;  %v1463_v20 = vpop.f32.mrf.mxu0 }
 0x17b   :  { %v2013_v0 = vpop.f32.mrf.mxu1  ;;  %v1706_v60 = vadd.f32 %v1463_v20, %v14865_v11  ;;  %v15180_v43 = vadd.f32 %v13064_v44, %v1708_v15  ;;  %v2362_v44 = vld [vmem:[#allocation2 + $0x271] sm:$0xff]  ;;  %v2363_v15 = vld [vmem:[#allocation2 + $0x279] sm:$0xff] }
 0x17c   :  { %v12999_v55 = vpop.f32.mrf.mxu0  ;;  %v2365_v20 = vld [vmem:[#allocation2 + $0x291] sm:$0xff]  ;;  %v2403_v7 = vpack.c.bf16 %v2363_v15, %v2362_v44  ;;  %v2368_v44 = vld [vmem:[#allocation2 + $0x2b9] sm:$0xff]  ;;  %v2369_v15 = vld [vmem:[#allocation2 + $0x2c1] sm:$0xff] }
 0x17d   :  { %v13065_v19 = vpop.f32.mrf.mxu1  ;;  %v1709_v41 = vadd.f32 %v12999_v55, %v14869_v23  ;;  %v15183_v1 = vadd.f32 %v2013_v0, %v1706_v60 }
 0x17e   :  { %v1466_v2 = vpop.f32.mrf.mxu0 }
 0x17f   :  { %v2016_v33 = vpop.f32.mrf.mxu1  ;;  %v1707_v35 = vadd.f32 %v1466_v2, %v14873_v28  ;;  %v15188_v59 = vadd.f32 %v13065_v19, %v1709_v41  ;;  %v15206_v19 = vpack.c.bf16 %v2365_v20, %v2364_v52 }
 0x180   :  { %v13002_v48 = vpop.f32.mrf.mxu0  ;;  %13165 = vmatmul.mubr.msk.bf16.gmra.mxu0 %vm27_vm1, %v2401_v37 }
 0x181   :  { %v13068_v11 = vpop.f32.mrf.mxu1  ;;  %13231 = vmatmul.mubr.msk.bf16.gmra.mxu1 %vm27_vm1, %v14871_v36  ;;  %v1712_v47 = vadd.f32 %v13002_v48, %v14879_v29  ;;  %v15194_v23 = vadd.f32 %v2016_v33, %v1707_v35  ;;  %13168 = vmatprep.mubr.msk.bf16.mxu0 %vm27_vm1, %v15185_v34  ;;  %v2366_v48 = vld [vmem:[#allocation2 + $0x2a1] sm:$0xff] }
 0x182   :  { %13234 = vmatprep.mubr.msk.bf16.mxu1 %vm27_vm1, %v14887_v50  ;;  %v1479_v28 = vpop.f32.mrf.mxu0 }
 0x183   :  { %v2029_v18 = vpop.f32.mrf.mxu1  ;;  %v1710_v0 = vadd.f32 %v1479_v28, %v14885_v30  ;;  %v15201_v6 = vadd.f32 %v13068_v11, %v1712_v47  ;;  %v2367_v11 = vld [vmem:[#allocation2 + $0x2a9] sm:$0xff] }
 0x184   :  { %v13003_v36 = vpop.f32.mrf.mxu0  ;;  %v2405_v52 = vpack.c.bf16 %v2367_v11, %v2366_v48  ;;  %v2373_v48 = vld [vmem:[#allocation2 + $0x2f1] sm:$0xff]  ;;  %v21131_v11 = vld [vmem:[#allocation3_spill] sm:$0xff] }
 0x185   :  { %v13069_v29 = vpop.f32.mrf.mxu1  ;;  %v1713_v60 = vadd.f32 %v13003_v36, %v14889_v40  ;;  %v15204_v55 = vadd.f32 %v2029_v18, %v1710_v0  ;;  %v15227_v36 = vpack.c.bf16 %v2369_v15, %v2368_v44  ;;  %v21132_v15 = vld [vmem:[#allocation4_spill] sm:$0xff] }
 0x186   :  { %v1482_v37 = vpop.f32.mrf.mxu0 }
 0x187   :  { %v2032_v41 = vpop.f32.mrf.mxu1  ;;  %v1711_v50 = vadd.f32 %v1482_v37, %v14893_v3  ;;  %v15209_v2 = vadd.f32 %v13069_v29, %v1713_v60 }
 0x188   :  { %v13006_v33 = vpop.f32.mrf.mxu0  ;;  %13169 = vmatmul.mubr.msk.bf16.gmra.mxu0 %vm27_vm1, %v2403_v7 }
 0x189   :  { %v13072_v30 = vpop.f32.mrf.mxu1  ;;  %13235 = vmatmul.mubr.msk.bf16.gmra.mxu1 %vm27_vm1, %v14891_v61  ;;  %v1716_v35 = vadd.f32 %v13006_v33, %v14899_v5  ;;  %v15215_v40 = vadd.f32 %v2032_v41, %v1711_v50  ;;  %13172 = vmatprep.mubr.msk.bf16.mxu0 %vm27_vm1, %v15206_v19  ;;  %v2370_v50 = vld [vmem:[#allocation2 + $0x2d1] sm:$0xff]  ;;  %v2371_v33 = vld [vmem:[#allocation2 + $0x2d9] sm:$0xff] }
 0x18a   :  { %13238 = vmatprep.mubr.msk.bf16.mxu1 %vm27_vm1, %v14907_v8  ;;  %v1495_v3 = vpop.f32.mrf.mxu0  ;;  %v2407_v44 = vpack.c.bf16 %v2371_v33, %v2370_v50 }
 0x18b   :  { %v2045_v47 = vpop.f32.mrf.mxu1  ;;  %v1714_v28 = vadd.f32 %v1495_v3, %v14905_v38  ;;  %v15222_v18 = vadd.f32 %v13072_v30, %v1716_v35  ;;  %v2372_v35 = vld [vmem:[#allocation2 + $0x2e9] sm:$0xff] }
 0x18c   :  { %v13007_v61 = vpop.f32.mrf.mxu0 }
 0x18d   :  { %v13073_v5 = vpop.f32.mrf.mxu1  ;;  %v1717_v20 = vadd.f32 %v13007_v61, %v14909_v58  ;;  %v15225_v0 = vadd.f32 %v2045_v47, %v1714_v28 }
 0x18e   :  { %v1498_v29 = vpop.f32.mrf.mxu0 }
 0x18f   :  { %v2048_v7 = vpop.f32.mrf.mxu1  ;;  %v1715_v8 = vadd.f32 %v1498_v29, %v14913_v45  ;;  %v15230_v60 = vadd.f32 %v13073_v5, %v1717_v20  ;;  %v15248_v5 = vpack.c.bf16 %v2373_v48, %v2372_v35  ;;  %v21140_v35 = vld [vmem:[#allocation9_spill] sm:$0xff] }
 0x190   :  { %v13010_v37 = vpop.f32.mrf.mxu0  ;;  %13173 = vmatmul.mubr.msk.bf16.gmra.mxu0 %vm27_vm1, %v2405_v52 }
 0x191   :  { %v13076_v38 = vpop.f32.mrf.mxu1  ;;  %13239 = vmatmul.mubr.msk.bf16.gmra.mxu1 %vm27_vm1, %v14911_v39  ;;  %v1720_v41 = vadd.f32 %v13010_v37, %v14919_v62  ;;  %v15236_v58 = vadd.f32 %v2048_v7, %v1715_v8  ;;  %13176 = vmatprep.mubr.msk.bf16.mxu0 %vm27_vm1, %v15227_v36  ;;  %21134 = vst [vmem:[#allocation4_spill] sm:$0xff] %v15248_v5 }
 0x192   :  { %13242 = vmatprep.mubr.msk.bf16.mxu1 %vm27_vm1, %v14927_v53  ;;  %v1511_v45 = vpop.f32.mrf.mxu0  ;;  %v21135_v53 = vld [vmem:[#allocation6_spill] sm:$0xff] }
 0x193   :  { %v2061_v30 = vpop.f32.mrf.mxu1  ;;  %v1718_v3 = vadd.f32 %v1511_v45, %v21131_v11  ;;  %v15243_v47 = vadd.f32 %v13076_v38, %v1720_v41  ;;  %v21137_v38 = vld [vmem:[#allocation5_spill] sm:$0xff]  ;;  %v21138_v41 = vld [vmem:[#allocation7_spill] sm:$0xff] }
 0x194   :  { %v13011_v39 = vpop.f32.mrf.mxu0  ;;  %v2374_v45 = vld [vmem:[#allocation2 + $0x301] sm:$0xff] }
 0x195   :  { %v13077_v62 = vpop.f32.mrf.mxu1  ;;  %v1721_v28 = vadd.f32 %v13011_v39, %v21132_v15  ;;  %v15246_v61 = vadd.f32 %v2061_v30, %v1718_v3  ;;  %v2375_v30 = vld [vmem:[#allocation2 + $0x309] sm:$0xff]  ;;  %v2376_v3 = vld [vmem:[#allocation2 + $0x319] sm:$0xff]  ;;  %v2377_v39 = vld [vmem:[#allocation2 + $0x321] sm:$0xff] }
 0x196   :  { %v1514_v52 = vpop.f32.mrf.mxu0 }
 0x197   :  { %21133 = vst [vmem:[#allocation3_spill] sm:$0xff] %v15246_v61  ;;  %v2064_v20 = vpop.f32.mrf.mxu1  ;;  %v1719_v29 = vadd.f32 %v1514_v52, %v21135_v53  ;;  %v15251_v7 = vadd.f32 %v13077_v62, %v1721_v28  ;;  %v21141_v62 = vld [vmem:[#allocation8_spill] sm:$0xff]  ;;  %v21142_v53 = vld [vmem:[#allocation10_spill] sm:$0xff] }
 0x198   :  { %v13014_v8 = vpop.f32.mrf.mxu0  ;;  %13177 = vmatmul.mubr.msk.bf16.gmra.mxu0 %vm27_vm1, %v2407_v44 }
 0x199   :  { %21136 = vst [vmem:[#allocation6_spill] sm:$0xff] %v15251_v7  ;;  %v13080_v37 = vpop.f32.mrf.mxu1  ;;  %13243 = vmatmul.mubr.msk.bf16.gmra.mxu1 %vm27_vm1, %v21137_v38  ;;  %v1724_v50 = vadd.f32 %v13014_v8, %v21138_v41  ;;  %v15257_v33 = vadd.f32 %v2064_v20, %v1719_v29  ;;  %13180 = vmatprep.mubr.msk.bf16.mxu0 %vm27_vm1, %v15248_v5 }
 0x19a   :  { %13246 = vmatprep.mubr.msk.bf16.mxu1 %vm27_vm1, %v21140_v35  ;;  %v1527_v48 = vpop.f32.mrf.mxu0  ;;  %v2409_v20 = vpack.c.bf16 %v2375_v30, %v2374_v45  ;;  %v15269_v38 = vpack.c.bf16 %v2377_v39, %v2376_v3  ;;  %v21145_v35 = vld [vmem:[#allocation12_spill] sm:$0xff]  ;;  %v2378_v45 = vld [vmem:[#allocation2 + $0x331] sm:$0xff]  ;;  %v2379_v3 = vld [vmem:[#allocation2 + $0x339] sm:$0xff] }
 0x19b   :  { %21139 = vst [vmem:[#allocation5_spill] sm:$0xff] %v15257_v33  ;;  %v2077_v11 = vpop.f32.mrf.mxu1  ;;  %v1722_v44 = vadd.f32 %v1527_v48, %v21141_v62  ;;  %v15264_v15 = vadd.f32 %v13080_v37, %v1724_v50  ;;  %v21147_v50 = vld [vmem:[#allocation11_spill] sm:$0xff]  ;;  %v21148_v30 = vld [vmem:[#allocation13_spill] sm:$0xff] }
 0x19c   :  { %v13015_v28 = vpop.f32.mrf.mxu0  ;;  %21144 = vst [vmem:[#allocation9_spill] sm:$0xff] %v15269_v38  ;;  %v2928_v39 = vld [vmem:[#allocation2 + $0x332] sm:$0xff]  ;;  %v2929_v62 = vld [vmem:[#allocation2 + $0x33a] sm:$0xff] }
 0x19d   :  { %v13081_v52 = vpop.f32.mrf.mxu1  ;;  %v1725_v29 = vadd.f32 %v13015_v28, %v21142_v53  ;;  %v15267_v8 = vadd.f32 %v2077_v11, %v1722_v44 }
 0x19e   :  { %v1530_v41 = vpop.f32.mrf.mxu0 }
 0x19f   :  { %21143 = vst [vmem:[#allocation7_spill] sm:$0xff] %v15267_v8  ;;  %v2080_v5 = vpop.f32.mrf.mxu1  ;;  %v1723_v33 = vadd.f32 %v1530_v41, %v21145_v35  ;;  %v15272_v7 = vadd.f32 %v13081_v52, %v1725_v29  ;;  %v3417_v52 = vld [vmem:[#allocation2 + $0x30] sm:$0xff]  ;;  %v2961_v41 = vpack.c.bf16 %v2929_v62, %v2928_v39  ;;  %v3421_v39 = vld [vmem:[#allocation2 + $0x60] sm:$0xff]  ;;  %v3422_v62 = vld [vmem:[#allocation2 + $0x68] sm:$0xff] }
 0x1a0   :  { %v13018_v61 = vpop.f32.mrf.mxu0  ;;  %13181 = vmatmul.mubr.msk.bf16.gmra.mxu0 %vm27_vm1, %v2409_v20  ;;  %v3418_v20 = vld [vmem:[#allocation2 + $0x38] sm:$0xff] }
 0x1a1   :  { %21146 = vst [vmem:[#allocation8_spill] sm:$0xff] %v15272_v7  ;;  %v13084_v37 = vpop.f32.mrf.mxu1  ;;  %13247 = vmatmul.mubr.msk.bf16.gmra.mxu1 %vm27_vm1, %v21147_v50  ;;  %v1728_v48 = vadd.f32 %v13018_v61, %v21148_v30  ;;  %v15278_v11 = vadd.f32 %v2080_v5, %v1723_v33  ;;  %13184 = vmatprep.mubr.msk.bf16.mxu0 %vm27_vm1, %v15269_v38 }
 0x1a2   :  { %13250 = vmatprep.mubr.msk.bf16.mxu1 %vm27_vm1, %v14967_v27  ;;  %v1543_v44 = vpop.f32.mrf.mxu0  ;;  %v2411_v33 = vpack.c.bf16 %v2379_v3, %v2378_v45  ;;  %v3481_v30 = vpack.c.bf16 %v3418_v20, %v3417_v52 }
 0x1a3   :  { %21149 = vst [vmem:[#allocation10_spill] sm:$0xff] %v15278_v11  ;;  %v2093_v28 = vpop.f32.mrf.mxu1  ;;  %v1726_v53 = vadd.f32 %v1543_v44, %v14965_v25  ;;  %v15285_v29 = vadd.f32 %v13084_v37, %v1728_v48  ;;  %v3420_v48 = vld [vmem:[#allocation2 + $0x50] sm:$0xff]  ;;  %v21150_v44 = vld [vmem:[#allocation14_spill] sm:$0xff] }
 0x1a4   :  { %v13019_v61 = vpop.f32.mrf.mxu0 }
 0x1a5   :  { %v13085_v5 = vpop.f32.mrf.mxu1  ;;  %v1729_v35 = vadd.f32 %v13019_v61, %v14969_v46  ;;  %v15288_v50 = vadd.f32 %v2093_v28, %v1726_v53  ;;  %v3419_v46 = vld [vmem:[#allocation2 + $0x48] sm:$0xff]  ;;  %v3483_v61 = vpack.c.bf16 %v3422_v62, %v3421_v39  ;;  %v3424_v39 = vld [vmem:[#allocation2 + $0x80] sm:$0xff] }
 0x1a6   :  { %v1546_v27 = vpop.f32.mrf.mxu0 }
 0x1a7   :  { %v2096_v38 = vpop.f32.mrf.mxu1  ;;  %v1727_v11 = vadd.f32 %v1546_v27, %v14971_v57  ;;  %v15291_v7 = vadd.f32 %v13085_v5, %v1729_v35 }
 0x1a8   :  { %v13022_v8 = vpop.f32.mrf.mxu0  ;;  %13185 = vmatmul.mubr.msk.bf16.gmra.mxu0 %vm27_vm1, %v2411_v33 }
 0x1a9   :  { %v13088_v25 = vpop.f32.mrf.mxu1  ;;  %13251 = vmatmul.mubr.msk.bf16.gmra.mxu1 %vm27_vm1, %v2961_v41  ;;  %v1732_v37 = vadd.f32 %v13022_v8, %v14976_v17  ;;  %v15296_v45 = vadd.f32 %v2096_v38, %v1727_v11  ;;  %13256 = vmatprep.mubr.msk.bf16.mxu0 %vm27_vm1, %v3481_v30  ;;  %v3482_v17 = vpack.c.bf16 %v3420_v48, %v3419_v46  ;;  %v21151_v8 = vld [vmem:[#allocation15_spill] sm:$0xff]  ;;  %v21152_v41 = vld [vmem:[#allocation17_spill] sm:$0xff]  ;;  %v4712_v30 = vsel %vm535_vm0, %v15146_v22, 0  ;;  %v21154_v46 = vld [vmem:[#allocation18_spill] sm:$0xff] }
 0x1aa   :  { %13322 = vmatprep.mubr.msk.bf16.mxu1 %vm27_vm1, %v14983_v4  ;;  %v1559_v57 = vpop.f32.mrf.mxu0 }
 0x1ab   :  { %v2109_v3 = vpop.f32.mrf.mxu1  ;;  %v1730_v28 = vadd.f32 %v1559_v57, %v21150_v44  ;;  %v15302_v52 = vadd.f32 %v13088_v25, %v1732_v37  ;;  %v21153_v37 = vld [vmem:[#allocation16_spill] sm:$0xff]  ;;  %v3425_v44 = vld [vmem:[#allocation2 + $0x90] sm:$0xff] }
 0x1ac   :  { %v13023_v20 = vpop.f32.mrf.mxu0 }
 0x1ad   :  { %v13089_v53 = vpop.f32.mrf.mxu1  ;;  %v1733_v38 = vadd.f32 %v13023_v20, %v21151_v8  ;;  %v15305_v11 = vadd.f32 %v2109_v3, %v1730_v28  ;;  %v3423_v3 = vld [vmem:[#allocation2 + $0x78] sm:$0xff] }
 0x1ae   :  { %v1562_v5 = vpop.f32.mrf.mxu0  ;;  %v3426_v28 = vld [vmem:[#allocation2 + $0x98] sm:$0xff] }
 0x1af   :  { %v2112_v33 = vpop.f32.mrf.mxu1  ;;  %v1731_v4 = vadd.f32 %v1562_v5, %v21152_v41  ;;  %v15308_v35 = vadd.f32 %v13089_v53, %v1733_v38  ;;  %v3484_v38 = vpack.c.bf16 %v3424_v39, %v3423_v3  ;;  %v3428_v39 = vld [vmem:[#allocation2 + $0xb0] sm:$0xff] }
 0x1b0   :  { %v13026_v27 = vpop.f32.mrf.mxu0  ;;  %13257 = vmatmul.mubr.msk.bf16.vlgmr.msra.gmra.mxu0 %vm27_vm1, %v3482_v17 }
 0x1b1   :  { %v13092_v25 = vpop.f32.mrf.mxu1  ;;  %13323 = vmatmul.mubr.msk.bf16.vlgmr.msra.gmra.mxu1 %vm27_vm1, %v21153_v37  ;;  %v1736_v48 = vadd.f32 %v13026_v27, %v21154_v46  ;;  %v15316_v57 = vadd.f32 %v2112_v33, %v1731_v4  ;;  %13260 = vmatprep.mubr.msk.bf16.mxu0 %vm27_vm1, %v3483_v61  ;;  %v3485_v33 = vpack.c.bf16 %v3426_v28, %v3425_v44  ;;  %v3429_v44 = vld [vmem:[#allocation2 + $0xc0] sm:$0xff]  ;;  %v3430_v28 = vld [vmem:[#allocation2 + $0xc8] sm:$0xff] }
 0x1b2   :  { %13326 = vmatprep.mubr.msk.bf16.mxu1 %vm27_vm1, %v15010_v21  ;;  %v1575_v62 = vpop.f32.mrf.mxu0  ;;  %13387 = vmatpush3.bf16.msra.mxu0 %v4712_v30  ;;  %v21155_v21 = vld [vmem:[#allocation20_spill] sm:$0xff]  ;;  %v21156_v30 = vld [vmem:[#allocation19_spill] sm:$0xff] }
 0x1b3   :  { %v2125_v22 = vpop.f32.mrf.mxu1  ;;  %v1734_v20 = vadd.f32 %v1575_v62, %v15008_v13  ;;  %v15322_v53 = vadd.f32 %v13092_v25, %v1736_v48  ;;  %v21157_v25 = vld [vmem:[#allocation21_spill] sm:$0xff] }
 0x1b4   :  { %v13027_v17 = vpop.f32.mrf.mxu0 }
 0x1b5   :  { %v13093_v8 = vpop.f32.mrf.mxu1  ;;  %v1737_v5 = vadd.f32 %v13027_v17, %v15012_v56  ;;  %v15325_v61 = vadd.f32 %v2125_v22, %v1734_v20  ;;  %v3427_v56 = vld [vmem:[#allocation2 + $0xa8] sm:$0xff] }
 0x1b6   :  { %v1578_v41 = vpop.f32.mrf.mxu0 }
 0x1b7   :  { %v2128_v4 = vpop.f32.mrf.mxu1  ;;  %v1735_v27 = vadd.f32 %v1578_v41, %v21155_v21  ;;  %v15328_v37 = vadd.f32 %v13093_v8, %v1737_v5  ;;  %v3486_v5 = vpack.c.bf16 %v3428_v39, %v3427_v56  ;;  %v21159_v41 = vld [vmem:[#allocation22_spill] sm:$0xff] }
 0x1b8   :  { %v13030_v46 = vpop.f32.mrf.mxu0  ;;  %13261 = vmatmul.mubr.msk.bf16.gmra.mxu0 %vm27_vm1, %v3484_v38 }
 0x1b9   :  { %v13096_v13 = vpop.f32.mrf.mxu1  ;;  %13327 = vmatmul.mubr.msk.bf16.gmra.mxu1 %vm27_vm1, %v21156_v30  ;;  %v1740_v48 = vadd.f32 %v13030_v46, %v21157_v25  ;;  %v15334_v3 = vadd.f32 %v2128_v4, %v1735_v27  ;;  %13264 = vmatprep.mubr.msk.bf16.mxu0 %vm27_vm1, %v3485_v33  ;;  %v3487_v33 = vpack.c.bf16 %v3430_v28, %v3429_v44  ;;  %v21161_v30 = vld [vmem:[#allocation24_spill] sm:$0xff] }
 0x1ba   :  { %13330 = vmatprep.mubr.msk.bf16.mxu1 %vm27_vm1, %v15030_v14  ;;  %v1591_v62 = vpop.f32.mrf.mxu0 }
 0x1bb   :  { %21158 = vst [vmem:[#allocation12_spill] sm:$0xff] %v15334_v3  ;;  %v2141_v22 = vpop.f32.mrf.mxu1  ;;  %v1738_v20 = vadd.f32 %v1591_v62, %v15028_v12  ;;  %v15340_v17 = vadd.f32 %v13096_v13, %v1740_v48  ;;  %v21163_v13 = vld [vmem:[#allocation23_spill] sm:$0xff]  ;;  %v21164_v48 = vld [vmem:[#allocation25_spill] sm:$0xff]  ;;  %v3431_v62 = vld [vmem:[#allocation2 + $0xd8] sm:$0xff] }
 0x1bc   :  { %v13031_v8 = vpop.f32.mrf.mxu0 }
 0x1bd   :  { %v13097_v38 = vpop.f32.mrf.mxu1  ;;  %v1741_v4 = vadd.f32 %v13031_v8, %v21159_v41  ;;  %v15343_v21 = vadd.f32 %v2141_v22, %v1738_v20  ;;  %v3432_v22 = vld [vmem:[#allocation2 + $0xe0] sm:$0xff]  ;;  %v3433_v20 = vld [vmem:[#allocation2 + $0xf0] sm:$0xff]  ;;  %v3434_v8 = vld [vmem:[#allocation2 + $0xf8] sm:$0xff] }
 0x1be   :  { %v1594_v27 = vpop.f32.mrf.mxu0 }
 0x1bf   :  { %21160 = vst [vmem:[#allocation11_spill] sm:$0xff] %v15343_v21  ;;  %v2144_v46 = vpop.f32.mrf.mxu1  ;;  %v1739_v14 = vadd.f32 %v1594_v27, %v21161_v30  ;;  %v15346_v25 = vadd.f32 %v13097_v38, %v1741_v4  ;;  %v21167_v27 = vld [vmem:[#allocation26_spill] sm:$0xff] }
 0x1c0   :  { %v13034_v3 = vpop.f32.mrf.mxu0  ;;  %13265 = vmatmul.mubr.msk.bf16.gmra.mxu0 %vm27_vm1, %v3486_v5 }
 0x1c1   :  { %21162 = vst [vmem:[#allocation13_spill] sm:$0xff] %v15346_v25  ;;  %v13100_v12 = vpop.f32.mrf.mxu1  ;;  %13331 = vmatmul.mubr.msk.bf16.gmra.mxu1 %vm27_vm1, %v21163_v13  ;;  %v1744_v56 = vadd.f32 %v13034_v3, %v21164_v48  ;;  %v15352_v39 = vadd.f32 %v2144_v46, %v1739_v14  ;;  %13268 = vmatprep.mubr.msk.bf16.mxu0 %vm27_vm1, %v3487_v33  ;;  %v21169_v48 = vld [vmem:[#allocation28_spill] sm:$0xff] }
 0x1c2   :  { %13334 = vmatprep.mubr.msk.bf16.mxu1 %vm27_vm1, %v15050_v51  ;;  %v1607_v44 = vpop.f32.mrf.mxu0  ;;  %v3488_v3 = vpack.c.bf16 %v3432_v22, %v3431_v62  ;;  %v3489_v33 = vpack.c.bf16 %v3434_v8, %v3433_v20  ;;  %v3437_v20 = vld [vmem:[#allocation2 + $0x120] sm:$0xff] }
 0x1c3   :  { %21165 = vst [vmem:[#allocation14_spill] sm:$0xff] %v15352_v39  ;;  %v2157_v28 = vpop.f32.mrf.mxu1  ;;  %v1742_v38 = vadd.f32 %v1607_v44, %v15048_v16  ;;  %v15358_v5 = vadd.f32 %v13100_v12, %v1744_v56  ;;  %v21171_v12 = vld [vmem:[#allocation27_spill] sm:$0xff]  ;;  %v21172_v56 = vld [vmem:[#allocation29_spill] sm:$0xff]  ;;  %v3435_v44 = vld [vmem:[#allocation2 + $0x108] sm:$0xff] }
 0x1c4   :  { %v13035_v41 = vpop.f32.mrf.mxu0 }
 0x1c5   :  { %21166 = vst [vmem:[#allocation15_spill] sm:$0xff] %v15358_v5  ;;  %v13101_v4 = vpop.f32.mrf.mxu1  ;;  %v1745_v46 = vadd.f32 %v13035_v41, %v21167_v27  ;;  %v15361_v30 = vadd.f32 %v2157_v28, %v1742_v38  ;;  %v3436_v28 = vld [vmem:[#allocation2 + $0x110] sm:$0xff]  ;;  %v3438_v41 = vld [vmem:[#allocation2 + $0x128] sm:$0xff] }
 0x1c6   :  { %v1610_v14 = vpop.f32.mrf.mxu0 }
 0x1c7   :  { %21168 = vst [vmem:[#allocation17_spill] sm:$0xff] %v15361_v30  ;;  %v2160_v13 = vpop.f32.mrf.mxu1  ;;  %v1743_v51 = vadd.f32 %v1610_v14, %v21169_v48  ;;  %v15364_v39 = vadd.f32 %v13101_v4, %v1745_v46  ;;  %v3987_v4 = vld [vmem:[#allocation2 + $0x121] sm:$0xff]  ;;  %v21175_v48 = vld [vmem:[#allocation30_spill] sm:$0xff] }
 0x1c8   :  { %v13038_v25 = vpop.f32.mrf.mxu0  ;;  %13269 = vmatmul.mubr.msk.bf16.gmra.mxu0 %vm27_vm1, %v3488_v3  ;;  %v3988_v3 = vld [vmem:[#allocation2 + $0x129] sm:$0xff] }
 0x1c9   :  { %21170 = vst [vmem:[#allocation16_spill] sm:$0xff] %v15364_v39  ;;  %v13104_v16 = vpop.f32.mrf.mxu1  ;;  %13335 = vmatmul.mubr.msk.bf16.gmra.mxu1 %vm27_vm1, %v21171_v12  ;;  %v1748_v62 = vadd.f32 %v13038_v25, %v21172_v56  ;;  %v15370_v22 = vadd.f32 %v2160_v13, %v1743_v51  ;;  %13272 = vmatprep.mubr.msk.bf16.mxu0 %vm27_vm1, %v3489_v33  ;;  %v21177_v39 = vld [vmem:[#allocation32_spill] sm:$0xff] }
 0x1ca   :  { %13338 = vmatprep.mubr.msk.bf16.mxu1 %vm27_vm1, %v15070_v10  ;;  %v1623_v8 = vpop.f32.mrf.mxu0  ;;  %v3490_v13 = vpack.c.bf16 %v3436_v28, %v3435_v44  ;;  %v3491_v12 = vpack.c.bf16 %v3438_v41, %v3437_v20  ;;  %v4041_v56 = vpack.c.bf16 %v3988_v3, %v3987_v4  ;;  %v3439_v20 = vld [vmem:[#allocation2 + $0x138] sm:$0xff] }
 0x1cb   :  { %21173 = vst [vmem:[#allocation18_spill] sm:$0xff] %v15370_v22  ;;  %v2173_v38 = vpop.f32.mrf.mxu1  ;;  %v1746_v27 = vadd.f32 %v1623_v8, %v15068_v9  ;;  %v15376_v46 = vadd.f32 %v13104_v16, %v1748_v62  ;;  %v21179_v16 = vld [vmem:[#allocation31_spill] sm:$0xff]  ;;  %v21180_v62 = vld [vmem:[#allocation33_spill] sm:$0xff]  ;;  %v3442_v4 = vld [vmem:[#allocation2 + $0x158] sm:$0xff] }
 0x1cc   :  { %v13039_v25 = vpop.f32.mrf.mxu0  ;;  %v3440_v8 = vld [vmem:[#allocation2 + $0x140] sm:$0xff]  ;;  %v3991_v3 = vld [vmem:[#allocation2 + $0x151] sm:$0xff] }
 0x1cd   :  { %21174 = vst [vmem:[#allocation20_spill] sm:$0xff] %v15376_v46  ;;  %v13105_v14 = vpop.f32.mrf.mxu1  ;;  %v1749_v33 = vadd.f32 %v13039_v25, %v21175_v48  ;;  %v15379_v51 = vadd.f32 %v2173_v38, %v1746_v27  ;;  %v3992_v27 = vld [vmem:[#allocation2 + $0x159] sm:$0xff] }
 0x1ce   :  { %v1626_v10 = vpop.f32.mrf.mxu0  ;;  %v21182_v25 = vld [vmem:[#allocation34_spill] sm:$0xff] }
 0x1cf   :  { %21176 = vst [vmem:[#allocation19_spill] sm:$0xff] %v15379_v51  ;;  %v2176_v22 = vpop.f32.mrf.mxu1  ;;  %v1747_v30 = vadd.f32 %v1626_v10, %v21177_v39  ;;  %v15382_v5 = vadd.f32 %v13105_v14, %v1749_v33  ;;  %v3441_v39 = vld [vmem:[#allocation2 + $0x150] sm:$0xff] }
 0x1d0   :  { %v13042_v21 = vpop.f32.mrf.mxu0  ;;  %13273 = vmatmul.mubr.msk.bf16.gmra.mxu0 %vm27_vm1, %v3490_v13  ;;  %v3493_v10 = vpack.c.bf16 %v3442_v4, %v3441_v39  ;;  %v3443_v39 = vld [vmem:[#allocation2 + $0x168] sm:$0xff] }
 0x1d1   :  { %21178 = vst [vmem:[#allocation21_spill] sm:$0xff] %v15382_v5  ;;  %v13108_v9 = vpop.f32.mrf.mxu1  ;;  %13339 = vmatmul.mubr.msk.bf16.gmra.mxu1 %vm27_vm1, %v21179_v16  ;;  %v1752_v44 = vadd.f32 %v13042_v21, %v21180_v62  ;;  %v15388_v28 = vadd.f32 %v2176_v22, %v1747_v30  ;;  %13276 = vmatprep.mubr.msk.bf16.mxu0 %vm27_vm1, %v3491_v12  ;;  %v21184_v22 = vld [vmem:[#allocation35_spill] sm:$0xff] }
 0x1d2   :  { %13342 = vmatprep.mubr.msk.bf16.mxu1 %vm27_vm1, %v4041_v56  ;;  %v1639_v38 = vpop.f32.mrf.mxu0  ;;  %v3492_v30 = vpack.c.bf16 %v3440_v8, %v3439_v20  ;;  %v4043_v16 = vpack.c.bf16 %v3992_v27, %v3991_v3  ;;  %v21189_v20 = vld [vmem:[#allocation38_spill] sm:$0xff]  ;;  %v3446_v27 = vld [vmem:[#allocation2 + $0x188] sm:$0xff] }
 0x1d3   :  { %21181 = vst [vmem:[#allocation22_spill] sm:$0xff] %v15388_v28  ;;  %v2189_v41 = vpop.f32.mrf.mxu1  ;;  %v1750_v14 = vadd.f32 %v1639_v38, %v21182_v25  ;;  %v15393_v13 = vadd.f32 %v13108_v9, %v1752_v44  ;;  %v21186_v28 = vld [vmem:[#allocation37_spill] sm:$0xff]  ;;  %v21188_v44 = vld [vmem:[#allocation36_spill] sm:$0xff] }
 0x1d4   :  { %v13043_v48 = vpop.f32.mrf.mxu0  ;;  %v3995_v25 = vld [vmem:[#allocation2 + $0x181] sm:$0xff] }
 0x1d5   :  { %21183 = vst [vmem:[#allocation24_spill] sm:$0xff] %v15393_v13  ;;  %v13109_v21 = vpop.f32.mrf.mxu1  ;;  %v1753_v33 = vadd.f32 %v13043_v48, %v21184_v22  ;;  %v15396_v12 = vadd.f32 %v2189_v41, %v1750_v14  ;;  %v3444_v41 = vld [vmem:[#allocation2 + $0x170] sm:$0xff]  ;;  %v21191_v48 = vld [vmem:[#allocation39_spill] sm:$0xff] }
 0x1d6   :  { %v1642_v56 = vpop.f32.mrf.mxu0  ;;  %v3996_v14 = vld [vmem:[#allocation2 + $0x189] sm:$0xff] }
 0x1d7   :  { %21185 = vst [vmem:[#allocation23_spill] sm:$0xff] %v15396_v12  ;;  %v2192_v62 = vpop.f32.mrf.mxu1  ;;  %v1751_v5 = vadd.f32 %v1642_v56, %v21186_v28  ;;  %v15399_v51 = vadd.f32 %v13109_v21, %v1753_v33  ;;  %v3445_v28 = vld [vmem:[#allocation2 + $0x180] sm:$0xff]  ;;  %v21193_v33 = vld [vmem:[#allocation40_spill] sm:$0xff] }
 0x1d8   :  { %v13046_v46 = vpop.f32.mrf.mxu0  ;;  %13277 = vmatmul.mubr.msk.bf16.gmra.mxu0 %vm27_vm1, %v3492_v30 }
 0x1d9   :  { %21187 = vst [vmem:[#allocation25_spill] sm:$0xff] %v15399_v51  ;;  %v13112_v9 = vpop.f32.mrf.mxu1  ;;  %13343 = vmatmul.mubr.msk.bf16.gmra.mxu1 %vm27_vm1, %v21188_v44  ;;  %v1756_v8 = vadd.f32 %v13046_v46, %v21189_v20  ;;  %v15405_v38 = vadd.f32 %v2192_v62, %v1751_v5  ;;  %13280 = vmatprep.mubr.msk.bf16.mxu0 %vm27_vm1, %v3493_v10 }
 0x1da   :  { %13346 = vmatprep.mubr.msk.bf16.mxu1 %vm27_vm1, %v4043_v16  ;;  %v1655_v4 = vpop.f32.mrf.mxu0  ;;  %v3494_v5 = vpack.c.bf16 %v3444_v41, %v3443_v39  ;;  %v3495_v62 = vpack.c.bf16 %v3446_v27, %v3445_v28  ;;  %v4045_v44 = vpack.c.bf16 %v3996_v14, %v3995_v25  ;;  %v3447_v39 = vld [vmem:[#allocation2 + $0x198] sm:$0xff]  ;;  %v3448_v41 = vld [vmem:[#allocation2 + $0x1a0] sm:$0xff] }
 0x1db   :  { %21190 = vst [vmem:[#allocation26_spill] sm:$0xff] %v15405_v38  ;;  %v2205_v3 = vpop.f32.mrf.mxu1  ;;  %v1754_v21 = vadd.f32 %v1655_v4, %v21191_v48  ;;  %v15410_v30 = vadd.f32 %v13112_v9, %v1756_v8  ;;  %v21195_v38 = vld [vmem:[#allocation42_spill] sm:$0xff]  ;;  %v21197_v8 = vld [vmem:[#allocation41_spill] sm:$0xff]  ;;  %v21198_v4 = vld [vmem:[#allocation43_spill] sm:$0xff] }
 0x1dc   :  { %v13047_v22 = vpop.f32.mrf.mxu0  ;;  %v3998_v28 = vld [vmem:[#allocation2 + $0x1a1] sm:$0xff] }
 0x1dd   :  { %21192 = vst [vmem:[#allocation28_spill] sm:$0xff] %v15410_v30  ;;  %v13113_v46 = vpop.f32.mrf.mxu1  ;;  %v1757_v56 = vadd.f32 %v13047_v22, %v21193_v33  ;;  %v15413_v10 = vadd.f32 %v2205_v3, %v1754_v21  ;;  %v3449_v27 = vld [vmem:[#allocation2 + $0x1e0] sm:$0xff]  ;;  %v3450_v21 = vld [vmem:[#allocation2 + $0x1e8] sm:$0xff] }
 0x1de   :  { %v1658_v16 = vpop.f32.mrf.mxu0  ;;  %v3999_v22 = vld [vmem:[#allocation2 + $0x1e1] sm:$0xff] }
 0x1df   :  { %21194 = vst [vmem:[#allocation27_spill] sm:$0xff] %v15413_v10  ;;  %v2208_v20 = vpop.f32.mrf.mxu1  ;;  %v1755_v51 = vadd.f32 %v1658_v16, %v21195_v38  ;;  %v15416_v12 = vadd.f32 %v13113_v46, %v1757_v56  ;;  %v3997_v38 = vld [vmem:[#allocation2 + $0x199] sm:$0xff]  ;;  %v4000_v46 = vld [vmem:[#allocation2 + $0x1e9] sm:$0xff] }
 0x1e0   :  { %v13050_v13 = vpop.f32.mrf.mxu0  ;;  %13281 = vmatmul.mubr.msk.bf16.gmra.mxu0 %vm27_vm1, %v3494_v5  ;;  %v4046_v16 = vpack.c.bf16 %v3998_v28, %v3997_v38  ;;  %v3453_v38 = vld [vmem:[#allocation2 + $0x210] sm:$0xff] }
 0x1e1   :  { %21196 = vst [vmem:[#allocation29_spill] sm:$0xff] %v15416_v12  ;;  %v13116_v9 = vpop.f32.mrf.mxu1  ;;  %13347 = vmatmul.mubr.msk.bf16.gmra.mxu1 %vm27_vm1, %v21197_v8  ;;  %v1760_v3 = vadd.f32 %v13050_v13, %v21198_v4  ;;  %v15422_v48 = vadd.f32 %v2208_v20, %v1755_v51  ;;  %13284 = vmatprep.mubr.msk.bf16.mxu0 %vm27_vm1, %v3495_v62 }
 0x1e2   :  { %13350 = vmatprep.mubr.msk.bf16.mxu1 %vm27_vm1, %v4045_v44  ;;  %v1671_v25 = vpop.f32.mrf.mxu0  ;;  %v3496_v51 = vpack.c.bf16 %v3448_v41, %v3447_v39  ;;  %v3497_v44 = vpack.c.bf16 %v3450_v21, %v3449_v27  ;;  %v4047_v8 = vpack.c.bf16 %v4000_v46, %v3999_v22  ;;  %v3454_v27 = vld [vmem:[#allocation2 + $0x218] sm:$0xff]  ;;  %v21202_v21 = vld [vmem:[#allocation45_spill] sm:$0xff] }
 0x1e3   :  { %21199 = vst [vmem:[#allocation30_spill] sm:$0xff] %v15422_v48  ;;  %v2221_v14 = vpop.f32.mrf.mxu1  ;;  %v1758_v5 = vadd.f32 %v1671_v25, %v15122_v49  ;;  %v15427_v33 = vadd.f32 %v13116_v9, %v1760_v3  ;;  %v21200_v9 = vld [vmem:[#allocation44_spill] sm:$0xff]  ;;  %v3452_v3 = vld [vmem:[#allocation2 + $0x200] sm:$0xff]  ;;  %v4003_v25 = vld [vmem:[#allocation2 + $0x211] sm:$0xff] }
 0x1e4   :  { %v13051_v56 = vpop.f32.mrf.mxu0 }
 0x1e5   :  { %v13117_v13 = vpop.f32.mrf.mxu1  ;;  %v1761_v62 = vadd.f32 %v13051_v56, %v15124_v63  ;;  %v15430_v20 = vadd.f32 %v2221_v14, %v1758_v5  ;;  %v3451_v63 = vld [vmem:[#allocation2 + $0x1f8] sm:$0xff] }
 0x1e6   :  { %v1674_v4 = vpop.f32.mrf.mxu0  ;;  %v4004_v14 = vld [vmem:[#allocation2 + $0x219] sm:$0xff] }
 0x1e7   :  { %v2224_v48 = vpop.f32.mrf.mxu1  ;;  %v1759_v12 = vadd.f32 %v1674_v4, %v15126_v31  ;;  %v15433_v10 = vadd.f32 %v13117_v13, %v1761_v62 }
 0x1e8   :  { %v13054_v30 = vpop.f32.mrf.mxu0  ;;  %13285 = vmatmul.mubr.msk.bf16.gmra.mxu0 %vm27_vm1, %v3496_v51  ;;  %v3499_v51 = vpack.c.bf16 %v3454_v27, %v3453_v38  ;;  %v3455_v38 = vld [vmem:[#allocation2 + $0x228] sm:$0xff] }
 0x1e9   :  { %v13120_v49 = vpop.f32.mrf.mxu1  ;;  %13351 = vmatmul.mubr.msk.bf16.gmra.mxu1 %vm27_vm1, %v4046_v16  ;;  %v1764_v39 = vadd.f32 %v13054_v30, %v21200_v9  ;;  %v15438_v41 = vadd.f32 %v2224_v48, %v1759_v12  ;;  %13288 = vmatprep.mubr.msk.bf16.mxu0 %vm27_vm1, %v3497_v44  ;;  %v3498_v12 = vpack.c.bf16 %v3452_v3, %v3451_v63  ;;  %v21203_v48 = vld [vmem:[#allocation46_spill] sm:$0xff] }
 0x1ea   :  { %13354 = vmatprep.mubr.msk.bf16.mxu1 %vm27_vm1, %v4047_v8  ;;  %v1687_v31 = vpop.f32.mrf.mxu0  ;;  %v4049_v16 = vpack.c.bf16 %v4004_v14, %v4003_v25  ;;  %v21204_v8 = vld [vmem:[#allocation48_spill] sm:$0xff] }
 0x1eb   :  { %21201 = vst [vmem:[#allocation32_spill] sm:$0xff] %v15438_v41  ;;  %v2237_v28 = vpop.f32.mrf.mxu1  ;;  %v1762_v22 = vadd.f32 %v1687_v31, %v21202_v21  ;;  %v15443_v46 = vadd.f32 %v13120_v49, %v1764_v39  ;;  %v21205_v39 = vld [vmem:[#allocation47_spill] sm:$0xff]  ;;  %v3456_v31 = vld [vmem:[#allocation2 + $0x230] sm:$0xff]  ;;  %v3458_v14 = vld [vmem:[#allocation2 + $0x248] sm:$0xff] }
 0x1ec   :  { %v13055_v5 = vpop.f32.mrf.mxu0  ;;  %v4007_v21 = vld [vmem:[#allocation2 + $0x241] sm:$0xff] }
 0x1ed   :  { %v13121_v30 = vpop.f32.mrf.mxu1  ;;  %v1765_v56 = vadd.f32 %v13055_v5, %v21203_v48  ;;  %v15446_v13 = vadd.f32 %v2237_v28, %v1762_v22  ;;  %v3457_v28 = vld [vmem:[#allocation2 + $0x240] sm:$0xff]  ;;  %v4008_v22 = vld [vmem:[#allocation2 + $0x249] sm:$0xff] }
 0x1ee   :  { %v1690_v62 = vpop.f32.mrf.mxu0 }
 0x1ef   :  { %v2240_v44 = vpop.f32.mrf.mxu1  ;;  %v1763_v4 = vadd.f32 %v1690_v62, %v21204_v8  ;;  %v15449_v9 = vadd.f32 %v13121_v30, %v1765_v56  ;;  %v3500_v56 = vpack.c.bf16 %v3456_v31, %v3455_v38  ;;  %v4051_v62 = vpack.c.bf16 %v4008_v22, %v4007_v21  ;;  %v3460_v38 = vld [vmem:[#allocation2 + $0x260] sm:$0xff] }
 0x1f0   :  { %v13126_v41 = vpop.f32.mrf.mxu0  ;;  %13289 = vmatmul.mubr.msk.bf16.gmra.mxu0 %vm27_vm1, %v3498_v12 }
 0x1f1   :  { %v13192_v49 = vpop.f32.mrf.mxu1  ;;  %13355 = vmatmul.mubr.msk.bf16.gmra.mxu1 %vm27_vm1, %v21205_v39  ;;  %v15454_v63 = vadd.f32 %v2240_v44, %v1763_v4  ;;  %v2804_v3 = vadd.f32 %v13126_v41, %v15159_v24  ;;  %13292 = vmatprep.mubr.msk.bf16.mxu0 %vm27_vm1, %v3499_v51  ;;  %v3501_v51 = vpack.c.bf16 %v3458_v14, %v3457_v28  ;;  %v4012_v14 = vld [vmem:[#allocation2 + $0x279] sm:$0xff] }
 0x1f2   :  { %13358 = vmatprep.mubr.msk.bf16.mxu1 %vm27_vm1, %v4049_v16  ;;  %v2547_v27 = vpop.f32.mrf.mxu0 }
 0x1f3   :  { %v3097_v25 = vpop.f32.mrf.mxu1  ;;  %v2802_v5 = vadd.f32 %v2547_v27, %v15162_v26  ;;  %v15460_v30 = vadd.f32 %v13192_v49, %v2804_v3  ;;  %v3459_v3 = vld [vmem:[#allocation2 + $0x258] sm:$0xff] }
 0x1f4   :  { %v13127_v12 = vpop.f32.mrf.mxu0  ;;  %v3462_v27 = vld [vmem:[#allocation2 + $0x278] sm:$0xff] }
 0x1f5   :  { %v13193_v48 = vpop.f32.mrf.mxu1  ;;  %v2805_v24 = vadd.f32 %v13127_v12, %v15167_v42  ;;  %v15463_v41 = vadd.f32 %v3097_v25, %v2802_v5  ;;  %v4011_v25 = vld [vmem:[#allocation2 + $0x271] sm:$0xff]  ;;  %v3502_v5 = vpack.c.bf16 %v3460_v38, %v3459_v3 }
 0x1f6   :  { %v2550_v16 = vpop.f32.mrf.mxu0 }
 0x1f7   :  { %v3100_v44 = vpop.f32.mrf.mxu1  ;;  %v2803_v8 = vadd.f32 %v2550_v16, %v15173_v32  ;;  %v15466_v4 = vadd.f32 %v13193_v48, %v2805_v24  ;;  %v3461_v32 = vld [vmem:[#allocation2 + $0x270] sm:$0xff]  ;;  %v4053_v24 = vpack.c.bf16 %v4012_v14, %v4011_v25 }
 0x1f8   :  { %v13130_v39 = vpop.f32.mrf.mxu0  ;;  %13293 = vmatmul.mubr.msk.bf16.gmra.mxu0 %vm27_vm1, %v3500_v56  ;;  %v3503_v56 = vpack.c.bf16 %v3462_v27, %v3461_v32  ;;  %v3466_v32 = vld [vmem:[#allocation2 + $0x2a8] sm:$0xff] }
 0x1f9   :  { %v13196_v26 = vpop.f32.mrf.mxu1  ;;  %13359 = vmatmul.mubr.msk.bf16.gmra.mxu1 %vm27_vm1, %v15164_v54  ;;  %v2808_v49 = vadd.f32 %v13130_v39, %v15180_v43  ;;  %v15472_v42 = vadd.f32 %v3100_v44, %v2803_v8  ;;  %13296 = vmatprep.mubr.msk.bf16.mxu0 %vm27_vm1, %v3501_v51 }
 0x1fa   :  { %13362 = vmatprep.mubr.msk.bf16.mxu1 %vm27_vm1, %v4051_v62  ;;  %v2563_v31 = vpop.f32.mrf.mxu0 }
 0x1fb   :  { %v3113_v28 = vpop.f32.mrf.mxu1  ;;  %v2806_v21 = vadd.f32 %v2563_v31, %v15183_v1  ;;  %v15477_v22 = vadd.f32 %v13196_v26, %v2808_v49  ;;  %v3463_v26 = vld [vmem:[#allocation2 + $0x288] sm:$0xff]  ;;  %v3464_v49 = vld [vmem:[#allocation2 + $0x290] sm:$0xff] }
 0x1fc   :  { %v13131_v54 = vpop.f32.mrf.mxu0  ;;  %v4015_v31 = vld [vmem:[#allocation2 + $0x2a1] sm:$0xff]  ;;  %v3504_v14 = vpack.c.bf16 %v3464_v49, %v3463_v26  ;;  %v3470_v49 = vld [vmem:[#allocation2 + $0x2d8] sm:$0xff] }
 0x1fd   :  { %v13197_v43 = vpop.f32.mrf.mxu1  ;;  %v2809_v12 = vadd.f32 %v13131_v54, %v15188_v59  ;;  %v15480_v48 = vadd.f32 %v3113_v28, %v2806_v21  ;;  %v4016_v28 = vld [vmem:[#allocation2 + $0x2a9] sm:$0xff] }
 0x1fe   :  { %v2566_v51 = vpop.f32.mrf.mxu0 }
 0x1ff   :  { %v3116_v62 = vpop.f32.mrf.mxu1  ;;  %v2807_v16 = vadd.f32 %v2566_v51, %v15194_v23  ;;  %v15483_v44 = vadd.f32 %v13197_v43, %v2809_v12  ;;  %v3465_v23 = vld [vmem:[#allocation2 + $0x2a0] sm:$0xff] }
 0x200   :  { %v13134_v8 = vpop.f32.mrf.mxu0  ;;  %13297 = vmatmul.mubr.msk.bf16.gmra.mxu0 %vm27_vm1, %v3502_v5  ;;  %v3505_v43 = vpack.c.bf16 %v3466_v32, %v3465_v23  ;;  %v4055_v5 = vpack.c.bf16 %v4016_v28, %v4015_v31  ;;  %v4019_v23 = vld [vmem:[#allocation2 + $0x2d1] sm:$0xff] }
 0x201   :  { %v13200_v1 = vpop.f32.mrf.mxu1  ;;  %13363 = vmatmul.mubr.msk.bf16.gmra.mxu1 %vm27_vm1, %v15185_v34  ;;  %v2812_v39 = vadd.f32 %v13134_v8, %v15201_v6  ;;  %v15489_v59 = vadd.f32 %v3116_v62, %v2807_v16  ;;  %13300 = vmatprep.mubr.msk.bf16.mxu0 %vm27_vm1, %v3503_v56  ;;  %v3467_v8 = vld [vmem:[#allocation2 + $0x2b8] sm:$0xff] }
 0x202   :  { %13366 = vmatprep.mubr.msk.bf16.mxu1 %vm27_vm1, %v4053_v24  ;;  %v2579_v3 = vpop.f32.mrf.mxu0 }
 0x203   :  { %v3129_v38 = vpop.f32.mrf.mxu1  ;;  %v2810_v27 = vadd.f32 %v2579_v3, %v15204_v55  ;;  %v15494_v25 = vadd.f32 %v13200_v1, %v2812_v39  ;;  %v3468_v1 = vld [vmem:[#allocation2 + $0x2c0] sm:$0xff] }
 0x204   :  { %v13135_v34 = vpop.f32.mrf.mxu0  ;;  %v4020_v3 = vld [vmem:[#allocation2 + $0x2d9] sm:$0xff]  ;;  %v3506_v31 = vpack.c.bf16 %v3468_v1, %v3467_v8  ;;  %v3474_v8 = vld [vmem:[#allocation2 + $0x308] sm:$0xff] }
 0x205   :  { %v13201_v6 = vpop.f32.mrf.mxu1  ;;  %v2813_v21 = vadd.f32 %v13135_v34, %v15209_v2  ;;  %v15497_v54 = vadd.f32 %v3129_v38, %v2810_v27  ;;  %v4023_v1 = vld [vmem:[#allocation2 + $0x301] sm:$0xff] }
 0x206   :  { %v2582_v12 = vpop.f32.mrf.mxu0 }
 0x207   :  { %v3132_v56 = vpop.f32.mrf.mxu1  ;;  %v2811_v24 = vadd.f32 %v2582_v12, %v15215_v40  ;;  %v15500_v51 = vadd.f32 %v13201_v6, %v2813_v21  ;;  %v3469_v40 = vld [vmem:[#allocation2 + $0x2d0] sm:$0xff]  ;;  %v4057_v6 = vpack.c.bf16 %v4020_v3, %v4019_v23  ;;  %v21207_v3 = vld [vmem:[#allocation6_spill] sm:$0xff] }
 0x208   :  { %v13138_v62 = vpop.f32.mrf.mxu0  ;;  %13301 = vmatmul.mubr.msk.bf16.gmra.mxu0 %vm27_vm1, %v3504_v14  ;;  %v3507_v34 = vpack.c.bf16 %v3470_v49, %v3469_v40  ;;  %v4024_v40 = vld [vmem:[#allocation2 + $0x309] sm:$0xff] }
 0x209   :  { %v13204_v55 = vpop.f32.mrf.mxu1  ;;  %13367 = vmatmul.mubr.msk.bf16.gmra.mxu1 %vm27_vm1, %v15206_v19  ;;  %v2816_v16 = vadd.f32 %v13138_v62, %v15222_v18  ;;  %v15506_v2 = vadd.f32 %v3132_v56, %v2811_v24  ;;  %13304 = vmatprep.mubr.msk.bf16.mxu0 %vm27_vm1, %v3505_v43  ;;  %v3471_v24 = vld [vmem:[#allocation2 + $0x2e8] sm:$0xff]  ;;  %v3472_v62 = vld [vmem:[#allocation2 + $0x2f0] sm:$0xff] }
 0x20a   :  { %13370 = vmatprep.mubr.msk.bf16.mxu1 %vm27_vm1, %v4055_v5  ;;  %v2595_v39 = vpop.f32.mrf.mxu0  ;;  %v3508_v23 = vpack.c.bf16 %v3472_v62, %v3471_v24  ;;  %v3476_v24 = vld [vmem:[#allocation2 + $0x320] sm:$0xff]  ;;  %v3477_v62 = vld [vmem:[#allocation2 + $0x330] sm:$0xff] }
 0x20b   :  { %v3145_v26 = vpop.f32.mrf.mxu1  ;;  %v2814_v38 = vadd.f32 %v2595_v39, %v15225_v0  ;;  %v15511_v32 = vadd.f32 %v13204_v55, %v2816_v16  ;;  %v21206_v39 = vld [vmem:[#allocation3_spill] sm:$0xff] }
 0x20c   :  { %v13139_v19 = vpop.f32.mrf.mxu0 }
 0x20d   :  { %v13205_v18 = vpop.f32.mrf.mxu1  ;;  %v2817_v28 = vadd.f32 %v13139_v19, %v15230_v60  ;;  %v15514_v27 = vadd.f32 %v3145_v26, %v2814_v38 }
 0x20e   :  { %v2598_v14 = vpop.f32.mrf.mxu0 }
 0x20f   :  { %v3148_v21 = vpop.f32.mrf.mxu1  ;;  %v2815_v43 = vadd.f32 %v2598_v14, %v15236_v58  ;;  %v15517_v5 = vadd.f32 %v13205_v18, %v2817_v28  ;;  %v3473_v58 = vld [vmem:[#allocation2 + $0x300] sm:$0xff]  ;;  %v4059_v18 = vpack.c.bf16 %v4024_v40, %v4023_v1  ;;  %v4027_v1 = vld [vmem:[#allocation2 + $0x331] sm:$0xff] }
 0x210   :  { %v13142_v12 = vpop.f32.mrf.mxu0  ;;  %13305 = vmatmul.mubr.msk.bf16.gmra.mxu0 %vm27_vm1, %v3506_v31  ;;  %v3509_v19 = vpack.c.bf16 %v3474_v8, %v3473_v58  ;;  %v3478_v8 = vld [vmem:[#allocation2 + $0x338] sm:$0xff] }
 0x211   :  { %v13208_v0 = vpop.f32.mrf.mxu1  ;;  %13371 = vmatmul.mubr.msk.bf16.gmra.mxu1 %vm27_vm1, %v15227_v36  ;;  %v2820_v56 = vadd.f32 %v13142_v12, %v15243_v47  ;;  %v15523_v60 = vadd.f32 %v3148_v21, %v2815_v43  ;;  %13308 = vmatprep.mubr.msk.bf16.mxu0 %vm27_vm1, %v3507_v34  ;;  %v21209_v34 = vld [vmem:[#allocation5_spill] sm:$0xff]  ;;  %v21211_v12 = vld [vmem:[#allocation4_spill] sm:$0xff]  ;;  %v4028_v40 = vld [vmem:[#allocation2 + $0x339] sm:$0xff] }
 0x212   :  { %13374 = vmatprep.mubr.msk.bf16.mxu1 %vm27_vm1, %v4057_v6  ;;  %v2611_v55 = vpop.f32.mrf.mxu0 }
 0x213   :  { %v15527_v16 = vpop.f32.mrf.mxu1  ;;  %v15530_v26 = vadd.f32 %v2611_v55, %v21206_v39  ;;  %v15532_v36 = vadd.f32 %v13208_v0, %v2820_v56  ;;  %v3475_v56 = vld [vmem:[#allocation2 + $0x318] sm:$0xff]  ;;  %v21213_v39 = vld [vmem:[#allocation7_spill] sm:$0xff] }
 0x214   :  { %v13143_v47 = vpop.f32.mrf.mxu0 }
 0x215   :  { %v13209_v49 = vpop.f32.mrf.mxu1  ;;  %v2821_v38 = vadd.f32 %v13143_v47, %v21207_v3  ;;  %v3510_v3 = vpack.c.bf16 %v3476_v24, %v3475_v56  ;;  %v3479_v56 = vld [vmem:[#allocation2 + $0x348] sm:$0xff] }
 0x216   :  { %v2614_v31 = vpop.f32.mrf.mxu0 }
 0x217   :  { %v15535_v28 = vpop.f32.mrf.mxu1  ;;  %v15538_v6 = vadd.f32 %v2614_v31, %v21209_v34  ;;  %v15540_v14 = vadd.f32 %v13209_v49, %v2821_v38  ;;  %v21214_v38 = vld [vmem:[#allocation8_spill] sm:$0xff]  ;;  %v3511_v31 = vpack.c.bf16 %v3478_v8, %v3477_v62  ;;  %v4061_v34 = vpack.c.bf16 %v4028_v40, %v4027_v1  ;;  %v3480_v62 = vld [vmem:[#allocation2 + $0x350] sm:$0xff] }
 0x218   :  { %21208 = vst [vmem:[#allocation31_spill] sm:$0xff] %v15535_v28  ;;  %v13146_v21 = vpop.f32.mrf.mxu0  ;;  %13309 = vmatmul.mubr.msk.bf16.gmra.mxu0 %vm27_vm1, %v3508_v23  ;;  %v4030_v8 = vld [vmem:[#allocation2 + $0x351] sm:$0xff] }
 0x219   :  { %21210 = vst [vmem:[#allocation33_spill] sm:$0xff] %v15538_v6  ;;  %v13212_v43 = vpop.f32.mrf.mxu1  ;;  %13375 = vmatmul.mubr.msk.bf16.gmra.mxu1 %vm27_vm1, %v21211_v12  ;;  %v2824_v0 = vadd.f32 %v13146_v21, %v15264_v15  ;;  %13312 = vmatprep.mubr.msk.bf16.mxu0 %vm27_vm1, %v3509_v19  ;;  %v21216_v12 = vld [vmem:[#allocation10_spill] sm:$0xff] }
 0x21a   :  { %13378 = vmatprep.mubr.msk.bf16.mxu1 %vm27_vm1, %v4059_v18  ;;  %v2627_v58 = vpop.f32.mrf.mxu0 }
 0x21b   :  { %v15548_v55 = vpop.f32.mrf.mxu1  ;;  %v15551_v47 = vadd.f32 %v2627_v58, %v21213_v39  ;;  %v15553_v49 = vadd.f32 %v13212_v43, %v2824_v0  ;;  %v21218_v0 = vld [vmem:[#allocation9_spill] sm:$0xff] }
 0x21c   :  { %21212 = vst [vmem:[#allocation34_spill] sm:$0xff] %v15548_v55  ;;  %v13147_v23 = vpop.f32.mrf.mxu0  ;;  %v4029_v58 = vld [vmem:[#allocation2 + $0x349] sm:$0xff]  ;;  %v4517_v39 = vld [vmem:[#allocation2 + $0x32] sm:$0xff] }
 0x21d   :  { %v13213_v15 = vpop.f32.mrf.mxu1  ;;  %v2825_v19 = vadd.f32 %v13147_v23, %v21214_v38  ;;  %v4518_v23 = vld [vmem:[#allocation2 + $0x3a] sm:$0xff] }
 0x21e   :  { %v2630_v18 = vpop.f32.mrf.mxu0 }
 0x21f   :  { %v15556_v21 = vpop.f32.mrf.mxu1  ;;  %v15559_v28 = vadd.f32 %v2630_v18, %v21216_v12  ;;  %v15561_v6 = vadd.f32 %v13213_v15, %v2825_v19  ;;  %v3512_v18 = vpack.c.bf16 %v3480_v62, %v3479_v56  ;;  %v4062_v12 = vpack.c.bf16 %v4030_v8, %v4029_v58  ;;  %v4521_v8 = vld [vmem:[#allocation2 + $0x62] sm:$0xff] }
 0x220   :  { %21215 = vst [vmem:[#allocation35_spill] sm:$0xff] %v15556_v21  ;;  %v13150_v55 = vpop.f32.mrf.mxu0  ;;  %13313 = vmatmul.mubr.msk.bf16.gmra.mxu0 %vm27_vm1, %v3510_v3 }
 0x221   :  { %21217 = vst [vmem:[#allocation37_spill] sm:$0xff] %v15559_v28  ;;  %v13216_v43 = vpop.f32.mrf.mxu1  ;;  %13379 = vmatmul.mubr.msk.bf16.gmra.mxu1 %vm27_vm1, %v21218_v0  ;;  %v2828_v24 = vadd.f32 %v13150_v55, %v15285_v29  ;;  %13316 = vmatprep.mubr.msk.bf16.mxu0 %vm27_vm1, %v3511_v31  ;;  %v4581_v31 = vpack.c.bf16 %v4518_v23, %v4517_v39 }
 0x222   :  { %13382 = vmatprep.mubr.msk.bf16.mxu1 %vm27_vm1, %v4061_v34  ;;  %v2643_v1 = vpop.f32.mrf.mxu0 }
 0x223   :  { %v3193_v40 = vpop.f32.mrf.mxu1  ;;  %v2826_v15 = vadd.f32 %v2643_v1, %v15288_v50  ;;  %v15570_v3 = vadd.f32 %v13216_v43, %v2828_v24  ;;  %v4520_v24 = vld [vmem:[#allocation2 + $0x52] sm:$0xff]  ;;  %v4522_v1 = vld [vmem:[#allocation2 + $0x6a] sm:$0xff] }
 0x224   :  { %v13151_v38 = vpop.f32.mrf.mxu0 }
 0x225   :  { %v13217_v19 = vpop.f32.mrf.mxu1  ;;  %v2829_v29 = vadd.f32 %v13151_v38, %v15291_v7  ;;  %v15573_v55 = vadd.f32 %v3193_v40, %v2826_v15  ;;  %v4519_v7 = vld [vmem:[#allocation2 + $0x4a] sm:$0xff] }
 0x226   :  { %v2646_v34 = vpop.f32.mrf.mxu0  ;;  %v4582_v15 = vpack.c.bf16 %v4520_v24, %v4519_v7  ;;  %v4525_v24 = vld [vmem:[#allocation2 + $0x92] sm:$0xff] }
 0x227   :  { %v15575_v0 = vpop.f32.mrf.mxu1  ;;  %v15578_v21 = vadd.f32 %v2646_v34, %v15296_v45  ;;  %v15580_v28 = vadd.f32 %v13217_v19, %v2829_v29 }
 0x228   :  { %21219 = vst [vmem:[#allocation36_spill] sm:$0xff] %v15575_v0  ;;  %v13154_v50 = vpop.f32.mrf.mxu0  ;;  %13317 = vmatmul.mubr.msk.bf16.gmra.mxu0 %vm27_vm1, %v3512_v18 }
 0x229   :  { %21220 = vst [vmem:[#allocation38_spill] sm:$0xff] %v15578_v21  ;;  %v13220_v43 = vpop.f32.mrf.mxu1  ;;  %13383 = vmatmul.mubr.msk.bf16.gmra.mxu1 %vm27_vm1, %v4062_v12  ;;  %v2832_v56 = vadd.f32 %v13154_v50, %v15302_v52  ;;  %13388 = vmatprep.mubr.msk.bf16.mxu0 %vm27_vm1, %v4581_v31  ;;  %v4583_v52 = vpack.c.bf16 %v4522_v1, %v4521_v8 }
 0x22a   :  { %v2659_v62 = vpop.f32.mrf.mxu0 }
 0x22b   :  { %v3209_v58 = vpop.f32.mrf.mxu1  ;;  %v2830_v45 = vadd.f32 %v2659_v62, %v15305_v11  ;;  %v15587_v40 = vadd.f32 %v13220_v43, %v2832_v56  ;;  %v4524_v43 = vld [vmem:[#allocation2 + $0x82] sm:$0xff]  ;;  %v4526_v62 = vld [vmem:[#allocation2 + $0x9a] sm:$0xff] }
 0x22c   :  { %v13155_v39 = vpop.f32.mrf.mxu0 }
 0x22d   :  { %v13221_v23 = vpop.f32.mrf.mxu1  ;;  %v2833_v38 = vadd.f32 %v13155_v39, %v15308_v35  ;;  %v15590_v19 = vadd.f32 %v3209_v58, %v2830_v45  ;;  %v4523_v35 = vld [vmem:[#allocation2 + $0x7a] sm:$0xff] }
 0x22e   :  { %v2662_v18 = vpop.f32.mrf.mxu0  ;;  %v4584_v45 = vpack.c.bf16 %v4524_v43, %v4523_v35 }
 0x22f   :  { %v15592_v12 = vpop.f32.mrf.mxu1  ;;  %v15595_v29 = vadd.f32 %v2662_v18, %v15316_v57  ;;  %v15597_v31 = vadd.f32 %v13221_v23, %v2833_v38 }
 0x230   :  { %21221 = vst [vmem:[#allocation39_spill] sm:$0xff] %v15592_v12  ;;  %v13158_v34 = vpop.f32.mrf.mxu0  ;;  %13389 = vmatmul.mubr.msk.bf16.vlgmr.msra.gmra.mxu0 %vm27_vm1, %v4582_v15 }
 0x231   :  { %21222 = vst [vmem:[#allocation40_spill] sm:$0xff] %v15595_v29  ;;  %v13224_v11 = vpop.f32.mrf.mxu1  ;;  %v2836_v50 = vadd.f32 %v13158_v34, %v15322_v53  ;;  %13392 = vmatprep.mubr.msk.bf16.mxu0 %vm27_vm1, %v4583_v52  ;;  %v4585_v53 = vpack.c.bf16 %v4526_v62, %v4525_v24  ;;  %v21224_v52 = vld [vmem:[#allocation12_spill] sm:$0xff]  ;;  %v21226_v24 = vld [vmem:[#allocation11_spill] sm:$0xff] }
 0x232   :  { %v2675_v56 = vpop.f32.mrf.mxu0 }
 0x233   :  { %v3225_v7 = vpop.f32.mrf.mxu1  ;;  %v2834_v58 = vadd.f32 %v2675_v56, %v15325_v61  ;;  %v15603_v57 = vadd.f32 %v13224_v11, %v2836_v50  ;;  %v4528_v50 = vld [vmem:[#allocation2 + $0xb2] sm:$0xff]  ;;  %v4529_v56 = vld [vmem:[#allocation2 + $0xc2] sm:$0xff] }
 0x234   :  { %v13159_v8 = vpop.f32.mrf.mxu0 }
 0x235   :  { %v13225_v1 = vpop.f32.mrf.mxu1  ;;  %v2837_v39 = vadd.f32 %v13159_v8, %v15328_v37  ;;  %v15606_v23 = vadd.f32 %v3225_v7, %v2834_v58  ;;  %v4527_v37 = vld [vmem:[#allocation2 + $0xaa] sm:$0xff] }
 0x236   :  { %v2678_v15 = vpop.f32.mrf.mxu0  ;;  %v4530_v7 = vld [vmem:[#allocation2 + $0xca] sm:$0xff] }
 0x237   :  { %v15608_v38 = vpop.f32.mrf.mxu1  ;;  %v15611_v18 = vadd.f32 %v2678_v15, %v21224_v52  ;;  %v15613_v34 = vadd.f32 %v13225_v1, %v2837_v39  ;;  %v4586_v39 = vpack.c.bf16 %v4528_v50, %v4527_v37  ;;  %v21227_v15 = vld [vmem:[#allocation13_spill] sm:$0xff]  ;;  %v4531_v37 = vld [vmem:[#allocation2 + $0xda] sm:$0xff]  ;;  %v4532_v50 = vld [vmem:[#allocation2 + $0xe2] sm:$0xff] }
 0x238   :  { %21223 = vst [vmem:[#allocation42_spill] sm:$0xff] %v15608_v38  ;;  %v13162_v0 = vpop.f32.mrf.mxu0  ;;  %13393 = vmatmul.mubr.msk.bf16.gmra.mxu0 %vm27_vm1, %v4584_v45  ;;  %v21230_v38 = vld [vmem:[#allocation14_spill] sm:$0xff] }
 0x239   :  { %21225 = vst [vmem:[#allocation41_spill] sm:$0xff] %v15611_v18  ;;  %v13228_v61 = vpop.f32.mrf.mxu1  ;;  %v2840_v11 = vadd.f32 %v13162_v0, %v15340_v17  ;;  %13396 = vmatprep.mubr.msk.bf16.mxu0 %vm27_vm1, %v4585_v53  ;;  %v4587_v17 = vpack.c.bf16 %v4530_v7, %v4529_v56  ;;  %v4533_v7 = vld [vmem:[#allocation2 + $0xf2] sm:$0xff] }
 0x23a   :  { %v2691_v35 = vpop.f32.mrf.mxu0 }
 0x23b   :  { %v3241_v43 = vpop.f32.mrf.mxu1  ;;  %v2838_v62 = vadd.f32 %v2691_v35, %v21226_v24  ;;  %v15619_v58 = vadd.f32 %v13228_v61, %v2840_v11  ;;  %v21233_v11 = vld [vmem:[#allocation15_spill] sm:$0xff] }
 0x23c   :  { %v13163_v8 = vpop.f32.mrf.mxu0  ;;  %v4534_v24 = vld [vmem:[#allocation2 + $0xfa] sm:$0xff] }
 0x23d   :  { %v13229_v1 = vpop.f32.mrf.mxu1  ;;  %v2841_v45 = vadd.f32 %v13163_v8, %v21227_v15  ;;  %v15622_v52 = vadd.f32 %v3241_v43, %v2838_v62  ;;  %v21234_v62 = vld [vmem:[#allocation17_spill] sm:$0xff] }
 0x23e   :  { %v2694_v0 = vpop.f32.mrf.mxu0 }
 0x23f   :  { %21228 = vst [vmem:[#allocation43_spill] sm:$0xff] %v15622_v52  ;;  %v15624_v53 = vpop.f32.mrf.mxu1  ;;  %v15627_v18 = vadd.f32 %v2694_v0, %v21230_v38  ;;  %v15629_v21 = vadd.f32 %v13229_v1, %v2841_v45  ;;  %v4588_v45 = vpack.c.bf16 %v4532_v50, %v4531_v37  ;;  %v21236_v0 = vld [vmem:[#allocation16_spill] sm:$0xff]  ;;  %v4536_v50 = vld [vmem:[#allocation2 + $0x112] sm:$0xff] }
 0x240   :  { %21229 = vst [vmem:[#allocation44_spill] sm:$0xff] %v15624_v53  ;;  %v13166_v12 = vpop.f32.mrf.mxu0  ;;  %13397 = vmatmul.mubr.msk.bf16.gmra.mxu0 %vm27_vm1, %v4586_v39  ;;  %v4535_v37 = vld [vmem:[#allocation2 + $0x10a] sm:$0xff] }
 0x241   :  { %21231 = vst [vmem:[#allocation45_spill] sm:$0xff] %v15627_v18  ;;  %21232 = vst [vmem:[#allocation46_spill] sm:$0xff] %v15629_v21  ;;  %v13232_v61 = vpop.f32.mrf.mxu1  ;;  %v2844_v35 = vadd.f32 %v13166_v12, %v21233_v11  ;;  %13400 = vmatprep.mubr.msk.bf16.mxu0 %vm27_vm1, %v4587_v17  ;;  %v4589_v12 = vpack.c.bf16 %v4534_v24, %v4533_v7  ;;  %v21239_v18 = vld [vmem:[#allocation18_spill] sm:$0xff]  ;;  %v4537_v24 = vld [vmem:[#allocation2 + $0x122] sm:$0xff] }
 0x242   :  { %v2707_v43 = vpop.f32.mrf.mxu0 }
 0x243   :  { %v3257_v56 = vpop.f32.mrf.mxu1  ;;  %v2842_v8 = vadd.f32 %v2707_v43, %v21234_v62  ;;  %v15635_v38 = vadd.f32 %v13232_v61, %v2844_v35  ;;  %v21242_v35 = vld [vmem:[#allocation20_spill] sm:$0xff] }
 0x244   :  { %v13167_v1 = vpop.f32.mrf.mxu0  ;;  %v4538_v62 = vld [vmem:[#allocation2 + $0x12a] sm:$0xff] }
 0x245   :  { %21235 = vst [vmem:[#allocation48_spill] sm:$0xff] %v15635_v38  ;;  %v13233_v15 = vpop.f32.mrf.mxu1  ;;  %v2845_v39 = vadd.f32 %v13167_v1, %v21236_v0  ;;  %v15638_v53 = vadd.f32 %v3257_v56, %v2842_v8  ;;  %v21243_v8 = vld [vmem:[#allocation19_spill] sm:$0xff] }
 0x246   :  { %v2710_v11 = vpop.f32.mrf.mxu0 }
 0x247   :  { %21237 = vst [vmem:[#allocation47_spill] sm:$0xff] %v15638_v53  ;;  %v15640_v17 = vpop.f32.mrf.mxu1  ;;  %v15643_v29 = vadd.f32 %v2710_v11, %v21239_v18  ;;  %v15645_v21 = vadd.f32 %v13233_v15, %v2845_v39  ;;  %v4590_v39 = vpack.c.bf16 %v4536_v50, %v4535_v37  ;;  %v21245_v11 = vld [vmem:[#allocation21_spill] sm:$0xff]  ;;  %v4539_v37 = vld [vmem:[#allocation2 + $0x13a] sm:$0xff]  ;;  %v4540_v50 = vld [vmem:[#allocation2 + $0x142] sm:$0xff] }
 0x248   :  { %21238 = vst [vmem:[#allocation3_spill] sm:$0xff] %v15640_v17  ;;  %v13170_v52 = vpop.f32.mrf.mxu0  ;;  %13401 = vmatmul.mubr.msk.bf16.gmra.mxu0 %vm27_vm1, %v4588_v45 }
 0x249   :  { %21240 = vst [vmem:[#allocation6_spill] sm:$0xff] %v15643_v29  ;;  %21241 = vst [vmem:[#allocation5_spill] sm:$0xff] %v15645_v21  ;;  %v13236_v61 = vpop.f32.mrf.mxu1  ;;  %v2848_v43 = vadd.f32 %v13170_v52, %v21242_v35  ;;  %13404 = vmatprep.mubr.msk.bf16.mxu0 %vm27_vm1, %v4589_v12  ;;  %v4591_v52 = vpack.c.bf16 %v4538_v62, %v4537_v24  ;;  %v21248_v29 = vld [vmem:[#allocation22_spill] sm:$0xff] }
 0x24a   :  { %v2723_v56 = vpop.f32.mrf.mxu0  ;;  %v4541_v62 = vld [vmem:[#allocation2 + $0x152] sm:$0xff] }
 0x24b   :  { %v3273_v7 = vpop.f32.mrf.mxu1  ;;  %v2846_v1 = vadd.f32 %v2723_v56, %v21243_v8  ;;  %v15651_v18 = vadd.f32 %v13236_v61, %v2848_v43  ;;  %v21251_v43 = vld [vmem:[#allocation24_spill] sm:$0xff]  ;;  %v4542_v8 = vld [vmem:[#allocation2 + $0x15a] sm:$0xff] }
 0x24c   :  { %v13171_v15 = vpop.f32.mrf.mxu0 }
 0x24d   :  { %21244 = vst [vmem:[#allocation4_spill] sm:$0xff] %v15651_v18  ;;  %v13237_v0 = vpop.f32.mrf.mxu1  ;;  %v2849_v45 = vadd.f32 %v13171_v15, %v21245_v11  ;;  %v15654_v17 = vadd.f32 %v3273_v7, %v2846_v1  ;;  %v21252_v1 = vld [vmem:[#allocation23_spill] sm:$0xff] }
 0x24e   :  { %v2726_v35 = vpop.f32.mrf.mxu0 }
 0x24f   :  { %21246 = vst [vmem:[#allocation7_spill] sm:$0xff] %v15654_v17  ;;  %v15656_v12 = vpop.f32.mrf.mxu1  ;;  %v15659_v21 = vadd.f32 %v2726_v35, %v21248_v29  ;;  %v15661_v53 = vadd.f32 %v13237_v0, %v2849_v45  ;;  %v4592_v45 = vpack.c.bf16 %v4540_v50, %v4539_v37  ;;  %v21254_v35 = vld [vmem:[#allocation25_spill] sm:$0xff] }
 0x250   :  { %21247 = vst [vmem:[#allocation8_spill] sm:$0xff] %v15656_v12  ;;  %v13174_v38 = vpop.f32.mrf.mxu0  ;;  %13405 = vmatmul.mubr.msk.bf16.gmra.mxu0 %vm27_vm1, %v4590_v39  ;;  %v4543_v37 = vld [vmem:[#allocation2 + $0x16a] sm:$0xff]  ;;  %v4544_v50 = vld [vmem:[#allocation2 + $0x172] sm:$0xff] }
 0x251   :  { %21249 = vst [vmem:[#allocation10_spill] sm:$0xff] %v15659_v21  ;;  %21250 = vst [vmem:[#allocation9_spill] sm:$0xff] %v15661_v53  ;;  %v13240_v61 = vpop.f32.mrf.mxu1  ;;  %v2852_v56 = vadd.f32 %v13174_v38, %v21251_v43  ;;  %13408 = vmatprep.mubr.msk.bf16.mxu0 %vm27_vm1, %v4591_v52  ;;  %v4593_v38 = vpack.c.bf16 %v4542_v8, %v4541_v62  ;;  %v21257_v21 = vld [vmem:[#allocation26_spill] sm:$0xff]  ;;  %v4545_v8 = vld [vmem:[#allocation2 + $0x182] sm:$0xff] }
 0x252   :  { %v2739_v7 = vpop.f32.mrf.mxu0 }
 0x253   :  { %v3289_v24 = vpop.f32.mrf.mxu1  ;;  %v2850_v15 = vadd.f32 %v2739_v7, %v21252_v1  ;;  %v15667_v29 = vadd.f32 %v13240_v61, %v2852_v56  ;;  %v21260_v56 = vld [vmem:[#allocation28_spill] sm:$0xff] }
 0x254   :  { %v13175_v0 = vpop.f32.mrf.mxu0  ;;  %v4546_v1 = vld [vmem:[#allocation2 + $0x18a] sm:$0xff] }
 0x255   :  { %21253 = vst [vmem:[#allocation12_spill] sm:$0xff] %v15667_v29  ;;  %v13241_v11 = vpop.f32.mrf.mxu1  ;;  %v2853_v39 = vadd.f32 %v13175_v0, %v21254_v35  ;;  %v15670_v12 = vadd.f32 %v3289_v24, %v2850_v15  ;;  %v21261_v15 = vld [vmem:[#allocation27_spill] sm:$0xff] }
 0x256   :  { %v2742_v43 = vpop.f32.mrf.mxu0 }
 0x257   :  { %21255 = vst [vmem:[#allocation11_spill] sm:$0xff] %v15670_v12  ;;  %v15672_v52 = vpop.f32.mrf.mxu1  ;;  %v15675_v53 = vadd.f32 %v2742_v43, %v21257_v21  ;;  %v15677_v17 = vadd.f32 %v13241_v11, %v2853_v39  ;;  %v4594_v39 = vpack.c.bf16 %v4544_v50, %v4543_v37  ;;  %v21262_v43 = vld [vmem:[#allocation29_spill] sm:$0xff]  ;;  %v4547_v37 = vld [vmem:[#allocation2 + $0x19a] sm:$0xff]  ;;  %v4548_v50 = vld [vmem:[#allocation2 + $0x1a2] sm:$0xff] }
 0x258   :  { %21256 = vst [vmem:[#allocation13_spill] sm:$0xff] %v15672_v52  ;;  %v13178_v18 = vpop.f32.mrf.mxu0  ;;  %13409 = vmatmul.mubr.msk.bf16.gmra.mxu0 %vm27_vm1, %v4592_v45 }
 0x259   :  { %21258 = vst [vmem:[#allocation14_spill] sm:$0xff] %v15675_v53  ;;  %21259 = vst [vmem:[#allocation15_spill] sm:$0xff] %v15677_v17  ;;  %v13244_v61 = vpop.f32.mrf.mxu1  ;;  %v2856_v7 = vadd.f32 %v13178_v18, %v21260_v56  ;;  %13412 = vmatprep.mubr.msk.bf16.mxu0 %vm27_vm1, %v4593_v38  ;;  %v4595_v18 = vpack.c.bf16 %v4546_v1, %v4545_v8  ;;  %v21264_v53 = vld [vmem:[#allocation30_spill] sm:$0xff]  ;;  %v4549_v8 = vld [vmem:[#allocation2 + $0x1e2] sm:$0xff] }
 0x25a   :  { %v2755_v24 = vpop.f32.mrf.mxu0  ;;  %v4550_v1 = vld [vmem:[#allocation2 + $0x1ea] sm:$0xff] }
 0x25b   :  { %v3305_v62 = vpop.f32.mrf.mxu1  ;;  %v2854_v0 = vadd.f32 %v2755_v24, %v21261_v15  ;;  %v15683_v21 = vadd.f32 %v13244_v61, %v2856_v7 }
 0x25c   :  { %v13179_v11 = vpop.f32.mrf.mxu0 }
 0x25d   :  { %v13245_v35 = vpop.f32.mrf.mxu1  ;;  %v2857_v45 = vadd.f32 %v13179_v11, %v21262_v43  ;;  %v15686_v52 = vadd.f32 %v3305_v62, %v2854_v0 }
 0x25e   :  { %v2758_v56 = vpop.f32.mrf.mxu0 }
 0x25f   :  { %v15688_v38 = vpop.f32.mrf.mxu1  ;;  %v15691_v17 = vadd.f32 %v2758_v56, %v21264_v53  ;;  %v15693_v12 = vadd.f32 %v13245_v35, %v2857_v45  ;;  %v4596_v35 = vpack.c.bf16 %v4548_v50, %v4547_v37 }
 0x260   :  { %21263 = vst [vmem:[#allocation17_spill] sm:$0xff] %v15688_v38  ;;  %v13182_v29 = vpop.f32.mrf.mxu0  ;;  %13413 = vmatmul.mubr.msk.bf16.gmra.mxu0 %vm27_vm1, %v4594_v39 }
 0x261   :  { %21265 = vst [vmem:[#allocation16_spill] sm:$0xff] %v15691_v17  ;;  %v13248_v61 = vpop.f32.mrf.mxu1  ;;  %v2860_v7 = vadd.f32 %v13182_v29, %v15427_v33  ;;  %13416 = vmatprep.mubr.msk.bf16.mxu0 %vm27_vm1, %v4595_v18  ;;  %v4597_v33 = vpack.c.bf16 %v4550_v1, %v4549_v8  ;;  %v21267_v18 = vld [vmem:[#allocation32_spill] sm:$0xff] }
 0x262   :  { %v2771_v24 = vpop.f32.mrf.mxu0 }
 0x263   :  { %v3321_v62 = vpop.f32.mrf.mxu1  ;;  %v2858_v15 = vadd.f32 %v2771_v24, %v15430_v20  ;;  %v15699_v53 = vadd.f32 %v13248_v61, %v2860_v7  ;;  %v4552_v7 = vld [vmem:[#allocation2 + $0x202] sm:$0xff]  ;;  %v4553_v24 = vld [vmem:[#allocation2 + $0x212] sm:$0xff] }
 0x264   :  { %v13183_v0 = vpop.f32.mrf.mxu0 }
 0x265   :  { %v13249_v11 = vpop.f32.mrf.mxu1  ;;  %v2861_v39 = vadd.f32 %v13183_v0, %v15433_v10  ;;  %v15702_v43 = vadd.f32 %v3321_v62, %v2858_v15  ;;  %v4551_v10 = vld [vmem:[#allocation2 + $0x1fa] sm:$0xff] }
 0x266   :  { %v2774_v29 = vpop.f32.mrf.mxu0  ;;  %v4554_v62 = vld [vmem:[#allocation2 + $0x21a] sm:$0xff] }
 0x267   :  { %v15704_v45 = vpop.f32.mrf.mxu1  ;;  %v15707_v56 = vadd.f32 %v2774_v29, %v21267_v18  ;;  %v15709_v38 = vadd.f32 %v13249_v11, %v2861_v39  ;;  %v4598_v11 = vpack.c.bf16 %v4552_v7, %v4551_v10 }
 0x268   :  { %21266 = vst [vmem:[#allocation18_spill] sm:$0xff] %v15704_v45  ;;  %v13186_v17 = vpop.f32.mrf.mxu0  ;;  %13417 = vmatmul.mubr.msk.bf16.gmra.mxu0 %vm27_vm1, %v4596_v35 }
 0x269   :  { %21268 = vst [vmem:[#allocation20_spill] sm:$0xff] %v15707_v56  ;;  %v13252_v20 = vpop.f32.mrf.mxu1  ;;  %v2864_v61 = vadd.f32 %v13186_v17, %v15443_v46  ;;  %13420 = vmatprep.mubr.msk.bf16.mxu0 %vm27_vm1, %v4597_v33  ;;  %v4599_v46 = vpack.c.bf16 %v4554_v62, %v4553_v24 }
 0x26a   :  { %v2787_v37 = vpop.f32.mrf.mxu0 }
 0x26b   :  { %v3337_v50 = vpop.f32.mrf.mxu1  ;;  %v2862_v8 = vadd.f32 %v2787_v37, %v15446_v13  ;;  %v15715_v1 = vadd.f32 %v13252_v20, %v2864_v61  ;;  %v4556_v61 = vld [vmem:[#allocation2 + $0x232] sm:$0xff]  ;;  %v4557_v37 = vld [vmem:[#allocation2 + $0x242] sm:$0xff] }
 0x26c   :  { %v13187_v15 = vpop.f32.mrf.mxu0 }
 0x26d   :  { %v13253_v0 = vpop.f32.mrf.mxu1  ;;  %v2865_v35 = vadd.f32 %v13187_v15, %v15449_v9  ;;  %v15718_v39 = vadd.f32 %v3337_v50, %v2862_v8  ;;  %v4555_v9 = vld [vmem:[#allocation2 + $0x22a] sm:$0xff] }
 0x26e   :  { %v2790_v17 = vpop.f32.mrf.mxu0  ;;  %v4558_v50 = vld [vmem:[#allocation2 + $0x24a] sm:$0xff]  ;;  %v4600_v15 = vpack.c.bf16 %v4556_v61, %v4555_v9 }
 0x26f   :  { %v15720_v33 = vpop.f32.mrf.mxu1  ;;  %v15723_v29 = vadd.f32 %v2790_v17, %v15454_v63  ;;  %v15725_v18 = vadd.f32 %v13253_v0, %v2865_v35 }
 0x270   :  { %21269 = vst [vmem:[#allocation19_spill] sm:$0xff] %v15720_v33  ;;  %v13258_v45 = vpop.f32.mrf.mxu0  ;;  %13421 = vmatmul.mubr.msk.bf16.gmra.mxu0 %vm27_vm1, %v4598_v11 }
 0x271   :  { %21270 = vst [vmem:[#allocation21_spill] sm:$0xff] %v15723_v29  ;;  %v13324_v13 = vpop.f32.mrf.mxu1  ;;  %v3905_v20 = vadd.f32 %v13258_v45, %v15460_v30  ;;  %13424 = vmatprep.mubr.msk.bf16.mxu0 %vm27_vm1, %v4599_v46  ;;  %v4601_v30 = vpack.c.bf16 %v4558_v50, %v4557_v37 }
 0x272   :  { %v3648_v10 = vpop.f32.mrf.mxu0 }
 0x273   :  { %v4198_v7 = vpop.f32.mrf.mxu1  ;;  %v3903_v24 = vadd.f32 %v3648_v10, %v15463_v41  ;;  %v15731_v63 = vadd.f32 %v13324_v13, %v3905_v20  ;;  %v4560_v20 = vld [vmem:[#allocation2 + $0x262] sm:$0xff]  ;;  %v4561_v10 = vld [vmem:[#allocation2 + $0x272] sm:$0xff] }
 0x274   :  { %v13259_v62 = vpop.f32.mrf.mxu0 }
 0x275   :  { %v13325_v8 = vpop.f32.mrf.mxu1  ;;  %v3906_v0 = vadd.f32 %v13259_v62, %v15466_v4  ;;  %v15734_v11 = vadd.f32 %v4198_v7, %v3903_v24  ;;  %v4559_v4 = vld [vmem:[#allocation2 + $0x25a] sm:$0xff] }
 0x276   :  { %v3651_v45 = vpop.f32.mrf.mxu0  ;;  %v4562_v7 = vld [vmem:[#allocation2 + $0x27a] sm:$0xff]  ;;  %v4602_v62 = vpack.c.bf16 %v4560_v20, %v4559_v4 }
 0x277   :  { %v15736_v35 = vpop.f32.mrf.mxu1  ;;  %v15739_v46 = vadd.f32 %v3651_v45, %v15472_v42  ;;  %v15741_v17 = vadd.f32 %v13325_v8, %v3906_v0 }
 0x278   :  { %21271 = vst [vmem:[#allocation22_spill] sm:$0xff] %v15736_v35  ;;  %v13262_v56 = vpop.f32.mrf.mxu0  ;;  %13425 = vmatmul.mubr.msk.bf16.gmra.mxu0 %vm27_vm1, %v4600_v15 }
 0x279   :  { %21272 = vst [vmem:[#allocation24_spill] sm:$0xff] %v15739_v46  ;;  %v13328_v41 = vpop.f32.mrf.mxu1  ;;  %v3909_v13 = vadd.f32 %v13262_v56, %v15477_v22  ;;  %13428 = vmatprep.mubr.msk.bf16.mxu0 %vm27_vm1, %v4601_v30  ;;  %v4603_v22 = vpack.c.bf16 %v4562_v7, %v4561_v10 }
 0x27a   :  { %v3664_v9 = vpop.f32.mrf.mxu0 }
 0x27b   :  { %v4214_v61 = vpop.f32.mrf.mxu1  ;;  %v3907_v37 = vadd.f32 %v3664_v9, %v15480_v48  ;;  %v15747_v42 = vadd.f32 %v13328_v41, %v3909_v13  ;;  %v4564_v13 = vld [vmem:[#allocation2 + $0x292] sm:$0xff]  ;;  %v4565_v9 = vld [vmem:[#allocation2 + $0x2a2] sm:$0xff] }
 0x27c   :  { %v13263_v50 = vpop.f32.mrf.mxu0 }
 0x27d   :  { %v13329_v24 = vpop.f32.mrf.mxu1  ;;  %v3910_v8 = vadd.f32 %v13263_v50, %v15483_v44  ;;  %v15750_v15 = vadd.f32 %v4214_v61, %v3907_v37  ;;  %v4563_v44 = vld [vmem:[#allocation2 + $0x28a] sm:$0xff] }
 0x27e   :  { %v3667_v56 = vpop.f32.mrf.mxu0  ;;  %v4604_v37 = vpack.c.bf16 %v4564_v13, %v4563_v44 }
 0x27f   :  { %v15752_v0 = vpop.f32.mrf.mxu1  ;;  %v15755_v30 = vadd.f32 %v3667_v56, %v15489_v59  ;;  %v15757_v45 = vadd.f32 %v13329_v24, %v3910_v8  ;;  %v4566_v59 = vld [vmem:[#allocation2 + $0x2aa] sm:$0xff]  ;;  %v4567_v56 = vld [vmem:[#allocation2 + $0x2ba] sm:$0xff] }
 0x280   :  { %21273 = vst [vmem:[#allocation23_spill] sm:$0xff] %v15752_v0  ;;  %v13266_v33 = vpop.f32.mrf.mxu0  ;;  %13429 = vmatmul.mubr.msk.bf16.gmra.mxu0 %vm27_vm1, %v4602_v62 }
 0x281   :  { %21274 = vst [vmem:[#allocation25_spill] sm:$0xff] %v15755_v30  ;;  %v15760_v48 = vpop.f32.mrf.mxu1  ;;  %v15763_v41 = vadd.f32 %v13266_v33, %v15494_v25  ;;  %13432 = vmatprep.mubr.msk.bf16.mxu0 %vm27_vm1, %v4603_v22  ;;  %v4605_v25 = vpack.c.bf16 %v4566_v59, %v4565_v9  ;;  %v4570_v9 = vld [vmem:[#allocation2 + $0x2da] sm:$0xff] }
 0x282   :  { %v3680_v4 = vpop.f32.mrf.mxu0 }
 0x283   :  { %v15766_v20 = vpop.f32.mrf.mxu1  ;;  %v15769_v61 = vadd.f32 %v3680_v4, %v15497_v54  ;;  %v4569_v4 = vld [vmem:[#allocation2 + $0x2d2] sm:$0xff] }
 0x284   :  { %21275 = vst [vmem:[#allocation26_spill] sm:$0xff] %v15766_v20  ;;  %v13267_v10 = vpop.f32.mrf.mxu0 }
 0x285   :  { %21276 = vst [vmem:[#allocation28_spill] sm:$0xff] %v15769_v61  ;;  %v15771_v7 = vpop.f32.mrf.mxu1  ;;  %v15774_v50 = vadd.f32 %v13267_v10, %v15500_v51  ;;  %v4568_v51 = vld [vmem:[#allocation2 + $0x2c2] sm:$0xff] }
 0x286   :  { %v3683_v33 = vpop.f32.mrf.mxu0 }
 0x287   :  { %v15776_v24 = vpop.f32.mrf.mxu1  ;;  %v15779_v62 = vadd.f32 %v3683_v33, %v15506_v2 }
 0x288   :  { %21277 = vst [vmem:[#allocation27_spill] sm:$0xff] %v15776_v24  ;;  %v13270_v8 = vpop.f32.mrf.mxu0  ;;  %13433 = vmatmul.mubr.msk.bf16.gmra.mxu0 %vm27_vm1, %v4604_v37  ;;  %v4606_v37 = vpack.c.bf16 %v4568_v51, %v4567_v56  ;;  %v4572_v51 = vld [vmem:[#allocation2 + $0x2f2] sm:$0xff] }
 0x289   :  { %21278 = vst [vmem:[#allocation29_spill] sm:$0xff] %v15779_v62  ;;  %v15782_v22 = vpop.f32.mrf.mxu1  ;;  %v15785_v54 = vadd.f32 %v13270_v8, %v15511_v32  ;;  %13436 = vmatprep.mubr.msk.bf16.mxu0 %vm27_vm1, %v4605_v25  ;;  %v4607_v32 = vpack.c.bf16 %v4570_v9, %v4569_v4  ;;  %v4574_v9 = vld [vmem:[#allocation2 + $0x30a] sm:$0xff] }
 0x28a   :  { %v3696_v44 = vpop.f32.mrf.mxu0 }
 0x28b   :  { %v15788_v13 = vpop.f32.mrf.mxu1  ;;  %v15791_v2 = vadd.f32 %v3696_v44, %v15514_v27  ;;  %v3368_v27 = vadd.f32 %v15527_v16, %v15530_v26 }
 0x28c   :  { %v13271_v59 = vpop.f32.mrf.mxu0 }
 0x28d   :  { %v15793_v10 = vpop.f32.mrf.mxu1  ;;  %v15796_v33 = vadd.f32 %v13271_v59, %v15517_v5  ;;  %v4571_v5 = vld [vmem:[#allocation2 + $0x2ea] sm:$0xff] }
 0x28e   :  { %v3699_v8 = vpop.f32.mrf.mxu0 }
 0x28f   :  { %v15798_v25 = vpop.f32.mrf.mxu1  ;;  %v15801_v29 = vadd.f32 %v3699_v8, %v15523_v60  ;;  %v4573_v60 = vld [vmem:[#allocation2 + $0x302] sm:$0xff] }
 0x290   :  { %v13274_v35 = vpop.f32.mrf.mxu0  ;;  %13437 = vmatmul.mubr.msk.bf16.gmra.mxu0 %vm27_vm1, %v4606_v37  ;;  %v4609_v26 = vpack.c.bf16 %v4574_v9, %v4573_v60  ;;  %v4577_v9 = vld [vmem:[#allocation2 + $0x332] sm:$0xff] }
 0x291   :  { %v15804_v46 = vpop.f32.mrf.mxu1  ;;  %v15809_v56 = vadd.f32 %v13274_v35, %v15532_v36  ;;  %13440 = vmatprep.mubr.msk.bf16.mxu0 %vm27_vm1, %v4607_v32 }
 0x292   :  { %21279 = vst [vmem:[#allocation30_spill] sm:$0xff] %v15804_v46  ;;  %v3712_v44 = vpop.f32.mrf.mxu0  ;;  %v4608_v46 = vpack.c.bf16 %v4572_v51, %v4571_v5  ;;  %v4576_v5 = vld [vmem:[#allocation2 + $0x322] sm:$0xff] }
 0x293   :  { %21280 = vst [vmem:[#allocation32_spill] sm:$0xff] %v15809_v56  ;;  %v15812_v4 = vpop.f32.mrf.mxu1  ;;  %v15814_v59 = vadd.f32 %v3712_v44, %v3368_v27  ;;  %v21288_v27 = vld [vmem:[#allocation34_spill] sm:$0xff] }
 0x294   :  { %21281 = vst [vmem:[#allocation49_spill] sm:$0xff] %v15812_v4  ;;  %v13275_v37 = vpop.f32.mrf.mxu0  ;;  %v3372_v44 = vadd.f32 %v21288_v27, %v15551_v47 }
 0x295   :  { %21282 = vst [vmem:[#allocation50_spill] sm:$0xff] %v15814_v59  ;;  %v15816_v8 = vpop.f32.mrf.mxu1  ;;  %v15819_v16 = vadd.f32 %v13275_v37, %v15540_v14  ;;  %v4575_v14 = vld [vmem:[#allocation2 + $0x31a] sm:$0xff] }
 0x296   :  { %21283 = vst [vmem:[#allocation51_spill] sm:$0xff] %v15816_v8  ;;  %v15821_v36 = vpop.f32.mrf.mxu0  ;;  %v4578_v37 = vld [vmem:[#allocation2 + $0x33a] sm:$0xff]  ;;  %v4610_v8 = vpack.c.bf16 %v4576_v5, %v4575_v14  ;;  %v4580_v14 = vld [vmem:[#allocation2 + $0x352] sm:$0xff] }
 0x297   :  { %21284 = vst [vmem:[#allocation52_spill] sm:$0xff] %v15819_v16  ;;  %21285 = vst [vmem:[#allocation53_spill] sm:$0xff] %v15821_v36  ;;  %v15823_v35 = vpop.f32.mrf.mxu1 }
 0x298   :  { %21286 = vst [vmem:[#allocation54_spill] sm:$0xff] %v15823_v35  ;;  %v13278_v32 = vpop.f32.mrf.mxu0  ;;  %13441 = vmatmul.mubr.msk.bf16.gmra.mxu0 %vm27_vm1, %v4608_v46 }
 0x299   :  { %v15826_v4 = vpop.f32.mrf.mxu1  ;;  %v15831_v59 = vadd.f32 %v13278_v32, %v15553_v49  ;;  %13444 = vmatprep.mubr.msk.bf16.mxu0 %vm27_vm1, %v4609_v26  ;;  %v4611_v49 = vpack.c.bf16 %v4578_v37, %v4577_v9 }
 0x29a   :  { %21287 = vst [vmem:[#allocation55_spill] sm:$0xff] %v15826_v4  ;;  %v3728_v51 = vpop.f32.mrf.mxu0 }
 0x29b   :  { %21289 = vst [vmem:[#allocation34_spill] sm:$0xff] %v15831_v59  ;;  %v15834_v60 = vpop.f32.mrf.mxu1  ;;  %v15836_v35 = vadd.f32 %v3728_v51, %v3372_v44  ;;  %v4579_v51 = vld [vmem:[#allocation2 + $0x34a] sm:$0xff] }
 0x29c   :  { %21290 = vst [vmem:[#allocation56_spill] sm:$0xff] %v15834_v60  ;;  %v13279_v46 = vpop.f32.mrf.mxu0  ;;  %v4612_v36 = vpack.c.bf16 %v4580_v14, %v4579_v51 }
 0x29d   :  { %21291 = vst [vmem:[#allocation57_spill] sm:$0xff] %v15836_v35  ;;  %v15838_v56 = vpop.f32.mrf.mxu1  ;;  %v15841_v47 = vadd.f32 %v13279_v46, %v15561_v6 }
 0x29e   :  { %21292 = vst [vmem:[#allocation58_spill] sm:$0xff] %v15838_v56  ;;  %v15843_v32 = vpop.f32.mrf.mxu0 }
 0x29f   :  { %21293 = vst [vmem:[#allocation59_spill] sm:$0xff] %v15841_v47  ;;  %21294 = vst [vmem:[#allocation60_spill] sm:$0xff] %v15843_v32  ;;  %v15845_v26 = vpop.f32.mrf.mxu1 }
 0x2a0   :  { %21295 = vst [vmem:[#allocation61_spill] sm:$0xff] %v15845_v26  ;;  %v13282_v27 = vpop.f32.mrf.mxu0  ;;  %13445 = vmatmul.mubr.msk.bf16.gmra.mxu0 %vm27_vm1, %v4610_v8 }
 0x2a1   :  { %v15848_v16 = vpop.f32.mrf.mxu1  ;;  %v15851_v44 = vadd.f32 %v13282_v27, %v15570_v3  ;;  %13448 = vmatprep.mubr.msk.bf16.mxu0 %vm27_vm1, %v4611_v49 }
 0x2a2   :  { %v3744_v5 = vpop.f32.mrf.mxu0 }
 0x2a3   :  { %v15854_v6 = vpop.f32.mrf.mxu1  ;;  %v15857_v9 = vadd.f32 %v3744_v5, %v15573_v55 }
 0x2a4   :  { %21296 = vst [vmem:[#allocation62_spill] sm:$0xff] %v15854_v6  ;;  %v13283_v37 = vpop.f32.mrf.mxu0 }
 0x2a5   :  { %21297 = vst [vmem:[#allocation63_spill] sm:$0xff] %v15857_v9  ;;  %v15859_v46 = vpop.f32.mrf.mxu1  ;;  %v15862_v8 = vadd.f32 %v13283_v37, %v15580_v28 }
 0x2a6   :  { %v15864_v60 = vpop.f32.mrf.mxu0 }
 0x2a7   :  { %v15866_v3 = vpop.f32.mrf.mxu1 }
 0x2a8   :  { %v13286_v49 = vpop.f32.mrf.mxu0  ;;  %13449 = vmatmul.mubr.msk.bf16.gmra.mxu0 %vm27_vm1, %v4612_v36 }
 0x2a9   :  { %v15869_v27 = vpop.f32.mrf.mxu1  ;;  %v15872_v35 = vadd.f32 %v13286_v49, %v15587_v40 }
 0x2aa   :  { %v3760_v55 = vpop.f32.mrf.mxu0 }
 0x2ab   :  { %v15874_v5 = vpop.f32.mrf.mxu1  ;;  %v15877_v51 = vadd.f32 %v3760_v55, %v15590_v19 }
 0x2ac   :  { %v13287_v28 = vpop.f32.mrf.mxu0 }
 0x2ad   :  { %v15879_v14 = vpop.f32.mrf.mxu1  ;;  %v15882_v37 = vadd.f32 %v13287_v28, %v15597_v31 }
 0x2ae   :  { %v15884_v0 = vpop.f32.mrf.mxu0 }
 0x2af   :  { %v15886_v36 = vpop.f32.mrf.mxu1 }
 0x2b0   :  { %v13290_v30 = vpop.f32.mrf.mxu0 }
 0x2b1   :  { %v13356_v26 = vpop.f32.mrf.mxu1  ;;  %v3937_v40 = vadd.f32 %v13290_v30, %v15603_v57 }
 0x2b2   :  { %v3776_v49 = vpop.f32.mrf.mxu0 }
 0x2b3   :  { %v4326_v4 = vpop.f32.mrf.mxu1  ;;  %v3935_v59 = vadd.f32 %v3776_v49, %v15606_v23  ;;  %v15890_v19 = vadd.f32 %v13356_v26, %v3937_v40  ;;  %v21300_v26 = vld [vmem:[#allocation43_spill] sm:$0xff] }
 0x2b4   :  { %v13291_v55 = vpop.f32.mrf.mxu0 }
 0x2b5   :  { %v13357_v56 = vpop.f32.mrf.mxu1  ;;  %v3938_v47 = vadd.f32 %v13291_v55, %v15613_v34  ;;  %v15893_v31 = vadd.f32 %v4326_v4, %v3935_v59  ;;  %v21301_v4 = vld [vmem:[#allocation46_spill] sm:$0xff] }
 0x2b6   :  { %v15895_v28 = vpop.f32.mrf.mxu0 }
 0x2b7   :  { %21298 = vst [vmem:[#allocation64_spill] sm:$0xff] %v15895_v28  ;;  %v15897_v32 = vpop.f32.mrf.mxu1  ;;  %v15899_v20 = vadd.f32 %v13357_v56, %v3938_v47 }
 0x2b8   :  { %21299 = vst [vmem:[#allocation65_spill] sm:$0xff] %v15897_v32  ;;  %v13294_v61 = vpop.f32.mrf.mxu0  ;;  %v21303_v32 = vld [vmem:[#allocation48_spill] sm:$0xff] }
 0x2b9   :  { %v13360_v57 = vpop.f32.mrf.mxu1  ;;  %v3941_v30 = vadd.f32 %v13294_v61, %v15619_v58  ;;  %v21305_v61 = vld [vmem:[#allocation47_spill] sm:$0xff] }
 0x2ba   :  { %v3792_v6 = vpop.f32.mrf.mxu0 }
 0x2bb   :  { %v4342_v23 = vpop.f32.mrf.mxu1  ;;  %v3939_v40 = vadd.f32 %v3792_v6, %v21300_v26  ;;  %v15903_v49 = vadd.f32 %v13360_v57, %v3941_v30  ;;  %v21307_v57 = vld [vmem:[#allocation5_spill] sm:$0xff] }
 0x2bc   :  { %v13295_v9 = vpop.f32.mrf.mxu0 }
 0x2bd   :  { %v13361_v34 = vpop.f32.mrf.mxu1  ;;  %v3942_v59 = vadd.f32 %v13295_v9, %v21301_v4  ;;  %v15906_v55 = vadd.f32 %v4342_v23, %v3939_v40  ;;  %v21310_v23 = vld [vmem:[#allocation4_spill] sm:$0xff]  ;;  %v21312_v4 = vld [vmem:[#allocation7_spill] sm:$0xff] }
 0x2be   :  { %v15908_v28 = vpop.f32.mrf.mxu0 }
 0x2bf   :  { %21302 = vst [vmem:[#allocation43_spill] sm:$0xff] %v15908_v28  ;;  %v15910_v56 = vadd.f32 %v13361_v34, %v3942_v59 }
 0x2c0   :  { %v13298_v47 = vpop.f32.mrf.mxu0 }
 0x2c1   :  { %v15913_v24 = vadd.f32 %v13298_v47, %v21303_v32  ;;  %v21314_v47 = vld [vmem:[#allocation9_spill] sm:$0xff] }
 0x2c2   :  { %v3808_v58 = vpop.f32.mrf.mxu0 }
 0x2c3   :  { %21304 = vst [vmem:[#allocation46_spill] sm:$0xff] %v15913_v24  ;;  %v15916_v62 = vadd.f32 %v3808_v58, %v21305_v61  ;;  %v21319_v24 = vld [vmem:[#allocation11_spill] sm:$0xff] }
 0x2c4   :  { %v13299_v6 = vpop.f32.mrf.mxu0 }
 0x2c5   :  { %21306 = vst [vmem:[#allocation48_spill] sm:$0xff] %v15916_v62  ;;  %v15919_v30 = vadd.f32 %v13299_v6, %v21307_v57  ;;  %v21317_v62 = vld [vmem:[#allocation12_spill] sm:$0xff] }
 0x2c6   :  { %v15921_v26 = vpop.f32.mrf.mxu0 }
 0x2c7   :  { %21308 = vst [vmem:[#allocation47_spill] sm:$0xff] %v15919_v30  ;;  %21309 = vst [vmem:[#allocation5_spill] sm:$0xff] %v15921_v26 }
 0x2c8   :  { %v13302_v9 = vpop.f32.mrf.mxu0 }
 0x2c9   :  { %v15924_v40 = vadd.f32 %v13302_v9, %v21310_v23  ;;  %v21321_v23 = vld [vmem:[#allocation15_spill] sm:$0xff] }
 0x2ca   :  { %v3824_v34 = vpop.f32.mrf.mxu0 }
 0x2cb   :  { %21311 = vst [vmem:[#allocation4_spill] sm:$0xff] %v15924_v40  ;;  %v15927_v59 = vadd.f32 %v3824_v34, %v21312_v4 }
 0x2cc   :  { %v13303_v32 = vpop.f32.mrf.mxu0 }
 0x2cd   :  { %21313 = vst [vmem:[#allocation7_spill] sm:$0xff] %v15927_v59  ;;  %v15930_v28 = vadd.f32 %v13303_v32, %v21314_v47 }
 0x2ce   :  { %v15932_v58 = vpop.f32.mrf.mxu0 }
 0x2cf   :  { %21315 = vst [vmem:[#allocation9_spill] sm:$0xff] %v15930_v28  ;;  %21316 = vst [vmem:[#allocation66_spill] sm:$0xff] %v15932_v58 }
 0x2d0   :  { %v13306_v61 = vpop.f32.mrf.mxu0 }
 0x2d1   :  { %v15935_v6 = vadd.f32 %v13306_v61, %v21317_v62 }
 0x2d2   :  { %v3840_v57 = vpop.f32.mrf.mxu0 }
 0x2d3   :  { %21318 = vst [vmem:[#allocation12_spill] sm:$0xff] %v15935_v6  ;;  %v15938_v30 = vadd.f32 %v3840_v57, %v21319_v24 }
 0x2d4   :  { %v13307_v9 = vpop.f32.mrf.mxu0 }
 0x2d5   :  { %21320 = vst [vmem:[#allocation11_spill] sm:$0xff] %v15938_v30  ;;  %v15941_v26 = vadd.f32 %v13307_v9, %v21321_v23 }
 0x2d6   :  { %v15943_v34 = vpop.f32.mrf.mxu0 }
 0x2d7   :  { %21322 = vst [vmem:[#allocation15_spill] sm:$0xff] %v15941_v26  ;;  %21323 = vst [vmem:[#allocation67_spill] sm:$0xff] %v15943_v34 }
 0x2d8   :  { %v13310_v4 = vpop.f32.mrf.mxu0 }
 0x2d9   :  { %v15946_v32 = vadd.f32 %v13310_v4, %v15683_v21 }
 0x2da   :  { %v3856_v47 = vpop.f32.mrf.mxu0 }
 0x2db   :  { %21324 = vst [vmem:[#allocation68_spill] sm:$0xff] %v15946_v32  ;;  %v15949_v59 = vadd.f32 %v3856_v47, %v15686_v52  ;;  %v16009_v32 = vpop.f32.mrf.mxu1 }
 0x2dc   :  { %v13311_v62 = vpop.f32.mrf.mxu0  ;;  %21343 = vst [vmem:[#allocation87_spill] sm:$0xff] %v16009_v32 }
 0x2dd   :  { %21325 = vst [vmem:[#allocation69_spill] sm:$0xff] %v15949_v59  ;;  %v15952_v61 = vadd.f32 %v13311_v62, %v15693_v12 }
 0x2de   :  { %v15954_v24 = vpop.f32.mrf.mxu0 }
 0x2df   :  { %21326 = vst [vmem:[#allocation70_spill] sm:$0xff] %v15952_v61  ;;  %21327 = vst [vmem:[#allocation71_spill] sm:$0xff] %v15954_v24  ;;  %v16011_v61 = vpop.f32.mrf.mxu1 }
 0x2e0   :  { %v13314_v57 = vpop.f32.mrf.mxu0  ;;  %21344 = vst [vmem:[#allocation88_spill] sm:$0xff] %v16011_v61 }
 0x2e1   :  { %v15957_v9 = vadd.f32 %v13314_v57, %v15699_v53  ;;  %v16017_v24 = vpop.f32.mrf.mxu1 }
 0x2e2   :  { %v3872_v23 = vpop.f32.mrf.mxu0  ;;  %21347 = vst [vmem:[#allocation91_spill] sm:$0xff] %v16017_v24 }
 0x2e3   :  { %21328 = vst [vmem:[#allocation72_spill] sm:$0xff] %v15957_v9  ;;  %v15960_v30 = vadd.f32 %v3872_v23, %v15702_v43  ;;  %v20966_v43 = vmov 1.0  }
 0x2e4   :  { %v13315_v21 = vpop.f32.mrf.mxu0  ;;  %5133 = vmatprep.mubr.f32.mxu1 %v20966_v43 }
 0x2e5   :  { %21329 = vst [vmem:[#allocation73_spill] sm:$0xff] %v15960_v30  ;;  %v15963_v4 = vadd.f32 %v13315_v21, %v15709_v38 }
 0x2e6   :  { %v15965_v52 = vpop.f32.mrf.mxu0 }
 0x2e7   :  { %21330 = vst [vmem:[#allocation74_spill] sm:$0xff] %v15963_v4  ;;  %21331 = vst [vmem:[#allocation75_spill] sm:$0xff] %v15965_v52  ;;  %v16023_v4 = vpop.f32.mrf.mxu1 }
 0x2e8   :  { %v13318_v47 = vpop.f32.mrf.mxu0  ;;  %21349 = vst [vmem:[#allocation93_spill] sm:$0xff] %v16023_v4 }
 0x2e9   :  { %v15968_v12 = vadd.f32 %v13318_v47, %v15715_v1  ;;  %v16029_v32 = vpop.f32.mrf.mxu1 }
 0x2ea   :  { %v3888_v62 = vpop.f32.mrf.mxu0  ;;  %21350 = vst [vmem:[#allocation94_spill] sm:$0xff] %v16029_v32 }
 0x2eb   :  { %21332 = vst [vmem:[#allocation76_spill] sm:$0xff] %v15968_v12  ;;  %v15971_v6 = vadd.f32 %v3888_v62, %v15718_v39  ;;  %v16035_v12 = vpop.f32.mrf.mxu1 }
 0x2ec   :  { %v13319_v53 = vpop.f32.mrf.mxu0  ;;  %21351 = vst [vmem:[#allocation95_spill] sm:$0xff] %v16035_v12  ;;  %v4468_v12 = vadd.f32 %v15793_v10, %v15796_v33  ;;  %v4466_v10 = vadd.f32 %v15798_v25, %v15801_v29  ;;  %v4465_v29 = vadd.f32 %v15788_v13, %v15791_v2  ;;  %v4464_v13 = vadd.f32 %v15771_v7, %v15774_v50 }
 0x2ed   :  { %21333 = vst [vmem:[#allocation77_spill] sm:$0xff] %v15971_v6  ;;  %v15974_v57 = vadd.f32 %v13319_v53, %v15725_v18  ;;  %v16039_v58 = vpop.f32.mrf.mxu1  ;;  %v4463_v7 = vadd.f32 %v15760_v48, %v15763_v41 }
 0x2ee   :  { %v15977_v23 = vpop.f32.mrf.mxu0  ;;  %21352 = vst [vmem:[#allocation96_spill] sm:$0xff] %v16039_v58 }
 0x2ef   :  { %21334 = vst [vmem:[#allocation78_spill] sm:$0xff] %v15974_v57  ;;  %21335 = vst [vmem:[#allocation79_spill] sm:$0xff] %v15977_v23  ;;  %v16041_v4 = vpop.f32.mrf.mxu1 }
 0x2f0   :  { %v13390_v38 = vpop.f32.mrf.mxu0  ;;  %21353 = vst [vmem:[#allocation97_spill] sm:$0xff] %v16041_v4 }
 0x2f1   :  { %v15980_v21 = vadd.f32 %v13390_v38, %v15731_v63 }
 0x2f2   :  { %v4748_v26 = vpop.f32.mrf.mxu0 }
 0x2f3   :  { %21336 = vst [vmem:[#allocation80_spill] sm:$0xff] %v15980_v21  ;;  %v15983_v1 = vadd.f32 %v4748_v26, %v15734_v11  ;;  %v21355_v21 = vld [vmem:[#allocation39_spill] sm:$0xff] }
 0x2f4   :  { %v13391_v47 = vpop.f32.mrf.mxu0 }
 0x2f5   :  { %21337 = vst [vmem:[#allocation81_spill] sm:$0xff] %v15983_v1  ;;  %v15986_v39 = vadd.f32 %v13391_v47, %v15741_v17 }
 0x2f6   :  { %v15988_v62 = vpop.f32.mrf.mxu0 }
 0x2f7   :  { %21338 = vst [vmem:[#allocation82_spill] sm:$0xff] %v15986_v39  ;;  %21339 = vst [vmem:[#allocation83_spill] sm:$0xff] %v15988_v62  ;;  %v4484_v39 = vadd.f32 %v15879_v14, %v15882_v37 }
 0x2f8   :  { %v13394_v18 = vpop.f32.mrf.mxu0 }
 0x2f9   :  { %v15991_v53 = vadd.f32 %v13394_v18, %v15747_v42 }
 0x2fa   :  { %v4764_v43 = vpop.f32.mrf.mxu0 }
 0x2fb   :  { %21340 = vst [vmem:[#allocation84_spill] sm:$0xff] %v15991_v53  ;;  %v15994_v34 = vadd.f32 %v4764_v43, %v15750_v15 }
 0x2fc   :  { %v13395_v63 = vpop.f32.mrf.mxu0 }
 0x2fd   :  { %21341 = vst [vmem:[#allocation85_spill] sm:$0xff] %v15994_v34  ;;  %v15997_v38 = vadd.f32 %v13395_v63, %v15757_v45  ;;  %v4483_v34 = vadd.f32 %v15869_v27, %v15872_v35 }
 0x2fe   :  { %v15999_v11 = vpop.f32.mrf.mxu0 }
 0x2ff   :  { %21342 = vst [vmem:[#allocation86_spill] sm:$0xff] %v15997_v38 }
 0x300   :  { %v16001_v26 = vpop.f32.mrf.mxu0 }
 0x301   :  { %v16127_v48 = vadd.f32 %v16001_v26, %v4463_v7 }
 0x302   :  { %v16003_v17 = vpop.f32.mrf.mxu0 }
 0x304   :  { %v16005_v47 = vpop.f32.mrf.mxu0 }
 0x305   :  { %v16113_v50 = vadd.f32 %v16005_v47, %v4464_v13  ;;  %v21374_v47 = vld [vmem:[#allocation37_spill] sm:$0xff]  ;;  %v21387_v13 = vld [vmem:[#allocation34_spill] sm:$0xff] }
 0x306   :  { %v16007_v59 = vpop.f32.mrf.mxu0 }
 0x307   :  { %21369 = vst [vmem:[#allocation105_spill] sm:$0xff] %v16113_v50 }
 0x308   :  { %v13402_v42 = vpop.f32.mrf.mxu0 }
 0x30a   :  { %v4796_v18 = vpop.f32.mrf.mxu0 }
 0x30c   :  { %v13403_v15 = vpop.f32.mrf.mxu0 }
 0x30e   :  { %v4799_v43 = vpop.f32.mrf.mxu0 }
 0x30f   :  { %v16083_v25 = vadd.f32 %v4799_v43, %v4466_v10  ;;  %v21376_v43 = vld [vmem:[#allocation63_spill] sm:$0xff]  ;;  %v21380_v10 = vld [vmem:[#allocation26_spill] sm:$0xff] }
 0x310   :  { %v16013_v45 = vpop.f32.mrf.mxu0 }
 0x311   :  { %21345 = vst [vmem:[#allocation89_spill] sm:$0xff] %v16013_v45  ;;  %v16050_v45 = vpop.f32.mrf.mxu1  ;;  %21364 = vst [vmem:[#allocation100_spill] sm:$0xff] %v16083_v25 }
 0x312   :  { %v16015_v63 = vpop.f32.mrf.mxu0 }
 0x313   :  { %21346 = vst [vmem:[#allocation90_spill] sm:$0xff] %v16015_v63  ;;  %v21354_v63 = vld [vmem:[#allocation40_spill] sm:$0xff]  ;;  %v16066_v33 = vpop.f32.mrf.mxu1 }
 0x314   :  { %v16019_v30 = vpop.f32.mrf.mxu0  ;;  %v3381_v62 = vadd.f32 %v21355_v21, %v21354_v63  ;;  %v4467_v21 = vadd.f32 %v15782_v22, %v15785_v54  ;;  %v16058_v63 = vadd.f32 %v13403_v15, %v4468_v12  ;;  %v21360_v22 = vld [vmem:[#allocation38_spill] sm:$0xff]  ;;  %v21361_v54 = vld [vmem:[#allocation36_spill] sm:$0xff] }
 0x315   :  { %v3377_v37 = vadd.f32 %v21361_v54, %v21360_v22  ;;  %v16097_v2 = vpop.f32.mrf.mxu1  ;;  %v21382_v54 = vld [vmem:[#allocation60_spill] sm:$0xff] }
 0x316   :  { %v16021_v9 = vpop.f32.mrf.mxu0  ;;  %21357 = vst [vmem:[#allocation39_spill] sm:$0xff] %v16058_v63  ;;  %v16068_v35 = vadd.f32 %v13402_v42, %v4467_v21 }
 0x317   :  { %21348 = vst [vmem:[#allocation92_spill] sm:$0xff] %v16021_v9  ;;  %v3932_v9 = vadd.f32 %v15884_v0, %v3381_v62  ;;  %v3928_v12 = vadd.f32 %v15864_v60, %v3377_v37  ;;  %v4479_v60 = vadd.f32 %v15848_v16, %v15851_v44  ;;  %v21372_v44 = vld [vmem:[#allocation27_spill] sm:$0xff]  ;;  %v16124_v42 = vpop.f32.mrf.mxu1 }
 0x318   :  { %v16025_v52 = vpop.f32.mrf.mxu0  ;;  %21359 = vst [vmem:[#allocation99_spill] sm:$0xff] %v16068_v35 }
 0x319   :  { %v4482_v62 = vadd.f32 %v15886_v36, %v3932_v9  ;;  %v4481_v36 = vadd.f32 %v15874_v5, %v15877_v51  ;;  %v4480_v5 = vadd.f32 %v15859_v46, %v15862_v8 }
 0x31a   :  { %v16027_v6 = vpop.f32.mrf.mxu0 }
 0x31c   :  { %v16031_v40 = vpop.f32.mrf.mxu0 }
 0x31e   :  { %v16033_v61 = vpop.f32.mrf.mxu0 }
 0x320   :  { %v13414_v28 = vpop.f32.mrf.mxu0 }
 0x321   :  { %v16119_v16 = vadd.f32 %v13414_v28, %v4479_v60 }
 0x322   :  { %v16037_v24 = vpop.f32.mrf.mxu0 }
 0x323   :  { %21370 = vst [vmem:[#allocation106_spill] sm:$0xff] %v16119_v16 }
 0x324   :  { %v13415_v57 = vpop.f32.mrf.mxu0 }
 0x325   :  { %v16104_v46 = vadd.f32 %v13415_v57, %v4480_v5 }
 0x326   :  { %v4847_v23 = vpop.f32.mrf.mxu0 }
 0x327   :  { %21368 = vst [vmem:[#allocation104_spill] sm:$0xff] %v16104_v46 }
 0x328   :  { %v13418_v1 = vpop.f32.mrf.mxu0 }
 0x329   :  { %v16061_v14 = vadd.f32 %v13418_v1, %v4483_v34  ;;  %v16099_v1 = vadd.f32 %v4796_v18, %v4465_v29  ;;  %v21375_v18 = vld [vmem:[#allocation35_spill] sm:$0xff]  ;;  %v21384_v29 = vld [vmem:[#allocation58_spill] sm:$0xff] }
 0x32a   :  { %v4860_v32 = vpop.f32.mrf.mxu0  ;;  %v3373_v15 = vadd.f32 %v21375_v18, %v21374_v47  ;;  %v21394_v47 = vld [vmem:[#allocation33_spill] sm:$0xff]  ;;  %v21395_v18 = vld [vmem:[#allocation31_spill] sm:$0xff] }
 0x32b   :  { %21358 = vst [vmem:[#allocation98_spill] sm:$0xff] %v16061_v14  ;;  %v16089_v51 = vadd.f32 %v4860_v32, %v4481_v36  ;;  %21367 = vst [vmem:[#allocation103_spill] sm:$0xff] %v16099_v1  ;;  %v4478_v32 = vadd.f32 %v15866_v3, %v3928_v12  ;;  %v21377_v3 = vld [vmem:[#allocation62_spill] sm:$0xff]  ;;  %v21383_v36 = vld [vmem:[#allocation59_spill] sm:$0xff]  ;;  %v16156_v12 = vpop.f32.mrf.mxu1 }
 0x32c   :  { %v13419_v58 = vpop.f32.mrf.mxu0  ;;  %v4477_v28 = vadd.f32 %v21377_v3, %v21376_v43  ;;  %v3924_v37 = vadd.f32 %v21382_v54, %v3373_v15  ;;  %v3369_v15 = vadd.f32 %v21395_v18, %v21394_v47  ;;  %v21396_v43 = vld [vmem:[#allocation57_spill] sm:$0xff]  ;;  %v21397_v3 = vld [vmem:[#allocation56_spill] sm:$0xff]  ;;  %v21412_v47 = vld [vmem:[#allocation22_spill] sm:$0xff] }
 0x32d   :  { %v16054_v4 = vadd.f32 %v13419_v58, %v4484_v39  ;;  %21365 = vst [vmem:[#allocation101_spill] sm:$0xff] %v16089_v51  ;;  %v16134_v21 = vadd.f32 %v4847_v23, %v4478_v32  ;;  %v4476_v23 = vadd.f32 %v21384_v29, %v21383_v36  ;;  %v21401_v54 = vld [vmem:[#allocation52_spill] sm:$0xff] }
 0x32e   :  { %v4863_v0 = vpop.f32.mrf.mxu0 }
 0x32f   :  { %21356 = vst [vmem:[#allocation40_spill] sm:$0xff] %v16054_v4  ;;  %12281 = vmatprep.subr.mxu1 %v16054_v4  ;;  %v16075_v58 = vadd.f32 %v4863_v0, %v4482_v62  ;;  %21378 = vst [vmem:[#allocation27_spill] sm:$0xff] %v16134_v21  ;;  %v21379_v62 = vld [vmem:[#allocation28_spill] sm:$0xff]  ;;  %v16165_v7 = vadd.f32 %v16031_v40, %v4476_v23 }
 0x330   :  { %v13422_v27 = vpop.f32.mrf.mxu0  ;;  %12282 = vmatpush3.msra.mxu1 %v16058_v63  ;;  %v4461_v26 = vadd.f32 %v21380_v10, %v21379_v62 }
 0x331   :  { %21362 = vst [vmem:[#allocation38_spill] sm:$0xff] %v16075_v58  ;;  %v16078_v34 = vadd.f32 %v13422_v27, %v15890_v19  ;;  %12283 = vmatprep.subr.mxu1 %v16061_v14  ;;  %21389 = vst [vmem:[#allocation62_spill] sm:$0xff] %v16165_v7 }
 0x332   :  { %v4876_v9 = vpop.f32.mrf.mxu0  ;;  %12284 = vmatpush3.msra.mxu1 %v16068_v35  ;;  %v21434_v35 = vld [vmem:[#allocation97_spill] sm:$0xff] }
 0x333   :  { %21363 = vst [vmem:[#allocation36_spill] sm:$0xff] %v16078_v34  ;;  %v16092_v19 = vadd.f32 %v4876_v9, %v15893_v31  ;;  %12285 = vmatprep.subr.mxu1 %v16075_v58  ;;  %v16150_v9 = vadd.f32 %v16037_v24, %v4477_v28  ;;  %v4473_v28 = vadd.f32 %v21397_v3, %v21396_v43  ;;  %v21413_v43 = vld [vmem:[#allocation82_spill] sm:$0xff]  ;;  %v21433_v58 = vld [vmem:[#allocation9_spill] sm:$0xff] }
 0x334   :  { %v13423_v39 = vpop.f32.mrf.mxu0  ;;  %12286 = vmatpush3.msra.mxu1 %v16083_v25  ;;  %v21414_v3 = vld [vmem:[#allocation50_spill] sm:$0xff]  ;;  %v4500_v14 = vadd.f32 %v21434_v35, %v21433_v58  ;;  %v21438_v58 = vld [vmem:[#allocation20_spill] sm:$0xff] }
 0x335   :  { %21366 = vst [vmem:[#allocation102_spill] sm:$0xff] %v16092_v19  ;;  %v16107_v8 = vadd.f32 %v13423_v39, %v15899_v20  ;;  %12287 = vmatprep.subr.mxu1 %v16089_v51  ;;  %v21371_v20 = vld [vmem:[#allocation29_spill] sm:$0xff]  ;;  %21385 = vst [vmem:[#allocation35_spill] sm:$0xff] %v16150_v9  ;;  %v21388_v39 = vld [vmem:[#allocation55_spill] sm:$0xff]  ;;  %v16204_v29 = vadd.f32 %v16027_v6, %v4473_v28 }
 0x336   :  { %v16115_v31 = vpop.f32.mrf.mxu0  ;;  %12288 = vmatpush3.msra.mxu1 %v16099_v1  ;;  %v4462_v57 = vadd.f32 %v21372_v44, %v21371_v20  ;;  %21373 = vst [vmem:[#allocation29_spill] sm:$0xff] %v16127_v48  ;;  %v4475_v60 = vadd.f32 %v21388_v39, %v21387_v13  ;;  %v21392_v44 = vld [vmem:[#allocation25_spill] sm:$0xff]  ;;  %v21432_v51 = vld [vmem:[#allocation66_spill] sm:$0xff] }
 0x337   :  { %12289 = vmatprep.subr.mxu1 %v16104_v46  ;;  %21403 = vst [vmem:[#allocation59_spill] sm:$0xff] %v16204_v29  ;;  %v21407_v6 = vld [vmem:[#allocation85_spill] sm:$0xff]  ;;  %v21431_v46 = vld [vmem:[#allocation78_spill] sm:$0xff] }
 0x338   :  { %v13426_v41 = vpop.f32.mrf.mxu0  ;;  %12290 = vmatpush3.msra.mxu1 %v16113_v50  ;;  %v16143_v27 = vadd.f32 %v16007_v59, %v4462_v57  ;;  %v16159_v59 = vadd.f32 %v16003_v17, %v4461_v26  ;;  %v21390_v17 = vld [vmem:[#allocation61_spill] sm:$0xff]  ;;  %v16176_v20 = vadd.f32 %v16025_v52, %v4475_v60  ;;  %v21393_v57 = vld [vmem:[#allocation23_spill] sm:$0xff] }
 0x339   :  { %v16137_v0 = vadd.f32 %v13426_v41, %v15903_v49  ;;  %12291 = vmatprep.subr.mxu1 %v16119_v16  ;;  %v4474_v32 = vadd.f32 %v21390_v17, %v3924_v37  ;;  %v4458_v40 = vadd.f32 %v21393_v57, %v21392_v44  ;;  %v16181_v41 = vpop.f32.mrf.mxu1  ;;  %v21400_v26 = vld [vmem:[#allocation53_spill] sm:$0xff]  ;;  %v21402_v37 = vld [vmem:[#allocation51_spill] sm:$0xff]  ;;  %v21408_v17 = vld [vmem:[#allocation54_spill] sm:$0xff] }
 0x33a   :  { %21381 = vst [vmem:[#allocation37_spill] sm:$0xff] %v16143_v27  ;;  %v4892_v22 = vpop.f32.mrf.mxu0  ;;  %12292 = vmatpush3.msra.mxu1 %v16127_v48  ;;  %21386 = vst [vmem:[#allocation63_spill] sm:$0xff] %v16159_v59  ;;  %v4472_v36 = vadd.f32 %v21402_v37, %v21401_v54  ;;  %v21409_v44 = vld [vmem:[#allocation89_spill] sm:$0xff]  ;;  %v21416_v54 = vld [vmem:[#allocation92_spill] sm:$0xff] }
 0x33b   :  { %v16153_v49 = vadd.f32 %v4892_v22, %v15906_v55  ;;  %12293 = vmatprep.subr.mxu1 %v16134_v21  ;;  %21391 = vst [vmem:[#allocation28_spill] sm:$0xff] %v16176_v20  ;;  %v16191_v52 = vadd.f32 %v16033_v61, %v4474_v32  ;;  %v16195_v62 = vadd.f32 %v15999_v11, %v4458_v40  ;;  %v16207_v61 = vpop.f32.mrf.mxu1  ;;  %v21404_v11 = vld [vmem:[#allocation32_spill] sm:$0xff]  ;;  %v21415_v28 = vld [vmem:[#allocation49_spill] sm:$0xff]  ;;  %v21430_v16 = vld [vmem:[#allocation79_spill] sm:$0xff] }
 0x33c   :  { %v13427_v5 = vpop.f32.mrf.mxu0  ;;  %12294 = vmatpush3.msra.mxu1 %v16143_v27  ;;  %v3920_v22 = vadd.f32 %v21400_v26, %v3369_v15  ;;  %v16215_v39 = vadd.f32 %v16019_v30, %v4472_v36  ;;  %v21411_v40 = vld [vmem:[#allocation24_spill] sm:$0xff]  ;;  %v4469_v26 = vadd.f32 %v21415_v28, %v21414_v3 }
 0x33d   :  { %v16168_v24 = vadd.f32 %v13427_v5, %v15910_v56  ;;  %12295 = vmatprep.subr.mxu1 %v16150_v9  ;;  %21398 = vst [vmem:[#allocation26_spill] sm:$0xff] %v16191_v52  ;;  %21399 = vst [vmem:[#allocation60_spill] sm:$0xff] %v16195_v62  ;;  %v21405_v5 = vld [vmem:[#allocation30_spill] sm:$0xff]  ;;  %v4454_v18 = vadd.f32 %v21412_v47, %v21411_v40  ;;  %v16228_v15 = vpop.f32.mrf.mxu1  ;;  %v21423_v47 = vld [vmem:[#allocation81_spill] sm:$0xff] }
 0x33e   :  { %v16171_v55 = vpop.f32.mrf.mxu0  ;;  %12296 = vmatpush3.msra.mxu1 %v16159_v59  ;;  %v4471_v13 = vadd.f32 %v21405_v5, %v21404_v11  ;;  %21406 = vst [vmem:[#allocation58_spill] sm:$0xff] %v16215_v39  ;;  %v4470_v32 = vadd.f32 %v21408_v17, %v3920_v22  ;;  %v21418_v22 = vld [vmem:[#allocation83_spill] sm:$0xff]  ;;  %v21420_v5 = vld [vmem:[#allocation80_spill] sm:$0xff]  ;;  %v21428_v9 = vld [vmem:[#allocation10_spill] sm:$0xff] }
 0x33f   :  { %12297 = vmatprep.subr.mxu1 %v16165_v7  ;;  %v16238_v36 = vadd.f32 %v21418_v22, %v4454_v18  ;;  %v21424_v18 = vmov 1.0   ;;  %v21427_v7 = vld [vmem:[#allocation19_spill] sm:$0xff]  ;;  %v21429_v27 = vld [vmem:[#allocation8_spill] sm:$0xff] }
 0x340   :  { %v16183_v56 = vpop.f32.mrf.mxu0  ;;  %12298 = vmatpush3.msra.mxu1 %v15997_v38  ;;  %v16223_v57 = vadd.f32 %v21409_v44, %v4471_v13  ;;  %v16234_v37 = vadd.f32 %v21416_v54, %v4470_v32  ;;  %v21421_v13 = vld [vmem:[#allocation90_spill] sm:$0xff]  ;;  %v16247_v44 = vpop.f32.mrf.mxu1  ;;  %v21426_v38 = vld [vmem:[#allocation21_spill] sm:$0xff]  ;;  %v3397_v21 = vadd.f32 %v21429_v27, %v21428_v9 }
 0x341   :  { %12299 = vmatprep.subr.mxu1 %v16176_v20  ;;  %21419 = vst [vmem:[#allocation61_spill] sm:$0xff] %v16238_v36  ;;  %v16244_v17 = vadd.f32 %v21421_v13, %v4469_v26  ;;  %v3413_v59 = vadd.f32 %v21427_v7, %v21426_v38  ;;  %v21436_v38 = vld [vmem:[#allocation4_spill] sm:$0xff]  ;;  %v21437_v7 = vld [vmem:[#allocation95_spill] sm:$0xff] }
 0x342   :  { %v16197_v10 = vpop.f32.mrf.mxu0  ;;  %12300 = vmatpush3.msra.mxu1 %v15991_v53  ;;  %21410 = vst [vmem:[#allocation34_spill] sm:$0xff] %v16223_v57  ;;  %21417 = vst [vmem:[#allocation55_spill] sm:$0xff] %v16234_v37  ;;  %v13380_v3 = vpop.f32.mrf.mxu1  ;;  %v3948_v25 = vadd.f32 %v21432_v51, %v3397_v21  ;;  %v4499_v34 = vadd.f32 %v21437_v7, %v21436_v38  ;;  %v21448_v7 = vld [vmem:[#allocation47_spill] sm:$0xff] }
 0x343   :  { %12301 = vmatprep.subr.mxu1 %v16191_v52  ;;  %21422 = vst [vmem:[#allocation25_spill] sm:$0xff] %v16244_v17  ;;  %v3964_v50 = vadd.f32 %v21430_v16, %v3413_v59 }
 0x344   :  { %v16209_v23 = vpop.f32.mrf.mxu0  ;;  %12302 = vmatpush3.msra.mxu1 %v16195_v62  ;;  %v16258_v54 = vpop.f32.mrf.mxu1 }
 0x345   :  { %12303 = vmatprep.subr.mxu1 %v16204_v29 }
 0x346   :  { %v16218_v60 = vpop.f32.mrf.mxu0  ;;  %12304 = vmatpush3.msra.mxu1 %v21407_v6 }
 0x347   :  { %12305 = vmatprep.subr.mxu1 %v16215_v39 }
 0x348   :  { %v13434_v30 = vpop.f32.mrf.mxu0  ;;  %12306 = vmatpush3.msra.mxu1 %v21413_v43 }
 0x349   :  { %12307 = vmatprep.subr.mxu1 %v16223_v57  ;;  %v16294_v35 = vadd.f32 %v13434_v30, %v4499_v34  ;;  %v21445_v34 = vld [vmem:[#allocation75_spill] sm:$0xff]  ;;  %v21446_v30 = vld [vmem:[#allocation74_spill] sm:$0xff] }
 0x34a   :  { %v16240_v11 = vpop.f32.mrf.mxu0  ;;  %12308 = vmatpush3.msra.mxu1 %v21420_v5 }
 0x34b   :  { %12309 = vmatprep.subr.mxu1 %v16234_v37 }
 0x34c   :  { %v13435_v40 = vpop.f32.mrf.mxu0  ;;  %12310 = vmatpush3.msra.mxu1 %v16238_v36  ;;  %v13381_v36 = vpop.f32.mrf.mxu1 }
 0x34d   :  { %12311 = vmatprep.subr.mxu1 %v16244_v17  ;;  %v16288_v27 = vadd.f32 %v13435_v40, %v4500_v14  ;;  %v21442_v14 = vld [vmem:[#allocation3_spill] sm:$0xff]  ;;  %v4512_v40 = vadd.f32 %v13381_v36, %v21446_v30  ;;  %v21452_v36 = vld [vmem:[#allocation88_spill] sm:$0xff] }
 0x34e   :  { %v4927_v32 = vpop.f32.mrf.mxu0  ;;  %12312 = vmatpush3.msra.mxu1 %v21423_v47  ;;  %v4425_v47 = vpop.f32.mrf.mxu1  ;;  %v21460_v30 = vld [vmem:[#allocation91_spill] sm:$0xff] }
 0x34f   :  { %5134 = vmatmul.mubr.f32.vlgmr.msra.gmra.mxu1 %v21424_v18 }
 0x350   :  { %v16253_v28 = vpop.f32.mrf.mxu0  ;;  %5203 = vmatprep.mubr.f32.mxu1 %v21424_v18  ;;  %v13384_v43 = vpop.f32.mrf.mxu1  ;;  %v21435_v18 = vld [vmem:[#allocation76_spill] sm:$0xff] }
 0x351   :  { %v4515_v19 = vadd.f32 %v13384_v43, %v21435_v18 }
 0x352   :  { %v16256_v26 = vpop.f32.mrf.mxu0  ;;  %v4438_v29 = vpop.f32.mrf.mxu1 }
 0x353   :  { %21425 = vst [vmem:[#allocation23_spill] sm:$0xff] %v16256_v26 }
 0x354   :  { %v16260_v22 = vpop.f32.mrf.mxu0  ;;  %v13385_v53 = vpop.f32.mrf.mxu1 }
 0x355   :  { %v4516_v1 = vadd.f32 %v13385_v53, %v21431_v46  ;;  %v4498_v53 = vadd.f32 %v16050_v45, %v3948_v25 }
 0x356   :  { %v16262_v13 = vpop.f32.mrf.mxu0  ;;  %v4441_v4 = vpop.f32.mrf.mxu1 }
 0x357   :  { %v4514_v16 = vadd.f32 %v4441_v4, %v3964_v50  ;;  %v21441_v4 = vld [vmem:[#allocation6_spill] sm:$0xff]  ;;  %v21443_v50 = vld [vmem:[#allocation7_spill] sm:$0xff]  ;;  %v16307_v45 = vadd.f32 %v4927_v32, %v4498_v53  ;;  %v21450_v32 = vld [vmem:[#allocation72_spill] sm:$0xff] }
 0x358   :  { %v16264_v17 = vpop.f32.mrf.mxu0  ;;  %v4511_v53 = vadd.f32 %v13380_v3, %v21450_v32  ;;  %v21454_v3 = vld [vmem:[#allocation16_spill] sm:$0xff] }
 0x35a   :  { %v16266_v37 = vpop.f32.mrf.mxu0 }
 0x35c   :  { %v16268_v5 = vpop.f32.mrf.mxu0 }
 0x35e   :  { %v16270_v57 = vpop.f32.mrf.mxu0 }
 0x360   :  { %v13446_v39 = vpop.f32.mrf.mxu0 }
 0x362   :  { %v16272_v6 = vpop.f32.mrf.mxu0 }
 0x364   :  { %v13447_v62 = vpop.f32.mrf.mxu0 }
 0x366   :  { %v4975_v52 = vpop.f32.mrf.mxu0 }
 0x368   :  { %v13450_v20 = vpop.f32.mrf.mxu0 }
 0x369   :  { %v16290_v59 = vadd.f32 %v13450_v20, %v4515_v19  ;;  %v3393_v19 = vadd.f32 %v21442_v14, %v21441_v4  ;;  %v21444_v20 = vld [vmem:[#allocation96_spill] sm:$0xff]  ;;  %v16332_v4 = vadd.f32 %v13446_v39, %v4511_v53  ;;  %v21457_v39 = vld [vmem:[#allocation45_spill] sm:$0xff] }
 0x36a   :  { %v4988_v48 = vpop.f32.mrf.mxu0  ;;  %v4497_v43 = vadd.f32 %v21444_v20, %v21443_v50  ;;  %v21456_v20 = vld [vmem:[#allocation73_spill] sm:$0xff] }
 0x36c   :  { %v13451_v63 = vpop.f32.mrf.mxu0 }
 0x36d   :  { %v16284_v26 = vadd.f32 %v13451_v63, %v4516_v1  ;;  %v21439_v63 = vld [vmem:[#allocation18_spill] sm:$0xff]  ;;  %v21440_v1 = vld [vmem:[#allocation77_spill] sm:$0xff] }
 0x36e   :  { %v4991_v9 = vpop.f32.mrf.mxu0  ;;  %v3409_v51 = vadd.f32 %v21439_v63, %v21438_v58  ;;  %v4513_v46 = vadd.f32 %v4438_v29, %v21440_v1  ;;  %v21447_v29 = vld [vmem:[#allocation5_spill] sm:$0xff]  ;;  %v16319_v58 = vadd.f32 %v16240_v11, %v4497_v43  ;;  %v16323_v63 = vadd.f32 %v13447_v62, %v4512_v40  ;;  %v21453_v11 = vld [vmem:[#allocation94_spill] sm:$0xff] }
 0x36f   :  { %12316 = vmatprep.subr.mxu1 %v16284_v26  ;;  %v16300_v21 = vadd.f32 %v4991_v9, %v4514_v16  ;;  %v3944_v38 = vadd.f32 %v21447_v29, %v3393_v19  ;;  %v21449_v9 = vld [vmem:[#allocation93_spill] sm:$0xff]  ;;  %v21461_v29 = vld [vmem:[#allocation71_spill] sm:$0xff] }
 0x370   :  { %12317 = vmatpush3.msra.mxu1 %v16288_v27  ;;  %v3960_v25 = vadd.f32 %v21445_v34, %v3409_v51  ;;  %v16312_v18 = vadd.f32 %v4988_v48, %v4513_v46  ;;  %v4496_v16 = vadd.f32 %v21449_v9, %v21448_v7  ;;  %v21451_v48 = vld [vmem:[#allocation46_spill] sm:$0xff]  ;;  %v21455_v19 = vld [vmem:[#allocation17_spill] sm:$0xff]  ;;  %v21463_v9 = vld [vmem:[#allocation43_spill] sm:$0xff] }
 0x371   :  { %12318 = vmatprep.subr.mxu1 %v16290_v59  ;;  %v4495_v51 = vadd.f32 %v21452_v36, %v21451_v48  ;;  %v4494_v14 = vadd.f32 %v21453_v11, %v3944_v38  ;;  %v3405_v50 = vadd.f32 %v21455_v19, %v21454_v3  ;;  %v21462_v7 = vld [vmem:[#allocation70_spill] sm:$0xff] }
 0x372   :  { %12319 = vmatpush3.msra.mxu1 %v16294_v35  ;;  %v16329_v1 = vadd.f32 %v16209_v23, %v4496_v16  ;;  %v4510_v46 = vadd.f32 %v4425_v47, %v3960_v25  ;;  %v4509_v23 = vadd.f32 %v16258_v54, %v21456_v20  ;;  %v21458_v47 = vld [vmem:[#allocation44_spill] sm:$0xff]  ;;  %v4508_v54 = vadd.f32 %v16228_v15, %v21462_v7 }
 0x373   :  { %12320 = vmatprep.subr.mxu1 %v16300_v21  ;;  %v16337_v62 = vadd.f32 %v16183_v56, %v4495_v51  ;;  %v3389_v34 = vadd.f32 %v21458_v47, %v21457_v39  ;;  %v21459_v25 = vld [vmem:[#allocation48_spill] sm:$0xff]  ;;  %v16352_v56 = vadd.f32 %v16218_v60, %v4494_v14  ;;  %v3956_v38 = vadd.f32 %v21461_v29, %v3405_v50  ;;  %v21466_v51 = vld [vmem:[#allocation14_spill] sm:$0xff]  ;;  %v21471_v50 = vld [vmem:[#allocation67_spill] sm:$0xff] }
 0x374   :  { %12321 = vmatpush3.msra.mxu1 %v16307_v45  ;;  %v16344_v43 = vadd.f32 %v4975_v52, %v4510_v46  ;;  %v4493_v40 = vadd.f32 %v21460_v30, %v21459_v25  ;;  %v16359_v52 = vadd.f32 %v16272_v6, %v4509_v23  ;;  %v21464_v60 = vld [vmem:[#allocation68_spill] sm:$0xff]  ;;  %v16370_v48 = vadd.f32 %v16268_v5, %v4508_v54  ;;  %v21468_v5 = vld [vmem:[#allocation69_spill] sm:$0xff]  ;;  %v21472_v23 = vld [vmem:[#allocation15_spill] sm:$0xff] }
 0x375   :  { %12322 = vmatprep.subr.mxu1 %v16312_v18  ;;  %v3940_v16 = vadd.f32 %v21463_v9, %v3389_v34  ;;  %v4507_v53 = vadd.f32 %v16181_v41, %v21464_v60  ;;  %v4506_v6 = vadd.f32 %v16247_v44, %v3956_v38  ;;  %v21467_v41 = vld [vmem:[#allocation13_spill] sm:$0xff]  ;;  %v4505_v11 = vadd.f32 %v16207_v61, %v21468_v5  ;;  %v21474_v34 = vld [vmem:[#allocation12_spill] sm:$0xff]  ;;  %v21476_v29 = vld [vmem:[#allocation11_spill] sm:$0xff] }
 0x376   :  { %12323 = vmatpush3.msra.mxu1 %v16319_v58  ;;  %v16364_v32 = vadd.f32 %v16197_v10, %v4493_v40  ;;  %v21465_v10 = vld [vmem:[#allocation87_spill] sm:$0xff]  ;;  %v3401_v46 = vadd.f32 %v21467_v41, %v21466_v51  ;;  %v21469_v44 = vld [vmem:[#allocation41_spill] sm:$0xff]  ;;  %v4504_v39 = vadd.f32 %v16124_v42, %v21472_v23 }
 0x377   :  { %12324 = vmatprep.subr.mxu1 %v16323_v63  ;;  %v16376_v15 = vadd.f32 %v16264_v17, %v4507_v53  ;;  %v4490_v36 = vadd.f32 %v21465_v10, %v3940_v16  ;;  %v16386_v14 = vadd.f32 %v16270_v57, %v4506_v6  ;;  %v21470_v17 = vld [vmem:[#allocation42_spill] sm:$0xff]  ;;  %v16399_v61 = vadd.f32 %v16266_v37, %v4505_v11  ;;  %v21473_v57 = vld [vmem:[#allocation64_spill] sm:$0xff]  ;;  %v21475_v30 = vld [vmem:[#allocation65_spill] sm:$0xff] }
 0x378   :  { %12325 = vmatpush3.msra.mxu1 %v16329_v1  ;;  %v3385_v3 = vadd.f32 %v21470_v17, %v21469_v44  ;;  %v3952_v20 = vadd.f32 %v21471_v50, %v3401_v46  ;;  %v16407_v25 = vadd.f32 %v16260_v22, %v4504_v39  ;;  %v5210_v53 = vlaneseq  ;;  %v21482_v5 = vld [vmem:[#allocation39_spill] sm:$0xff]  ;;  %v21483_v44 = vld [vmem:[#allocation40_spill] sm:$0xff]  ;;  %v21485_v50 = vld [vmem:[#allocation98_spill] sm:$0xff] }
 0x379   :  { %12326 = vmatprep.subr.mxu1 %v16332_v4  ;;  %v16392_v19 = vadd.f32 %v16171_v55, %v4490_v36  ;;  %v4503_v55 = vadd.f32 %v16066_v33, %v21474_v34  ;;  %v4501_v33 = vadd.f32 %v16097_v2, %v21476_v29  ;;  %v21479_v2 = vld [vmem:[#allocation102_spill] sm:$0xff]  ;;  %v21487_v39 = vld [vmem:[#allocation99_spill] sm:$0xff] }
 0x37a   :  { %12327 = vmatpush3.msra.mxu1 %v16337_v62  ;;  %v3936_v47 = vadd.f32 %v21473_v57, %v3385_v3  ;;  %v4502_v42 = vadd.f32 %v16156_v12, %v3952_v20  ;;  %v21477_v12 = vld [vmem:[#allocation36_spill] sm:$0xff]  ;;  %v5211_v36 = vshrl.u32 %v5210_v53, 7 }
 0x37b   :  { %12328 = vmatprep.subr.mxu1 %v16344_v43  ;;  %v16413_v37 = vadd.f32 %v16253_v28, %v4503_v55  ;;  %v21478_v28 = vld [vmem:[#allocation23_spill] sm:$0xff]  ;;  %v21490_v55 = vld [vmem:[#allocation100_spill] sm:$0xff] }
 0x37c   :  { %12329 = vmatpush3.msra.mxu1 %v16352_v56  ;;  %v4486_v40 = vadd.f32 %v21475_v30, %v3936_v47  ;;  %v16421_v22 = vadd.f32 %v16262_v13, %v4502_v42  ;;  %v16429_v7 = vadd.f32 %v21478_v28, %v4501_v33  ;;  %v21480_v13 = vmov 1.0   ;;  %v21488_v47 = vld [vmem:[#allocation38_spill] sm:$0xff]  ;;  %v21491_v30 = vld [vmem:[#allocation101_spill] sm:$0xff]  ;;  %v21493_v33 = vld [vmem:[#allocation103_spill] sm:$0xff] }
 0x37d   :  { %12330 = vmatprep.subr.mxu1 %v16359_v52  ;;  %v16437_v41 = vsub.s32 0, %v5211_v36 }
 0x37e   :  { %12331 = vmatpush3.msra.mxu1 %v16364_v32  ;;  %v16425_v38 = vadd.f32 %v16115_v31, %v4486_v40 }
 0x37f   :  { %12332 = vmatprep.subr.mxu1 %v16370_v48  ;;  %21481 = vst [vmem:[#allocation33_spill] sm:$0xff] %v16437_v41 }
 0x380   :  { %12333 = vmatpush3.msra.mxu1 %v16168_v24 }
 0x381   :  { %12334 = vmatprep.subr.mxu1 %v16376_v15 }
 0x382   :  { %12335 = vmatpush3.msra.mxu1 %v16137_v0 }
 0x383   :  { %12336 = vmatprep.subr.mxu1 %v16386_v14 }
 0x384   :  { %12337 = vmatpush3.msra.mxu1 %v16392_v19 }
 0x385   :  { %12338 = vmatprep.subr.mxu1 %v16399_v61 }
 0x386   :  { %12339 = vmatpush3.msra.mxu1 %v16153_v49 }
 0x387   :  { %12340 = vmatprep.subr.mxu1 %v16407_v25 }
 0x388   :  { %12341 = vmatpush3.msra.mxu1 %v16107_v8 }
 0x389   :  { %12342 = vmatprep.subr.mxu1 %v16413_v37 }
 0x38a   :  { %12343 = vmatpush3.msra.mxu1 %v21477_v12 }
 0x38b   :  { %12344 = vmatprep.subr.mxu1 %v16421_v22 }
 0x38c   :  { %12345 = vmatpush3.msra.mxu1 %v16425_v38 }
 0x38d   :  { %12346 = vmatprep.subr.mxu1 %v16429_v7 }
 0x38e   :  { %12347 = vmatpush3.msra.mxu1 %v21479_v2 }
 0x38f   :  { %5204 = vmatmul.mubr.f32.vlgmr.msra.gmra.mxu1 %v21480_v13 }
 0x390   :  { %5406 = vmatprep.mubr.f32.mxu1 %v21480_v13 }
 0x40f   :  { %v12313_v54 = vpop.f32.mrf.mxu1 }
 0x411   :  { %v12314_v31 = vpop.f32.mrf.mxu1 }
 0x412   :  { %v12315_v6 = vadd.f32 %v12314_v31, %v12313_v54  ;;  %v21494_v31 = vld [vmem:[#allocation104_spill] sm:$0xff] }
 0x44f   :  { %v12348_v9 = vpop.f32.mrf.mxu1 }
 0x451   :  { %v12349_v16 = vpop.f32.mrf.mxu1 }
 0x452   :  { %v12350_v60 = vadd.f32 %v12349_v16, %v12348_v9 }
 0x454   :  { %v5206_v10 = vadd.f32 %v12350_v60, %v12315_v6  ;;  %v21496_v60 = vld [vmem:[#allocation105_spill] sm:$0xff] }
 0x456   :  { %v5209_v51 = vmul.f32 0.001953125, %v5206_v10  ;;  %v21497_v10 = vld [vmem:[#allocation106_spill] sm:$0xff] }
 0x458   :  { %v16440_v46 = vrot.slane %v5209_v51, %v16437_v41 }
 0x45a   :  { %v16444_v11 = vsub.f32 %v21482_v5, %v16440_v46  ;;  %v16448_v17 = vsub.f32 %v21483_v44, %v16440_v46  ;;  %v16454_v20 = vsub.f32 %v21485_v50, %v16440_v46  ;;  %v16460_v57 = vsub.f32 %v21487_v39, %v16440_v46  ;;  %v21499_v5 = vld [vmem:[#allocation29_spill] sm:$0xff]  ;;  %v21500_v50 = vld [vmem:[#allocation27_spill] sm:$0xff] }
 0x45b   :  { %v16464_v34 = vsub.f32 %v21488_v47, %v16440_v46  ;;  %v16468_v42 = vsub.f32 %v21490_v55, %v16440_v46  ;;  %v16472_v40 = vsub.f32 %v21491_v30, %v16440_v46  ;;  %v16478_v28 = vsub.f32 %v21493_v33, %v16440_v46  ;;  %v21502_v47 = vld [vmem:[#allocation37_spill] sm:$0xff] }
 0x45c   :  { %21484 = vst [vmem:[#allocation31_spill] sm:$0xff] %v16448_v17  ;;  %v5293_v3 = vmul.f32 %v16444_v11, %v16444_v11  ;;  %21486 = vst [vmem:[#allocation57_spill] sm:$0xff] %v16454_v20  ;;  %v5309_v23 = vmul.f32 %v16448_v17, %v16448_v17  ;;  %v5308_v29 = vmul.f32 %v16454_v20, %v16454_v20  ;;  %v21515_v17 = vld [vmem:[#allocation59_spill] sm:$0xff] }
 0x45d   :  { %21489 = vst [vmem:[#allocation56_spill] sm:$0xff] %v16464_v34  ;;  %21492 = vst [vmem:[#allocation53_spill] sm:$0xff] %v16472_v40  ;;  %v5292_v54 = vmul.f32 %v16460_v57, %v16460_v57  ;;  %v16484_v9 = vsub.f32 %v21494_v31, %v16440_v46  ;;  %v5307_v16 = vmul.f32 %v16464_v34, %v16464_v34  ;;  %v21505_v31 = vld [vmem:[#allocation63_spill] sm:$0xff]  ;;  %v21517_v34 = vld [vmem:[#allocation58_spill] sm:$0xff] }
 0x45e   :  { %12351 = vmatprep.subr.mxu1 %v5309_v23  ;;  %v16490_v53 = vsub.f32 %v21496_v60, %v16440_v46  ;;  %v5291_v6 = vmul.f32 %v16468_v42, %v16468_v42  ;;  %v16496_v36 = vsub.f32 %v21497_v10, %v16440_v46  ;;  %v5306_v51 = vmul.f32 %v16472_v40, %v16472_v40 }
 0x45f   :  { %12352 = vmatpush3.msra.mxu1 %v5293_v3  ;;  %21495 = vst [vmem:[#allocation52_spill] sm:$0xff] %v16484_v9  ;;  %v16502_v44 = vsub.f32 %v21499_v5, %v16440_v46  ;;  %v5290_v3 = vmul.f32 %v16478_v28, %v16478_v28  ;;  %v16508_v23 = vsub.f32 %v21500_v50, %v16440_v46  ;;  %v21508_v5 = vld [vmem:[#allocation86_spill] sm:$0xff] }
 0x460   :  { %12353 = vmatprep.subr.mxu1 %v5308_v29  ;;  %21498 = vst [vmem:[#allocation51_spill] sm:$0xff] %v16496_v36  ;;  %v5305_v39 = vmul.f32 %v16484_v9, %v16484_v9  ;;  %v16514_v55 = vsub.f32 %v21502_v47, %v16440_v46  ;;  %v5289_v30 = vmul.f32 %v16490_v53, %v16490_v53  ;;  %v21503_v29 = vld [vmem:[#allocation35_spill] sm:$0xff]  ;;  %v21519_v9 = vld [vmem:[#allocation34_spill] sm:$0xff] }
 0x461   :  { %12354 = vmatpush3.msra.mxu1 %v5292_v54  ;;  %21501 = vst [vmem:[#allocation32_spill] sm:$0xff] %v16508_v23  ;;  %v16520_v33 = vsub.f32 %v21503_v29, %v16440_v46  ;;  %v5304_v54 = vmul.f32 %v16496_v36, %v16496_v36  ;;  %v5288_v60 = vmul.f32 %v16502_v44, %v16502_v44  ;;  %v21511_v29 = vld [vmem:[#allocation84_spill] sm:$0xff] }
 0x462   :  { %12355 = vmatprep.subr.mxu1 %v5307_v16  ;;  %v16526_v16 = vsub.f32 %v21505_v31, %v16440_v46  ;;  %v5287_v50 = vmul.f32 %v16514_v55, %v16514_v55  ;;  %v16568_v20 = vsub.f32 %v21515_v17, %v16440_v46  ;;  %v16580_v40 = vsub.f32 %v21517_v34, %v16440_v46 }
 0x463   :  { %12356 = vmatpush3.msra.mxu1 %v5291_v6  ;;  %21504 = vst [vmem:[#allocation30_spill] sm:$0xff] %v16520_v33  ;;  %v21506_v6 = vld [vmem:[#allocation62_spill] sm:$0xff]  ;;  %v16592_v36 = vsub.f32 %v21519_v9, %v16440_v46 }
 0x464   :  { %12357 = vmatprep.subr.mxu1 %v5306_v51  ;;  %v16532_v10 = vsub.f32 %v21506_v6, %v16440_v46  ;;  %v5303_v51 = vmul.f32 %v16508_v23, %v16508_v23  ;;  %v5286_v31 = vmul.f32 %v16526_v16, %v16526_v16  ;;  %v21512_v6 = vld [vmem:[#allocation26_spill] sm:$0xff]  ;;  %v5298_v34 = vmul.f32 %v16568_v20, %v16568_v20  ;;  %v21521_v23 = vld [vmem:[#allocation55_spill] sm:$0xff] }
 0x465   :  { %12358 = vmatpush3.msra.mxu1 %v5290_v3  ;;  %v16538_v3 = vsub.f32 %v21508_v5, %v16440_v46  ;;  %v16556_v5 = vsub.f32 %v21512_v6, %v16440_v46  ;;  %v5297_v9 = vmul.f32 %v16580_v40, %v16580_v40 }
 0x466   :  { %12359 = vmatprep.subr.mxu1 %v5305_v39  ;;  %21507 = vst [vmem:[#allocation54_spill] sm:$0xff] %v16532_v10  ;;  %v21509_v39 = vld [vmem:[#allocation28_spill] sm:$0xff] }
 0x467   :  { %12360 = vmatpush3.msra.mxu1 %v5289_v30  ;;  %v16544_v47 = vsub.f32 %v21509_v39, %v16440_v46  ;;  %v5302_v30 = vmul.f32 %v16520_v33, %v16520_v33  ;;  %21513 = vst [vmem:[#allocation24_spill] sm:$0xff] %v16556_v5  ;;  %v5299_v17 = vmul.f32 %v16556_v5, %v16556_v5 }
 0x468   :  { %12361 = vmatprep.subr.mxu1 %v5304_v54  ;;  %v16550_v54 = vsub.f32 %v21511_v29, %v16440_v46  ;;  %v5285_v29 = vmul.f32 %v16538_v3, %v16538_v3  ;;  %v16604_v33 = vsub.f32 %v21521_v23, %v16440_v46  ;;  %v5296_v23 = vmul.f32 %v16592_v36, %v16592_v36 }
 0x469   :  { %12362 = vmatpush3.msra.mxu1 %v5288_v60  ;;  %21510 = vst [vmem:[#allocation89_spill] sm:$0xff] %v16544_v47  ;;  %v5301_v60 = vmul.f32 %v16532_v10, %v16532_v10  ;;  %v21523_v10 = vld [vmem:[#allocation25_spill] sm:$0xff]  ;;  %v16628_v5 = vsub.f32 %v16284_v26, %v16440_v46 }
 0x46a   :  { %12363 = vmatprep.subr.mxu1 %v5303_v51  ;;  %v21514_v51 = vld [vmem:[#allocation60_spill] sm:$0xff] }
 0x46b   :  { %12364 = vmatpush3.msra.mxu1 %v5287_v50  ;;  %v16562_v39 = vsub.f32 %v21514_v51, %v16440_v46  ;;  %v5300_v50 = vmul.f32 %v16544_v47, %v16544_v47  ;;  %v5284_v51 = vmul.f32 %v16550_v54, %v16550_v54  ;;  %v16616_v47 = vsub.f32 %v21523_v10, %v16440_v46 }
 0x46c   :  { %12365 = vmatprep.subr.mxu1 %v5302_v30  ;;  %v21516_v30 = vld [vmem:[#allocation85_spill] sm:$0xff]  ;;  %21525 = vst [vmem:[#allocation22_spill] sm:$0xff] %v16628_v5  ;;  %v5295_v10 = vmul.f32 %v16604_v33, %v16604_v33 }
 0x46d   :  { %12366 = vmatpush3.msra.mxu1 %v5286_v31  ;;  %v16574_v6 = vsub.f32 %v21516_v30, %v16440_v46  ;;  %v21518_v31 = vld [vmem:[#allocation82_spill] sm:$0xff]  ;;  %v5283_v30 = vmul.f32 %v16562_v39, %v16562_v39  ;;  %v5294_v26 = vmul.f32 %v16616_v47, %v16616_v47 }
 0x46e   :  { %12367 = vmatprep.subr.mxu1 %v5301_v60  ;;  %v16586_v60 = vsub.f32 %v21518_v31, %v16440_v46 }
 0x46f   :  { %12368 = vmatpush3.msra.mxu1 %v5285_v29  ;;  %v21520_v29 = vld [vmem:[#allocation80_spill] sm:$0xff]  ;;  %v5282_v31 = vmul.f32 %v16574_v6, %v16574_v6 }
 0x470   :  { %12369 = vmatprep.subr.mxu1 %v5300_v50  ;;  %v16598_v50 = vsub.f32 %v21520_v29, %v16440_v46  ;;  %v5281_v29 = vmul.f32 %v16586_v60, %v16586_v60 }
 0x471   :  { %12370 = vmatpush3.msra.mxu1 %v5284_v51  ;;  %v21522_v51 = vld [vmem:[#allocation61_spill] sm:$0xff] }
 0x472   :  { %12371 = vmatprep.subr.mxu1 %v5299_v17  ;;  %v16610_v17 = vsub.f32 %v21522_v51, %v16440_v46  ;;  %v5280_v51 = vmul.f32 %v16598_v50, %v16598_v50 }
 0x473   :  { %12372 = vmatpush3.msra.mxu1 %v5283_v30  ;;  %v21524_v30 = vld [vmem:[#allocation81_spill] sm:$0xff] }
 0x474   :  { %12373 = vmatprep.subr.mxu1 %v5298_v34  ;;  %v16622_v34 = vsub.f32 %v21524_v30, %v16440_v46  ;;  %v16640_v30 = vsub.f32 %v16290_v59, %v16440_v46  ;;  %v5341_v59 = vmul.f32 %v16628_v5, %v16628_v5 }
 0x475   :  { %12374 = vmatpush3.msra.mxu1 %v5282_v31  ;;  %v16634_v31 = vsub.f32 %v16288_v27, %v16440_v46 }
 0x476   :  { %12375 = vmatprep.subr.mxu1 %v5297_v9  ;;  %v5279_v9 = vmul.f32 %v16610_v17, %v16610_v17  ;;  %21526 = vst [vmem:[#allocation50_spill] sm:$0xff] %v16640_v30  ;;  %v5278_v27 = vmul.f32 %v16622_v34, %v16622_v34 }
 0x477   :  { %12376 = vmatpush3.msra.mxu1 %v5281_v29  ;;  %v16646_v29 = vsub.f32 %v16294_v35, %v16440_v46  ;;  %v5325_v35 = vmul.f32 %v16634_v31, %v16634_v31 }
 0x478   :  { %12377 = vmatprep.subr.mxu1 %v5296_v23  ;;  %v16652_v23 = vsub.f32 %v16300_v21, %v16440_v46  ;;  %v5340_v21 = vmul.f32 %v16640_v30, %v16640_v30 }
 0x479   :  { %12378 = vmatpush3.msra.mxu1 %v5280_v51  ;;  %v16658_v51 = vsub.f32 %v16307_v45, %v16440_v46  ;;  %v5324_v45 = vmul.f32 %v16646_v29, %v16646_v29 }
 0x47a   :  { %12379 = vmatprep.subr.mxu1 %v5295_v10  ;;  %21527 = vst [vmem:[#allocation49_spill] sm:$0xff] %v16652_v23  ;;  %v16664_v10 = vsub.f32 %v16312_v18, %v16440_v46  ;;  %v16678_v18 = vsub.f32 %v16323_v63, %v16440_v46 }
 0x47b   :  { %12380 = vmatpush3.msra.mxu1 %v5279_v9  ;;  %v16671_v9 = vsub.f32 %v16319_v58, %v16440_v46  ;;  %v5323_v58 = vmul.f32 %v16658_v51, %v16658_v51 }
 0x47c   :  { %12381 = vmatprep.subr.mxu1 %v5294_v26  ;;  %21528 = vst [vmem:[#allocation92_spill] sm:$0xff] %v16664_v10  ;;  %21529 = vst [vmem:[#allocation83_spill] sm:$0xff] %v16678_v18  ;;  %v5339_v26 = vmul.f32 %v16652_v23, %v16652_v23  ;;  %v5338_v63 = vmul.f32 %v16664_v10, %v16664_v10 }
 0x47d   :  { %12382 = vmatpush3.msra.mxu1 %v5278_v27  ;;  %v16684_v27 = vsub.f32 %v16329_v1, %v16440_v46  ;;  %v5322_v1 = vmul.f32 %v16671_v9, %v16671_v9 }
 0x47e   :  { %5407 = vmatmul.mubr.f32.vlgmr.msra.gmra.mxu1 %v21480_v13  ;;  %12386 = vmatprep.subr.mxu1 %v5341_v59  ;;  %v16690_v59 = vsub.f32 %v16332_v4, %v16440_v46  ;;  %v5337_v4 = vmul.f32 %v16678_v18, %v16678_v18 }
 0x47f   :  { %12387 = vmatpush3.msra.mxu1 %v5325_v35  ;;  %5476 = vmatprep.mubr.f32.mxu1 %v21480_v13  ;;  %v16696_v35 = vsub.f32 %v16337_v62, %v16440_v46  ;;  %v5321_v62 = vmul.f32 %v16684_v27, %v16684_v27 }
 0x480   :  { %12388 = vmatprep.subr.mxu1 %v5340_v21  ;;  %21530 = vst [vmem:[#allocation90_spill] sm:$0xff] %v16690_v59  ;;  %v16702_v21 = vsub.f32 %v16344_v43, %v16440_v46  ;;  %v5336_v43 = vmul.f32 %v16690_v59, %v16690_v59 }
 0x481   :  { %12389 = vmatpush3.msra.mxu1 %v5324_v45  ;;  %v16708_v45 = vsub.f32 %v16352_v56, %v16440_v46  ;;  %v5320_v56 = vmul.f32 %v16696_v35, %v16696_v35 }
 0x482   :  { %12390 = vmatprep.subr.mxu1 %v5339_v26  ;;  %21531 = vst [vmem:[#allocation21_spill] sm:$0xff] %v16702_v21  ;;  %v16714_v26 = vsub.f32 %v16359_v52, %v16440_v46  ;;  %v5335_v52 = vmul.f32 %v16702_v21, %v16702_v21 }
 0x483   :  { %12391 = vmatpush3.msra.mxu1 %v5323_v58  ;;  %v16720_v58 = vsub.f32 %v16364_v32, %v16440_v46  ;;  %v5319_v32 = vmul.f32 %v16708_v45, %v16708_v45 }
 0x484   :  { %12392 = vmatprep.subr.mxu1 %v5338_v63  ;;  %v16726_v63 = vsub.f32 %v16370_v48, %v16440_v46  ;;  %v5334_v48 = vmul.f32 %v16714_v26, %v16714_v26 }
 0x485   :  { %12393 = vmatpush3.msra.mxu1 %v5322_v1  ;;  %v16732_v1 = vsub.f32 %v16168_v24, %v16440_v46  ;;  %v5318_v24 = vmul.f32 %v16720_v58, %v16720_v58 }
 0x486   :  { %12394 = vmatprep.subr.mxu1 %v5337_v4  ;;  %v16738_v4 = vsub.f32 %v16376_v15, %v16440_v46  ;;  %v5333_v15 = vmul.f32 %v16726_v63, %v16726_v63 }
 0x487   :  { %12395 = vmatpush3.msra.mxu1 %v5321_v62  ;;  %v16744_v62 = vsub.f32 %v16137_v0, %v16440_v46  ;;  %v5317_v0 = vmul.f32 %v16732_v1, %v16732_v1 }
 0x488   :  { %12396 = vmatprep.subr.mxu1 %v5336_v43  ;;  %v16750_v43 = vsub.f32 %v16386_v14, %v16440_v46  ;;  %v5332_v14 = vmul.f32 %v16738_v4, %v16738_v4 }
 0x489   :  { %12397 = vmatpush3.msra.mxu1 %v5320_v56  ;;  %v16756_v56 = vsub.f32 %v16392_v19, %v16440_v46  ;;  %v5316_v19 = vmul.f32 %v16744_v62, %v16744_v62 }
 0x48a   :  { %12398 = vmatprep.subr.mxu1 %v5335_v52  ;;  %v16762_v52 = vsub.f32 %v16399_v61, %v16440_v46  ;;  %v5331_v61 = vmul.f32 %v16750_v43, %v16750_v43 }
 0x48b   :  { %12399 = vmatpush3.msra.mxu1 %v5319_v32  ;;  %v16768_v32 = vsub.f32 %v16153_v49, %v16440_v46  ;;  %v5315_v49 = vmul.f32 %v16756_v56, %v16756_v56 }
 0x48c   :  { %12400 = vmatprep.subr.mxu1 %v5334_v48  ;;  %v16774_v48 = vsub.f32 %v16407_v25, %v16440_v46  ;;  %v5330_v25 = vmul.f32 %v16762_v52, %v16762_v52 }
 0x48d   :  { %12401 = vmatpush3.msra.mxu1 %v5318_v24  ;;  %v16780_v24 = vsub.f32 %v16107_v8, %v16440_v46  ;;  %v5314_v8 = vmul.f32 %v16768_v32, %v16768_v32 }
 0x48e   :  { %12402 = vmatprep.subr.mxu1 %v5333_v15  ;;  %v16786_v15 = vsub.f32 %v16413_v37, %v16440_v46  ;;  %v5329_v37 = vmul.f32 %v16774_v48, %v16774_v48 }
 0x48f   :  { %12403 = vmatpush3.msra.mxu1 %v5317_v0  ;;  %v16792_v0 = vsub.f32 %v21477_v12, %v16440_v46  ;;  %v5313_v12 = vmul.f32 %v16780_v24, %v16780_v24 }
 0x490   :  { %12404 = vmatprep.subr.mxu1 %v5332_v14  ;;  %v16798_v14 = vsub.f32 %v16421_v22, %v16440_v46  ;;  %v5328_v22 = vmul.f32 %v16786_v15, %v16786_v15 }
 0x491   :  { %12405 = vmatpush3.msra.mxu1 %v5316_v19  ;;  %v16804_v19 = vsub.f32 %v16425_v38, %v16440_v46  ;;  %v5312_v38 = vmul.f32 %v16792_v0, %v16792_v0 }
 0x492   :  { %12406 = vmatprep.subr.mxu1 %v5331_v61  ;;  %v16810_v61 = vsub.f32 %v16429_v7, %v16440_v46 }
 0x493   :  { %12407 = vmatpush3.msra.mxu1 %v5315_v49  ;;  %v16816_v49 = vsub.f32 %v21479_v2, %v16440_v46  ;;  %v5311_v7 = vmul.f32 %v16804_v19, %v16804_v19  ;;  %v11687_v46 = vld [vmem:[%s20947_s2 + $0x2] sm:$0x3] }
 0x494   :  { %12408 = vmatprep.subr.mxu1 %v5330_v25  ;;  %v5327_v25 = vmul.f32 %v16798_v14, %v16798_v14 }
 0x495   :  { %12409 = vmatpush3.msra.mxu1 %v5314_v8  ;;  %v5326_v8 = vmul.f32 %v16810_v61, %v16810_v61  ;;  %v5310_v2 = vmul.f32 %v16816_v49, %v16816_v49 }
 0x496   :  { %12410 = vmatprep.subr.mxu1 %v5329_v37  ;;  %v5848_v37 = vld [vmem:[%s20947_s2] sm:$0x3] }
 0x497   :  { %12411 = vmatpush3.msra.mxu1 %v5313_v12  ;;  %v6044_v12 = vsel %vm535_vm0, %v11687_v46, 0  ;;  %14056 = vmatprep.subr.msk.bf16.mxu0 %vm535_vm0, %v5848_v37 }
 0x498   :  { %12412 = vmatprep.subr.mxu1 %v5328_v22  ;;  %v5849_v22 = vld [vmem:[#allocation2 + $0x1] sm:$0xff] }
 0x499   :  { %12413 = vmatpush3.msra.mxu1 %v5312_v38  ;;  %v5850_v38 = vld [vmem:[#allocation2 + $0x9] sm:$0xff] }
 0x49a   :  { %12414 = vmatprep.subr.mxu1 %v5327_v25  ;;  %v6432_v25 = vsel %vm535_vm0, %v5848_v37, 0  ;;  %v16844_v37 = vld [vmem:[%s20947_s2 + $0x4] sm:$0x3] }
 0x49b   :  { %12415 = vmatpush3.msra.mxu1 %v5311_v7  ;;  %v5913_v7 = vpack.c.bf16 %v5850_v38, %v5849_v22  ;;  %13519 = vmatpush3.bf16.msra.mxu0 %v6432_v25  ;;  %21532 = vst [vmem:[#allocation19_spill] sm:$0xff] %v16844_v37  ;;  %v21534_v25 = vld [vmem:[#allocation89_spill] sm:$0xff] }
 0x49c   :  { %12416 = vmatprep.subr.mxu1 %v5326_v8  ;;  %v5752_v8 = vld [vmem:[#allocation2] sm:$0xff] }
 0x49d   :  { %12417 = vmatpush3.msra.mxu1 %v5310_v2  ;;  %v5753_v2 = vld [vmem:[#allocation2 + $0x8] sm:$0xff] }
 0x49e   :  { %5477 = vmatmul.mubr.f32.vlgmr.msra.gmra.mxu1 %v21480_v13  ;;  %14055 = vmatprep.subr.msk.bf16.mxu1 %vm535_vm0, %v11687_v46  ;;  %v5816_v13 = vpack.c.bf16 %v5753_v2, %v5752_v8  ;;  %v21536_v8 = vld [vmem:[#allocation30_spill] sm:$0xff]  ;;  %v21537_v2 = vld [vmem:[#allocation32_spill] sm:$0xff] }
 0x49f   :  { %13453 = vmatpush3.bf16.msra.mxu1 %v6044_v12  ;;  %13454 = vmatprep.mubr.msk.bf16.mxu1 %vm27_vm1, %v5913_v7  ;;  %v21535_v7 = vld [vmem:[#allocation54_spill] sm:$0xff] }
 0x4a0   :  { %13520 = vmatprep.mubr.msk.bf16.mxu0 %vm27_vm1, %v5816_v13  ;;  %14057 = vmatprep.subr.msk.bf16.mxu1 %vm535_vm0, %v16844_v37  ;;  %v5067_v13 = vld [vmem:[%s20948_s3] sm:$0x1] }
 0x53e   :  { %v12383_v5 = vpop.f32.mrf.mxu1 }
 0x540   :  { %v12384_v30 = vpop.f32.mrf.mxu1 }
 0x541   :  { %v12385_v10 = vadd.f32 %v12384_v30, %v12383_v5 }
 0x55e   :  { %v12418_v23 = vpop.f32.mrf.mxu1 }
 0x560   :  { %v12419_v46 = vpop.f32.mrf.mxu1 }
 0x561   :  { %v12420_v18 = vadd.f32 %v12419_v46, %v12418_v23  ;;  %v21538_v46 = vld [vmem:[#allocation51_spill] sm:$0xff] }
 0x563   :  { %v5479_v59 = vadd.f32 %v12420_v18, %v12385_v10 }
 0x565   :  { %v5482_v21 = vmul.f32 0.001953125, %v5479_v59 }
 0x567   :  { %v5483_v12 = vadd.f32 1e-05, %v5482_v21  ;;  %v21533_v21 = vld [vmem:[#allocation24_spill] sm:$0xff] }
 0x569   :  { %14066 = vrsqrt.f32 %v5483_v12 }
 0x576   :  { %v14067_v22 = vpop.eup %14066 }
 0x577   :  { %v5485_v38 = vmul.f32 %v14067_v22, %v5067_v13  ;;  %v21539_v13 = vld [vmem:[#allocation52_spill] sm:$0xff] }
 0x579   :  { %v16852_v5 = vrot.slane %v5485_v38, %v16437_v41  ;;  %v21540_v38 = vld [vmem:[#allocation53_spill] sm:$0xff]  ;;  %v21543_v41 = vld [vmem:[#allocation31_spill] sm:$0xff] }
 0x57b   :  { %v16856_v30 = vmul.f32 %v16852_v5, %v16622_v34  ;;  %v16860_v23 = vmul.f32 %v16852_v5, %v16610_v17  ;;  %v16864_v10 = vmul.f32 %v16852_v5, %v16598_v50  ;;  %v16868_v18 = vmul.f32 %v16852_v5, %v16586_v60 }
 0x57c   :  { %v16872_v59 = vmul.f32 %v16852_v5, %v16574_v6  ;;  %v16876_v34 = vmul.f32 %v16852_v5, %v16562_v39  ;;  %v16880_v17 = vmul.f32 %v16852_v5, %v16550_v54  ;;  %v16884_v50 = vmul.f32 %v16852_v5, %v16538_v3 }
 0x57d   :  { %v16888_v60 = vmul.f32 %v16852_v5, %v16526_v16  ;;  %v16892_v6 = vmul.f32 %v16852_v5, %v16514_v55  ;;  %v16896_v39 = vmul.f32 %v16852_v5, %v16502_v44  ;;  %v16900_v54 = vmul.f32 %v16852_v5, %v16490_v53 }
 0x57e   :  { %v16904_v3 = vmul.f32 %v16852_v5, %v16478_v28  ;;  %v16908_v16 = vmul.f32 %v16852_v5, %v16468_v42  ;;  %v16912_v55 = vmul.f32 %v16852_v5, %v16460_v57  ;;  %v16916_v44 = vmul.f32 %v16852_v5, %v16444_v11 }
 0x57f   :  { %v16920_v53 = vmul.f32 %v16852_v5, %v16616_v47  ;;  %v16924_v28 = vmul.f32 %v16852_v5, %v16604_v33  ;;  %v16928_v42 = vmul.f32 %v16852_v5, %v16592_v36  ;;  %v16932_v57 = vmul.f32 %v16852_v5, %v16580_v40 }
 0x580   :  { %v16936_v11 = vmul.f32 %v16852_v5, %v16568_v20  ;;  %v16940_v47 = vmul.f32 %v16852_v5, %v21533_v21  ;;  %v16944_v33 = vmul.f32 %v16852_v5, %v21534_v25  ;;  %v16948_v36 = vmul.f32 %v16852_v5, %v21535_v7  ;;  %v21541_v25 = vld [vmem:[#allocation56_spill] sm:$0xff] }
 0x581   :  { %v16952_v40 = vmul.f32 %v16852_v5, %v21536_v8  ;;  %v16956_v20 = vmul.f32 %v16852_v5, %v21537_v2  ;;  %v16960_v12 = vmul.f32 %v16852_v5, %v21538_v46  ;;  %v16964_v22 = vmul.f32 %v16852_v5, %v21539_v13  ;;  %v21542_v8 = vld [vmem:[#allocation57_spill] sm:$0xff] }
 0x582   :  { %v16968_v21 = vmul.f32 %v16852_v5, %v21540_v38  ;;  %v16972_v7 = vmul.f32 %v16852_v5, %v21541_v25  ;;  %v16976_v2 = vmul.f32 %v16852_v5, %v21542_v8  ;;  %v16980_v46 = vmul.f32 %v16852_v5, %v21543_v41 }
 0x583   :  { %v16984_v13 = vmul.f32 %v16852_v5, %v16816_v49  ;;  %v16988_v38 = vmul.f32 %v16852_v5, %v16804_v19  ;;  %v16992_v25 = vmul.f32 %v16852_v5, %v16792_v0  ;;  %v16996_v8 = vmul.f32 %v16852_v5, %v16780_v24 }
 0x584   :  { %v17000_v41 = vmul.f32 %v16852_v5, %v16768_v32  ;;  %v17004_v49 = vmul.f32 %v16852_v5, %v16756_v56  ;;  %v17008_v19 = vmul.f32 %v16852_v5, %v16744_v62  ;;  %v17012_v0 = vmul.f32 %v16852_v5, %v16732_v1 }
 0x585   :  { %v17016_v24 = vmul.f32 %v16852_v5, %v16720_v58  ;;  %v17020_v32 = vmul.f32 %v16852_v5, %v16708_v45  ;;  %v17024_v56 = vmul.f32 %v16852_v5, %v16696_v35  ;;  %v17028_v62 = vmul.f32 %v16852_v5, %v16684_v27 }
 0x586   :  { %v17032_v1 = vmul.f32 %v16852_v5, %v16671_v9  ;;  %v17036_v58 = vmul.f32 %v16852_v5, %v16658_v51  ;;  %v17040_v45 = vmul.f32 %v16852_v5, %v16646_v29  ;;  %v17044_v35 = vmul.f32 %v16852_v5, %v16634_v31  ;;  %v17065_v31 = vld [vmem:[%s20949_s4] ss:$0 sm:$0xff] }
 0x587   :  { %v17048_v27 = vmul.f32 %v16852_v5, %v16810_v61  ;;  %v17052_v9 = vmul.f32 %v16852_v5, %v16798_v14  ;;  %v17056_v51 = vmul.f32 %v16852_v5, %v16786_v15  ;;  %v17060_v29 = vmul.f32 %v16852_v5, %v16774_v48 }
 0x588   :  { %v17069_v61 = vmul.f32 %v16852_v5, %v16762_v52  ;;  %v17073_v14 = vmul.f32 %v16852_v5, %v16750_v43  ;;  %v17077_v15 = vmul.f32 %v16852_v5, %v16738_v4  ;;  %v17081_v48 = vmul.f32 %v16852_v5, %v16726_v63 }
 0x589   :  { %21544 = vst [vmem:[#allocation10_spill] sm:$0xff] %v17060_v29  ;;  %v17085_v37 = vmul.f32 %v16852_v5, %v16714_v26  ;;  %v21550_v29 = vld [vmem:[#allocation21_spill] sm:$0xff] }
 0x58a   :  { %21545 = vst [vmem:[#allocation8_spill] sm:$0xff] %v17069_v61  ;;  %21546 = vst [vmem:[#allocation79_spill] sm:$0xff] %v17073_v14  ;;  %v17089_v52 = vmul.f32 %v16852_v5, %v21550_v29  ;;  %v21552_v61 = vld [vmem:[#allocation90_spill] sm:$0xff]  ;;  %v21553_v14 = vld [vmem:[#allocation83_spill] sm:$0xff] }
 0x58b   :  { %21547 = vst [vmem:[#allocation78_spill] sm:$0xff] %v17077_v15  ;;  %21548 = vst [vmem:[#allocation66_spill] sm:$0xff] %v17081_v48  ;;  %v17093_v43 = vmul.f32 %v16852_v5, %v21552_v61  ;;  %v17097_v4 = vmul.f32 %v16852_v5, %v21553_v14  ;;  %v21554_v15 = vld [vmem:[#allocation92_spill] sm:$0xff]  ;;  %v21555_v48 = vld [vmem:[#allocation49_spill] sm:$0xff]  ;;  %v17117_v14 = vadd.f32 %v17065_v31, %v16856_v30 }
 0x58c   :  { %21549 = vst [vmem:[#allocation9_spill] sm:$0xff] %v17085_v37  ;;  %21551 = vst [vmem:[#allocation97_spill] sm:$0xff] %v17089_v52  ;;  %v17101_v63 = vmul.f32 %v16852_v5, %v21554_v15  ;;  %v17105_v26 = vmul.f32 %v16852_v5, %v21555_v48  ;;  %v21556_v37 = vld [vmem:[#allocation50_spill] sm:$0xff]  ;;  %v17121_v15 = vadd.f32 %v17065_v31, %v16860_v23 }
 0x58d   :  { %v17109_v29 = vmul.f32 %v16852_v5, %v21556_v37  ;;  %v21557_v52 = vld [vmem:[#allocation22_spill] sm:$0xff]  ;;  %v17125_v48 = vadd.f32 %v17065_v31, %v16864_v10  ;;  %v17129_v37 = vadd.f32 %v17065_v31, %v16868_v18  ;;  %v17137_v30 = vadd.f32 %v17065_v31, %v16876_v34 }
 0x58e   :  { %v17113_v61 = vmul.f32 %v16852_v5, %v21557_v52  ;;  %v17133_v5 = vadd.f32 %v17065_v31, %v16872_v59  ;;  %v17141_v23 = vadd.f32 %v17065_v31, %v16880_v17  ;;  %v17145_v10 = vadd.f32 %v17065_v31, %v16884_v50 }
 0x58f   :  { %v17149_v18 = vadd.f32 %v17065_v31, %v16888_v60  ;;  %v17153_v59 = vadd.f32 %v17065_v31, %v16892_v6  ;;  %v17157_v34 = vadd.f32 %v17065_v31, %v16896_v39  ;;  %v17161_v17 = vadd.f32 %v17065_v31, %v16900_v54 }
 0x590   :  { %v17165_v50 = vadd.f32 %v17065_v31, %v16904_v3  ;;  %v17169_v60 = vadd.f32 %v17065_v31, %v16908_v16  ;;  %v17173_v6 = vadd.f32 %v17065_v31, %v16912_v55  ;;  %v17177_v39 = vadd.f32 %v17065_v31, %v16916_v44  ;;  %v21563_v52 = vld [vmem:[#allocation10_spill] sm:$0xff] }
 0x591   :  { %v17181_v54 = vadd.f32 %v17065_v31, %v16920_v53  ;;  %v17185_v3 = vadd.f32 %v17065_v31, %v16924_v28  ;;  %v17189_v16 = vadd.f32 %v17065_v31, %v16928_v42  ;;  %v17193_v55 = vadd.f32 %v17065_v31, %v16932_v57 }
 0x592   :  { %v17197_v44 = vadd.f32 %v17065_v31, %v16936_v11  ;;  %v17201_v53 = vadd.f32 %v17065_v31, %v16940_v47  ;;  %v17205_v28 = vadd.f32 %v17065_v31, %v16944_v33  ;;  %v17209_v42 = vadd.f32 %v17065_v31, %v16948_v36 }
 0x593   :  { %v17213_v57 = vadd.f32 %v17065_v31, %v16952_v40  ;;  %v17217_v11 = vadd.f32 %v17065_v31, %v16956_v20  ;;  %v17221_v47 = vadd.f32 %v17065_v31, %v16960_v12  ;;  %v17225_v33 = vadd.f32 %v17065_v31, %v16964_v22 }
 0x594   :  { %v17229_v36 = vadd.f32 %v17065_v31, %v16968_v21  ;;  %v17233_v40 = vadd.f32 %v17065_v31, %v16972_v7  ;;  %v17237_v20 = vadd.f32 %v17065_v31, %v16976_v2  ;;  %v17241_v12 = vadd.f32 %v17065_v31, %v16980_v46 }
 0x595   :  { %v17245_v22 = vadd.f32 %v17065_v31, %v16984_v13  ;;  %v17249_v21 = vadd.f32 %v17065_v31, %v16988_v38  ;;  %v17253_v7 = vadd.f32 %v17065_v31, %v16992_v25  ;;  %v17257_v2 = vadd.f32 %v17065_v31, %v16996_v8 }
 0x596   :  { %v17261_v46 = vadd.f32 %v17065_v31, %v17000_v41  ;;  %v17265_v13 = vadd.f32 %v17065_v31, %v17004_v49  ;;  %v17269_v38 = vadd.f32 %v17065_v31, %v17008_v19  ;;  %v17273_v25 = vadd.f32 %v17065_v31, %v17012_v0 }
 0x597   :  { %v17277_v8 = vadd.f32 %v17065_v31, %v17016_v24  ;;  %v17281_v41 = vadd.f32 %v17065_v31, %v17020_v32  ;;  %v17285_v49 = vadd.f32 %v17065_v31, %v17024_v56  ;;  %v17289_v19 = vadd.f32 %v17065_v31, %v17028_v62 }
 0x598   :  { %v17293_v0 = vadd.f32 %v17065_v31, %v17032_v1  ;;  %v17297_v24 = vadd.f32 %v17065_v31, %v17036_v58  ;;  %v17301_v32 = vadd.f32 %v17065_v31, %v17040_v45  ;;  %v17305_v56 = vadd.f32 %v17065_v31, %v17044_v35 }
 0x599   :  { %v17309_v62 = vadd.f32 %v17065_v31, %v17048_v27  ;;  %v17313_v1 = vadd.f32 %v17065_v31, %v17052_v9  ;;  %v17317_v58 = vadd.f32 %v17065_v31, %v17056_v51  ;;  %v17321_v45 = vadd.f32 %v17065_v31, %v21563_v52 }
 0x59a   :  { %21558 = vst [vmem:[#allocation76_spill] sm:$0xff] %v17301_v32  ;;  %21559 = vst [vmem:[#allocation4_spill] sm:$0xff] %v17305_v56  ;;  %v21565_v32 = vld [vmem:[#allocation8_spill] sm:$0xff]  ;;  %v21566_v56 = vld [vmem:[#allocation79_spill] sm:$0xff] }
 0x59b   :  { %21560 = vst [vmem:[#allocation95_spill] sm:$0xff] %v17309_v62  ;;  %21561 = vst [vmem:[#allocation20_spill] sm:$0xff] %v17313_v1  ;;  %v17325_v35 = vadd.f32 %v17065_v31, %v21565_v32  ;;  %v17329_v27 = vadd.f32 %v17065_v31, %v21566_v56  ;;  %v21567_v62 = vld [vmem:[#allocation78_spill] sm:$0xff]  ;;  %v17349_v56 = vadd.f32 %v17065_v31, %v17093_v43 }
 0x59c   :  { %21562 = vst [vmem:[#allocation18_spill] sm:$0xff] %v17317_v58  ;;  %21564 = vst [vmem:[#allocation77_spill] sm:$0xff] %v17321_v45  ;;  %v17333_v9 = vadd.f32 %v17065_v31, %v21567_v62  ;;  %v21568_v1 = vld [vmem:[#allocation66_spill] sm:$0xff]  ;;  %v21569_v58 = vld [vmem:[#allocation9_spill] sm:$0xff]  ;;  %v17353_v62 = vadd.f32 %v17065_v31, %v17097_v4  ;;  %v17369_v43 = vadd.f32 %v17065_v31, %v17113_v61  ;;  %v5625_v4 = vmax.f32 %v17121_v15, 0.0 }
 0x59d   :  { %v17337_v51 = vadd.f32 %v17065_v31, %v21568_v1  ;;  %v17341_v52 = vadd.f32 %v17065_v31, %v21569_v58  ;;  %v21570_v45 = vld [vmem:[#allocation97_spill] sm:$0xff]  ;;  %21571 = vst [vmem:[#allocation6_spill] sm:$0xff] %v17349_v56  ;;  %v17357_v1 = vadd.f32 %v17065_v31, %v17101_v63  ;;  %v17361_v58 = vadd.f32 %v17065_v31, %v17105_v26 }
 0x59e   :  { %v17345_v32 = vadd.f32 %v17065_v31, %v21570_v45  ;;  %21572 = vst [vmem:[#allocation3_spill] sm:$0xff] %v17353_v62  ;;  %v17365_v45 = vadd.f32 %v17065_v31, %v17109_v29  ;;  %v5624_v56 = vmax.f32 %v17117_v14, 0.0  ;;  %v5626_v62 = vmax.f32 %v17125_v48, 0.0  ;;  %5689 = vst.msk [vmem:[#allocation2 + $0x21] sm:$0xff] %vm27_vm1, %v5625_v4 }
 0x59f   :  { %21573 = vst [vmem:[#allocation7_spill] sm:$0xff] %v17357_v1  ;;  %21574 = vst [vmem:[#allocation96_spill] sm:$0xff] %v17361_v58  ;;  %v5627_v63 = vmax.f32 %v17129_v37, 0.0  ;;  %v5628_v1 = vmax.f32 %v17133_v5, 0.0  ;;  %v5629_v26 = vmax.f32 %v17137_v30, 0.0  ;;  %v5630_v58 = vmax.f32 %v17141_v23, 0.0 }
 0x5a0   :  { %21575 = vst [vmem:[#allocation75_spill] sm:$0xff] %v17365_v45  ;;  %v5631_v29 = vmax.f32 %v17145_v10, 0.0  ;;  %v5632_v45 = vmax.f32 %v17149_v18, 0.0  ;;  %v5633_v31 = vmax.f32 %v17153_v59, 0.0  ;;  %v5634_v61 = vmax.f32 %v17157_v34, 0.0  ;;  %5688 = vst.msk [vmem:[#allocation2 + $0x19] sm:$0xff] %vm27_vm1, %v5624_v56 }
 0x5a1   :  { %v5635_v14 = vmax.f32 %v17161_v17, 0.0  ;;  %5690 = vst.msk [vmem:[#allocation2 + $0x31] sm:$0xff] %vm27_vm1, %v5626_v62  ;;  %5691 = vst.msk [vmem:[#allocation2 + $0x39] sm:$0xff] %vm27_vm1, %v5627_v63  ;;  %v5636_v15 = vmax.f32 %v17165_v50, 0.0  ;;  %v5637_v48 = vmax.f32 %v17169_v60, 0.0  ;;  %v5638_v37 = vmax.f32 %v17173_v6, 0.0 }
 0x5a2   :  { %v5639_v5 = vmax.f32 %v17177_v39, 0.0  ;;  %5692 = vst.msk [vmem:[#allocation2 + $0x49] sm:$0xff] %vm27_vm1, %v5628_v1  ;;  %5693 = vst.msk [vmem:[#allocation2 + $0x51] sm:$0xff] %vm27_vm1, %v5629_v26  ;;  %v5640_v30 = vmax.f32 %v17181_v54, 0.0  ;;  %v5641_v23 = vmax.f32 %v17185_v3, 0.0  ;;  %v5642_v10 = vmax.f32 %v17189_v16, 0.0 }
 0x5a3   :  { %5694 = vst.msk [vmem:[#allocation2 + $0x61] sm:$0xff] %vm27_vm1, %v5630_v58  ;;  %5695 = vst.msk [vmem:[#allocation2 + $0x69] sm:$0xff] %vm27_vm1, %v5631_v29  ;;  %v5643_v18 = vmax.f32 %v17193_v55, 0.0  ;;  %v5644_v59 = vmax.f32 %v17197_v44, 0.0  ;;  %v5645_v34 = vmax.f32 %v17201_v53, 0.0  ;;  %v5646_v17 = vmax.f32 %v17205_v28, 0.0 }
 0x5a4   :  { %5696 = vst.msk [vmem:[#allocation2 + $0x79] sm:$0xff] %vm27_vm1, %v5632_v45  ;;  %5697 = vst.msk [vmem:[#allocation2 + $0x81] sm:$0xff] %vm27_vm1, %v5633_v31  ;;  %v5647_v50 = vmax.f32 %v17209_v42, 0.0  ;;  %v5648_v60 = vmax.f32 %v17213_v57, 0.0  ;;  %v5649_v6 = vmax.f32 %v17217_v11, 0.0  ;;  %v5650_v39 = vmax.f32 %v17221_v47, 0.0 }
 0x5a5   :  { %5698 = vst.msk [vmem:[#allocation2 + $0x91] sm:$0xff] %vm27_vm1, %v5634_v61  ;;  %5699 = vst.msk [vmem:[#allocation2 + $0x99] sm:$0xff] %vm27_vm1, %v5635_v14  ;;  %v5651_v54 = vmax.f32 %v17225_v33, 0.0  ;;  %v5652_v3 = vmax.f32 %v17229_v36, 0.0  ;;  %v5653_v16 = vmax.f32 %v17233_v40, 0.0  ;;  %v5654_v55 = vmax.f32 %v17237_v20, 0.0 }
 0x5a6   :  { %5700 = vst.msk [vmem:[#allocation2 + $0xa9] sm:$0xff] %vm27_vm1, %v5636_v15  ;;  %5701 = vst.msk [vmem:[#allocation2 + $0xb1] sm:$0xff] %vm27_vm1, %v5637_v48  ;;  %v5655_v44 = vmax.f32 %v17241_v12, 0.0  ;;  %v5656_v53 = vmax.f32 %v17245_v22, 0.0  ;;  %v5657_v28 = vmax.f32 %v17249_v21, 0.0  ;;  %v5658_v42 = vmax.f32 %v17253_v7, 0.0 }
 0x5a7   :  { %5702 = vst.msk [vmem:[#allocation2 + $0xc1] sm:$0xff] %vm27_vm1, %v5638_v37  ;;  %5703 = vst.msk [vmem:[#allocation2 + $0xc9] sm:$0xff] %vm27_vm1, %v5639_v5  ;;  %v5659_v57 = vmax.f32 %v17257_v2, 0.0  ;;  %v5660_v11 = vmax.f32 %v17261_v46, 0.0  ;;  %v5661_v47 = vmax.f32 %v17265_v13, 0.0  ;;  %v5662_v33 = vmax.f32 %v17269_v38, 0.0 }
 0x5a8   :  { %5704 = vst.msk [vmem:[#allocation2 + $0xd9] sm:$0xff] %vm27_vm1, %v5640_v30  ;;  %5705 = vst.msk [vmem:[#allocation2 + $0xe1] sm:$0xff] %vm27_vm1, %v5641_v23  ;;  %v5663_v36 = vmax.f32 %v17273_v25, 0.0  ;;  %v5664_v40 = vmax.f32 %v17277_v8, 0.0  ;;  %v5665_v20 = vmax.f32 %v17281_v41, 0.0  ;;  %v5666_v12 = vmax.f32 %v17285_v49, 0.0 }
 0x5a9   :  { %5706 = vst.msk [vmem:[#allocation2 + $0xf1] sm:$0xff] %vm27_vm1, %v5642_v10  ;;  %5707 = vst.msk [vmem:[#allocation2 + $0xf9] sm:$0xff] %vm27_vm1, %v5643_v18  ;;  %v5667_v22 = vmax.f32 %v17289_v19, 0.0  ;;  %v5668_v21 = vmax.f32 %v17293_v0, 0.0  ;;  %v5669_v7 = vmax.f32 %v17297_v24, 0.0  ;;  %v21576_v2 = vld [vmem:[#allocation76_spill] sm:$0xff] }
 0x5aa   :  { %5708 = vst.msk [vmem:[#allocation2 + $0x109] sm:$0xff] %vm27_vm1, %v5644_v59  ;;  %5709 = vst.msk [vmem:[#allocation2 + $0x111] sm:$0xff] %vm27_vm1, %v5645_v34  ;;  %v5670_v46 = vmax.f32 %v21576_v2, 0.0  ;;  %v21577_v13 = vld [vmem:[#allocation4_spill] sm:$0xff]  ;;  %v5851_v25 = vld [vmem:[#allocation2 + $0x19] sm:$0xff]  ;;  %v5676_v26 = vmax.f32 %v17325_v35, 0.0 }
 0x5ab   :  { %5710 = vst.msk [vmem:[#allocation2 + $0x121] sm:$0xff] %vm27_vm1, %v5646_v17  ;;  %5711 = vst.msk [vmem:[#allocation2 + $0x129] sm:$0xff] %vm27_vm1, %v5647_v50  ;;  %v5671_v38 = vmax.f32 %v21577_v13, 0.0  ;;  %v5852_v8 = vld [vmem:[#allocation2 + $0x21] sm:$0xff]  ;;  %v5754_v41 = vld [vmem:[#allocation2 + $0x18] sm:$0xff]  ;;  %v5677_v29 = vmax.f32 %v17329_v27, 0.0 }
 0x5ac   :  { %5712 = vst.msk [vmem:[#allocation2 + $0x139] sm:$0xff] %vm27_vm1, %v5648_v60  ;;  %5713 = vst.msk [vmem:[#allocation2 + $0x141] sm:$0xff] %vm27_vm1, %v5649_v6  ;;  %v5755_v49 = vld [vmem:[#allocation2 + $0x20] sm:$0xff]  ;;  %v21579_v56 = vld [vmem:[#allocation20_spill] sm:$0xff]  ;;  %v5678_v31 = vmax.f32 %v17333_v9, 0.0  ;;  %v5679_v61 = vmax.f32 %v17337_v51, 0.0  ;;  %v5914_v59 = vpack.c.bf16 %v5852_v8, %v5851_v25 }
 0x5ad   :  { %5714 = vst.msk [vmem:[#allocation2 + $0x151] sm:$0xff] %vm27_vm1, %v5650_v39  ;;  %5715 = vst.msk [vmem:[#allocation2 + $0x159] sm:$0xff] %vm27_vm1, %v5651_v54  ;;  %v21578_v19 = vld [vmem:[#allocation95_spill] sm:$0xff]  ;;  %v5673_v24 = vmax.f32 %v21579_v56, 0.0  ;;  %v21580_v62 = vld [vmem:[#allocation18_spill] sm:$0xff]  ;;  %v5680_v48 = vmax.f32 %v17341_v52, 0.0  ;;  %v17495_v34 = vpack.c.bf16 %v5755_v49, %v5754_v41 }
 0x5ae   :  { %5716 = vst.msk [vmem:[#allocation2 + $0x169] sm:$0xff] %vm27_vm1, %v5652_v3  ;;  %5717 = vst.msk [vmem:[#allocation2 + $0x171] sm:$0xff] %vm27_vm1, %v5653_v16  ;;  %v5672_v0 = vmax.f32 %v21578_v19, 0.0  ;;  %v5674_v1 = vmax.f32 %v21580_v62, 0.0  ;;  %v21581_v58 = vld [vmem:[#allocation77_spill] sm:$0xff]  ;;  %v5854_v63 = vld [vmem:[#allocation2 + $0x39] sm:$0xff]  ;;  %13455 = vmatmul.mubr.msk.bf16.vlgmr.msra.gmra.mxu1 %vm27_vm1, %v5914_v59 }
 0x5af   :  { %5718 = vst.msk [vmem:[#allocation2 + $0x181] sm:$0xff] %vm27_vm1, %v5654_v55  ;;  %5719 = vst.msk [vmem:[#allocation2 + $0x189] sm:$0xff] %vm27_vm1, %v5655_v44  ;;  %v5675_v45 = vmax.f32 %v21581_v58, 0.0  ;;  %v5853_v4 = vld [vmem:[#allocation2 + $0x31] sm:$0xff]  ;;  %v5681_v35 = vmax.f32 %v17345_v32, 0.0  ;;  %v21583_v5 = vld [vmem:[#allocation3_spill] sm:$0xff]  ;;  %13521 = vmatmul.mubr.msk.bf16.vlgmr.msra.gmra.mxu0 %vm27_vm1, %v17495_v34 }
 0x5b0   :  { %5720 = vst.msk [vmem:[#allocation2 + $0x1c9] sm:$0xff] %vm27_vm1, %v5656_v53  ;;  %5721 = vst.msk [vmem:[#allocation2 + $0x1d1] sm:$0xff] %vm27_vm1, %v5657_v28  ;;  %v5756_v14 = vld [vmem:[#allocation2 + $0x30] sm:$0xff]  ;;  %v5757_v15 = vld [vmem:[#allocation2 + $0x38] sm:$0xff]  ;;  %v5683_v9 = vmax.f32 %v21583_v5, 0.0  ;;  %v5687_v32 = vmax.f32 %v17369_v43, 0.0  ;;  %v5915_v43 = vpack.c.bf16 %v5854_v63, %v5853_v4 }
 0x5b1   :  { %5722 = vst.msk [vmem:[#allocation2 + $0x1e1] sm:$0xff] %vm27_vm1, %v5658_v42  ;;  %5723 = vst.msk [vmem:[#allocation2 + $0x1e9] sm:$0xff] %vm27_vm1, %v5659_v57  ;;  %v21582_v37 = vld [vmem:[#allocation6_spill] sm:$0xff]  ;;  %v21584_v51 = vld [vmem:[#allocation7_spill] sm:$0xff]  ;;  %v17497_v17 = vpack.c.bf16 %v5757_v15, %v5756_v14 }
 0x5b2   :  { %5724 = vst.msk [vmem:[#allocation2 + $0x1f9] sm:$0xff] %vm27_vm1, %v5660_v11  ;;  %5725 = vst.msk [vmem:[#allocation2 + $0x201] sm:$0xff] %vm27_vm1, %v5661_v47  ;;  %v5682_v27 = vmax.f32 %v21582_v37, 0.0  ;;  %v5684_v30 = vmax.f32 %v21584_v51, 0.0  ;;  %v21585_v23 = vld [vmem:[#allocation96_spill] sm:$0xff]  ;;  %v21586_v18 = vld [vmem:[#allocation75_spill] sm:$0xff]  ;;  %13458 = vmatprep.mubr.msk.bf16.mxu1 %vm27_vm1, %v5915_v43 }
 0x5b3   :  { %5726 = vst.msk [vmem:[#allocation2 + $0x211] sm:$0xff] %vm27_vm1, %v5662_v33  ;;  %5727 = vst.msk [vmem:[#allocation2 + $0x219] sm:$0xff] %vm27_vm1, %v5663_v36  ;;  %v5685_v10 = vmax.f32 %v21585_v23, 0.0  ;;  %v5686_v52 = vmax.f32 %v21586_v18, 0.0  ;;  %v21587_v50 = vld [vmem:[#allocation19_spill] sm:$0xff]  ;;  %13524 = vmatprep.mubr.msk.bf16.mxu0 %vm27_vm1, %v17497_v17  ;;  %v5855_v6 = vld [vmem:[#allocation2 + $0x49] sm:$0xff] }
 0x5b4   :  { %5728 = vst.msk [vmem:[#allocation2 + $0x229] sm:$0xff] %vm27_vm1, %v5664_v40  ;;  %5729 = vst.msk [vmem:[#allocation2 + $0x231] sm:$0xff] %vm27_vm1, %v5665_v20  ;;  %v6918_v60 = vsel %vm535_vm0, %v21587_v50, 0  ;;  %v5856_v39 = vld [vmem:[#allocation2 + $0x51] sm:$0xff]  ;;  %v5758_v54 = vld [vmem:[#allocation2 + $0x48] sm:$0xff] }
 0x5b5   :  { %5730 = vst.msk [vmem:[#allocation2 + $0x241] sm:$0xff] %vm27_vm1, %v5666_v12  ;;  %5731 = vst.msk [vmem:[#allocation2 + $0x249] sm:$0xff] %vm27_vm1, %v5667_v22  ;;  %13585 = vmatpush3.bf16.msra.mxu1 %v6918_v60  ;;  %v5759_v3 = vld [vmem:[#allocation2 + $0x50] sm:$0xff]  ;;  %v5857_v16 = vld [vmem:[#allocation2 + $0x61] sm:$0xff]  ;;  %v5916_v28 = vpack.c.bf16 %v5856_v39, %v5855_v6 }
 0x5b6   :  { %5732 = vst.msk [vmem:[#allocation2 + $0x259] sm:$0xff] %vm27_vm1, %v5668_v21  ;;  %5733 = vst.msk [vmem:[#allocation2 + $0x261] sm:$0xff] %vm27_vm1, %v5669_v7  ;;  %v5858_v55 = vld [vmem:[#allocation2 + $0x69] sm:$0xff]  ;;  %v5760_v44 = vld [vmem:[#allocation2 + $0x60] sm:$0xff]  ;;  %v17511_v42 = vpack.c.bf16 %v5759_v3, %v5758_v54 }
 0x5b7   :  { %5734 = vst.msk [vmem:[#allocation2 + $0x271] sm:$0xff] %vm27_vm1, %v5670_v46  ;;  %5735 = vst.msk [vmem:[#allocation2 + $0x279] sm:$0xff] %vm27_vm1, %v5671_v38  ;;  %v5761_v53 = vld [vmem:[#allocation2 + $0x68] sm:$0xff]  ;;  %v5917_v57 = vpack.c.bf16 %v5858_v55, %v5857_v16  ;;  %13459 = vmatmul.mubr.msk.bf16.gmra.mxu1 %vm27_vm1, %v5916_v28  ;;  %v5859_v47 = vld [vmem:[#allocation2 + $0x79] sm:$0xff] }
 0x5b8   :  { %5736 = vst.msk [vmem:[#allocation2 + $0x289] sm:$0xff] %vm27_vm1, %v5672_v0  ;;  %5737 = vst.msk [vmem:[#allocation2 + $0x291] sm:$0xff] %vm27_vm1, %v5673_v24  ;;  %v17513_v11 = vpack.c.bf16 %v5761_v53, %v5760_v44  ;;  %13525 = vmatmul.mubr.msk.bf16.gmra.mxu0 %vm27_vm1, %v17511_v42  ;;  %v5860_v33 = vld [vmem:[#allocation2 + $0x81] sm:$0xff]  ;;  %v5762_v36 = vld [vmem:[#allocation2 + $0x78] sm:$0xff] }
 0x5b9   :  { %5738 = vst.msk [vmem:[#allocation2 + $0x2a1] sm:$0xff] %vm27_vm1, %v5674_v1  ;;  %5739 = vst.msk [vmem:[#allocation2 + $0x2a9] sm:$0xff] %vm27_vm1, %v5675_v45  ;;  %13462 = vmatprep.mubr.msk.bf16.mxu1 %vm27_vm1, %v5917_v57  ;;  %v5763_v40 = vld [vmem:[#allocation2 + $0x80] sm:$0xff]  ;;  %v5861_v20 = vld [vmem:[#allocation2 + $0x91] sm:$0xff]  ;;  %v5918_v7 = vpack.c.bf16 %v5860_v33, %v5859_v47 }
 0x5ba   :  { %5740 = vst.msk [vmem:[#allocation2 + $0x2b9] sm:$0xff] %vm27_vm1, %v5676_v26  ;;  %5741 = vst.msk [vmem:[#allocation2 + $0x2c1] sm:$0xff] %vm27_vm1, %v5677_v29  ;;  %13528 = vmatprep.mubr.msk.bf16.mxu0 %vm27_vm1, %v17513_v11  ;;  %v5862_v12 = vld [vmem:[#allocation2 + $0x99] sm:$0xff]  ;;  %v5764_v22 = vld [vmem:[#allocation2 + $0x90] sm:$0xff]  ;;  %v17521_v2 = vpack.c.bf16 %v5763_v40, %v5762_v36 }
 0x5bb   :  { %5742 = vst.msk [vmem:[#allocation2 + $0x2d1] sm:$0xff] %vm27_vm1, %v5678_v31  ;;  %5743 = vst.msk [vmem:[#allocation2 + $0x2d9] sm:$0xff] %vm27_vm1, %v5679_v61  ;;  %v5765_v21 = vld [vmem:[#allocation2 + $0x98] sm:$0xff]  ;;  %v5919_v46 = vpack.c.bf16 %v5862_v12, %v5861_v20  ;;  %v5863_v38 = vld [vmem:[#allocation2 + $0xa9] sm:$0xff] }
 0x5bc   :  { %5744 = vst.msk [vmem:[#allocation2 + $0x2e9] sm:$0xff] %vm27_vm1, %v5680_v48  ;;  %5745 = vst.msk [vmem:[#allocation2 + $0x2f1] sm:$0xff] %vm27_vm1, %v5681_v35  ;;  %v17523_v13 = vpack.c.bf16 %v5765_v21, %v5764_v22  ;;  %v5864_v25 = vld [vmem:[#allocation2 + $0xb1] sm:$0xff]  ;;  %v5766_v8 = vld [vmem:[#allocation2 + $0xa8] sm:$0xff] }
 0x5bd   :  { %5746 = vst.msk [vmem:[#allocation2 + $0x301] sm:$0xff] %vm27_vm1, %v5682_v27  ;;  %5747 = vst.msk [vmem:[#allocation2 + $0x309] sm:$0xff] %vm27_vm1, %v5683_v9  ;;  %v5767_v41 = vld [vmem:[#allocation2 + $0xb0] sm:$0xff]  ;;  %v5865_v49 = vld [vmem:[#allocation2 + $0xc1] sm:$0xff]  ;;  %v5920_v24 = vpack.c.bf16 %v5864_v25, %v5863_v38 }
 0x5be   :  { %5748 = vst.msk [vmem:[#allocation2 + $0x319] sm:$0xff] %vm27_vm1, %v5684_v30  ;;  %5749 = vst.msk [vmem:[#allocation2 + $0x321] sm:$0xff] %vm27_vm1, %v5685_v10  ;;  %v5866_v19 = vld [vmem:[#allocation2 + $0xc9] sm:$0xff]  ;;  %v5768_v0 = vld [vmem:[#allocation2 + $0xc0] sm:$0xff]  ;;  %v17531_v62 = vpack.c.bf16 %v5767_v41, %v5766_v8 }
 0x5bf   :  { %5750 = vst.msk [vmem:[#allocation2 + $0x331] sm:$0xff] %vm27_vm1, %v5686_v52  ;;  %5751 = vst.msk [vmem:[#allocation2 + $0x339] sm:$0xff] %vm27_vm1, %v5687_v32  ;;  %13463 = vmatmul.mubr.msk.bf16.gmra.mxu1 %vm27_vm1, %v5918_v7  ;;  %v5769_v56 = vld [vmem:[#allocation2 + $0xc8] sm:$0xff]  ;;  %v5921_v1 = vpack.c.bf16 %v5866_v19, %v5865_v49  ;;  %v5867_v45 = vld [vmem:[#allocation2 + $0xd9] sm:$0xff] }
 0x5c0   :  { %13529 = vmatmul.mubr.msk.bf16.gmra.mxu0 %vm27_vm1, %v17521_v2  ;;  %13466 = vmatprep.mubr.msk.bf16.mxu1 %vm27_vm1, %v5919_v46  ;;  %v17533_v58 = vpack.c.bf16 %v5769_v56, %v5768_v0  ;;  %v5868_v4 = vld [vmem:[#allocation2 + $0xe1] sm:$0xff]  ;;  %v5770_v63 = vld [vmem:[#allocation2 + $0xd8] sm:$0xff]  ;;  %v5772_v61 = vld [vmem:[#allocation2 + $0xf0] sm:$0xff] }
 0x5c1   :  { %13532 = vmatprep.mubr.msk.bf16.mxu0 %vm27_vm1, %v17523_v13  ;;  %v5771_v26 = vld [vmem:[#allocation2 + $0xe0] sm:$0xff]  ;;  %v5869_v29 = vld [vmem:[#allocation2 + $0xf1] sm:$0xff]  ;;  %v5922_v15 = vpack.c.bf16 %v5868_v4, %v5867_v45  ;;  %v5871_v5 = vld [vmem:[#allocation2 + $0x109] sm:$0xff] }
 0x5c2   :  { %v5870_v31 = vld [vmem:[#allocation2 + $0xf9] sm:$0xff]  ;;  %v17541_v48 = vpack.c.bf16 %v5771_v26, %v5770_v63  ;;  %v11785_v27 = vld [vmem:[%s20947_s2 + $0x6] sm:$0x3]  ;;  %v5872_v9 = vld [vmem:[#allocation2 + $0x111] sm:$0xff] }
 0x5c3   :  { %v5773_v14 = vld [vmem:[#allocation2 + $0xf8] sm:$0xff]  ;;  %v5923_v35 = vpack.c.bf16 %v5870_v31, %v5869_v29  ;;  %14058 = vmatprep.subr.msk.bf16.mxu0 %vm535_vm0, %v11785_v27  ;;  %v7468_v51 = vsel %vm535_vm0, %v11785_v27, 0  ;;  %v5774_v30 = vld [vmem:[#allocation2 + $0x108] sm:$0xff]  ;;  %v5775_v23 = vld [vmem:[#allocation2 + $0x110] sm:$0xff]  ;;  %v5924_v59 = vpack.c.bf16 %v5872_v9, %v5871_v5 }
 0x5c4   :  { %v17543_v37 = vpack.c.bf16 %v5773_v14, %v5772_v61  ;;  %v5873_v10 = vld [vmem:[#allocation2 + $0x121] sm:$0xff]  ;;  %13651 = vmatpush3.bf16.msra.mxu0 %v7468_v51  ;;  %v5874_v18 = vld [vmem:[#allocation2 + $0x129] sm:$0xff]  ;;  %v17556_v43 = vpack.c.bf16 %v5775_v23, %v5774_v30  ;;  %v5875_v6 = vld [vmem:[#allocation2 + $0x139] sm:$0xff] }
 0x5c5   :  { %v5776_v52 = vld [vmem:[#allocation2 + $0x120] sm:$0xff]  ;;  %v5777_v32 = vld [vmem:[#allocation2 + $0x128] sm:$0xff]  ;;  %v5925_v50 = vpack.c.bf16 %v5874_v18, %v5873_v10  ;;  %v5778_v54 = vld [vmem:[#allocation2 + $0x138] sm:$0xff] }
 0x5c6   :  { %v17558_v60 = vpack.c.bf16 %v5777_v32, %v5776_v52  ;;  %v5876_v39 = vld [vmem:[#allocation2 + $0x141] sm:$0xff]  ;;  %v5877_v16 = vld [vmem:[#allocation2 + $0x151] sm:$0xff]  ;;  %v5878_v55 = vld [vmem:[#allocation2 + $0x159] sm:$0xff] }
 0x5c7   :  { %13467 = vmatmul.mubr.msk.bf16.gmra.mxu1 %vm27_vm1, %v5920_v24  ;;  %v5779_v3 = vld [vmem:[#allocation2 + $0x140] sm:$0xff]  ;;  %v5780_v44 = vld [vmem:[#allocation2 + $0x150] sm:$0xff]  ;;  %v5781_v53 = vld [vmem:[#allocation2 + $0x158] sm:$0xff]  ;;  %v5926_v28 = vpack.c.bf16 %v5876_v39, %v5875_v6  ;;  %v5927_v47 = vpack.c.bf16 %v5878_v55, %v5877_v16 }
 0x5c8   :  { %13533 = vmatmul.mubr.msk.bf16.gmra.mxu0 %vm27_vm1, %v17531_v62  ;;  %13470 = vmatprep.mubr.msk.bf16.mxu1 %vm27_vm1, %v5921_v1  ;;  %v17566_v57 = vpack.c.bf16 %v5779_v3, %v5778_v54  ;;  %v17568_v33 = vpack.c.bf16 %v5781_v53, %v5780_v44  ;;  %v5881_v36 = vld [vmem:[#allocation2 + $0x1b1] sm:$0xff]  ;;  %v5882_v40 = vld [vmem:[#allocation2 + $0x1b9] sm:$0xff]  ;;  %v5879_v20 = vld [vmem:[#allocation2 + $0x169] sm:$0xff] }
 0x5c9   :  { %13536 = vmatprep.mubr.msk.bf16.mxu0 %vm27_vm1, %v17533_v58  ;;  %v5784_v12 = vld [vmem:[#allocation2 + $0x1b0] sm:$0xff]  ;;  %v5785_v22 = vld [vmem:[#allocation2 + $0x1b8] sm:$0xff]  ;;  %v5782_v7 = vld [vmem:[#allocation2 + $0x168] sm:$0xff]  ;;  %v5929_v38 = vpack.c.bf16 %v5882_v40, %v5881_v36 }
 0x5ca   :  { %v5880_v21 = vld [vmem:[#allocation2 + $0x171] sm:$0xff]  ;;  %v5832_v25 = vpack.c.bf16 %v5785_v22, %v5784_v12  ;;  %v17586_v49 = vld [vmem:[%s20947_s2 + $0x8] sm:$0x3]  ;;  %v5788_v4 = vld [vmem:[#allocation2 + $0x1e0] sm:$0xff] }
 0x5cb   :  { %v5783_v46 = vld [vmem:[#allocation2 + $0x170] sm:$0xff]  ;;  %v5928_v8 = vpack.c.bf16 %v5880_v21, %v5879_v20  ;;  %14059 = vmatprep.subr.msk.bf16.mxu1 %vm535_vm0, %v17586_v49  ;;  %v5786_v56 = vld [vmem:[#allocation2 + $0x1c8] sm:$0xff]  ;;  %v5887_v14 = vld [vmem:[#allocation2 + $0x1f9] sm:$0xff] }
 0x5cc   :  { %v17576_v41 = vpack.c.bf16 %v5783_v46, %v5782_v7  ;;  %v5883_v19 = vld [vmem:[#allocation2 + $0x1c9] sm:$0xff]  ;;  %v5884_v0 = vld [vmem:[#allocation2 + $0x1d1] sm:$0xff]  ;;  %v5885_v1 = vld [vmem:[#allocation2 + $0x1e1] sm:$0xff] }
 0x5cd   :  { %v5787_v24 = vld [vmem:[#allocation2 + $0x1d0] sm:$0xff]  ;;  %v5789_v63 = vld [vmem:[#allocation2 + $0x1e8] sm:$0xff]  ;;  %v5930_v26 = vpack.c.bf16 %v5884_v0, %v5883_v19  ;;  %v5791_v27 = vld [vmem:[#allocation2 + $0x200] sm:$0xff] }
 0x5ce   :  { %v5886_v45 = vld [vmem:[#allocation2 + $0x1e9] sm:$0xff]  ;;  %v17590_v29 = vpack.c.bf16 %v5787_v24, %v5786_v56  ;;  %v17592_v61 = vpack.c.bf16 %v5789_v63, %v5788_v4  ;;  %v5889_v5 = vld [vmem:[#allocation2 + $0x211] sm:$0xff]  ;;  %v5890_v9 = vld [vmem:[#allocation2 + $0x219] sm:$0xff] }
 0x5cf   :  { %13471 = vmatmul.mubr.msk.bf16.gmra.mxu1 %vm27_vm1, %v5922_v15  ;;  %v5931_v31 = vpack.c.bf16 %v5886_v45, %v5885_v1  ;;  %v5888_v15 = vld [vmem:[#allocation2 + $0x201] sm:$0xff]  ;;  %v5792_v51 = vld [vmem:[#allocation2 + $0x210] sm:$0xff]  ;;  %v5793_v30 = vld [vmem:[#allocation2 + $0x218] sm:$0xff]  ;;  %v5933_v18 = vpack.c.bf16 %v5890_v9, %v5889_v5 }
 0x5d0   :  { %13537 = vmatmul.mubr.msk.bf16.gmra.mxu0 %vm27_vm1, %v17541_v48  ;;  %13474 = vmatprep.mubr.msk.bf16.mxu1 %vm27_vm1, %v5923_v35  ;;  %v5790_v35 = vld [vmem:[#allocation2 + $0x1f8] sm:$0xff]  ;;  %v5932_v23 = vpack.c.bf16 %v5888_v15, %v5887_v14  ;;  %v17602_v52 = vpack.c.bf16 %v5793_v30, %v5792_v51  ;;  %v5891_v32 = vld [vmem:[#allocation2 + $0x229] sm:$0xff]  ;;  %v5893_v39 = vld [vmem:[#allocation2 + $0x241] sm:$0xff] }
 0x5d1   :  { %13540 = vmatprep.mubr.msk.bf16.mxu0 %vm27_vm1, %v17543_v37  ;;  %v17600_v10 = vpack.c.bf16 %v5791_v27, %v5790_v35  ;;  %v5795_v6 = vld [vmem:[#allocation2 + $0x230] sm:$0xff]  ;;  %v5796_v3 = vld [vmem:[#allocation2 + $0x240] sm:$0xff]  ;;  %v5797_v16 = vld [vmem:[#allocation2 + $0x248] sm:$0xff] }
 0x5d2   :  { %v5894_v54 = vld [vmem:[#allocation2 + $0x249] sm:$0xff]  ;;  %v5896_v36 = vld [vmem:[#allocation2 + $0x261] sm:$0xff]  ;;  %v5798_v40 = vld [vmem:[#allocation2 + $0x258] sm:$0xff] }
 0x5d3   :  { %v5935_v53 = vpack.c.bf16 %v5894_v54, %v5893_v39  ;;  %v5799_v20 = vld [vmem:[#allocation2 + $0x260] sm:$0xff]  ;;  %v5897_v12 = vld [vmem:[#allocation2 + $0x271] sm:$0xff]  ;;  %v5899_v19 = vld [vmem:[#allocation2 + $0x289] sm:$0xff] }
 0x5d4   :  { %v5898_v22 = vld [vmem:[#allocation2 + $0x279] sm:$0xff]  ;;  %v5800_v21 = vld [vmem:[#allocation2 + $0x270] sm:$0xff]  ;;  %v5802_v56 = vld [vmem:[#allocation2 + $0x288] sm:$0xff] }
 0x5d5   :  { %v5801_v7 = vld [vmem:[#allocation2 + $0x278] sm:$0xff]  ;;  %v5803_v24 = vld [vmem:[#allocation2 + $0x290] sm:$0xff]  ;;  %v5901_v1 = vld [vmem:[#allocation2 + $0x2a1] sm:$0xff] }
 0x5d6   :  { %v5900_v0 = vld [vmem:[#allocation2 + $0x291] sm:$0xff]  ;;  %v5902_v45 = vld [vmem:[#allocation2 + $0x2a9] sm:$0xff]  ;;  %v5804_v4 = vld [vmem:[#allocation2 + $0x2a0] sm:$0xff] }
 0x5d7   :  { %13475 = vmatmul.mubr.msk.bf16.gmra.mxu1 %vm27_vm1, %v5924_v59  ;;  %v5892_v59 = vld [vmem:[#allocation2 + $0x231] sm:$0xff]  ;;  %v5805_v63 = vld [vmem:[#allocation2 + $0x2a8] sm:$0xff]  ;;  %v5939_v14 = vpack.c.bf16 %v5902_v45, %v5901_v1  ;;  %v5903_v35 = vld [vmem:[#allocation2 + $0x2b9] sm:$0xff] }
 0x5d8   :  { %13541 = vmatmul.mubr.msk.bf16.gmra.mxu0 %vm27_vm1, %v17556_v43  ;;  %13478 = vmatprep.mubr.msk.bf16.mxu1 %vm27_vm1, %v5925_v50  ;;  %v5794_v50 = vld [vmem:[#allocation2 + $0x228] sm:$0xff]  ;;  %v5934_v55 = vpack.c.bf16 %v5892_v59, %v5891_v32  ;;  %v17632_v15 = vpack.c.bf16 %v5805_v63, %v5804_v4  ;;  %v5806_v5 = vld [vmem:[#allocation2 + $0x2b8] sm:$0xff]  ;;  %v5807_v9 = vld [vmem:[#allocation2 + $0x2c0] sm:$0xff] }
 0x5d9   :  { %13544 = vmatprep.mubr.msk.bf16.mxu0 %vm27_vm1, %v17558_v60  ;;  %v17610_v44 = vpack.c.bf16 %v5795_v6, %v5794_v50  ;;  %v5904_v27 = vld [vmem:[#allocation2 + $0x2c1] sm:$0xff]  ;;  %v5905_v51 = vld [vmem:[#allocation2 + $0x2d1] sm:$0xff]  ;;  %v5906_v30 = vld [vmem:[#allocation2 + $0x2d9] sm:$0xff]  ;;  %v17640_v59 = vpack.c.bf16 %v5807_v9, %v5806_v5  ;;  %v8018_v5 = vsel %vm535_vm0, %v17586_v49, 0 }
 0x5da   :  { %v5940_v32 = vpack.c.bf16 %v5904_v27, %v5903_v35  ;;  %v5941_v50 = vpack.c.bf16 %v5906_v30, %v5905_v51  ;;  %v5907_v39 = vld [vmem:[#allocation2 + $0x2e9] sm:$0xff]  ;;  %v5908_v54 = vld [vmem:[#allocation2 + $0x2f1] sm:$0xff]  ;;  %v6725_v45 = vld [vmem:[#allocation2 + $0x1a] sm:$0xff] }
 0x5db   :  { %v6726_v4 = vld [vmem:[#allocation2 + $0x22] sm:$0xff]  ;;  %v6727_v63 = vld [vmem:[#allocation2 + $0x32] sm:$0xff]  ;;  %v6729_v9 = vld [vmem:[#allocation2 + $0x4a] sm:$0xff] }
 0x5dc   :  { %v17671_v35 = vpack.c.bf16 %v6726_v4, %v6725_v45  ;;  %v6730_v51 = vld [vmem:[#allocation2 + $0x52] sm:$0xff]  ;;  %v6731_v30 = vld [vmem:[#allocation2 + $0x62] sm:$0xff]  ;;  %v6732_v49 = vld [vmem:[#allocation2 + $0x6a] sm:$0xff] }
 0x5dd   :  { %v6756_v45 = vld [vmem:[#allocation2 + $0x1ba] sm:$0xff]  ;;  %v6754_v4 = vld [vmem:[#allocation2 + $0x172] sm:$0xff] }
 0x5df   :  { %13479 = vmatmul.mubr.msk.bf16.gmra.mxu1 %vm27_vm1, %v5926_v28  ;;  %v17612_v28 = vpack.c.bf16 %v5797_v16, %v5796_v3  ;;  %v5810_v3 = vld [vmem:[#allocation2 + $0x2e8] sm:$0xff]  ;;  %v5811_v16 = vld [vmem:[#allocation2 + $0x2f0] sm:$0xff] }
 0x5e0   :  { %13545 = vmatmul.mubr.msk.bf16.gmra.mxu0 %vm27_vm1, %v17566_v57  ;;  %13482 = vmatprep.mubr.msk.bf16.mxu1 %vm27_vm1, %v5927_v47  ;;  %v5895_v47 = vld [vmem:[#allocation2 + $0x259] sm:$0xff] }
 0x5e1   :  { %13548 = vmatprep.mubr.msk.bf16.mxu0 %vm27_vm1, %v17568_v33  ;;  %v5936_v46 = vpack.c.bf16 %v5896_v36, %v5895_v47  ;;  %v5812_v47 = vld [vmem:[#allocation2 + $0x300] sm:$0xff]  ;;  %v5813_v36 = vld [vmem:[#allocation2 + $0x308] sm:$0xff] }
 0x5e7   :  { %13483 = vmatmul.mubr.msk.bf16.gmra.mxu1 %vm27_vm1, %v5928_v8  ;;  %v17622_v8 = vpack.c.bf16 %v5801_v7, %v5800_v21  ;;  %v5911_v21 = vld [vmem:[#allocation2 + $0x319] sm:$0xff]  ;;  %v6723_v7 = vld [vmem:[#allocation2 + $0x2] sm:$0xff] }
 0x5e8   :  { %13549 = vmatmul.mubr.msk.bf16.gmra.mxu0 %vm27_vm1, %v17576_v41  ;;  %13486 = vmatprep.mubr.msk.bf16.mxu1 %vm27_vm1, %v5929_v38  ;;  %v17620_v38 = vpack.c.bf16 %v5799_v20, %v5798_v40  ;;  %v5942_v40 = vpack.c.bf16 %v5908_v54, %v5907_v39  ;;  %v17650_v20 = vpack.c.bf16 %v5811_v16, %v5810_v3  ;;  %v6739_v3 = vld [vmem:[#allocation2 + $0xc2] sm:$0xff]  ;;  %v6740_v16 = vld [vmem:[#allocation2 + $0xca] sm:$0xff] }
 0x5e9   :  { %13552 = vmatprep.mubr.msk.bf16.mxu0 %vm27_vm1, %v5832_v25  ;;  %v5937_v25 = vpack.c.bf16 %v5898_v22, %v5897_v12  ;;  %v17652_v22 = vpack.c.bf16 %v5813_v36, %v5812_v47  ;;  %v6743_v47 = vld [vmem:[#allocation2 + $0xf2] sm:$0xff]  ;;  %v6744_v36 = vld [vmem:[#allocation2 + $0xfa] sm:$0xff] }
 0x5ef   :  { %13487 = vmatmul.mubr.msk.bf16.gmra.mxu1 %vm27_vm1, %v5930_v26  ;;  %v5938_v26 = vpack.c.bf16 %v5900_v0, %v5899_v19  ;;  %v5814_v19 = vld [vmem:[#allocation2 + $0x318] sm:$0xff]  ;;  %v5815_v0 = vld [vmem:[#allocation2 + $0x320] sm:$0xff] }
 0x5f0   :  { %13553 = vmatmul.mubr.msk.bf16.gmra.mxu0 %vm27_vm1, %v17590_v29  ;;  %13490 = vmatprep.mubr.msk.bf16.mxu1 %vm27_vm1, %v5931_v31  ;;  %v17630_v31 = vpack.c.bf16 %v5803_v24, %v5802_v56  ;;  %v17660_v1 = vpack.c.bf16 %v5815_v0, %v5814_v19  ;;  %v6751_v19 = vld [vmem:[#allocation2 + $0x152] sm:$0xff]  ;;  %v6752_v0 = vld [vmem:[#allocation2 + $0x15a] sm:$0xff] }
 0x5f1   :  { %13556 = vmatprep.mubr.msk.bf16.mxu0 %vm27_vm1, %v17592_v61 }
 0x5f7   :  { %13491 = vmatmul.mubr.msk.bf16.gmra.mxu1 %vm27_vm1, %v5932_v23  ;;  %v5808_v23 = vld [vmem:[#allocation2 + $0x2d0] sm:$0xff] }
 0x5f8   :  { %13557 = vmatmul.mubr.msk.bf16.gmra.mxu0 %vm27_vm1, %v17600_v10  ;;  %13494 = vmatprep.mubr.msk.bf16.mxu1 %vm27_vm1, %v5933_v18  ;;  %v5809_v18 = vld [vmem:[#allocation2 + $0x2d8] sm:$0xff] }
 0x5f9   :  { %13560 = vmatprep.mubr.msk.bf16.mxu0 %vm27_vm1, %v17602_v52  ;;  %v17642_v6 = vpack.c.bf16 %v5809_v18, %v5808_v23  ;;  %v17687_v23 = vpack.c.bf16 %v6730_v51, %v6729_v9  ;;  %v17689_v18 = vpack.c.bf16 %v6732_v49, %v6731_v30  ;;  %v6759_v9 = vld [vmem:[#allocation2 + $0x1e2] sm:$0xff]  ;;  %v6760_v51 = vld [vmem:[#allocation2 + $0x1ea] sm:$0xff] }
 0x5fa   :  { %v17769_v49 = vpack.c.bf16 %v6760_v51, %v6759_v9 }
 0x5ff   :  { %13495 = vmatmul.mubr.msk.bf16.gmra.mxu1 %vm27_vm1, %v5934_v55  ;;  %v5909_v55 = vld [vmem:[#allocation2 + $0x301] sm:$0xff] }
 0x600   :  { %13561 = vmatmul.mubr.msk.bf16.gmra.mxu0 %vm27_vm1, %v17610_v44  ;;  %13498 = vmatprep.mubr.msk.bf16.mxu1 %vm27_vm1, %v5935_v53  ;;  %v5910_v53 = vld [vmem:[#allocation2 + $0x309] sm:$0xff] }
 0x601   :  { %13564 = vmatprep.mubr.msk.bf16.mxu0 %vm27_vm1, %v17612_v28  ;;  %v5943_v12 = vpack.c.bf16 %v5910_v53, %v5909_v55  ;;  %v17713_v53 = vpack.c.bf16 %v6740_v16, %v6739_v3  ;;  %v6761_v3 = vld [vmem:[#allocation2 + $0x1fa] sm:$0xff]  ;;  %v6762_v16 = vld [vmem:[#allocation2 + $0x202] sm:$0xff] }
 0x607   :  { %13499 = vmatmul.mubr.msk.bf16.gmra.mxu1 %vm27_vm1, %v5936_v46  ;;  %v6724_v46 = vld [vmem:[#allocation2 + $0xa] sm:$0xff] }
 0x608   :  { %13565 = vmatmul.mubr.msk.bf16.gmra.mxu0 %vm27_vm1, %v17620_v38  ;;  %13502 = vmatprep.mubr.msk.bf16.mxu1 %vm27_vm1, %v5937_v25  ;;  %v5912_v25 = vld [vmem:[#allocation2 + $0x321] sm:$0xff]  ;;  %v6787_v56 = vpack.c.bf16 %v6724_v46, %v6723_v7  ;;  %v6748_v7 = vld [vmem:[#allocation2 + $0x12a] sm:$0xff] }
 0x609   :  { %13568 = vmatprep.mubr.msk.bf16.mxu0 %vm27_vm1, %v17622_v8  ;;  %v5944_v24 = vpack.c.bf16 %v5912_v25, %v5911_v21  ;;  %v6747_v21 = vld [vmem:[#allocation2 + $0x122] sm:$0xff] }
 0x60a   :  { %v17737_v25 = vpack.c.bf16 %v6748_v7, %v6747_v21  ;;  %v17792_v21 = vpack.c.bf16 %v6762_v16, %v6761_v3 }
 0x60f   :  { %13503 = vmatmul.mubr.msk.bf16.gmra.mxu1 %vm27_vm1, %v5938_v26  ;;  %v6728_v26 = vld [vmem:[#allocation2 + $0x3a] sm:$0xff] }
 0x610   :  { %13569 = vmatmul.mubr.msk.bf16.gmra.mxu0 %vm27_vm1, %v17630_v31  ;;  %13506 = vmatprep.mubr.msk.bf16.mxu1 %vm27_vm1, %v5939_v14  ;;  %v11851_v14 = vld [vmem:[%s20947_s2 + $0xa] sm:$0x3]  ;;  %v17674_v27 = vpack.c.bf16 %v6728_v26, %v6727_v63  ;;  %v7303_v63 = vld [vmem:[#allocation2 + $0x180] sm:$0xff] }
 0x611   :  { %13572 = vmatprep.mubr.msk.bf16.mxu0 %vm27_vm1, %v17632_v15  ;;  %14060 = vmatprep.subr.msk.bf16.mxu0 %vm535_vm0, %v11851_v14  ;;  %v7304_v26 = vld [vmem:[#allocation2 + $0x188] sm:$0xff] }
 0x617   :  { %13507 = vmatmul.mubr.msk.bf16.gmra.mxu1 %vm27_vm1, %v5940_v32  ;;  %v6735_v32 = vld [vmem:[#allocation2 + $0x92] sm:$0xff] }
 0x618   :  { %13573 = vmatmul.mubr.msk.bf16.gmra.mxu0 %vm27_vm1, %v17640_v59  ;;  %13510 = vmatprep.mubr.msk.bf16.mxu1 %vm27_vm1, %v5941_v50  ;;  %v6736_v50 = vld [vmem:[#allocation2 + $0x9a] sm:$0xff] }
 0x619   :  { %13576 = vmatprep.mubr.msk.bf16.mxu0 %vm27_vm1, %v17642_v6  ;;  %v17701_v54 = vpack.c.bf16 %v6736_v50, %v6735_v32 }
 0x61f   :  { %13511 = vmatmul.mubr.msk.bf16.gmra.mxu1 %vm27_vm1, %v5942_v40 }
 0x620   :  { %13577 = vmatmul.mubr.msk.bf16.gmra.mxu0 %vm27_vm1, %v17650_v20  ;;  %13514 = vmatprep.mubr.msk.bf16.mxu1 %vm27_vm1, %v5943_v12  ;;  %v17725_v12 = vpack.c.bf16 %v6744_v36, %v6743_v47  ;;  %v6764_v47 = vld [vmem:[#allocation2 + $0x21a] sm:$0xff] }
 0x621   :  { %13580 = vmatprep.mubr.msk.bf16.mxu0 %vm27_vm1, %v17652_v22 }
 0x627   :  { %13515 = vmatmul.mubr.msk.bf16.gmra.mxu1 %vm27_vm1, %v5944_v24  ;;  %v17749_v24 = vpack.c.bf16 %v6752_v0, %v6751_v19 }
 0x628   :  { %13581 = vmatmul.mubr.msk.bf16.gmra.mxu0 %vm27_vm1, %v17660_v1  ;;  %13586 = vmatprep.mubr.msk.bf16.mxu1 %vm27_vm1, %v6787_v56 }
 0x629   :  { %13652 = vmatprep.mubr.msk.bf16.mxu0 %vm27_vm1, %v17495_v34  ;;  %v8568_v34 = vsel %vm535_vm0, %v11851_v14, 0 }
 0x62f   :  { %13587 = vmatmul.mubr.msk.bf16.vlgmr.msra.gmra.mxu1 %vm27_vm1, %v17671_v35 }
 0x630   :  { %13653 = vmatmul.mubr.msk.bf16.vlgmr.msra.gmra.mxu0 %vm27_vm1, %v17497_v17  ;;  %13590 = vmatprep.mubr.msk.bf16.mxu1 %vm27_vm1, %v17674_v27  ;;  %v6733_v17 = vld [vmem:[#allocation2 + $0x7a] sm:$0xff] }
 0x631   :  { %13656 = vmatprep.mubr.msk.bf16.mxu0 %vm27_vm1, %v17511_v42  ;;  %13717 = vmatpush3.bf16.msra.mxu1 %v8018_v5  ;;  %v6734_v42 = vld [vmem:[#allocation2 + $0x82] sm:$0xff] }
 0x632   :  { %13783 = vmatpush3.bf16.msra.mxu0 %v8568_v34  ;;  %v17699_v39 = vpack.c.bf16 %v6734_v42, %v6733_v17  ;;  %v7352_v34 = vpack.c.bf16 %v7304_v26, %v7303_v63  ;;  %v17774_v17 = vld [vmem:[%s20947_s2 + $0xc] sm:$0x3] }
 0x633   :  { %14061 = vmatprep.subr.msk.bf16.mxu1 %vm535_vm0, %v17774_v17 }
 0x637   :  { %13591 = vmatmul.mubr.msk.bf16.gmra.mxu1 %vm27_vm1, %v17687_v23 }
 0x638   :  { %13657 = vmatmul.mubr.msk.bf16.gmra.mxu0 %vm27_vm1, %v17513_v11  ;;  %13594 = vmatprep.mubr.msk.bf16.mxu1 %vm27_vm1, %v17689_v18  ;;  %v6737_v11 = vld [vmem:[#allocation2 + $0xaa] sm:$0xff] }
 0x639   :  { %13660 = vmatprep.mubr.msk.bf16.mxu0 %vm27_vm1, %v17521_v2  ;;  %v6738_v2 = vld [vmem:[#allocation2 + $0xb2] sm:$0xff] }
 0x63a   :  { %v17711_v55 = vpack.c.bf16 %v6738_v2, %v6737_v11 }
 0x63f   :  { %13595 = vmatmul.mubr.msk.bf16.gmra.mxu1 %vm27_vm1, %v17699_v39 }
 0x640   :  { %13661 = vmatmul.mubr.msk.bf16.gmra.mxu0 %vm27_vm1, %v17523_v13  ;;  %13598 = vmatprep.mubr.msk.bf16.mxu1 %vm27_vm1, %v17701_v54  ;;  %v6741_v13 = vld [vmem:[#allocation2 + $0xda] sm:$0xff] }
 0x641   :  { %13664 = vmatprep.mubr.msk.bf16.mxu0 %vm27_vm1, %v17531_v62  ;;  %v6742_v62 = vld [vmem:[#allocation2 + $0xe2] sm:$0xff] }
 0x642   :  { %v17723_v40 = vpack.c.bf16 %v6742_v62, %v6741_v13 }
 0x647   :  { %13599 = vmatmul.mubr.msk.bf16.gmra.mxu1 %vm27_vm1, %v17711_v55 }
 0x648   :  { %13665 = vmatmul.mubr.msk.bf16.gmra.mxu0 %vm27_vm1, %v17533_v58  ;;  %13602 = vmatprep.mubr.msk.bf16.mxu1 %vm27_vm1, %v17713_v53  ;;  %v6745_v58 = vld [vmem:[#allocation2 + $0x10a] sm:$0xff] }
 0x649   :  { %13668 = vmatprep.mubr.msk.bf16.mxu0 %vm27_vm1, %v17541_v48  ;;  %v6746_v48 = vld [vmem:[#allocation2 + $0x112] sm:$0xff] }
 0x64a   :  { %v17735_v46 = vpack.c.bf16 %v6746_v48, %v6745_v58 }
 0x64f   :  { %13603 = vmatmul.mubr.msk.bf16.gmra.mxu1 %vm27_vm1, %v17723_v40 }
 0x650   :  { %13669 = vmatmul.mubr.msk.bf16.gmra.mxu0 %vm27_vm1, %v17543_v37  ;;  %13606 = vmatprep.mubr.msk.bf16.mxu1 %vm27_vm1, %v17725_v12  ;;  %v6749_v37 = vld [vmem:[#allocation2 + $0x13a] sm:$0xff] }
 0x651   :  { %13672 = vmatprep.mubr.msk.bf16.mxu0 %vm27_vm1, %v17556_v43  ;;  %v6750_v43 = vld [vmem:[#allocation2 + $0x142] sm:$0xff] }
 0x652   :  { %v17747_v56 = vpack.c.bf16 %v6750_v43, %v6749_v37 }
 0x657   :  { %13607 = vmatmul.mubr.msk.bf16.gmra.mxu1 %vm27_vm1, %v17735_v46 }
 0x658   :  { %13673 = vmatmul.mubr.msk.bf16.gmra.mxu0 %vm27_vm1, %v17558_v60  ;;  %13610 = vmatprep.mubr.msk.bf16.mxu1 %vm27_vm1, %v17737_v25  ;;  %v6753_v60 = vld [vmem:[#allocation2 + $0x16a] sm:$0xff] }
 0x659   :  { %13676 = vmatprep.mubr.msk.bf16.mxu0 %vm27_vm1, %v17566_v57  ;;  %v6755_v57 = vld [vmem:[#allocation2 + $0x1b2] sm:$0xff]  ;;  %v17759_v5 = vpack.c.bf16 %v6754_v4, %v6753_v60 }
 0x65a   :  { %v6803_v14 = vpack.c.bf16 %v6756_v45, %v6755_v57  ;;  %v6765_v45 = vld [vmem:[#allocation2 + $0x22a] sm:$0xff]  ;;  %v6766_v4 = vld [vmem:[#allocation2 + $0x232] sm:$0xff] }
 0x65b   :  { %v17812_v9 = vpack.c.bf16 %v6766_v4, %v6765_v45 }
 0x65f   :  { %13611 = vmatmul.mubr.msk.bf16.gmra.mxu1 %vm27_vm1, %v17747_v56 }
 0x660   :  { %13677 = vmatmul.mubr.msk.bf16.gmra.mxu0 %vm27_vm1, %v17568_v33  ;;  %13614 = vmatprep.mubr.msk.bf16.mxu1 %vm27_vm1, %v17749_v24  ;;  %v6757_v33 = vld [vmem:[#allocation2 + $0x1ca] sm:$0xff] }
 0x661   :  { %13680 = vmatprep.mubr.msk.bf16.mxu0 %vm27_vm1, %v17576_v41  ;;  %v6758_v41 = vld [vmem:[#allocation2 + $0x1d2] sm:$0xff] }
 0x662   :  { %v17767_v30 = vpack.c.bf16 %v6758_v41, %v6757_v33 }
 0x667   :  { %13615 = vmatmul.mubr.msk.bf16.gmra.mxu1 %vm27_vm1, %v17759_v5 }
 0x668   :  { %13681 = vmatmul.mubr.msk.bf16.gmra.mxu0 %vm27_vm1, %v7352_v34  ;;  %13618 = vmatprep.mubr.msk.bf16.mxu1 %vm27_vm1, %v6803_v14  ;;  %v6767_v14 = vld [vmem:[#allocation2 + $0x242] sm:$0xff]  ;;  %v6768_v34 = vld [vmem:[#allocation2 + $0x24a] sm:$0xff] }
 0x669   :  { %13684 = vmatprep.mubr.msk.bf16.mxu0 %vm27_vm1, %v17590_v29 }
 0x66e   :  { %v13456_v42 = vpop.f32.mrf.mxu1 }
 0x66f   :  { %v13522_v32 = vpop.f32.mrf.mxu0  ;;  %13619 = vmatmul.mubr.msk.bf16.gmra.mxu1 %vm27_vm1, %v17767_v30 }
 0x670   :  { %13685 = vmatmul.mubr.msk.bf16.gmra.mxu0 %vm27_vm1, %v17592_v61  ;;  %v17780_v29 = vadd.f32 %v13522_v32, %v13456_v42  ;;  %13622 = vmatprep.mubr.msk.bf16.mxu1 %vm27_vm1, %v17769_v49  ;;  %v6080_v50 = vpop.f32.mrf.mxu1  ;;  %v6763_v61 = vld [vmem:[#allocation2 + $0x212] sm:$0xff]  ;;  %v17816_v42 = vpack.c.bf16 %v6768_v34, %v6767_v14 }
 0x671   :  { %13688 = vmatprep.mubr.msk.bf16.mxu0 %vm27_vm1, %v17600_v10  ;;  %v6468_v11 = vpop.f32.mrf.mxu0  ;;  %v17796_v7 = vpack.c.bf16 %v6764_v47, %v6763_v61 }
 0x672   :  { %v17788_v2 = vadd.f32 %v6468_v11, %v6080_v50  ;;  %v13457_v13 = vpop.f32.mrf.mxu1 }
 0x673   :  { %v13523_v62 = vpop.f32.mrf.mxu0 }
 0x674   :  { %v17790_v36 = vadd.f32 %v13523_v62, %v13457_v13  ;;  %v6083_v58 = vpop.f32.mrf.mxu1  ;;  %v6769_v13 = vld [vmem:[#allocation2 + $0x25a] sm:$0xff]  ;;  %v6770_v62 = vld [vmem:[#allocation2 + $0x262] sm:$0xff] }
 0x675   :  { %v6471_v48 = vpop.f32.mrf.mxu0 }
 0x676   :  { %v17794_v10 = vadd.f32 %v6471_v48, %v6083_v58  ;;  %v6771_v58 = vld [vmem:[#allocation2 + $0x272] sm:$0xff]  ;;  %v6772_v48 = vld [vmem:[#allocation2 + $0x27a] sm:$0xff] }
 0x677   :  { %v13460_v37 = vpop.f32.mrf.mxu1  ;;  %13623 = vmatmul.mubr.msk.bf16.gmra.mxu1 %vm27_vm1, %v17792_v21  ;;  %v17836_v45 = vpack.c.bf16 %v6772_v48, %v6771_v58 }
 0x678   :  { %v13526_v43 = vpop.f32.mrf.mxu0  ;;  %13689 = vmatmul.mubr.msk.bf16.gmra.mxu0 %vm27_vm1, %v17602_v52  ;;  %13626 = vmatprep.mubr.msk.bf16.mxu1 %vm27_vm1, %v17796_v7 }
 0x679   :  { %v17802_v19 = vadd.f32 %v13526_v43, %v13460_v37  ;;  %13692 = vmatprep.mubr.msk.bf16.mxu0 %vm27_vm1, %v17610_v44  ;;  %v6096_v0 = vpop.f32.mrf.mxu1 }
 0x67a   :  { %v6484_v60 = vpop.f32.mrf.mxu0 }
 0x67b   :  { %v17808_v57 = vadd.f32 %v6484_v60, %v6096_v0  ;;  %v13461_v63 = vpop.f32.mrf.mxu1  ;;  %v17832_v0 = vpack.c.bf16 %v6770_v62, %v6769_v13 }
 0x67c   :  { %v13527_v26 = vpop.f32.mrf.mxu0 }
 0x67d   :  { %v17810_v33 = vadd.f32 %v13527_v26, %v13461_v63  ;;  %v6099_v52 = vpop.f32.mrf.mxu1 }
 0x67e   :  { %v6487_v41 = vpop.f32.mrf.mxu0 }
 0x67f   :  { %v17814_v51 = vadd.f32 %v6487_v41, %v6099_v52  ;;  %v13464_v44 = vpop.f32.mrf.mxu1  ;;  %13627 = vmatmul.mubr.msk.bf16.gmra.mxu1 %vm27_vm1, %v17812_v9  ;;  %v6773_v52 = vld [vmem:[#allocation2 + $0x28a] sm:$0xff]  ;;  %v6774_v41 = vld [vmem:[#allocation2 + $0x292] sm:$0xff] }
 0x680   :  { %v13530_v32 = vpop.f32.mrf.mxu0  ;;  %13693 = vmatmul.mubr.msk.bf16.gmra.mxu0 %vm27_vm1, %v17612_v28  ;;  %13630 = vmatprep.mubr.msk.bf16.mxu1 %vm27_vm1, %v17816_v42 }
 0x681   :  { %v17822_v50 = vadd.f32 %v13530_v32, %v13464_v44  ;;  %13696 = vmatprep.mubr.msk.bf16.mxu0 %vm27_vm1, %v17620_v38  ;;  %v6112_v11 = vpop.f32.mrf.mxu1 }
 0x682   :  { %v6500_v3 = vpop.f32.mrf.mxu0 }
 0x683   :  { %v17828_v16 = vadd.f32 %v6500_v3, %v6112_v11  ;;  %v13465_v61 = vpop.f32.mrf.mxu1  ;;  %v6775_v11 = vld [vmem:[#allocation2 + $0x2a2] sm:$0xff]  ;;  %v6776_v3 = vld [vmem:[#allocation2 + $0x2aa] sm:$0xff] }
 0x684   :  { %v13531_v47 = vpop.f32.mrf.mxu0  ;;  %v17856_v58 = vpack.c.bf16 %v6776_v3, %v6775_v11 }
 0x685   :  { %v17830_v37 = vadd.f32 %v13531_v47, %v13465_v61  ;;  %v6115_v28 = vpop.f32.mrf.mxu1  ;;  %v17852_v61 = vpack.c.bf16 %v6774_v41, %v6773_v52 }
 0x686   :  { %v6503_v43 = vpop.f32.mrf.mxu0 }
 0x687   :  { %v17834_v60 = vadd.f32 %v6503_v43, %v6115_v28  ;;  %v13468_v38 = vpop.f32.mrf.mxu1  ;;  %13631 = vmatmul.mubr.msk.bf16.gmra.mxu1 %vm27_vm1, %v17832_v0 }
 0x688   :  { %v13534_v4 = vpop.f32.mrf.mxu0  ;;  %13697 = vmatmul.mubr.msk.bf16.gmra.mxu0 %vm27_vm1, %v17622_v8  ;;  %13634 = vmatprep.mubr.msk.bf16.mxu1 %vm27_vm1, %v17836_v45 }
 0x689   :  { %v17842_v63 = vadd.f32 %v13534_v4, %v13468_v38  ;;  %13700 = vmatprep.mubr.msk.bf16.mxu0 %vm27_vm1, %v17630_v31  ;;  %v6128_v26 = vpop.f32.mrf.mxu1 }
 0x68a   :  { %v6516_v14 = vpop.f32.mrf.mxu0 }
 0x68b   :  { %v17848_v34 = vadd.f32 %v6516_v14, %v6128_v26  ;;  %v13469_v44 = vpop.f32.mrf.mxu1  ;;  %v6777_v26 = vld [vmem:[#allocation2 + $0x2ba] sm:$0xff]  ;;  %v6778_v14 = vld [vmem:[#allocation2 + $0x2c2] sm:$0xff] }
 0x68c   :  { %v13535_v32 = vpop.f32.mrf.mxu0 }
 0x68d   :  { %v17850_v13 = vadd.f32 %v13535_v32, %v13469_v44  ;;  %v6131_v8 = vpop.f32.mrf.mxu1  ;;  %v6779_v44 = vld [vmem:[#allocation2 + $0x2d2] sm:$0xff]  ;;  %v6780_v32 = vld [vmem:[#allocation2 + $0x2da] sm:$0xff] }
 0x68e   :  { %v6519_v62 = vpop.f32.mrf.mxu0 }
 0x68f   :  { %v17854_v47 = vadd.f32 %v6519_v62, %v6131_v8  ;;  %v13472_v31 = vpop.f32.mrf.mxu1  ;;  %13635 = vmatmul.mubr.msk.bf16.gmra.mxu1 %vm27_vm1, %v17852_v61  ;;  %v17872_v8 = vpack.c.bf16 %v6778_v14, %v6777_v26 }
 0x690   :  { %v13538_v48 = vpop.f32.mrf.mxu0  ;;  %13701 = vmatmul.mubr.msk.bf16.gmra.mxu0 %vm27_vm1, %v17632_v15  ;;  %13638 = vmatprep.mubr.msk.bf16.mxu1 %vm27_vm1, %v17856_v58 }
 0x691   :  { %v17862_v28 = vadd.f32 %v13538_v48, %v13472_v31  ;;  %13704 = vmatprep.mubr.msk.bf16.mxu0 %vm27_vm1, %v17640_v59  ;;  %v6144_v43 = vpop.f32.mrf.mxu1  ;;  %v17876_v31 = vpack.c.bf16 %v6780_v32, %v6779_v44 }
 0x692   :  { %v6532_v38 = vpop.f32.mrf.mxu0 }
 0x693   :  { %v17868_v4 = vadd.f32 %v6532_v38, %v6144_v43  ;;  %v13473_v52 = vpop.f32.mrf.mxu1  ;;  %21590 = vst [vmem:[#allocation47_spill] sm:$0xff] %v17876_v31 }
 0x694   :  { %v13539_v41 = vpop.f32.mrf.mxu0 }
 0x695   :  { %v17870_v11 = vadd.f32 %v13539_v41, %v13473_v52  ;;  %v6147_v15 = vpop.f32.mrf.mxu1  ;;  %v6781_v52 = vld [vmem:[#allocation2 + $0x2ea] sm:$0xff]  ;;  %v6782_v41 = vld [vmem:[#allocation2 + $0x2f2] sm:$0xff] }
 0x696   :  { %v6535_v3 = vpop.f32.mrf.mxu0 }
 0x697   :  { %21588 = vst [vmem:[#allocation74_spill] sm:$0xff] %v17870_v11  ;;  %v17874_v62 = vadd.f32 %v6535_v3, %v6147_v15  ;;  %v13476_v59 = vpop.f32.mrf.mxu1  ;;  %13639 = vmatmul.mubr.msk.bf16.gmra.mxu1 %vm27_vm1, %v17872_v8  ;;  %v6783_v15 = vld [vmem:[#allocation2 + $0x302] sm:$0xff]  ;;  %v6784_v3 = vld [vmem:[#allocation2 + $0x30a] sm:$0xff] }
 0x698   :  { %v13542_v48 = vpop.f32.mrf.mxu0  ;;  %13705 = vmatmul.mubr.msk.bf16.gmra.mxu0 %vm27_vm1, %v17642_v6  ;;  %13642 = vmatprep.mubr.msk.bf16.mxu1 %vm27_vm1, %v17876_v31  ;;  %v17896_v31 = vpack.c.bf16 %v6784_v3, %v6783_v15  ;;  %v7335_v15 = vld [vmem:[#allocation2 + $0x330] sm:$0xff]  ;;  %v7336_v3 = vld [vmem:[#allocation2 + $0x338] sm:$0xff] }
 0x699   :  { %21589 = vst [vmem:[#allocation5_spill] sm:$0xff] %v17874_v62  ;;  %v17882_v43 = vadd.f32 %v13542_v48, %v13476_v59  ;;  %13708 = vmatprep.mubr.msk.bf16.mxu0 %vm27_vm1, %v17650_v20  ;;  %v6160_v38 = vpop.f32.mrf.mxu1  ;;  %v17892_v48 = vpack.c.bf16 %v6782_v41, %v6781_v52  ;;  %v6785_v41 = vld [vmem:[#allocation2 + $0x31a] sm:$0xff] }
 0x69a   :  { %v6548_v26 = vpop.f32.mrf.mxu0  ;;  %21596 = vst [vmem:[#allocation16_spill] sm:$0xff] %v17896_v31 }
 0x69b   :  { %21591 = vst [vmem:[#allocation93_spill] sm:$0xff] %v17882_v43  ;;  %v17888_v14 = vadd.f32 %v6548_v26, %v6160_v38  ;;  %v13477_v44 = vpop.f32.mrf.mxu1  ;;  %21594 = vst [vmem:[#allocation88_spill] sm:$0xff] %v17892_v48 }
 0x69c   :  { %v13543_v32 = vpop.f32.mrf.mxu0 }
 0x69d   :  { %21592 = vst [vmem:[#allocation72_spill] sm:$0xff] %v17888_v14  ;;  %v17890_v62 = vadd.f32 %v13543_v32, %v13477_v44  ;;  %v6163_v6 = vpop.f32.mrf.mxu1  ;;  %v6786_v32 = vld [vmem:[#allocation2 + $0x322] sm:$0xff] }
 0x69e   :  { %v6551_v59 = vpop.f32.mrf.mxu0 }
 0x69f   :  { %21593 = vst [vmem:[#allocation46_spill] sm:$0xff] %v17890_v62  ;;  %v17894_v43 = vadd.f32 %v6551_v59, %v6163_v6  ;;  %v13480_v20 = vpop.f32.mrf.mxu1  ;;  %13643 = vmatmul.mubr.msk.bf16.gmra.mxu1 %vm27_vm1, %v17892_v48  ;;  %v7368_v62 = vpack.c.bf16 %v7336_v3, %v7335_v15 }
 0x6a0   :  { %v13546_v11 = vpop.f32.mrf.mxu0  ;;  %13709 = vmatmul.mubr.msk.bf16.gmra.mxu0 %vm27_vm1, %v17652_v22  ;;  %13646 = vmatprep.mubr.msk.bf16.mxu1 %vm27_vm1, %v17896_v31  ;;  %v7824_v22 = vld [vmem:[#allocation2 + $0x21] sm:$0xff]  ;;  %v17912_v31 = vpack.c.bf16 %v6786_v32, %v6785_v41 }
 0x6a1   :  { %21595 = vst [vmem:[#allocation94_spill] sm:$0xff] %v17894_v43  ;;  %v17902_v38 = vadd.f32 %v13546_v11, %v13480_v20  ;;  %13712 = vmatprep.mubr.msk.bf16.mxu0 %vm27_vm1, %v17660_v1  ;;  %v6176_v26 = vpop.f32.mrf.mxu1  ;;  %v7823_v43 = vld [vmem:[#allocation2 + $0x19] sm:$0xff] }
 0x6a2   :  { %v6564_v52 = vpop.f32.mrf.mxu0  ;;  %v7887_v14 = vpack.c.bf16 %v7824_v22, %v7823_v43  ;;  %v7826_v43 = vld [vmem:[#allocation2 + $0x39] sm:$0xff]  ;;  %v7828_v22 = vld [vmem:[#allocation2 + $0x51] sm:$0xff] }
 0x6a3   :  { %21597 = vst [vmem:[#allocation17_spill] sm:$0xff] %v17902_v38  ;;  %v17908_v44 = vadd.f32 %v6564_v52, %v6176_v26  ;;  %v13481_v6 = vpop.f32.mrf.mxu1 }
 0x6a4   :  { %v13547_v59 = vpop.f32.mrf.mxu0 }
 0x6a5   :  { %v17910_v11 = vadd.f32 %v13547_v59, %v13481_v6  ;;  %v6179_v20 = vpop.f32.mrf.mxu1  ;;  %v7827_v59 = vld [vmem:[#allocation2 + $0x49] sm:$0xff] }
 0x6a6   :  { %v6567_v38 = vpop.f32.mrf.mxu0 }
 0x6a7   :  { %v17914_v1 = vadd.f32 %v6567_v38, %v6179_v20  ;;  %v13484_v48 = vpop.f32.mrf.mxu1  ;;  %13647 = vmatmul.mubr.msk.bf16.gmra.mxu1 %vm27_vm1, %v17912_v31  ;;  %v7825_v38 = vld [vmem:[#allocation2 + $0x31] sm:$0xff] }
 0x6a8   :  { %v13550_v26 = vpop.f32.mrf.mxu0  ;;  %13713 = vmatmul.mubr.msk.bf16.gmra.mxu0 %vm27_vm1, %v7368_v62  ;;  %13718 = vmatprep.mubr.msk.bf16.mxu1 %vm27_vm1, %v7887_v14 }
 0x6a9   :  { %v17919_v52 = vadd.f32 %v13550_v26, %v13484_v48  ;;  %13784 = vmatprep.mubr.msk.bf16.mxu0 %vm27_vm1, %v17671_v35  ;;  %v6192_v41 = vpop.f32.mrf.mxu1  ;;  %v17928_v26 = vpack.c.bf16 %v7826_v43, %v7825_v38  ;;  %v9118_v35 = vsel %vm535_vm0, %v17774_v17, 0 }
 0x6aa   :  { %v6580_v32 = vpop.f32.mrf.mxu0 }
 0x6ab   :  { %21598 = vst [vmem:[#allocation73_spill] sm:$0xff] %v17919_v52  ;;  %v17924_v15 = vadd.f32 %v6580_v32, %v6192_v41  ;;  %v13485_v3 = vpop.f32.mrf.mxu1  ;;  %v17932_v52 = vpack.c.bf16 %v7828_v22, %v7827_v59  ;;  %v11917_v41 = vld [vmem:[%s20947_s2 + $0xe] sm:$0x3]  ;;  %v7829_v59 = vld [vmem:[#allocation2 + $0x61] sm:$0xff] }
 0x6ac   :  { %v13551_v6 = vpop.f32.mrf.mxu0  ;;  %v9668_v38 = vsel %vm535_vm0, %v11917_v41, 0  ;;  %14062 = vmatprep.subr.msk.bf16.mxu0 %vm535_vm0, %v11917_v41  ;;  %v7830_v22 = vld [vmem:[#allocation2 + $0x69] sm:$0xff] }
 0x6ad   :  { %21599 = vst [vmem:[#allocation45_spill] sm:$0xff] %v17924_v15  ;;  %v17926_v20 = vadd.f32 %v13551_v6, %v13485_v3  ;;  %v6195_v62 = vpop.f32.mrf.mxu1  ;;  %21601 = vst [vmem:[#allocation48_spill] sm:$0xff] %v17932_v52 }
 0x6ae   :  { %v6583_v48 = vpop.f32.mrf.mxu0 }
 0x6af   :  { %v17930_v14 = vadd.f32 %v6583_v48, %v6195_v62  ;;  %v13488_v32 = vpop.f32.mrf.mxu1  ;;  %13719 = vmatmul.mubr.msk.bf16.vlgmr.msra.gmra.mxu1 %vm27_vm1, %v17928_v26  ;;  %v7832_v48 = vld [vmem:[#allocation2 + $0x81] sm:$0xff] }
 0x6b0   :  { %v13554_v15 = vpop.f32.mrf.mxu0  ;;  %13785 = vmatmul.mubr.msk.bf16.vlgmr.msra.gmra.mxu0 %vm27_vm1, %v17674_v27  ;;  %13722 = vmatprep.mubr.msk.bf16.mxu1 %vm27_vm1, %v17932_v52 }
 0x6b1   :  { %21600 = vst [vmem:[#allocation44_spill] sm:$0xff] %v17930_v14  ;;  %v17944_v43 = vadd.f32 %v13554_v15, %v13488_v32  ;;  %13788 = vmatprep.mubr.msk.bf16.mxu0 %vm27_vm1, %v17687_v23  ;;  %v6208_v17 = vpop.f32.mrf.mxu1  ;;  %13849 = vmatpush3.bf16.msra.mxu1 %v9118_v35  ;;  %v7831_v15 = vld [vmem:[#allocation2 + $0x79] sm:$0xff]  ;;  %v17955_v14 = vpack.c.bf16 %v7830_v22, %v7829_v59  ;;  %v7833_v59 = vld [vmem:[#allocation2 + $0x91] sm:$0xff] }
 0x6b2   :  { %v6596_v3 = vpop.f32.mrf.mxu0  ;;  %13915 = vmatpush3.bf16.msra.mxu0 %v9668_v38  ;;  %v17959_v35 = vpack.c.bf16 %v7832_v48, %v7831_v15  ;;  %v7834_v22 = vld [vmem:[#allocation2 + $0x99] sm:$0xff]  ;;  %v7835_v15 = vld [vmem:[#allocation2 + $0xa9] sm:$0xff]  ;;  %v7836_v48 = vld [vmem:[#allocation2 + $0xb1] sm:$0xff] }
 0x6b3   :  { %21602 = vst [vmem:[#allocation91_spill] sm:$0xff] %v17944_v43  ;;  %v17951_v6 = vadd.f32 %v6596_v3, %v6208_v17  ;;  %v13489_v27 = vpop.f32.mrf.mxu1 }
 0x6b4   :  { %v13555_v62 = vpop.f32.mrf.mxu0  ;;  %21605 = vst [vmem:[#allocation43_spill] sm:$0xff] %v17959_v35 }
 0x6b5   :  { %v17953_v32 = vadd.f32 %v13555_v62, %v13489_v27  ;;  %v6211_v43 = vpop.f32.mrf.mxu1 }
 0x6b6   :  { %v6599_v52 = vpop.f32.mrf.mxu0 }
 0x6b7   :  { %21603 = vst [vmem:[#allocation71_spill] sm:$0xff] %v17953_v32  ;;  %v17957_v23 = vadd.f32 %v6599_v52, %v6211_v43  ;;  %v13492_v41 = vpop.f32.mrf.mxu1  ;;  %13723 = vmatmul.mubr.msk.bf16.gmra.mxu1 %vm27_vm1, %v17955_v14 }
 0x6b8   :  { %v13558_v17 = vpop.f32.mrf.mxu0  ;;  %13789 = vmatmul.mubr.msk.bf16.gmra.mxu0 %vm27_vm1, %v17689_v18  ;;  %13726 = vmatprep.mubr.msk.bf16.mxu1 %vm27_vm1, %v17959_v35  ;;  %v17979_v35 = vpack.c.bf16 %v7836_v48, %v7835_v15 }
 0x6b9   :  { %21604 = vst [vmem:[#allocation70_spill] sm:$0xff] %v17957_v23  ;;  %v17965_v38 = vadd.f32 %v13558_v17, %v13492_v41  ;;  %13792 = vmatprep.mubr.msk.bf16.mxu0 %vm27_vm1, %v17699_v39  ;;  %v6224_v52 = vpop.f32.mrf.mxu1  ;;  %v17975_v17 = vpack.c.bf16 %v7834_v22, %v7833_v59 }
 0x6ba   :  { %v6612_v43 = vpop.f32.mrf.mxu0  ;;  %21609 = vst [vmem:[#allocation13_spill] sm:$0xff] %v17979_v35 }
 0x6bb   :  { %21606 = vst [vmem:[#allocation68_spill] sm:$0xff] %v17965_v38  ;;  %v17971_v3 = vadd.f32 %v6612_v43, %v6224_v52  ;;  %v13493_v27 = vpop.f32.mrf.mxu1 }
 0x6bc   :  { %v13559_v62 = vpop.f32.mrf.mxu0 }
 0x6bd   :  { %v17973_v23 = vadd.f32 %v13559_v62, %v13493_v27  ;;  %v6227_v18 = vpop.f32.mrf.mxu1  ;;  %v7837_v27 = vld [vmem:[#allocation2 + $0xc1] sm:$0xff]  ;;  %v7838_v62 = vld [vmem:[#allocation2 + $0xc9] sm:$0xff] }
 0x6be   :  { %v6615_v41 = vpop.f32.mrf.mxu0 }
 0x6bf   :  { %21607 = vst [vmem:[#allocation87_spill] sm:$0xff] %v17973_v23  ;;  %v17977_v38 = vadd.f32 %v6615_v41, %v6227_v18  ;;  %v13496_v39 = vpop.f32.mrf.mxu1  ;;  %13727 = vmatmul.mubr.msk.bf16.gmra.mxu1 %vm27_vm1, %v17975_v17  ;;  %v7839_v18 = vld [vmem:[#allocation2 + $0xd9] sm:$0xff]  ;;  %v7840_v41 = vld [vmem:[#allocation2 + $0xe1] sm:$0xff] }
 0x6c0   :  { %v13562_v32 = vpop.f32.mrf.mxu0  ;;  %13793 = vmatmul.mubr.msk.bf16.gmra.mxu0 %vm27_vm1, %v17701_v54  ;;  %13730 = vmatprep.mubr.msk.bf16.mxu1 %vm27_vm1, %v17979_v35  ;;  %v17999_v35 = vpack.c.bf16 %v7840_v41, %v7839_v18 }
 0x6c1   :  { %21608 = vst [vmem:[#allocation14_spill] sm:$0xff] %v17977_v38  ;;  %v17985_v52 = vadd.f32 %v13562_v32, %v13496_v39  ;;  %13796 = vmatprep.mubr.msk.bf16.mxu0 %vm27_vm1, %v17711_v55  ;;  %v6240_v43 = vpop.f32.mrf.mxu1  ;;  %v17995_v39 = vpack.c.bf16 %v7838_v62, %v7837_v27 }
 0x6c2   :  { %v6628_v59 = vpop.f32.mrf.mxu0  ;;  %21613 = vst [vmem:[#allocation67_spill] sm:$0xff] %v17999_v35 }
 0x6c3   :  { %21610 = vst [vmem:[#allocation69_spill] sm:$0xff] %v17985_v52  ;;  %v17991_v22 = vadd.f32 %v6628_v59, %v6240_v43  ;;  %v13497_v15 = vpop.f32.mrf.mxu1 }
 0x6c4   :  { %v13563_v48 = vpop.f32.mrf.mxu0 }
 0x6c5   :  { %v17993_v38 = vadd.f32 %v13563_v48, %v13497_v15  ;;  %v6243_v54 = vpop.f32.mrf.mxu1  ;;  %v7841_v15 = vld [vmem:[#allocation2 + $0xf1] sm:$0xff]  ;;  %v7842_v48 = vld [vmem:[#allocation2 + $0xf9] sm:$0xff] }
 0x6c6   :  { %v6631_v32 = vpop.f32.mrf.mxu0 }
 0x6c7   :  { %21611 = vst [vmem:[#allocation41_spill] sm:$0xff] %v17993_v38  ;;  %v17997_v52 = vadd.f32 %v6631_v32, %v6243_v54  ;;  %v13500_v55 = vpop.f32.mrf.mxu1  ;;  %13731 = vmatmul.mubr.msk.bf16.gmra.mxu1 %vm27_vm1, %v17995_v39  ;;  %v7843_v54 = vld [vmem:[#allocation2 + $0x109] sm:$0xff]  ;;  %v7844_v32 = vld [vmem:[#allocation2 + $0x111] sm:$0xff] }
 0x6c8   :  { %v13566_v23 = vpop.f32.mrf.mxu0  ;;  %13797 = vmatmul.mubr.msk.bf16.gmra.mxu0 %vm27_vm1, %v17713_v53  ;;  %13734 = vmatprep.mubr.msk.bf16.mxu1 %vm27_vm1, %v17999_v35  ;;  %v18019_v35 = vpack.c.bf16 %v7844_v32, %v7843_v54 }
 0x6c9   :  { %21612 = vst [vmem:[#allocation42_spill] sm:$0xff] %v17997_v52  ;;  %v18005_v43 = vadd.f32 %v13566_v23, %v13500_v55  ;;  %13800 = vmatprep.mubr.msk.bf16.mxu0 %vm27_vm1, %v17723_v40  ;;  %v6256_v59 = vpop.f32.mrf.mxu1  ;;  %v18015_v55 = vpack.c.bf16 %v7842_v48, %v7841_v15 }
 0x6ca   :  { %v6644_v27 = vpop.f32.mrf.mxu0  ;;  %21617 = vst [vmem:[#allocation65_spill] sm:$0xff] %v18019_v35 }
 0x6cb   :  { %21614 = vst [vmem:[#allocation15_spill] sm:$0xff] %v18005_v43  ;;  %v18011_v62 = vadd.f32 %v6644_v27, %v6256_v59  ;;  %v13501_v18 = vpop.f32.mrf.mxu1 }
 0x6cc   :  { %v13567_v41 = vpop.f32.mrf.mxu0 }
 0x6cd   :  { %v18013_v52 = vadd.f32 %v13567_v41, %v13501_v18  ;;  %v6259_v53 = vpop.f32.mrf.mxu1  ;;  %v7845_v18 = vld [vmem:[#allocation2 + $0x121] sm:$0xff]  ;;  %v7846_v41 = vld [vmem:[#allocation2 + $0x129] sm:$0xff] }
 0x6ce   :  { %v6647_v23 = vpop.f32.mrf.mxu0 }
 0x6cf   :  { %21615 = vst [vmem:[#allocation64_spill] sm:$0xff] %v18013_v52  ;;  %v18017_v43 = vadd.f32 %v6647_v23, %v6259_v53  ;;  %v13504_v40 = vpop.f32.mrf.mxu1  ;;  %13735 = vmatmul.mubr.msk.bf16.gmra.mxu1 %vm27_vm1, %v18015_v55  ;;  %v7847_v53 = vld [vmem:[#allocation2 + $0x139] sm:$0xff]  ;;  %v7848_v23 = vld [vmem:[#allocation2 + $0x141] sm:$0xff] }
 0x6d0   :  { %v13570_v38 = vpop.f32.mrf.mxu0  ;;  %13801 = vmatmul.mubr.msk.bf16.gmra.mxu0 %vm27_vm1, %v17725_v12  ;;  %13738 = vmatprep.mubr.msk.bf16.mxu1 %vm27_vm1, %v18019_v35  ;;  %v18039_v35 = vpack.c.bf16 %v7848_v23, %v7847_v53 }
 0x6d1   :  { %21616 = vst [vmem:[#allocation12_spill] sm:$0xff] %v18017_v43  ;;  %v18025_v59 = vadd.f32 %v13570_v38, %v13504_v40  ;;  %13804 = vmatprep.mubr.msk.bf16.mxu0 %vm27_vm1, %v17735_v46  ;;  %v6272_v27 = vpop.f32.mrf.mxu1  ;;  %v18035_v40 = vpack.c.bf16 %v7846_v41, %v7845_v18 }
 0x6d2   :  { %v6660_v15 = vpop.f32.mrf.mxu0  ;;  %21621 = vst [vmem:[#allocation102_spill] sm:$0xff] %v18039_v35 }
 0x6d3   :  { %21618 = vst [vmem:[#allocation11_spill] sm:$0xff] %v18025_v59  ;;  %v18031_v48 = vadd.f32 %v6660_v15, %v6272_v27  ;;  %v13505_v54 = vpop.f32.mrf.mxu1 }
 0x6d4   :  { %v13571_v32 = vpop.f32.mrf.mxu0 }
 0x6d5   :  { %v18033_v43 = vadd.f32 %v13571_v32, %v13505_v54  ;;  %v6275_v12 = vpop.f32.mrf.mxu1  ;;  %v7849_v54 = vld [vmem:[#allocation2 + $0x151] sm:$0xff]  ;;  %v7850_v32 = vld [vmem:[#allocation2 + $0x159] sm:$0xff] }
 0x6d6   :  { %v6663_v38 = vpop.f32.mrf.mxu0 }
 0x6d7   :  { %21619 = vst [vmem:[#allocation36_spill] sm:$0xff] %v18033_v43  ;;  %v18037_v59 = vadd.f32 %v6663_v38, %v6275_v12  ;;  %v13508_v46 = vpop.f32.mrf.mxu1  ;;  %13739 = vmatmul.mubr.msk.bf16.gmra.mxu1 %vm27_vm1, %v18035_v40  ;;  %v7851_v12 = vld [vmem:[#allocation2 + $0x169] sm:$0xff]  ;;  %v7852_v38 = vld [vmem:[#allocation2 + $0x171] sm:$0xff] }
 0x6d8   :  { %v13574_v52 = vpop.f32.mrf.mxu0  ;;  %13805 = vmatmul.mubr.msk.bf16.gmra.mxu0 %vm27_vm1, %v17737_v25  ;;  %13742 = vmatprep.mubr.msk.bf16.mxu1 %vm27_vm1, %v18039_v35  ;;  %v18059_v35 = vpack.c.bf16 %v7852_v38, %v7851_v12  ;;  %v8403_v12 = vld [vmem:[#allocation2 + $0x182] sm:$0xff]  ;;  %v8404_v38 = vld [vmem:[#allocation2 + $0x18a] sm:$0xff] }
 0x6d9   :  { %21620 = vst [vmem:[#allocation23_spill] sm:$0xff] %v18037_v59  ;;  %v18045_v27 = vadd.f32 %v13574_v52, %v13508_v46  ;;  %13808 = vmatprep.mubr.msk.bf16.mxu0 %vm27_vm1, %v17747_v56  ;;  %v6288_v15 = vpop.f32.mrf.mxu1  ;;  %v18055_v46 = vpack.c.bf16 %v7850_v32, %v7849_v54  ;;  %v7853_v32 = vld [vmem:[#allocation2 + $0x181] sm:$0xff] }
 0x6da   :  { %v6676_v18 = vpop.f32.mrf.mxu0  ;;  %21627 = vst [vmem:[#allocation100_spill] sm:$0xff] %v18059_v35 }
 0x6db   :  { %21622 = vst [vmem:[#allocation39_spill] sm:$0xff] %v18045_v27  ;;  %v18051_v41 = vadd.f32 %v6676_v18, %v6288_v15  ;;  %v13509_v53 = vpop.f32.mrf.mxu1  ;;  %21625 = vst [vmem:[#allocation99_spill] sm:$0xff] %v18055_v46 }
 0x6dc   :  { %v13575_v23 = vpop.f32.mrf.mxu0 }
 0x6dd   :  { %21623 = vst [vmem:[#allocation40_spill] sm:$0xff] %v18051_v41  ;;  %v18053_v59 = vadd.f32 %v13575_v23, %v13509_v53  ;;  %v6291_v25 = vpop.f32.mrf.mxu1  ;;  %v7854_v23 = vld [vmem:[#allocation2 + $0x189] sm:$0xff] }
 0x6de   :  { %v6679_v52 = vpop.f32.mrf.mxu0 }
 0x6df   :  { %21624 = vst [vmem:[#allocation98_spill] sm:$0xff] %v18053_v59  ;;  %v18057_v27 = vadd.f32 %v6679_v52, %v6291_v25  ;;  %v13512_v56 = vpop.f32.mrf.mxu1  ;;  %13743 = vmatmul.mubr.msk.bf16.gmra.mxu1 %vm27_vm1, %v18055_v46  ;;  %v8452_v59 = vpack.c.bf16 %v8404_v38, %v8403_v12 }
 0x6e0   :  { %v13578_v43 = vpop.f32.mrf.mxu0  ;;  %13809 = vmatmul.mubr.msk.bf16.gmra.mxu0 %vm27_vm1, %v17749_v24  ;;  %13746 = vmatprep.mubr.msk.bf16.mxu1 %vm27_vm1, %v18059_v35  ;;  %v7856_v24 = vld [vmem:[#allocation2 + $0x1d1] sm:$0xff]  ;;  %v18075_v35 = vpack.c.bf16 %v7854_v23, %v7853_v32 }
 0x6e1   :  { %21626 = vst [vmem:[#allocation38_spill] sm:$0xff] %v18057_v27  ;;  %v18065_v15 = vadd.f32 %v13578_v43, %v13512_v56  ;;  %13812 = vmatprep.mubr.msk.bf16.mxu0 %vm27_vm1, %v17759_v5  ;;  %v6304_v18 = vpop.f32.mrf.mxu1  ;;  %v7855_v27 = vld [vmem:[#allocation2 + $0x1c9] sm:$0xff] }
 0x6e2   :  { %v6692_v54 = vpop.f32.mrf.mxu0  ;;  %v7903_v41 = vpack.c.bf16 %v7856_v24, %v7855_v27  ;;  %v7858_v27 = vld [vmem:[#allocation2 + $0x1e9] sm:$0xff]  ;;  %v7860_v24 = vld [vmem:[#allocation2 + $0x201] sm:$0xff] }
 0x6e3   :  { %21628 = vst [vmem:[#allocation101_spill] sm:$0xff] %v18065_v15  ;;  %v18071_v53 = vadd.f32 %v6692_v54, %v6304_v18  ;;  %v13513_v25 = vpop.f32.mrf.mxu1 }
 0x6e4   :  { %v13579_v52 = vpop.f32.mrf.mxu0 }
 0x6e5   :  { %v18073_v43 = vadd.f32 %v13579_v52, %v13513_v25  ;;  %v6307_v56 = vpop.f32.mrf.mxu1  ;;  %v7859_v52 = vld [vmem:[#allocation2 + $0x1f9] sm:$0xff] }
 0x6e6   :  { %v6695_v15 = vpop.f32.mrf.mxu0 }
 0x6e7   :  { %v18077_v5 = vadd.f32 %v6695_v15, %v6307_v56  ;;  %v13516_v46 = vpop.f32.mrf.mxu1  ;;  %13747 = vmatmul.mubr.msk.bf16.gmra.mxu1 %vm27_vm1, %v18075_v35  ;;  %v7857_v15 = vld [vmem:[#allocation2 + $0x1e1] sm:$0xff] }
 0x6e8   :  { %v13582_v18 = vpop.f32.mrf.mxu0  ;;  %13813 = vmatmul.mubr.msk.bf16.gmra.mxu0 %vm27_vm1, %v8452_v59  ;;  %13750 = vmatprep.mubr.msk.bf16.mxu1 %vm27_vm1, %v7903_v41 }
 0x6e9   :  { %21629 = vst [vmem:[#allocation103_spill] sm:$0xff] %v18077_v5  ;;  %v18082_v54 = vadd.f32 %v13582_v18, %v13516_v46  ;;  %13816 = vmatprep.mubr.msk.bf16.mxu0 %vm27_vm1, %v17767_v30  ;;  %v6320_v32 = vpop.f32.mrf.mxu1  ;;  %v18091_v18 = vpack.c.bf16 %v7858_v27, %v7857_v15 }
 0x6ea   :  { %v6708_v23 = vpop.f32.mrf.mxu0 }
 0x6eb   :  { %21630 = vst [vmem:[#allocation104_spill] sm:$0xff] %v18082_v54  ;;  %v18087_v12 = vadd.f32 %v6708_v23, %v6320_v32  ;;  %v13517_v38 = vpop.f32.mrf.mxu1  ;;  %v7905_v54 = vpack.c.bf16 %v7860_v24, %v7859_v52  ;;  %v18106_v23 = vld [vmem:[%s20947_s2 + $0x10] sm:$0x3] }
 0x6ec   :  { %v13583_v25 = vpop.f32.mrf.mxu0  ;;  %14063 = vmatprep.subr.msk.bf16.mxu1 %vm535_vm0, %v18106_v23  ;;  %v7863_v24 = vld [vmem:[#allocation2 + $0x229] sm:$0xff] }
 0x6ed   :  { %21631 = vst [vmem:[#allocation105_spill] sm:$0xff] %v18087_v12  ;;  %v18089_v56 = vadd.f32 %v13583_v25, %v13517_v38  ;;  %v6323_v59 = vpop.f32.mrf.mxu1  ;;  %v7862_v25 = vld [vmem:[#allocation2 + $0x219] sm:$0xff] }
 0x6ee   :  { %v6711_v46 = vpop.f32.mrf.mxu0 }
 0x6ef   :  { %21632 = vst [vmem:[#allocation106_spill] sm:$0xff] %v18089_v56  ;;  %v18093_v41 = vadd.f32 %v6711_v46, %v6323_v59  ;;  %v13588_v30 = vpop.f32.mrf.mxu1  ;;  %13751 = vmatmul.mubr.msk.bf16.gmra.mxu1 %vm27_vm1, %v18091_v18 }
 0x6f0   :  { %v13654_v5 = vpop.f32.mrf.mxu0  ;;  %13817 = vmatmul.mubr.msk.bf16.gmra.mxu0 %vm27_vm1, %v17769_v49  ;;  %v7211_v32 = vadd.f32 %v13588_v30, %v17780_v29  ;;  %13754 = vmatprep.mubr.msk.bf16.mxu1 %vm27_vm1, %v7905_v54  ;;  %v7861_v29 = vld [vmem:[#allocation2 + $0x211] sm:$0xff] }
 0x6f1   :  { %21633 = vst [vmem:[#allocation29_spill] sm:$0xff] %v18093_v41  ;;  %13820 = vmatprep.mubr.msk.bf16.mxu0 %vm27_vm1, %v17792_v21  ;;  %v6954_v15 = vpop.f32.mrf.mxu1  ;;  %v7864_v21 = vld [vmem:[#allocation2 + $0x231] sm:$0xff]  ;;  %v18116_v56 = vpack.c.bf16 %v7862_v25, %v7861_v29 }
 0x6f2   :  { %v7504_v27 = vpop.f32.mrf.mxu0  ;;  %v18110_v38 = vadd.f32 %v13654_v5, %v7211_v32  ;;  %v7209_v49 = vadd.f32 %v6954_v15, %v17788_v2  ;;  %v7907_v32 = vpack.c.bf16 %v7864_v21, %v7863_v24 }
 0x6f3   :  { %v13589_v54 = vpop.f32.mrf.mxu1 }
 0x6f4   :  { %v13655_v52 = vpop.f32.mrf.mxu0  ;;  %v18113_v59 = vadd.f32 %v7504_v27, %v7209_v49  ;;  %v7212_v46 = vadd.f32 %v13589_v54, %v17790_v36  ;;  %v7865_v54 = vld [vmem:[#allocation2 + $0x241] sm:$0xff] }
 0x6f5   :  { %v6957_v30 = vpop.f32.mrf.mxu1 }
 0x6f6   :  { %v7507_v41 = vpop.f32.mrf.mxu0  ;;  %v18118_v12 = vadd.f32 %v13655_v52, %v7212_v46  ;;  %v7210_v5 = vadd.f32 %v6957_v30, %v17794_v10  ;;  %v7866_v52 = vld [vmem:[#allocation2 + $0x249] sm:$0xff] }
 0x6f7   :  { %v13592_v2 = vpop.f32.mrf.mxu1  ;;  %13755 = vmatmul.mubr.msk.bf16.gmra.mxu1 %vm27_vm1, %v18116_v56 }
 0x6f8   :  { %v13658_v15 = vpop.f32.mrf.mxu0  ;;  %13821 = vmatmul.mubr.msk.bf16.gmra.mxu0 %vm27_vm1, %v17796_v7  ;;  %v18125_v27 = vadd.f32 %v7507_v41, %v7210_v5  ;;  %v7215_v36 = vadd.f32 %v13592_v2, %v17802_v19  ;;  %13758 = vmatprep.mubr.msk.bf16.mxu1 %vm27_vm1, %v7907_v32  ;;  %v7867_v7 = vld [vmem:[#allocation2 + $0x259] sm:$0xff]  ;;  %v7868_v41 = vld [vmem:[#allocation2 + $0x261] sm:$0xff]  ;;  %v18137_v32 = vpack.c.bf16 %v7866_v52, %v7865_v54  ;;  %v7869_v52 = vld [vmem:[#allocation2 + $0x271] sm:$0xff] }
 0x6f9   :  { %13824 = vmatprep.mubr.msk.bf16.mxu0 %vm27_vm1, %v17812_v9  ;;  %v6970_v49 = vpop.f32.mrf.mxu1 }
 0x6fa   :  { %v7520_v10 = vpop.f32.mrf.mxu0  ;;  %v18131_v29 = vadd.f32 %v13658_v15, %v7215_v36  ;;  %v7213_v25 = vadd.f32 %v6970_v49, %v17808_v57  ;;  %v7909_v15 = vpack.c.bf16 %v7868_v41, %v7867_v7  ;;  %v7872_v41 = vld [vmem:[#allocation2 + $0x291] sm:$0xff] }
 0x6fb   :  { %v13593_v24 = vpop.f32.mrf.mxu1 }
 0x6fc   :  { %v13659_v21 = vpop.f32.mrf.mxu0  ;;  %v18134_v46 = vadd.f32 %v7520_v10, %v7213_v25  ;;  %v7216_v19 = vadd.f32 %v13593_v24, %v17810_v33  ;;  %v7870_v24 = vld [vmem:[#allocation2 + $0x279] sm:$0xff] }
 0x6fd   :  { %v6973_v30 = vpop.f32.mrf.mxu1 }
 0x6fe   :  { %v7523_v5 = vpop.f32.mrf.mxu0  ;;  %v18139_v9 = vadd.f32 %v13659_v21, %v7216_v19  ;;  %v7214_v2 = vadd.f32 %v6973_v30, %v17814_v51 }
 0x6ff   :  { %v13596_v57 = vpop.f32.mrf.mxu1  ;;  %13759 = vmatmul.mubr.msk.bf16.gmra.mxu1 %vm27_vm1, %v18137_v32 }
 0x700   :  { %v13662_v36 = vpop.f32.mrf.mxu0  ;;  %13825 = vmatmul.mubr.msk.bf16.gmra.mxu0 %vm27_vm1, %v17816_v42  ;;  %v18146_v49 = vadd.f32 %v7523_v5, %v7214_v2  ;;  %v7219_v33 = vadd.f32 %v13596_v57, %v17822_v50  ;;  %13762 = vmatprep.mubr.msk.bf16.mxu1 %vm27_vm1, %v7909_v15  ;;  %v7871_v42 = vld [vmem:[#allocation2 + $0x289] sm:$0xff]  ;;  %v18158_v2 = vpack.c.bf16 %v7870_v24, %v7869_v52  ;;  %v7873_v52 = vld [vmem:[#allocation2 + $0x2a1] sm:$0xff] }
 0x701   :  { %13828 = vmatprep.mubr.msk.bf16.mxu0 %vm27_vm1, %v17832_v0  ;;  %v6986_v10 = vpop.f32.mrf.mxu1  ;;  %v7911_v57 = vpack.c.bf16 %v7872_v41, %v7871_v42  ;;  %v7874_v24 = vld [vmem:[#allocation2 + $0x2a9] sm:$0xff]  ;;  %v7876_v42 = vld [vmem:[#allocation2 + $0x2c1] sm:$0xff] }
 0x702   :  { %v7536_v51 = vpop.f32.mrf.mxu0  ;;  %v18152_v25 = vadd.f32 %v13662_v36, %v7219_v33  ;;  %v7217_v54 = vadd.f32 %v6986_v10, %v17828_v16 }
 0x703   :  { %v13597_v21 = vpop.f32.mrf.mxu1 }
 0x704   :  { %v13663_v7 = vpop.f32.mrf.mxu0  ;;  %v18155_v19 = vadd.f32 %v7536_v51, %v7217_v54  ;;  %v7220_v50 = vadd.f32 %v13597_v21, %v17830_v37 }
 0x705   :  { %v6989_v30 = vpop.f32.mrf.mxu1 }
 0x706   :  { %v7539_v5 = vpop.f32.mrf.mxu0  ;;  %v18160_v0 = vadd.f32 %v13663_v7, %v7220_v50  ;;  %v7218_v15 = vadd.f32 %v6989_v30, %v17834_v60 }
 0x707   :  { %v13600_v16 = vpop.f32.mrf.mxu1  ;;  %13763 = vmatmul.mubr.msk.bf16.gmra.mxu1 %vm27_vm1, %v18158_v2 }
 0x708   :  { %v13666_v36 = vpop.f32.mrf.mxu0  ;;  %13829 = vmatmul.mubr.msk.bf16.gmra.mxu0 %vm27_vm1, %v17836_v45  ;;  %v18167_v33 = vadd.f32 %v7539_v5, %v7218_v15  ;;  %v7223_v37 = vadd.f32 %v13600_v16, %v17842_v63  ;;  %13766 = vmatprep.mubr.msk.bf16.mxu1 %vm27_vm1, %v7911_v57  ;;  %v7875_v45 = vld [vmem:[#allocation2 + $0x2b9] sm:$0xff]  ;;  %v18179_v5 = vpack.c.bf16 %v7874_v24, %v7873_v52 }
 0x709   :  { %13832 = vmatprep.mubr.msk.bf16.mxu0 %vm27_vm1, %v17852_v61  ;;  %v7002_v10 = vpop.f32.mrf.mxu1  ;;  %v7913_v57 = vpack.c.bf16 %v7876_v42, %v7875_v45  ;;  %v7878_v52 = vld [vmem:[#allocation2 + $0x2d9] sm:$0xff] }
 0x70a   :  { %v7552_v60 = vpop.f32.mrf.mxu0  ;;  %v18173_v51 = vadd.f32 %v13666_v36, %v7223_v37  ;;  %v7221_v54 = vadd.f32 %v7002_v10, %v17848_v34 }
 0x70b   :  { %v13601_v21 = vpop.f32.mrf.mxu1 }
 0x70c   :  { %v13667_v7 = vpop.f32.mrf.mxu0  ;;  %v18176_v41 = vadd.f32 %v7552_v60, %v7221_v54  ;;  %v7224_v63 = vadd.f32 %v13601_v21, %v17850_v13  ;;  %v7877_v54 = vld [vmem:[#allocation2 + $0x2d1] sm:$0xff] }
 0x70d   :  { %v7005_v50 = vpop.f32.mrf.mxu1 }
 0x70e   :  { %v7555_v30 = vpop.f32.mrf.mxu0  ;;  %v18181_v61 = vadd.f32 %v13667_v7, %v7224_v63  ;;  %v7222_v15 = vadd.f32 %v7005_v50, %v17854_v47  ;;  %v7880_v7 = vld [vmem:[#allocation2 + $0x2f1] sm:$0xff] }
 0x70f   :  { %v13604_v34 = vpop.f32.mrf.mxu1  ;;  %13767 = vmatmul.mubr.msk.bf16.gmra.mxu1 %vm27_vm1, %v18179_v5 }
 0x710   :  { %v13670_v16 = vpop.f32.mrf.mxu0  ;;  %13833 = vmatmul.mubr.msk.bf16.gmra.mxu0 %vm27_vm1, %v17856_v58  ;;  %v18188_v36 = vadd.f32 %v7555_v30, %v7222_v15  ;;  %v7227_v13 = vadd.f32 %v13604_v34, %v17862_v28  ;;  %13770 = vmatprep.mubr.msk.bf16.mxu1 %vm27_vm1, %v7913_v57  ;;  %v7879_v58 = vld [vmem:[#allocation2 + $0x2e9] sm:$0xff]  ;;  %v21635_v28 = vld [vmem:[#allocation74_spill] sm:$0xff]  ;;  %v18200_v30 = vpack.c.bf16 %v7878_v52, %v7877_v54 }
 0x711   :  { %13836 = vmatprep.mubr.msk.bf16.mxu0 %vm27_vm1, %v17872_v8  ;;  %v7018_v37 = vpop.f32.mrf.mxu1  ;;  %v21637_v15 = vld [vmem:[#allocation5_spill] sm:$0xff]  ;;  %v7915_v34 = vpack.c.bf16 %v7880_v7, %v7879_v58  ;;  %v21641_v54 = vld [vmem:[#allocation88_spill] sm:$0xff] }
 0x712   :  { %v7568_v47 = vpop.f32.mrf.mxu0  ;;  %v18194_v10 = vadd.f32 %v13670_v16, %v7227_v13  ;;  %v7225_v60 = vadd.f32 %v7018_v37, %v17868_v4  ;;  %v21638_v13 = vld [vmem:[#allocation47_spill] sm:$0xff]  ;;  %v21643_v58 = vld [vmem:[#allocation72_spill] sm:$0xff] }
 0x713   :  { %v13605_v24 = vpop.f32.mrf.mxu1 }
 0x714   :  { %v13671_v21 = vpop.f32.mrf.mxu0  ;;  %v18197_v45 = vadd.f32 %v7568_v47, %v7225_v60  ;;  %v7228_v42 = vadd.f32 %v13605_v24, %v21635_v28  ;;  %v21640_v47 = vld [vmem:[#allocation93_spill] sm:$0xff]  ;;  %v7881_v28 = vld [vmem:[#allocation2 + $0x301] sm:$0xff] }
 0x715   :  { %v7021_v63 = vpop.f32.mrf.mxu1 }
 0x716   :  { %21634 = vst [vmem:[#allocation27_spill] sm:$0xff] %v18197_v45  ;;  %v7571_v50 = vpop.f32.mrf.mxu0  ;;  %v18202_v8 = vadd.f32 %v13671_v21, %v7228_v42  ;;  %v7226_v57 = vadd.f32 %v7021_v63, %v21637_v15  ;;  %v7882_v42 = vld [vmem:[#allocation2 + $0x309] sm:$0xff] }
 0x717   :  { %v13608_v4 = vpop.f32.mrf.mxu1  ;;  %13771 = vmatmul.mubr.msk.bf16.gmra.mxu1 %vm27_vm1, %v18200_v30  ;;  %v21647_v45 = vld [vmem:[#allocation16_spill] sm:$0xff] }
 0x718   :  { %21636 = vst [vmem:[#allocation37_spill] sm:$0xff] %v18202_v8  ;;  %v13674_v16 = vpop.f32.mrf.mxu0  ;;  %13837 = vmatmul.mubr.msk.bf16.gmra.mxu0 %vm27_vm1, %v21638_v13  ;;  %v18209_v37 = vadd.f32 %v7571_v50, %v7226_v57  ;;  %v7231_v60 = vadd.f32 %v13608_v4, %v21640_v47  ;;  %13774 = vmatprep.mubr.msk.bf16.mxu1 %vm27_vm1, %v7915_v34  ;;  %v7883_v13 = vld [vmem:[#allocation2 + $0x319] sm:$0xff]  ;;  %v7884_v50 = vld [vmem:[#allocation2 + $0x321] sm:$0xff] }
 0x719   :  { %13840 = vmatprep.mubr.msk.bf16.mxu0 %vm27_vm1, %v21641_v54  ;;  %v7034_v52 = vpop.f32.mrf.mxu1  ;;  %v21644_v4 = vld [vmem:[#allocation46_spill] sm:$0xff]  ;;  %v18221_v8 = vpack.c.bf16 %v7882_v42, %v7881_v28 }
 0x71a   :  { %21639 = vst [vmem:[#allocation35_spill] sm:$0xff] %v18209_v37  ;;  %v7584_v24 = vpop.f32.mrf.mxu0  ;;  %v18215_v21 = vadd.f32 %v13674_v16, %v7231_v60  ;;  %v7229_v7 = vadd.f32 %v7034_v52, %v21643_v58  ;;  %v21646_v16 = vld [vmem:[#allocation94_spill] sm:$0xff] }
 0x71b   :  { %v13609_v63 = vpop.f32.mrf.mxu1 }
 0x71c   :  { %21642 = vst [vmem:[#allocation63_spill] sm:$0xff] %v18215_v21  ;;  %v13675_v15 = vpop.f32.mrf.mxu0  ;;  %v18218_v57 = vadd.f32 %v7584_v24, %v7229_v7  ;;  %v7232_v47 = vadd.f32 %v13609_v63, %v21644_v4  ;;  %v7917_v21 = vpack.c.bf16 %v7884_v50, %v7883_v13  ;;  %v21649_v7 = vld [vmem:[#allocation17_spill] sm:$0xff]  ;;  %v7886_v4 = vld [vmem:[#allocation2 + $0x339] sm:$0xff] }
 0x71d   :  { %v7037_v34 = vpop.f32.mrf.mxu1 }
 0x71e   :  { %v7587_v37 = vpop.f32.mrf.mxu0  ;;  %v18223_v54 = vadd.f32 %v13675_v15, %v7232_v47  ;;  %v7230_v60 = vadd.f32 %v7037_v34, %v21646_v16  ;;  %v7885_v15 = vld [vmem:[#allocation2 + $0x331] sm:$0xff]  ;;  %v8436_v34 = vld [vmem:[#allocation2 + $0x33a] sm:$0xff] }
 0x71f   :  { %v13612_v52 = vpop.f32.mrf.mxu1  ;;  %13775 = vmatmul.mubr.msk.bf16.gmra.mxu1 %vm27_vm1, %v18221_v8  ;;  %v8435_v47 = vld [vmem:[#allocation2 + $0x332] sm:$0xff] }
 0x720   :  { %21645 = vst [vmem:[#allocation62_spill] sm:$0xff] %v18223_v54  ;;  %v13678_v58 = vpop.f32.mrf.mxu0  ;;  %13841 = vmatmul.mubr.msk.bf16.gmra.mxu0 %vm27_vm1, %v21647_v45  ;;  %v18230_v24 = vadd.f32 %v7587_v37, %v7230_v60  ;;  %v7235_v63 = vadd.f32 %v13612_v52, %v21649_v7  ;;  %13778 = vmatprep.mubr.msk.bf16.mxu1 %vm27_vm1, %v7917_v21  ;;  %v8923_v16 = vld [vmem:[#allocation2 + $0x30] sm:$0xff]  ;;  %v8924_v60 = vld [vmem:[#allocation2 + $0x38] sm:$0xff] }
 0x721   :  { %13844 = vmatprep.mubr.msk.bf16.mxu0 %vm27_vm1, %v17912_v31  ;;  %v7050_v28 = vpop.f32.mrf.mxu1  ;;  %v8468_v54 = vpack.c.bf16 %v8436_v34, %v8435_v47  ;;  %v21654_v47 = vld [vmem:[#allocation45_spill] sm:$0xff] }
 0x722   :  { %21648 = vst [vmem:[#allocation86_spill] sm:$0xff] %v18230_v24  ;;  %v7600_v42 = vpop.f32.mrf.mxu0  ;;  %v18236_v13 = vadd.f32 %v13678_v58, %v7235_v63  ;;  %v7233_v50 = vadd.f32 %v7050_v28, %v17908_v44  ;;  %v18242_v24 = vpack.c.bf16 %v7886_v4, %v7885_v15  ;;  %v8987_v63 = vpack.c.bf16 %v8924_v60, %v8923_v16 }
 0x723   :  { %v13613_v45 = vpop.f32.mrf.mxu1 }
 0x724   :  { %21650 = vst [vmem:[#allocation28_spill] sm:$0xff] %v18236_v13  ;;  %v13679_v37 = vpop.f32.mrf.mxu0  ;;  %v18239_v52 = vadd.f32 %v7600_v42, %v7233_v50  ;;  %v7236_v21 = vadd.f32 %v13613_v45, %v17910_v11  ;;  %v21652_v11 = vld [vmem:[#allocation73_spill] sm:$0xff]  ;;  %v8925_v45 = vld [vmem:[#allocation2 + $0x48] sm:$0xff] }
 0x725   :  { %v7053_v7 = vpop.f32.mrf.mxu1 }
 0x726   :  { %v7603_v31 = vpop.f32.mrf.mxu0  ;;  %v18244_v58 = vadd.f32 %v13679_v37, %v7236_v21  ;;  %v7234_v44 = vadd.f32 %v7053_v7, %v17914_v1  ;;  %v8926_v37 = vld [vmem:[#allocation2 + $0x50] sm:$0xff]  ;;  %v8928_v21 = vld [vmem:[#allocation2 + $0x68] sm:$0xff] }
 0x727   :  { %v13616_v28 = vpop.f32.mrf.mxu1  ;;  %13779 = vmatmul.mubr.msk.bf16.gmra.mxu1 %vm27_vm1, %v18242_v24 }
 0x728   :  { %v13682_v13 = vpop.f32.mrf.mxu0  ;;  %13845 = vmatmul.mubr.msk.bf16.gmra.mxu0 %vm27_vm1, %v8468_v54  ;;  %v18250_v42 = vadd.f32 %v7603_v31, %v7234_v44  ;;  %v7239_v50 = vadd.f32 %v13616_v28, %v21652_v11  ;;  %13850 = vmatprep.mubr.msk.bf16.mxu1 %vm27_vm1, %v8987_v63  ;;  %v8927_v54 = vld [vmem:[#allocation2 + $0x60] sm:$0xff]  ;;  %v8988_v28 = vpack.c.bf16 %v8926_v37, %v8925_v45  ;;  %v21655_v11 = vld [vmem:[#allocation44_spill] sm:$0xff] }
 0x729   :  { %13916 = vmatprep.mubr.msk.bf16.mxu0 %vm27_vm1, %v17928_v26  ;;  %v7066_v15 = vpop.f32.mrf.mxu1 }
 0x72a   :  { %21651 = vst [vmem:[#allocation84_spill] sm:$0xff] %v18250_v42  ;;  %v7616_v4 = vpop.f32.mrf.mxu0  ;;  %v18256_v1 = vadd.f32 %v13682_v13, %v7239_v50  ;;  %v7237_v34 = vadd.f32 %v7066_v15, %v21654_v47  ;;  %v8989_v50 = vpack.c.bf16 %v8928_v21, %v8927_v54  ;;  %v10218_v15 = vsel %vm535_vm0, %v18106_v23, 0  ;;  %v21656_v42 = vld [vmem:[#allocation48_spill] sm:$0xff]  ;;  %v8930_v54 = vld [vmem:[#allocation2 + $0x80] sm:$0xff] }
 0x72b   :  { %v13617_v16 = vpop.f32.mrf.mxu1 }
 0x72c   :  { %21653 = vst [vmem:[#allocation26_spill] sm:$0xff] %v18256_v1  ;;  %v13683_v60 = vpop.f32.mrf.mxu0  ;;  %v18259_v7 = vadd.f32 %v7616_v4, %v7237_v34  ;;  %v7240_v31 = vadd.f32 %v13617_v16, %v17926_v20  ;;  %v21657_v20 = vld [vmem:[#allocation91_spill] sm:$0xff] }
 0x72d   :  { %v7069_v44 = vpop.f32.mrf.mxu1 }
 0x72e   :  { %v7619_v63 = vpop.f32.mrf.mxu0  ;;  %v18262_v26 = vadd.f32 %v13683_v60, %v7240_v31  ;;  %v7238_v13 = vadd.f32 %v7069_v44, %v21655_v11  ;;  %v8929_v60 = vld [vmem:[#allocation2 + $0x78] sm:$0xff]  ;;  %v8931_v31 = vld [vmem:[#allocation2 + $0x90] sm:$0xff] }
 0x72f   :  { %v13620_v47 = vpop.f32.mrf.mxu1  ;;  %13851 = vmatmul.mubr.msk.bf16.vlgmr.msra.gmra.mxu1 %vm27_vm1, %v8988_v28  ;;  %v8932_v44 = vld [vmem:[#allocation2 + $0x98] sm:$0xff]  ;;  %v21659_v28 = vld [vmem:[#allocation71_spill] sm:$0xff] }
 0x730   :  { %v13686_v1 = vpop.f32.mrf.mxu0  ;;  %13917 = vmatmul.mubr.msk.bf16.vlgmr.msra.gmra.mxu0 %vm27_vm1, %v21656_v42  ;;  %v18270_v4 = vadd.f32 %v7619_v63, %v7238_v13  ;;  %v7243_v34 = vadd.f32 %v13620_v47, %v21657_v20  ;;  %13854 = vmatprep.mubr.msk.bf16.mxu1 %vm27_vm1, %v8989_v50  ;;  %v8991_v20 = vpack.c.bf16 %v8932_v44, %v8931_v31  ;;  %v8933_v31 = vld [vmem:[#allocation2 + $0xa8] sm:$0xff]  ;;  %v8934_v44 = vld [vmem:[#allocation2 + $0xb0] sm:$0xff] }
 0x731   :  { %13920 = vmatprep.mubr.msk.bf16.mxu0 %vm27_vm1, %v17955_v14  ;;  %v7082_v45 = vpop.f32.mrf.mxu1  ;;  %13981 = vmatpush3.bf16.msra.mxu1 %v10218_v15  ;;  %v8990_v14 = vpack.c.bf16 %v8930_v54, %v8929_v60  ;;  %v21660_v15 = vld [vmem:[#allocation70_spill] sm:$0xff] }
 0x732   :  { %v7632_v37 = vpop.f32.mrf.mxu0  ;;  %v18276_v23 = vadd.f32 %v13686_v1, %v7243_v34  ;;  %v7241_v16 = vadd.f32 %v7082_v45, %v17951_v6  ;;  %v21661_v45 = vld [vmem:[#allocation43_spill] sm:$0xff] }
 0x733   :  { %v13621_v21 = vpop.f32.mrf.mxu1 }
 0x734   :  { %21658 = vst [vmem:[#allocation60_spill] sm:$0xff] %v18276_v23  ;;  %v13687_v42 = vpop.f32.mrf.mxu0  ;;  %v18279_v63 = vadd.f32 %v7632_v37, %v7241_v16  ;;  %v7244_v11 = vadd.f32 %v13621_v21, %v21659_v28  ;;  %v21663_v37 = vld [vmem:[#allocation68_spill] sm:$0xff] }
 0x735   :  { %v7085_v13 = vpop.f32.mrf.mxu1 }
 0x736   :  { %v7635_v50 = vpop.f32.mrf.mxu0  ;;  %v18282_v47 = vadd.f32 %v13687_v42, %v7244_v11  ;;  %v7242_v1 = vadd.f32 %v7085_v13, %v21660_v15  ;;  %v8935_v13 = vld [vmem:[#allocation2 + $0xc0] sm:$0xff] }
 0x737   :  { %v13624_v34 = vpop.f32.mrf.mxu1  ;;  %13855 = vmatmul.mubr.msk.bf16.gmra.mxu1 %vm27_vm1, %v8990_v14  ;;  %v21665_v15 = vld [vmem:[#allocation87_spill] sm:$0xff] }
 0x738   :  { %v13690_v6 = vpop.f32.mrf.mxu0  ;;  %13921 = vmatmul.mubr.msk.bf16.gmra.mxu0 %vm27_vm1, %v21661_v45  ;;  %v18288_v23 = vadd.f32 %v7635_v50, %v7242_v1  ;;  %v7247_v16 = vadd.f32 %v13624_v34, %v21663_v37  ;;  %13858 = vmatprep.mubr.msk.bf16.mxu1 %vm27_vm1, %v8991_v20  ;;  %v8936_v50 = vld [vmem:[#allocation2 + $0xc8] sm:$0xff]  ;;  %v8992_v45 = vpack.c.bf16 %v8934_v44, %v8933_v31  ;;  %v21666_v37 = vld [vmem:[#allocation14_spill] sm:$0xff] }
 0x739   :  { %13924 = vmatprep.mubr.msk.bf16.mxu0 %vm27_vm1, %v17975_v17  ;;  %v7098_v60 = vpop.f32.mrf.mxu1 }
 0x73a   :  { %21662 = vst [vmem:[#allocation59_spill] sm:$0xff] %v18288_v23  ;;  %v7648_v54 = vpop.f32.mrf.mxu0  ;;  %v18294_v21 = vadd.f32 %v13690_v6, %v7247_v16  ;;  %v7245_v42 = vadd.f32 %v7098_v60, %v17971_v3  ;;  %v8993_v16 = vpack.c.bf16 %v8936_v50, %v8935_v13  ;;  %v21667_v60 = vld [vmem:[#allocation13_spill] sm:$0xff]  ;;  %v8937_v13 = vld [vmem:[#allocation2 + $0xd8] sm:$0xff]  ;;  %v8938_v50 = vld [vmem:[#allocation2 + $0xe0] sm:$0xff] }
 0x73b   :  { %v13625_v28 = vpop.f32.mrf.mxu1 }
 0x73c   :  { %21664 = vst [vmem:[#allocation85_spill] sm:$0xff] %v18294_v21  ;;  %v13691_v11 = vpop.f32.mrf.mxu0  ;;  %v18297_v14 = vadd.f32 %v7648_v54, %v7245_v42  ;;  %v7248_v1 = vadd.f32 %v13625_v28, %v21665_v15  ;;  %v21669_v54 = vld [vmem:[#allocation69_spill] sm:$0xff] }
 0x73d   :  { %v7101_v20 = vpop.f32.mrf.mxu1 }
 0x73e   :  { %v7651_v34 = vpop.f32.mrf.mxu0  ;;  %v18300_v17 = vadd.f32 %v13691_v11, %v7248_v1  ;;  %v7246_v6 = vadd.f32 %v7101_v20, %v21666_v37  ;;  %v8939_v20 = vld [vmem:[#allocation2 + $0xf0] sm:$0xff] }
 0x73f   :  { %v13628_v21 = vpop.f32.mrf.mxu1  ;;  %13859 = vmatmul.mubr.msk.bf16.gmra.mxu1 %vm27_vm1, %v8992_v45 }
 0x740   :  { %v13694_v3 = vpop.f32.mrf.mxu0  ;;  %13925 = vmatmul.mubr.msk.bf16.gmra.mxu0 %vm27_vm1, %v21667_v60  ;;  %v18306_v23 = vadd.f32 %v7651_v34, %v7246_v6  ;;  %v7251_v42 = vadd.f32 %v13628_v21, %v21669_v54  ;;  %13862 = vmatprep.mubr.msk.bf16.mxu1 %vm27_vm1, %v8993_v16  ;;  %v8940_v34 = vld [vmem:[#allocation2 + $0xf8] sm:$0xff]  ;;  %v21671_v21 = vld [vmem:[#allocation41_spill] sm:$0xff]  ;;  %v8994_v60 = vpack.c.bf16 %v8938_v50, %v8937_v13 }
 0x741   :  { %13928 = vmatprep.mubr.msk.bf16.mxu0 %vm27_vm1, %v17995_v39  ;;  %v7114_v31 = vpop.f32.mrf.mxu1  ;;  %v21672_v54 = vld [vmem:[#allocation42_spill] sm:$0xff] }
 0x742   :  { %21668 = vst [vmem:[#allocation58_spill] sm:$0xff] %v18306_v23  ;;  %v7664_v44 = vpop.f32.mrf.mxu0  ;;  %v18312_v28 = vadd.f32 %v13694_v3, %v7251_v42  ;;  %v7249_v11 = vadd.f32 %v7114_v31, %v17991_v22  ;;  %v8995_v42 = vpack.c.bf16 %v8940_v34, %v8939_v20  ;;  %v21673_v31 = vld [vmem:[#allocation67_spill] sm:$0xff]  ;;  %v8941_v20 = vld [vmem:[#allocation2 + $0x108] sm:$0xff]  ;;  %v8942_v34 = vld [vmem:[#allocation2 + $0x110] sm:$0xff] }
 0x743   :  { %v13629_v15 = vpop.f32.mrf.mxu1 }
 0x744   :  { %21670 = vst [vmem:[#allocation82_spill] sm:$0xff] %v18312_v28  ;;  %v13695_v1 = vpop.f32.mrf.mxu0  ;;  %v18315_v45 = vadd.f32 %v7664_v44, %v7249_v11  ;;  %v7252_v37 = vadd.f32 %v13629_v15, %v21671_v21  ;;  %v21675_v44 = vld [vmem:[#allocation15_spill] sm:$0xff] }
 0x745   :  { %v7117_v6 = vpop.f32.mrf.mxu1 }
 0x746   :  { %v7667_v16 = vpop.f32.mrf.mxu0  ;;  %v18318_v39 = vadd.f32 %v13695_v1, %v7252_v37  ;;  %v7250_v3 = vadd.f32 %v7117_v6, %v21672_v54  ;;  %v8943_v6 = vld [vmem:[#allocation2 + $0x120] sm:$0xff] }
 0x747   :  { %v13632_v28 = vpop.f32.mrf.mxu1  ;;  %13863 = vmatmul.mubr.msk.bf16.gmra.mxu1 %vm27_vm1, %v8994_v60 }
 0x748   :  { %v13698_v22 = vpop.f32.mrf.mxu0  ;;  %13929 = vmatmul.mubr.msk.bf16.gmra.mxu0 %vm27_vm1, %v21673_v31  ;;  %v18324_v23 = vadd.f32 %v7667_v16, %v7250_v3  ;;  %v7255_v11 = vadd.f32 %v13632_v28, %v21675_v44  ;;  %13866 = vmatprep.mubr.msk.bf16.mxu1 %vm27_vm1, %v8995_v42  ;;  %v8944_v16 = vld [vmem:[#allocation2 + $0x128] sm:$0xff]  ;;  %v8996_v31 = vpack.c.bf16 %v8942_v34, %v8941_v20 }
 0x749   :  { %13932 = vmatprep.mubr.msk.bf16.mxu0 %vm27_vm1, %v18015_v55  ;;  %v7130_v13 = vpop.f32.mrf.mxu1  ;;  %v21677_v28 = vld [vmem:[#allocation64_spill] sm:$0xff] }
 0x74a   :  { %21674 = vst [vmem:[#allocation34_spill] sm:$0xff] %v18324_v23  ;;  %v7680_v50 = vpop.f32.mrf.mxu0  ;;  %v18330_v15 = vadd.f32 %v13698_v22, %v7255_v11  ;;  %v7253_v1 = vadd.f32 %v7130_v13, %v18011_v62  ;;  %v21678_v44 = vld [vmem:[#allocation12_spill] sm:$0xff]  ;;  %v8997_v11 = vpack.c.bf16 %v8944_v16, %v8943_v6  ;;  %v21679_v13 = vld [vmem:[#allocation65_spill] sm:$0xff]  ;;  %v8945_v6 = vld [vmem:[#allocation2 + $0x138] sm:$0xff] }
 0x74b   :  { %v13633_v21 = vpop.f32.mrf.mxu1  ;;  %v8946_v16 = vld [vmem:[#allocation2 + $0x140] sm:$0xff] }
 0x74c   :  { %21676 = vst [vmem:[#allocation80_spill] sm:$0xff] %v18330_v15  ;;  %v13699_v37 = vpop.f32.mrf.mxu0  ;;  %v18333_v60 = vadd.f32 %v7680_v50, %v7253_v1  ;;  %v7256_v54 = vadd.f32 %v13633_v21, %v21677_v28  ;;  %v21681_v50 = vld [vmem:[#allocation11_spill] sm:$0xff] }
 0x74d   :  { %v7133_v3 = vpop.f32.mrf.mxu1 }
 0x74e   :  { %v7683_v42 = vpop.f32.mrf.mxu0  ;;  %v18336_v55 = vadd.f32 %v13699_v37, %v7256_v54  ;;  %v7254_v22 = vadd.f32 %v7133_v3, %v21678_v44  ;;  %v8947_v3 = vld [vmem:[#allocation2 + $0x150] sm:$0xff] }
 0x74f   :  { %v13636_v15 = vpop.f32.mrf.mxu1  ;;  %13867 = vmatmul.mubr.msk.bf16.gmra.mxu1 %vm27_vm1, %v8996_v31 }
 0x750   :  { %v13702_v62 = vpop.f32.mrf.mxu0  ;;  %13933 = vmatmul.mubr.msk.bf16.gmra.mxu0 %vm27_vm1, %v21679_v13  ;;  %v18342_v23 = vadd.f32 %v7683_v42, %v7254_v22  ;;  %v7259_v1 = vadd.f32 %v13636_v15, %v21681_v50  ;;  %13870 = vmatprep.mubr.msk.bf16.mxu1 %vm27_vm1, %v8997_v11  ;;  %v8948_v42 = vld [vmem:[#allocation2 + $0x158] sm:$0xff]  ;;  %v21684_v15 = vld [vmem:[#allocation36_spill] sm:$0xff]  ;;  %v8998_v13 = vpack.c.bf16 %v8946_v16, %v8945_v6  ;;  %v21686_v50 = vld [vmem:[#allocation23_spill] sm:$0xff] }
 0x751   :  { %13936 = vmatprep.mubr.msk.bf16.mxu0 %vm27_vm1, %v18035_v40  ;;  %v7146_v20 = vpop.f32.mrf.mxu1 }
 0x752   :  { %21680 = vst [vmem:[#allocation55_spill] sm:$0xff] %v18342_v23  ;;  %v7696_v34 = vpop.f32.mrf.mxu0  ;;  %v18348_v21 = vadd.f32 %v13702_v62, %v7259_v1  ;;  %v7257_v37 = vadd.f32 %v7146_v20, %v18031_v48  ;;  %v8999_v1 = vpack.c.bf16 %v8948_v42, %v8947_v3  ;;  %v21687_v20 = vld [vmem:[#allocation102_spill] sm:$0xff]  ;;  %v21692_v3 = vld [vmem:[#allocation40_spill] sm:$0xff] }
 0x753   :  { %v13637_v28 = vpop.f32.mrf.mxu1 }
 0x754   :  { %21682 = vst [vmem:[#allocation61_spill] sm:$0xff] %v18348_v21  ;;  %v13703_v54 = vpop.f32.mrf.mxu0  ;;  %v18351_v31 = vadd.f32 %v7696_v34, %v7257_v37  ;;  %v7260_v44 = vadd.f32 %v13637_v28, %v21684_v15  ;;  %v21689_v34 = vld [vmem:[#allocation39_spill] sm:$0xff]  ;;  %v8949_v15 = vld [vmem:[#allocation2 + $0x168] sm:$0xff] }
 0x755   :  { %v7149_v22 = vpop.f32.mrf.mxu1  ;;  %v21690_v28 = vld [vmem:[#allocation99_spill] sm:$0xff] }
 0x756   :  { %21683 = vst [vmem:[#allocation25_spill] sm:$0xff] %v18351_v31  ;;  %v7699_v11 = vpop.f32.mrf.mxu0  ;;  %v18354_v40 = vadd.f32 %v13703_v54, %v7260_v44  ;;  %v7258_v62 = vadd.f32 %v7149_v22, %v21686_v50  ;;  %v8950_v44 = vld [vmem:[#allocation2 + $0x170] sm:$0xff]  ;;  %v8951_v50 = vld [vmem:[#allocation2 + $0x180] sm:$0xff]  ;;  %v8953_v31 = vld [vmem:[#allocation2 + $0x198] sm:$0xff] }
 0x757   :  { %v13640_v21 = vpop.f32.mrf.mxu1  ;;  %13871 = vmatmul.mubr.msk.bf16.gmra.mxu1 %vm27_vm1, %v8998_v13 }
 0x758   :  { %21685 = vst [vmem:[#allocation81_spill] sm:$0xff] %v18354_v40  ;;  %v13706_v48 = vpop.f32.mrf.mxu0  ;;  %13937 = vmatmul.mubr.msk.bf16.gmra.mxu0 %vm27_vm1, %v21687_v20  ;;  %v18360_v23 = vadd.f32 %v7699_v11, %v7258_v62  ;;  %v7263_v37 = vadd.f32 %v13640_v21, %v21689_v34  ;;  %13874 = vmatprep.mubr.msk.bf16.mxu1 %vm27_vm1, %v8999_v1  ;;  %v8952_v11 = vld [vmem:[#allocation2 + $0x188] sm:$0xff]  ;;  %v21694_v21 = vld [vmem:[#allocation98_spill] sm:$0xff] }
 0x759   :  { %13940 = vmatprep.mubr.msk.bf16.mxu0 %vm27_vm1, %v21690_v28  ;;  %v7162_v6 = vpop.f32.mrf.mxu1  ;;  %v21696_v40 = vld [vmem:[#allocation38_spill] sm:$0xff] }
 0x75a   :  { %21688 = vst [vmem:[#allocation24_spill] sm:$0xff] %v18360_v23  ;;  %v7712_v16 = vpop.f32.mrf.mxu0  ;;  %v18366_v54 = vadd.f32 %v13706_v48, %v7263_v37  ;;  %v7261_v42 = vadd.f32 %v7162_v6, %v21692_v3  ;;  %v9000_v23 = vpack.c.bf16 %v8950_v44, %v8949_v15  ;;  %v9001_v37 = vpack.c.bf16 %v8952_v11, %v8951_v50  ;;  %v21697_v3 = vld [vmem:[#allocation100_spill] sm:$0xff]  ;;  %v8954_v15 = vld [vmem:[#allocation2 + $0x1a0] sm:$0xff] }
 0x75b   :  { %v13641_v22 = vpop.f32.mrf.mxu1  ;;  %v9504_v44 = vld [vmem:[#allocation2 + $0x1a1] sm:$0xff] }
 0x75c   :  { %21691 = vst [vmem:[#allocation89_spill] sm:$0xff] %v18366_v54  ;;  %v13707_v13 = vpop.f32.mrf.mxu0  ;;  %v18369_v62 = vadd.f32 %v7712_v16, %v7261_v42  ;;  %v7264_v20 = vadd.f32 %v13641_v22, %v21694_v21  ;;  %v21699_v42 = vld [vmem:[#allocation101_spill] sm:$0xff] }
 0x75d   :  { %v7165_v1 = vpop.f32.mrf.mxu1 }
 0x75e   :  { %21693 = vst [vmem:[#allocation54_spill] sm:$0xff] %v18369_v62  ;;  %v7715_v34 = vpop.f32.mrf.mxu0  ;;  %v18372_v28 = vadd.f32 %v13707_v13, %v7264_v20  ;;  %v7262_v48 = vadd.f32 %v7165_v1, %v21696_v40  ;;  %v9503_v40 = vld [vmem:[#allocation2 + $0x199] sm:$0xff]  ;;  %v9002_v1 = vpack.c.bf16 %v8954_v15, %v8953_v31  ;;  %v21703_v31 = vld [vmem:[#allocation104_spill] sm:$0xff] }
 0x75f   :  { %v13644_v54 = vpop.f32.mrf.mxu1  ;;  %13875 = vmatmul.mubr.msk.bf16.gmra.mxu1 %vm27_vm1, %v9000_v23 }
 0x760   :  { %21695 = vst [vmem:[#allocation30_spill] sm:$0xff] %v18372_v28  ;;  %v13710_v6 = vpop.f32.mrf.mxu0  ;;  %13941 = vmatmul.mubr.msk.bf16.gmra.mxu0 %vm27_vm1, %v21697_v3  ;;  %v18378_v16 = vadd.f32 %v7715_v34, %v7262_v48  ;;  %v7267_v22 = vadd.f32 %v13644_v54, %v21699_v42  ;;  %13878 = vmatprep.mubr.msk.bf16.mxu1 %vm27_vm1, %v9001_v37  ;;  %v8955_v48 = vld [vmem:[#allocation2 + $0x1e0] sm:$0xff]  ;;  %v8956_v54 = vld [vmem:[#allocation2 + $0x1e8] sm:$0xff] }
 0x761   :  { %13944 = vmatprep.mubr.msk.bf16.mxu0 %vm27_vm1, %v18075_v35  ;;  %v7178_v13 = vpop.f32.mrf.mxu1  ;;  %v9552_v34 = vpack.c.bf16 %v9504_v44, %v9503_v40  ;;  %v21701_v28 = vld [vmem:[#allocation103_spill] sm:$0xff]  ;;  %v8957_v44 = vld [vmem:[#allocation2 + $0x1f8] sm:$0xff] }
 0x762   :  { %21698 = vst [vmem:[#allocation32_spill] sm:$0xff] %v18378_v16  ;;  %v7728_v50 = vpop.f32.mrf.mxu0  ;;  %v18384_v11 = vadd.f32 %v13710_v6, %v7267_v22  ;;  %v7265_v23 = vadd.f32 %v7178_v13, %v18071_v53  ;;  %v9003_v6 = vpack.c.bf16 %v8956_v54, %v8955_v48  ;;  %v21705_v13 = vld [vmem:[#allocation105_spill] sm:$0xff]  ;;  %v8960_v48 = vld [vmem:[#allocation2 + $0x218] sm:$0xff] }
 0x763   :  { %v13645_v21 = vpop.f32.mrf.mxu1 }
 0x764   :  { %21700 = vst [vmem:[#allocation51_spill] sm:$0xff] %v18384_v11  ;;  %v13711_v20 = vpop.f32.mrf.mxu0  ;;  %v18387_v3 = vadd.f32 %v7728_v50, %v7265_v23  ;;  %v7268_v37 = vadd.f32 %v13645_v21, %v18073_v43  ;;  %v8958_v23 = vld [vmem:[#allocation2 + $0x200] sm:$0xff] }
 0x765   :  { %v7181_v35 = vpop.f32.mrf.mxu1  ;;  %v9507_v21 = vld [vmem:[#allocation2 + $0x1f9] sm:$0xff] }
 0x766   :  { %v7731_v42 = vpop.f32.mrf.mxu0  ;;  %v18390_v16 = vadd.f32 %v13711_v20, %v7268_v37  ;;  %v7266_v62 = vadd.f32 %v7181_v35, %v21701_v28  ;;  %v9508_v20 = vld [vmem:[#allocation2 + $0x201] sm:$0xff]  ;;  %v21706_v37 = vld [vmem:[#allocation106_spill] sm:$0xff] }
 0x767   :  { %v13648_v22 = vpop.f32.mrf.mxu1  ;;  %13879 = vmatmul.mubr.msk.bf16.gmra.mxu1 %vm27_vm1, %v9002_v1 }
 0x768   :  { %v13714_v11 = vpop.f32.mrf.mxu0  ;;  %13945 = vmatmul.mubr.msk.bf16.gmra.mxu0 %vm27_vm1, %v9552_v34  ;;  %v18395_v53 = vadd.f32 %v7731_v42, %v7266_v62  ;;  %v7271_v15 = vadd.f32 %v13648_v22, %v21703_v31  ;;  %13882 = vmatprep.mubr.msk.bf16.mxu1 %vm27_vm1, %v9003_v6  ;;  %v8959_v34 = vld [vmem:[#allocation2 + $0x210] sm:$0xff]  ;;  %v9004_v6 = vpack.c.bf16 %v8958_v23, %v8957_v44  ;;  %v8961_v23 = vld [vmem:[#allocation2 + $0x228] sm:$0xff] }
 0x769   :  { %13948 = vmatprep.mubr.msk.bf16.mxu0 %vm27_vm1, %v18091_v18  ;;  %v7194_v43 = vpop.f32.mrf.mxu1  ;;  %v9554_v22 = vpack.c.bf16 %v9508_v20, %v9507_v21 }
 0x76a   :  { %21702 = vst [vmem:[#allocation52_spill] sm:$0xff] %v18395_v53  ;;  %v7744_v40 = vpop.f32.mrf.mxu0  ;;  %v18401_v28 = vadd.f32 %v13714_v11, %v7271_v15  ;;  %v7269_v50 = vadd.f32 %v7194_v43, %v21705_v13  ;;  %v21707_v11 = vld [vmem:[#allocation29_spill] sm:$0xff]  ;;  %v9005_v43 = vpack.c.bf16 %v8960_v48, %v8959_v34 }
 0x76b   :  { %v13649_v1 = vpop.f32.mrf.mxu1  ;;  %v9512_v34 = vld [vmem:[#allocation2 + $0x231] sm:$0xff] }
 0x76c   :  { %21704 = vst [vmem:[#allocation53_spill] sm:$0xff] %v18401_v28  ;;  %v13715_v62 = vpop.f32.mrf.mxu0  ;;  %v18404_v54 = vadd.f32 %v7744_v40, %v7269_v50  ;;  %v7272_v35 = vadd.f32 %v13649_v1, %v21706_v37  ;;  %v8962_v1 = vld [vmem:[#allocation2 + $0x230] sm:$0xff] }
 0x76d   :  { %v7197_v42 = vpop.f32.mrf.mxu1 }
 0x76e   :  { %v7747_v18 = vpop.f32.mrf.mxu0  ;;  %v18407_v31 = vadd.f32 %v13715_v62, %v7272_v35  ;;  %v7270_v15 = vadd.f32 %v7197_v42, %v21707_v11  ;;  %v9511_v62 = vld [vmem:[#allocation2 + $0x229] sm:$0xff]  ;;  %v8963_v35 = vld [vmem:[#allocation2 + $0x240] sm:$0xff] }
 0x76f   :  { %v13720_v13 = vpop.f32.mrf.mxu1  ;;  %13883 = vmatmul.mubr.msk.bf16.gmra.mxu1 %vm27_vm1, %v9004_v6  ;;  %v8964_v42 = vld [vmem:[#allocation2 + $0x248] sm:$0xff]  ;;  %v9556_v11 = vpack.c.bf16 %v9512_v34, %v9511_v62  ;;  %v9515_v62 = vld [vmem:[#allocation2 + $0x259] sm:$0xff] }
 0x770   :  { %v13786_v28 = vpop.f32.mrf.mxu0  ;;  %13949 = vmatmul.mubr.msk.bf16.gmra.mxu0 %vm27_vm1, %v9554_v22  ;;  %v18412_v53 = vadd.f32 %v7747_v18, %v7270_v15  ;;  %v8311_v40 = vadd.f32 %v13720_v13, %v18110_v38  ;;  %13886 = vmatprep.mubr.msk.bf16.mxu1 %vm27_vm1, %v9005_v43  ;;  %v9006_v22 = vpack.c.bf16 %v8962_v1, %v8961_v23  ;;  %v8965_v23 = vld [vmem:[#allocation2 + $0x258] sm:$0xff]  ;;  %v8966_v1 = vld [vmem:[#allocation2 + $0x260] sm:$0xff] }
 0x771   :  { %13952 = vmatprep.mubr.msk.bf16.mxu0 %vm27_vm1, %v18116_v56  ;;  %v8054_v44 = vpop.f32.mrf.mxu1  ;;  %v9516_v34 = vld [vmem:[#allocation2 + $0x261] sm:$0xff] }
 0x772   :  { %v8604_v50 = vpop.f32.mrf.mxu0  ;;  %v18418_v21 = vadd.f32 %v13786_v28, %v8311_v40  ;;  %v8309_v20 = vadd.f32 %v8054_v44, %v18113_v59  ;;  %v9007_v59 = vpack.c.bf16 %v8964_v42, %v8963_v35  ;;  %v8967_v35 = vld [vmem:[#allocation2 + $0x270] sm:$0xff]  ;;  %v8968_v42 = vld [vmem:[#allocation2 + $0x278] sm:$0xff] }
 0x773   :  { %v13721_v48 = vpop.f32.mrf.mxu1 }
 0x774   :  { %v13787_v37 = vpop.f32.mrf.mxu0  ;;  %v18421_v38 = vadd.f32 %v8604_v50, %v8309_v20  ;;  %v8312_v18 = vadd.f32 %v13721_v48, %v18118_v12 }
 0x775   :  { %v8057_v6 = vpop.f32.mrf.mxu1 }
 0x776   :  { %v8607_v56 = vpop.f32.mrf.mxu0  ;;  %v18424_v15 = vadd.f32 %v13787_v37, %v8312_v18  ;;  %v8310_v28 = vadd.f32 %v8057_v6, %v18125_v27 }
 0x777   :  { %v13724_v43 = vpop.f32.mrf.mxu1  ;;  %13887 = vmatmul.mubr.msk.bf16.gmra.mxu1 %vm27_vm1, %v9006_v22  ;;  %v9558_v22 = vpack.c.bf16 %v9516_v34, %v9515_v62  ;;  %v9520_v62 = vld [vmem:[#allocation2 + $0x291] sm:$0xff] }
 0x778   :  { %v13790_v13 = vpop.f32.mrf.mxu0  ;;  %13953 = vmatmul.mubr.msk.bf16.gmra.mxu0 %vm27_vm1, %v9556_v11  ;;  %v18429_v40 = vadd.f32 %v8607_v56, %v8310_v28  ;;  %v8315_v44 = vadd.f32 %v13724_v43, %v18131_v29  ;;  %13890 = vmatprep.mubr.msk.bf16.mxu1 %vm27_vm1, %v9007_v59  ;;  %v9008_v56 = vpack.c.bf16 %v8966_v1, %v8965_v23  ;;  %v9519_v1 = vld [vmem:[#allocation2 + $0x289] sm:$0xff] }
 0x779   :  { %13956 = vmatprep.mubr.msk.bf16.mxu0 %vm27_vm1, %v18137_v32  ;;  %v8070_v12 = vpop.f32.mrf.mxu1 }
 0x77a   :  { %v8620_v50 = vpop.f32.mrf.mxu0  ;;  %v18435_v27 = vadd.f32 %v13790_v13, %v8315_v44  ;;  %v8313_v20 = vadd.f32 %v8070_v12, %v18134_v46  ;;  %v9009_v46 = vpack.c.bf16 %v8968_v42, %v8967_v35  ;;  %v8972_v35 = vld [vmem:[#allocation2 + $0x2a8] sm:$0xff] }
 0x77b   :  { %v13725_v48 = vpop.f32.mrf.mxu1 }
 0x77c   :  { %v13791_v37 = vpop.f32.mrf.mxu0  ;;  %v18438_v29 = vadd.f32 %v8620_v50, %v8313_v20  ;;  %v8316_v18 = vadd.f32 %v13725_v48, %v18139_v9  ;;  %v8969_v50 = vld [vmem:[#allocation2 + $0x288] sm:$0xff]  ;;  %v8970_v20 = vld [vmem:[#allocation2 + $0x290] sm:$0xff] }
 0x77d   :  { %v8073_v6 = vpop.f32.mrf.mxu1 }
 0x77e   :  { %v8623_v32 = vpop.f32.mrf.mxu0  ;;  %v18441_v11 = vadd.f32 %v13791_v37, %v8316_v18  ;;  %v8314_v28 = vadd.f32 %v8073_v6, %v18146_v49  ;;  %v8971_v37 = vld [vmem:[#allocation2 + $0x2a0] sm:$0xff]  ;;  %v9010_v6 = vpack.c.bf16 %v8970_v20, %v8969_v50 }
 0x77f   :  { %v13728_v59 = vpop.f32.mrf.mxu1  ;;  %13891 = vmatmul.mubr.msk.bf16.gmra.mxu1 %vm27_vm1, %v9008_v56  ;;  %v8974_v50 = vld [vmem:[#allocation2 + $0x2c0] sm:$0xff] }
 0x780   :  { %v13794_v43 = vpop.f32.mrf.mxu0  ;;  %13957 = vmatmul.mubr.msk.bf16.gmra.mxu0 %vm27_vm1, %v9558_v22  ;;  %v18446_v13 = vadd.f32 %v8623_v32, %v8314_v28  ;;  %v8319_v44 = vadd.f32 %v13728_v59, %v18152_v25  ;;  %13894 = vmatprep.mubr.msk.bf16.mxu1 %vm27_vm1, %v9009_v46  ;;  %v9560_v32 = vpack.c.bf16 %v9520_v62, %v9519_v1  ;;  %v9524_v20 = vld [vmem:[#allocation2 + $0x2c1] sm:$0xff] }
 0x781   :  { %13960 = vmatprep.mubr.msk.bf16.mxu0 %vm27_vm1, %v18158_v2  ;;  %v8086_v9 = vpop.f32.mrf.mxu1 }
 0x782   :  { %v8636_v12 = vpop.f32.mrf.mxu0  ;;  %v18452_v49 = vadd.f32 %v13794_v43, %v8319_v44  ;;  %v8317_v23 = vadd.f32 %v8086_v9, %v18155_v19  ;;  %v9011_v19 = vpack.c.bf16 %v8972_v35, %v8971_v37  ;;  %v8973_v9 = vld [vmem:[#allocation2 + $0x2b8] sm:$0xff] }
 0x783   :  { %v13729_v34 = vpop.f32.mrf.mxu1 }
 0x784   :  { %v13795_v48 = vpop.f32.mrf.mxu0  ;;  %v18455_v25 = vadd.f32 %v8636_v12, %v8317_v23  ;;  %v8320_v42 = vadd.f32 %v13729_v34, %v18160_v0  ;;  %v9523_v23 = vld [vmem:[#allocation2 + $0x2b9] sm:$0xff]  ;;  %v8975_v34 = vld [vmem:[#allocation2 + $0x2d0] sm:$0xff] }
 0x785   :  { %v8089_v18 = vpop.f32.mrf.mxu1 }
 0x786   :  { %v8639_v2 = vpop.f32.mrf.mxu0  ;;  %v18458_v56 = vadd.f32 %v13795_v48, %v8320_v42  ;;  %v8318_v22 = vadd.f32 %v8089_v18, %v18167_v33  ;;  %v8976_v48 = vld [vmem:[#allocation2 + $0x2d8] sm:$0xff]  ;;  %v9012_v42 = vpack.c.bf16 %v8974_v50, %v8973_v9  ;;  %v9562_v18 = vpack.c.bf16 %v9524_v20, %v9523_v23  ;;  %v8978_v9 = vld [vmem:[#allocation2 + $0x2f0] sm:$0xff] }
 0x787   :  { %v13732_v28 = vpop.f32.mrf.mxu1  ;;  %13895 = vmatmul.mubr.msk.bf16.gmra.mxu1 %vm27_vm1, %v9010_v6  ;;  %v9528_v50 = vld [vmem:[#allocation2 + $0x2f1] sm:$0xff] }
 0x788   :  { %v13798_v46 = vpop.f32.mrf.mxu0  ;;  %13961 = vmatmul.mubr.msk.bf16.gmra.mxu0 %vm27_vm1, %v9560_v32  ;;  %v18463_v59 = vadd.f32 %v8639_v2, %v8318_v22  ;;  %v8323_v43 = vadd.f32 %v13732_v28, %v18173_v51  ;;  %13898 = vmatprep.mubr.msk.bf16.mxu1 %vm27_vm1, %v9011_v19 }
 0x789   :  { %13964 = vmatprep.mubr.msk.bf16.mxu0 %vm27_vm1, %v18179_v5  ;;  %v8102_v0 = vpop.f32.mrf.mxu1 }
 0x78a   :  { %v8652_v44 = vpop.f32.mrf.mxu0  ;;  %v18469_v33 = vadd.f32 %v13798_v46, %v8323_v43  ;;  %v8321_v12 = vadd.f32 %v8102_v0, %v18176_v41  ;;  %v9013_v41 = vpack.c.bf16 %v8976_v48, %v8975_v34  ;;  %v21708_v0 = vld [vmem:[#allocation27_spill] sm:$0xff] }
 0x78b   :  { %v13733_v1 = vpop.f32.mrf.mxu1 }
 0x78c   :  { %v13799_v62 = vpop.f32.mrf.mxu0  ;;  %v18472_v51 = vadd.f32 %v8652_v44, %v8321_v12  ;;  %v8324_v37 = vadd.f32 %v13733_v1, %v18181_v61  ;;  %v9527_v12 = vld [vmem:[#allocation2 + $0x2e9] sm:$0xff] }
 0x78d   :  { %v8105_v35 = vpop.f32.mrf.mxu1  ;;  %v8980_v1 = vld [vmem:[#allocation2 + $0x308] sm:$0xff] }
 0x78e   :  { %v8655_v5 = vpop.f32.mrf.mxu0  ;;  %v18475_v2 = vadd.f32 %v13799_v62, %v8324_v37  ;;  %v8322_v6 = vadd.f32 %v8105_v35, %v18188_v36  ;;  %v8977_v36 = vld [vmem:[#allocation2 + $0x2e8] sm:$0xff]  ;;  %v21709_v62 = vld [vmem:[#allocation37_spill] sm:$0xff]  ;;  %v9564_v35 = vpack.c.bf16 %v9528_v50, %v9527_v12  ;;  %v8982_v50 = vld [vmem:[#allocation2 + $0x320] sm:$0xff] }
 0x78f   :  { %v13736_v32 = vpop.f32.mrf.mxu1  ;;  %13899 = vmatmul.mubr.msk.bf16.gmra.mxu1 %vm27_vm1, %v9012_v42  ;;  %v9014_v37 = vpack.c.bf16 %v8978_v9, %v8977_v36  ;;  %v21710_v42 = vld [vmem:[#allocation35_spill] sm:$0xff] }
 0x790   :  { %v13802_v22 = vpop.f32.mrf.mxu0  ;;  %13965 = vmatmul.mubr.msk.bf16.gmra.mxu0 %vm27_vm1, %v9562_v18  ;;  %v18480_v19 = vadd.f32 %v8655_v5, %v8322_v6  ;;  %v8327_v28 = vadd.f32 %v13736_v32, %v18194_v10  ;;  %13902 = vmatprep.mubr.msk.bf16.mxu1 %vm27_vm1, %v9013_v41  ;;  %v8979_v10 = vld [vmem:[#allocation2 + $0x300] sm:$0xff] }
 0x791   :  { %13968 = vmatprep.mubr.msk.bf16.mxu0 %vm27_vm1, %v18200_v30  ;;  %v8118_v61 = vpop.f32.mrf.mxu1  ;;  %v9015_v6 = vpack.c.bf16 %v8980_v1, %v8979_v10 }
 0x792   :  { %v18486_v46 = vpop.f32.mrf.mxu0  ;;  %v18488_v43 = vadd.f32 %v13802_v22, %v8327_v28  ;;  %v18491_v44 = vadd.f32 %v8118_v61, %v21708_v0  ;;  %v21711_v22 = vld [vmem:[#allocation63_spill] sm:$0xff]  ;;  %v8981_v0 = vld [vmem:[#allocation2 + $0x318] sm:$0xff] }
 0x793   :  { %v13737_v23 = vpop.f32.mrf.mxu1 }
 0x794   :  { %v13803_v20 = vpop.f32.mrf.mxu0  ;;  %v8328_v34 = vadd.f32 %v13737_v23, %v21709_v62  ;;  %v9531_v23 = vld [vmem:[#allocation2 + $0x319] sm:$0xff]  ;;  %v8983_v62 = vld [vmem:[#allocation2 + $0x330] sm:$0xff] }
 0x795   :  { %v8121_v48 = vpop.f32.mrf.mxu1 }
 0x796   :  { %v18494_v30 = vpop.f32.mrf.mxu0  ;;  %v18496_v5 = vadd.f32 %v13803_v20, %v8328_v34  ;;  %v18499_v18 = vadd.f32 %v8121_v48, %v21710_v42  ;;  %v9532_v20 = vld [vmem:[#allocation2 + $0x321] sm:$0xff]  ;;  %v8984_v34 = vld [vmem:[#allocation2 + $0x338] sm:$0xff]  ;;  %v9016_v42 = vpack.c.bf16 %v8982_v50, %v8981_v0  ;;  %v8986_v0 = vld [vmem:[#allocation2 + $0x350] sm:$0xff] }
 0x797   :  { %v13740_v41 = vpop.f32.mrf.mxu1  ;;  %13903 = vmatmul.mubr.msk.bf16.gmra.mxu1 %vm27_vm1, %v9014_v37  ;;  %v21714_v48 = vld [vmem:[#allocation62_spill] sm:$0xff]  ;;  %v9535_v50 = vld [vmem:[#allocation2 + $0x349] sm:$0xff] }
 0x798   :  { %v13806_v32 = vpop.f32.mrf.mxu0  ;;  %13969 = vmatmul.mubr.msk.bf16.gmra.mxu0 %vm27_vm1, %v9564_v35  ;;  %v8331_v28 = vadd.f32 %v13740_v41, %v21711_v22  ;;  %13906 = vmatprep.mubr.msk.bf16.mxu1 %vm27_vm1, %v9015_v6  ;;  %v9566_v6 = vpack.c.bf16 %v9532_v20, %v9531_v23  ;;  %v9536_v23 = vld [vmem:[#allocation2 + $0x351] sm:$0xff] }
 0x799   :  { %13972 = vmatprep.mubr.msk.bf16.mxu0 %vm27_vm1, %v18221_v8  ;;  %v8134_v61 = vpop.f32.mrf.mxu1 }
 0x79a   :  { %v18507_v36 = vpop.f32.mrf.mxu0  ;;  %v18509_v9 = vadd.f32 %v13806_v32, %v8331_v28  ;;  %v18512_v12 = vadd.f32 %v8134_v61, %v18218_v57  ;;  %v21717_v32 = vld [vmem:[#allocation86_spill] sm:$0xff]  ;;  %v9017_v57 = vpack.c.bf16 %v8984_v34, %v8983_v62 }
 0x79b   :  { %21712 = vst [vmem:[#allocation56_spill] sm:$0xff] %v18507_v36  ;;  %v13741_v10 = vpop.f32.mrf.mxu1  ;;  %v21719_v36 = vld [vmem:[#allocation28_spill] sm:$0xff] }
 0x79c   :  { %21713 = vst [vmem:[#allocation57_spill] sm:$0xff] %v18509_v9  ;;  %v13807_v1 = vpop.f32.mrf.mxu0  ;;  %v8332_v37 = vadd.f32 %v13741_v10, %v21714_v48  ;;  %v8985_v9 = vld [vmem:[#allocation2 + $0x348] sm:$0xff] }
 0x79d   :  { %v8137_v35 = vpop.f32.mrf.mxu1 }
 0x79e   :  { %v18515_v8 = vpop.f32.mrf.mxu0  ;;  %v18517_v41 = vadd.f32 %v13807_v1, %v8332_v37  ;;  %v18520_v22 = vadd.f32 %v8137_v35, %v21717_v32  ;;  %v9018_v35 = vpack.c.bf16 %v8986_v0, %v8985_v9  ;;  %v21722_v9 = vld [vmem:[#allocation26_spill] sm:$0xff] }
 0x79f   :  { %21715 = vst [vmem:[#allocation31_spill] sm:$0xff] %v18515_v8  ;;  %v13744_v28 = vpop.f32.mrf.mxu1  ;;  %13907 = vmatmul.mubr.msk.bf16.gmra.mxu1 %vm27_vm1, %v9016_v42  ;;  %v10023_v42 = vld [vmem:[#allocation2 + $0x32] sm:$0xff]  ;;  %v21721_v8 = vld [vmem:[#allocation84_spill] sm:$0xff] }
 0x7a0   :  { %21716 = vst [vmem:[#allocation21_spill] sm:$0xff] %v18517_v41  ;;  %21718 = vst [vmem:[#allocation90_spill] sm:$0xff] %v18520_v22  ;;  %v13810_v61 = vpop.f32.mrf.mxu0  ;;  %13973 = vmatmul.mubr.msk.bf16.gmra.mxu0 %vm27_vm1, %v9566_v6  ;;  %v8335_v10 = vadd.f32 %v13744_v28, %v21719_v36  ;;  %13910 = vmatprep.mubr.msk.bf16.mxu1 %vm27_vm1, %v9017_v57  ;;  %v10024_v6 = vld [vmem:[#allocation2 + $0x3a] sm:$0xff]  ;;  %v9568_v36 = vpack.c.bf16 %v9536_v23, %v9535_v50 }
 0x7a1   :  { %13976 = vmatprep.mubr.msk.bf16.mxu0 %vm27_vm1, %v18242_v24  ;;  %v8150_v20 = vpop.f32.mrf.mxu1 }
 0x7a2   :  { %v8700_v1 = vpop.f32.mrf.mxu0  ;;  %v18528_v62 = vadd.f32 %v13810_v61, %v8335_v10  ;;  %v8333_v34 = vadd.f32 %v8150_v20, %v18239_v52  ;;  %v10087_v61 = vpack.c.bf16 %v10024_v6, %v10023_v42  ;;  %v10028_v42 = vld [vmem:[#allocation2 + $0x6a] sm:$0xff] }
 0x7a3   :  { %v13745_v48 = vpop.f32.mrf.mxu1 }
 0x7a4   :  { %21720 = vst [vmem:[#allocation83_spill] sm:$0xff] %v18528_v62  ;;  %v13811_v37 = vpop.f32.mrf.mxu0  ;;  %v18531_v32 = vadd.f32 %v8700_v1, %v8333_v34  ;;  %v8336_v57 = vadd.f32 %v13745_v48, %v18244_v58  ;;  %v21723_v58 = vmov 1.0   ;;  %v10025_v1 = vld [vmem:[#allocation2 + $0x4a] sm:$0xff]  ;;  %v10026_v34 = vld [vmem:[#allocation2 + $0x52] sm:$0xff] }
 0x7a5   :  { %v8153_v24 = vpop.f32.mrf.mxu1 }
 0x7a6   :  { %v8703_v28 = vpop.f32.mrf.mxu0  ;;  %v18534_v41 = vadd.f32 %v13811_v37, %v8336_v57  ;;  %v8334_v22 = vadd.f32 %v8153_v24, %v21721_v8  ;;  %v10088_v24 = vpack.c.bf16 %v10026_v34, %v10025_v1  ;;  %v10029_v34 = vld [vmem:[#allocation2 + $0x7a] sm:$0xff] }
 0x7a7   :  { %v13748_v10 = vpop.f32.mrf.mxu1  ;;  %13911 = vmatmul.mubr.msk.bf16.gmra.mxu1 %vm27_vm1, %v9018_v35  ;;  %v10027_v35 = vld [vmem:[#allocation2 + $0x62] sm:$0xff] }
 0x7a8   :  { %v13814_v62 = vpop.f32.mrf.mxu0  ;;  %13977 = vmatmul.mubr.msk.bf16.gmra.mxu0 %vm27_vm1, %v9568_v36  ;;  %v18539_v52 = vadd.f32 %v8703_v28, %v8334_v22  ;;  %v8339_v0 = vadd.f32 %v13748_v10, %v21722_v9  ;;  %13982 = vmatprep.mubr.msk.bf16.mxu1 %vm27_vm1, %v10087_v61  ;;  %v10089_v61 = vpack.c.bf16 %v10028_v42, %v10027_v35  ;;  %v10031_v35 = vld [vmem:[#allocation2 + $0x92] sm:$0xff]  ;;  %v10032_v42 = vld [vmem:[#allocation2 + $0x9a] sm:$0xff] }
 0x7a9   :  { %10639 = vmatprep.mubr.f32.mxu0 %v21723_v58  ;;  %v8166_v50 = vpop.f32.mrf.mxu1  ;;  %v21728_v58 = vld [vmem:[#allocation85_spill] sm:$0xff] }
 0x7aa   :  { %v8716_v23 = vpop.f32.mrf.mxu0  ;;  %v18544_v20 = vadd.f32 %v13814_v62, %v8339_v0  ;;  %v8337_v8 = vadd.f32 %v8166_v50, %v18259_v7  ;;  %v21724_v0 = vld [vmem:[#allocation60_spill] sm:$0xff] }
 0x7ab   :  { %v13749_v48 = vpop.f32.mrf.mxu1 }
 0x7ac   :  { %v13815_v37 = vpop.f32.mrf.mxu0  ;;  %v18547_v22 = vadd.f32 %v8716_v23, %v8337_v8  ;;  %v8340_v6 = vadd.f32 %v13749_v48, %v18262_v26  ;;  %v10030_v48 = vld [vmem:[#allocation2 + $0x82] sm:$0xff] }
 0x7ad   :  { %v8169_v36 = vpop.f32.mrf.mxu1 }
 0x7ae   :  { %v8719_v57 = vpop.f32.mrf.mxu0  ;;  %v18550_v28 = vadd.f32 %v13815_v37, %v8340_v6  ;;  %v8338_v62 = vadd.f32 %v8169_v36, %v18270_v4 }
 0x7af   :  { %v13752_v10 = vpop.f32.mrf.mxu1  ;;  %13983 = vmatmul.mubr.msk.bf16.vlgmr.msra.gmra.mxu1 %vm27_vm1, %v10088_v24 }
 0x7b0   :  { %v13818_v7 = vpop.f32.mrf.mxu0  ;;  %v18554_v9 = vadd.f32 %v8719_v57, %v8338_v62  ;;  %v8343_v50 = vadd.f32 %v13752_v10, %v21724_v0  ;;  %13986 = vmatprep.mubr.msk.bf16.mxu1 %vm27_vm1, %v10089_v61  ;;  %v10090_v62 = vpack.c.bf16 %v10030_v48, %v10029_v34  ;;  %v21726_v10 = vld [vmem:[#allocation59_spill] sm:$0xff]  ;;  %v10091_v0 = vpack.c.bf16 %v10032_v42, %v10031_v35  ;;  %v10033_v48 = vld [vmem:[#allocation2 + $0xaa] sm:$0xff] }
 0x7b1   :  { %v8182_v23 = vpop.f32.mrf.mxu1  ;;  %v10035_v42 = vld [vmem:[#allocation2 + $0xc2] sm:$0xff] }
 0x7b2   :  { %v8732_v26 = vpop.f32.mrf.mxu0  ;;  %v18558_v8 = vadd.f32 %v13818_v7, %v8343_v50  ;;  %v8341_v1 = vadd.f32 %v8182_v23, %v18279_v63 }
 0x7b3   :  { %v13753_v4 = vpop.f32.mrf.mxu1 }
 0x7b4   :  { %21725 = vst [vmem:[#allocation92_spill] sm:$0xff] %v18558_v8  ;;  %v13819_v37 = vpop.f32.mrf.mxu0  ;;  %v18561_v6 = vadd.f32 %v8732_v26, %v8341_v1  ;;  %v8344_v36 = vadd.f32 %v13753_v4, %v18282_v47  ;;  %v10034_v4 = vld [vmem:[#allocation2 + $0xb2] sm:$0xff] }
 0x7b5   :  { %v8185_v57 = vpop.f32.mrf.mxu1 }
 0x7b6   :  { %v8735_v24 = vpop.f32.mrf.mxu0  ;;  %v18564_v61 = vadd.f32 %v13819_v37, %v8344_v36  ;;  %v8342_v7 = vadd.f32 %v8185_v57, %v21726_v10  ;;  %v10036_v36 = vld [vmem:[#allocation2 + $0xca] sm:$0xff]  ;;  %v10092_v10 = vpack.c.bf16 %v10034_v4, %v10033_v48  ;;  %v10037_v4 = vld [vmem:[#allocation2 + $0xda] sm:$0xff] }
 0x7b7   :  { %v13756_v50 = vpop.f32.mrf.mxu1  ;;  %13987 = vmatmul.mubr.msk.bf16.gmra.mxu1 %vm27_vm1, %v10090_v62 }
 0x7b8   :  { %v13822_v63 = vpop.f32.mrf.mxu0  ;;  %v18568_v23 = vadd.f32 %v8735_v24, %v8342_v7  ;;  %v8347_v8 = vadd.f32 %v13756_v50, %v21728_v58  ;;  %13990 = vmatprep.mubr.msk.bf16.mxu1 %vm27_vm1, %v10091_v0  ;;  %v21730_v0 = vld [vmem:[#allocation58_spill] sm:$0xff]  ;;  %v10093_v50 = vpack.c.bf16 %v10036_v36, %v10035_v42 }
 0x7b9   :  { %v8198_v26 = vpop.f32.mrf.mxu1  ;;  %v10039_v36 = vld [vmem:[#allocation2 + $0xf2] sm:$0xff] }
 0x7ba   :  { %21727 = vst [vmem:[#allocation49_spill] sm:$0xff] %v18568_v23  ;;  %v8748_v47 = vpop.f32.mrf.mxu0  ;;  %v18572_v1 = vadd.f32 %v13822_v63, %v8347_v8  ;;  %v8345_v34 = vadd.f32 %v8198_v26, %v18297_v14 }
 0x7bb   :  { %v13757_v37 = vpop.f32.mrf.mxu1 }
 0x7bc   :  { %21729 = vst [vmem:[#allocation50_spill] sm:$0xff] %v18572_v1  ;;  %v13823_v35 = vpop.f32.mrf.mxu0  ;;  %v18575_v57 = vadd.f32 %v8748_v47, %v8345_v34  ;;  %v8348_v24 = vadd.f32 %v13757_v37, %v18300_v17  ;;  %v21732_v1 = vld [vmem:[#allocation82_spill] sm:$0xff]  ;;  %v10038_v37 = vld [vmem:[#allocation2 + $0xe2] sm:$0xff] }
 0x7bd   :  { %v8201_v62 = vpop.f32.mrf.mxu1 }
 0x7be   :  { %v8751_v58 = vpop.f32.mrf.mxu0  ;;  %v18578_v7 = vadd.f32 %v13823_v35, %v8348_v24  ;;  %v8346_v8 = vadd.f32 %v8201_v62, %v21730_v0  ;;  %v10040_v24 = vld [vmem:[#allocation2 + $0xfa] sm:$0xff]  ;;  %v10094_v0 = vpack.c.bf16 %v10038_v37, %v10037_v4  ;;  %v10041_v37 = vld [vmem:[#allocation2 + $0x10a] sm:$0xff] }
 0x7bf   :  { %v13760_v63 = vpop.f32.mrf.mxu1  ;;  %13991 = vmatmul.mubr.msk.bf16.gmra.mxu1 %vm27_vm1, %v10092_v10 }
 0x7c0   :  { %v13826_v14 = vpop.f32.mrf.mxu0  ;;  %v18582_v26 = vadd.f32 %v8751_v58, %v8346_v8  ;;  %v8351_v23 = vadd.f32 %v13760_v63, %v21732_v1  ;;  %13994 = vmatprep.mubr.msk.bf16.mxu1 %vm27_vm1, %v10093_v50  ;;  %v21734_v50 = vld [vmem:[#allocation34_spill] sm:$0xff]  ;;  %v10095_v63 = vpack.c.bf16 %v10040_v24, %v10039_v36  ;;  %v10043_v24 = vld [vmem:[#allocation2 + $0x122] sm:$0xff] }
 0x7c1   :  { %v8214_v47 = vpop.f32.mrf.mxu1 }
 0x7c2   :  { %21731 = vst [vmem:[#allocation22_spill] sm:$0xff] %v18582_v26  ;;  %v8764_v17 = vpop.f32.mrf.mxu0  ;;  %v18586_v34 = vadd.f32 %v13826_v14, %v8351_v23  ;;  %v8349_v48 = vadd.f32 %v8214_v47, %v18315_v45 }
 0x7c3   :  { %v13761_v35 = vpop.f32.mrf.mxu1 }
 0x7c4   :  { %21733 = vst [vmem:[#allocation10_spill] sm:$0xff] %v18586_v34  ;;  %v13827_v42 = vpop.f32.mrf.mxu0  ;;  %v18589_v62 = vadd.f32 %v8764_v17, %v8349_v48  ;;  %v8352_v58 = vadd.f32 %v13761_v35, %v18318_v39  ;;  %v21736_v34 = vld [vmem:[#allocation80_spill] sm:$0xff]  ;;  %v10042_v35 = vld [vmem:[#allocation2 + $0x112] sm:$0xff] }
 0x7c5   :  { %v8217_v10 = vpop.f32.mrf.mxu1 }
 0x7c6   :  { %v8767_v1 = vpop.f32.mrf.mxu0  ;;  %v18592_v8 = vadd.f32 %v13827_v42, %v8352_v58  ;;  %v8350_v23 = vadd.f32 %v8217_v10, %v21734_v50  ;;  %v10044_v58 = vld [vmem:[#allocation2 + $0x12a] sm:$0xff]  ;;  %v10096_v50 = vpack.c.bf16 %v10042_v35, %v10041_v37 }
 0x7c7   :  { %v13764_v14 = vpop.f32.mrf.mxu1  ;;  %13995 = vmatmul.mubr.msk.bf16.gmra.mxu1 %vm27_vm1, %v10094_v0  ;;  %v21744_v37 = vld [vmem:[#allocation25_spill] sm:$0xff] }
 0x7c8   :  { %v13830_v45 = vpop.f32.mrf.mxu0  ;;  %v18596_v47 = vadd.f32 %v8767_v1, %v8350_v23  ;;  %v8355_v26 = vadd.f32 %v13764_v14, %v21736_v34  ;;  %13998 = vmatprep.mubr.msk.bf16.mxu1 %vm27_vm1, %v10095_v63  ;;  %v21740_v63 = vld [vmem:[#allocation55_spill] sm:$0xff]  ;;  %v10097_v14 = vpack.c.bf16 %v10044_v58, %v10043_v24  ;;  %v10047_v58 = vld [vmem:[#allocation2 + $0x152] sm:$0xff] }
 0x7c9   :  { %v8230_v17 = vpop.f32.mrf.mxu1 }
 0x7ca   :  { %21735 = vst [vmem:[#allocation8_spill] sm:$0xff] %v18596_v47  ;;  %v8780_v39 = vpop.f32.mrf.mxu0  ;;  %v18600_v48 = vadd.f32 %v13830_v45, %v8355_v26  ;;  %v8353_v4 = vadd.f32 %v8230_v17, %v18333_v60 }
 0x7cb   :  { %v13765_v42 = vpop.f32.mrf.mxu1 }
 0x7cc   :  { %21737 = vst [vmem:[#allocation79_spill] sm:$0xff] %v18600_v48  ;;  %v13831_v36 = vpop.f32.mrf.mxu0  ;;  %v18603_v10 = vadd.f32 %v8780_v39, %v8353_v4  ;;  %v8356_v1 = vadd.f32 %v13765_v42, %v18336_v55  ;;  %v21742_v48 = vld [vmem:[#allocation61_spill] sm:$0xff]  ;;  %v10045_v42 = vld [vmem:[#allocation2 + $0x13a] sm:$0xff] }
 0x7cd   :  { %v8233_v0 = vpop.f32.mrf.mxu1 }
 0x7ce   :  { %21738 = vst [vmem:[#allocation78_spill] sm:$0xff] %v18603_v10  ;;  %v8783_v34 = vpop.f32.mrf.mxu0  ;;  %v18606_v23 = vadd.f32 %v13831_v36, %v8356_v1  ;;  %v8354_v26 = vadd.f32 %v8233_v0, %v21740_v63  ;;  %v10046_v36 = vld [vmem:[#allocation2 + $0x142] sm:$0xff]  ;;  %v10048_v0 = vld [vmem:[#allocation2 + $0x15a] sm:$0xff] }
 0x7cf   :  { %v13768_v45 = vpop.f32.mrf.mxu1  ;;  %13999 = vmatmul.mubr.msk.bf16.gmra.mxu1 %vm27_vm1, %v10096_v50 }
 0x7d0   :  { %21739 = vst [vmem:[#allocation66_spill] sm:$0xff] %v18606_v23  ;;  %v13834_v60 = vpop.f32.mrf.mxu0  ;;  %v18610_v17 = vadd.f32 %v8783_v34, %v8354_v26  ;;  %v8359_v47 = vadd.f32 %v13768_v45, %v21742_v48  ;;  %14002 = vmatprep.mubr.msk.bf16.mxu1 %vm27_vm1, %v10097_v14  ;;  %v21746_v34 = vld [vmem:[#allocation81_spill] sm:$0xff]  ;;  %v10098_v45 = vpack.c.bf16 %v10046_v36, %v10045_v42  ;;  %v21752_v42 = vld [vmem:[#allocation54_spill] sm:$0xff] }
 0x7d1   :  { %v8246_v39 = vpop.f32.mrf.mxu1  ;;  %v21750_v23 = vld [vmem:[#allocation89_spill] sm:$0xff] }
 0x7d2   :  { %21741 = vst [vmem:[#allocation9_spill] sm:$0xff] %v18610_v17  ;;  %v8796_v55 = vpop.f32.mrf.mxu0  ;;  %v18614_v4 = vadd.f32 %v13834_v60, %v8359_v47  ;;  %v8357_v35 = vadd.f32 %v8246_v39, %v21744_v37  ;;  %v21748_v17 = vld [vmem:[#allocation24_spill] sm:$0xff]  ;;  %v10099_v60 = vpack.c.bf16 %v10048_v0, %v10047_v58 }
 0x7d3   :  { %v13769_v1 = vpop.f32.mrf.mxu1  ;;  %v10051_v0 = vld [vmem:[#allocation2 + $0x182] sm:$0xff] }
 0x7d4   :  { %21743 = vst [vmem:[#allocation97_spill] sm:$0xff] %v18614_v4  ;;  %v13835_v24 = vpop.f32.mrf.mxu0  ;;  %v18617_v63 = vadd.f32 %v8796_v55, %v8357_v35  ;;  %v8360_v50 = vadd.f32 %v13769_v1, %v21746_v34  ;;  %v10050_v34 = vld [vmem:[#allocation2 + $0x172] sm:$0xff] }
 0x7d5   :  { %v8249_v26 = vpop.f32.mrf.mxu1 }
 0x7d6   :  { %21745 = vst [vmem:[#allocation76_spill] sm:$0xff] %v18617_v63  ;;  %v8799_v48 = vpop.f32.mrf.mxu0  ;;  %v18620_v14 = vadd.f32 %v13835_v24, %v8360_v50  ;;  %v8358_v47 = vadd.f32 %v8249_v26, %v21748_v17  ;;  %v10049_v24 = vld [vmem:[#allocation2 + $0x16a] sm:$0xff] }
 0x7d7   :  { %v13772_v4 = vpop.f32.mrf.mxu1  ;;  %14003 = vmatmul.mubr.msk.bf16.gmra.mxu1 %vm27_vm1, %v10098_v45  ;;  %v10052_v50 = vld [vmem:[#allocation2 + $0x18a] sm:$0xff] }
 0x7d8   :  { %21747 = vst [vmem:[#allocation4_spill] sm:$0xff] %v18620_v14  ;;  %v13838_v39 = vpop.f32.mrf.mxu0  ;;  %v18624_v37 = vadd.f32 %v8799_v48, %v8358_v47  ;;  %v8363_v10 = vadd.f32 %v13772_v4, %v21750_v23  ;;  %14006 = vmatprep.mubr.msk.bf16.mxu1 %vm27_vm1, %v10099_v60  ;;  %v21753_v48 = vld [vmem:[#allocation30_spill] sm:$0xff]  ;;  %v10100_v4 = vpack.c.bf16 %v10050_v34, %v10049_v24  ;;  %v21756_v14 = vld [vmem:[#allocation51_spill] sm:$0xff] }
 0x7d9   :  { %v8262_v55 = vpop.f32.mrf.mxu1 }
 0x7da   :  { %21749 = vst [vmem:[#allocation95_spill] sm:$0xff] %v18624_v37  ;;  %v8812_v35 = vpop.f32.mrf.mxu0  ;;  %v18628_v1 = vadd.f32 %v13838_v39, %v8363_v10  ;;  %v8361_v36 = vadd.f32 %v8262_v55, %v21752_v42  ;;  %v21754_v37 = vld [vmem:[#allocation32_spill] sm:$0xff]  ;;  %v10101_v39 = vpack.c.bf16 %v10052_v50, %v10051_v0 }
 0x7db   :  { %v13773_v17 = vpop.f32.mrf.mxu1  ;;  %v10055_v50 = vld [vmem:[#allocation2 + $0x1e2] sm:$0xff] }
 0x7dc   :  { %21751 = vst [vmem:[#allocation20_spill] sm:$0xff] %v18628_v1  ;;  %v13839_v58 = vpop.f32.mrf.mxu0  ;;  %v18631_v26 = vadd.f32 %v8812_v35, %v8361_v36  ;;  %v8364_v45 = vadd.f32 %v13773_v17, %v21753_v48  ;;  %v10053_v35 = vld [vmem:[#allocation2 + $0x19a] sm:$0xff]  ;;  %v10054_v36 = vld [vmem:[#allocation2 + $0x1a2] sm:$0xff] }
 0x7dd   :  { %v8265_v47 = vpop.f32.mrf.mxu1  ;;  %v10102_v0 = vpack.c.bf16 %v10054_v36, %v10053_v35  ;;  %v21758_v35 = vld [vmem:[#allocation53_spill] sm:$0xff] }
 0x7de   :  { %v8815_v23 = vpop.f32.mrf.mxu0  ;;  %v18634_v60 = vadd.f32 %v13839_v58, %v8364_v45  ;;  %v8362_v10 = vadd.f32 %v8265_v47, %v21754_v37  ;;  %v10056_v45 = vld [vmem:[#allocation2 + $0x1ea] sm:$0xff] }
 0x7df   :  { %v13776_v1 = vpop.f32.mrf.mxu1  ;;  %14007 = vmatmul.mubr.msk.bf16.gmra.mxu1 %vm27_vm1, %v10100_v4 }
 0x7e0   :  { %v13842_v55 = vpop.f32.mrf.mxu0  ;;  %v18638_v42 = vadd.f32 %v8815_v23, %v8362_v10  ;;  %v8367_v63 = vadd.f32 %v13776_v1, %v21756_v14  ;;  %14010 = vmatprep.mubr.msk.bf16.mxu1 %vm27_vm1, %v10101_v39  ;;  %v21757_v10 = vld [vmem:[#allocation52_spill] sm:$0xff] }
 0x7e1   :  { %v8278_v17 = vpop.f32.mrf.mxu1 }
 0x7e2   :  { %21755 = vst [vmem:[#allocation18_spill] sm:$0xff] %v18638_v42  ;;  %v8828_v48 = vpop.f32.mrf.mxu0  ;;  %v18642_v24 = vadd.f32 %v13842_v55, %v8367_v63  ;;  %v8365_v34 = vadd.f32 %v8278_v17, %v18387_v3  ;;  %v10103_v42 = vpack.c.bf16 %v10056_v45, %v10055_v50  ;;  %v10059_v45 = vld [vmem:[#allocation2 + $0x212] sm:$0xff] }
 0x7e3   :  { %v13777_v37 = vpop.f32.mrf.mxu1 }
 0x7e4   :  { %v13843_v58 = vpop.f32.mrf.mxu0  ;;  %v18645_v47 = vadd.f32 %v8828_v48, %v8365_v34  ;;  %v8368_v23 = vadd.f32 %v13777_v37, %v18390_v16  ;;  %v10057_v37 = vld [vmem:[#allocation2 + $0x1fa] sm:$0xff] }
 0x7e5   :  { %v8281_v14 = vpop.f32.mrf.mxu1 }
 0x7e6   :  { %v8831_v1 = vpop.f32.mrf.mxu0  ;;  %v18648_v4 = vadd.f32 %v13843_v58, %v8368_v23  ;;  %v8366_v39 = vadd.f32 %v8281_v14, %v21757_v10  ;;  %v10058_v58 = vld [vmem:[#allocation2 + $0x202] sm:$0xff]  ;;  %v10060_v14 = vld [vmem:[#allocation2 + $0x21a] sm:$0xff] }
 0x7e7   :  { %v13780_v63 = vpop.f32.mrf.mxu1  ;;  %14011 = vmatmul.mubr.msk.bf16.gmra.mxu1 %vm27_vm1, %v10102_v0 }
 0x7e8   :  { %v13846_v55 = vpop.f32.mrf.mxu0  ;;  %v18652_v3 = vadd.f32 %v8831_v1, %v8366_v39  ;;  %v8371_v36 = vadd.f32 %v13780_v63, %v21758_v35  ;;  %14014 = vmatprep.mubr.msk.bf16.mxu1 %vm27_vm1, %v10103_v42  ;;  %v10104_v63 = vpack.c.bf16 %v10058_v58, %v10057_v37  ;;  %v10105_v35 = vpack.c.bf16 %v10060_v14, %v10059_v45  ;;  %v10061_v58 = vld [vmem:[#allocation2 + $0x22a] sm:$0xff]  ;;  %v10063_v45 = vld [vmem:[#allocation2 + $0x242] sm:$0xff] }
 0x7e9   :  { %v8294_v17 = vpop.f32.mrf.mxu1  ;;  %v10064_v14 = vld [vmem:[#allocation2 + $0x24a] sm:$0xff] }
 0x7ea   :  { %v8844_v48 = vpop.f32.mrf.mxu0  ;;  %v18656_v16 = vadd.f32 %v13846_v55, %v8371_v36  ;;  %v8369_v34 = vadd.f32 %v8294_v17, %v18404_v54 }
 0x7eb   :  { %v13781_v23 = vpop.f32.mrf.mxu1 }
 0x7ec   :  { %21759 = vst [vmem:[#allocation77_spill] sm:$0xff] %v18656_v16  ;;  %v13847_v50 = vpop.f32.mrf.mxu0  ;;  %v18659_v10 = vadd.f32 %v8844_v48, %v8369_v34  ;;  %v8372_v0 = vadd.f32 %v13781_v23, %v18407_v31  ;;  %v10062_v23 = vld [vmem:[#allocation2 + $0x232] sm:$0xff] }
 0x7ed   :  { %v8297_v1 = vpop.f32.mrf.mxu1 }
 0x7ee   :  { %v8847_v39 = vpop.f32.mrf.mxu0  ;;  %v18662_v42 = vadd.f32 %v13847_v50, %v8372_v0  ;;  %v8370_v55 = vadd.f32 %v8297_v1, %v18412_v53 }
 0x7ef   :  { %v13852_v36 = vpop.f32.mrf.mxu1  ;;  %14015 = vmatmul.mubr.msk.bf16.gmra.mxu1 %vm27_vm1, %v10104_v63  ;;  %v10106_v63 = vpack.c.bf16 %v10062_v23, %v10061_v58  ;;  %v10065_v23 = vld [vmem:[#allocation2 + $0x25a] sm:$0xff] }
 0x7f0   :  { %v13918_v54 = vpop.f32.mrf.mxu0  ;;  %v18666_v17 = vadd.f32 %v8847_v39, %v8370_v55  ;;  %v9411_v16 = vadd.f32 %v13852_v36, %v18418_v21  ;;  %14018 = vmatprep.mubr.msk.bf16.mxu1 %vm27_vm1, %v10105_v35  ;;  %v10107_v35 = vpack.c.bf16 %v10064_v14, %v10063_v45  ;;  %v10067_v45 = vld [vmem:[#allocation2 + $0x272] sm:$0xff]  ;;  %v10068_v14 = vld [vmem:[#allocation2 + $0x27a] sm:$0xff] }
 0x7f1   :  { %v9154_v48 = vpop.f32.mrf.mxu1 }
 0x7f2   :  { %v9704_v31 = vpop.f32.mrf.mxu0  ;;  %v18670_v34 = vadd.f32 %v13918_v54, %v9411_v16  ;;  %v9409_v37 = vadd.f32 %v9154_v48, %v18421_v38 }
 0x7f3   :  { %v13853_v53 = vpop.f32.mrf.mxu1 }
 0x7f4   :  { %v13919_v50 = vpop.f32.mrf.mxu0  ;;  %v18673_v0 = vadd.f32 %v9704_v31, %v9409_v37  ;;  %v9412_v1 = vadd.f32 %v13853_v53, %v18424_v15  ;;  %v10066_v53 = vld [vmem:[#allocation2 + $0x262] sm:$0xff] }
 0x7f5   :  { %v9157_v39 = vpop.f32.mrf.mxu1 }
 0x7f6   :  { %v9707_v21 = vpop.f32.mrf.mxu0  ;;  %v18676_v55 = vadd.f32 %v13919_v50, %v9412_v1  ;;  %v9410_v16 = vadd.f32 %v9157_v39, %v18429_v40 }
 0x7f7   :  { %v13856_v36 = vpop.f32.mrf.mxu1  ;;  %14019 = vmatmul.mubr.msk.bf16.gmra.mxu1 %vm27_vm1, %v10106_v63  ;;  %v10108_v63 = vpack.c.bf16 %v10066_v53, %v10065_v23  ;;  %v10070_v23 = vld [vmem:[#allocation2 + $0x292] sm:$0xff] }
 0x7f8   :  { %v13922_v38 = vpop.f32.mrf.mxu0  ;;  %v18680_v54 = vadd.f32 %v9707_v21, %v9410_v16  ;;  %v9415_v48 = vadd.f32 %v13856_v36, %v18435_v27  ;;  %14022 = vmatprep.mubr.msk.bf16.mxu1 %vm27_vm1, %v10107_v35  ;;  %v10109_v36 = vpack.c.bf16 %v10068_v14, %v10067_v45  ;;  %v10072_v45 = vld [vmem:[#allocation2 + $0x2aa] sm:$0xff] }
 0x7f9   :  { %v9170_v31 = vpop.f32.mrf.mxu1 }
 0x7fa   :  { %v9720_v15 = vpop.f32.mrf.mxu0  ;;  %v18684_v37 = vadd.f32 %v13922_v38, %v9415_v48  ;;  %v9413_v58 = vadd.f32 %v9170_v31, %v18438_v29 }
 0x7fb   :  { %v13857_v40 = vpop.f32.mrf.mxu1 }
 0x7fc   :  { %v13923_v50 = vpop.f32.mrf.mxu0  ;;  %v18687_v1 = vadd.f32 %v9720_v15, %v9413_v58  ;;  %v9416_v39 = vadd.f32 %v13857_v40, %v18441_v11 }
 0x7fd   :  { %v9173_v21 = vpop.f32.mrf.mxu1 }
 0x7fe   :  { %v9723_v27 = vpop.f32.mrf.mxu0  ;;  %v18690_v16 = vadd.f32 %v13923_v50, %v9416_v39  ;;  %v9414_v35 = vadd.f32 %v9173_v21, %v18446_v13  ;;  %v10069_v13 = vld [vmem:[#allocation2 + $0x28a] sm:$0xff]  ;;  %v10071_v50 = vld [vmem:[#allocation2 + $0x2a2] sm:$0xff] }
 0x7ff   :  { %v13860_v38 = vpop.f32.mrf.mxu1  ;;  %14023 = vmatmul.mubr.msk.bf16.gmra.mxu1 %vm27_vm1, %v10108_v63  ;;  %v10110_v21 = vpack.c.bf16 %v10070_v23, %v10069_v13  ;;  %v10111_v63 = vpack.c.bf16 %v10072_v45, %v10071_v50  ;;  %v10073_v13 = vld [vmem:[#allocation2 + $0x2ba] sm:$0xff]  ;;  %v10075_v50 = vld [vmem:[#allocation2 + $0x2d2] sm:$0xff] }
 0x800   :  { %v18693_v29 = vpop.f32.mrf.mxu0  ;;  %v18696_v48 = vadd.f32 %v9723_v27, %v9414_v35  ;;  %v18699_v31 = vadd.f32 %v13860_v38, %v18452_v49  ;;  %14026 = vmatprep.mubr.msk.bf16.mxu1 %vm27_vm1, %v10109_v36  ;;  %v10076_v45 = vld [vmem:[#allocation2 + $0x2da] sm:$0xff] }
 0x801   :  { %21760 = vst [vmem:[#allocation6_spill] sm:$0xff] %v18693_v29  ;;  %v9186_v11 = vpop.f32.mrf.mxu1 }
 0x802   :  { %21761 = vst [vmem:[#allocation3_spill] sm:$0xff] %v18699_v31  ;;  %v18702_v15 = vpop.f32.mrf.mxu0  ;;  %v18705_v58 = vadd.f32 %v9186_v11, %v18455_v25 }
 0x803   :  { %21762 = vst [vmem:[#allocation7_spill] sm:$0xff] %v18702_v15  ;;  %v13861_v53 = vpop.f32.mrf.mxu1  ;;  %v10113_v15 = vpack.c.bf16 %v10076_v45, %v10075_v50 }
 0x804   :  { %21763 = vst [vmem:[#allocation96_spill] sm:$0xff] %v18705_v58  ;;  %v18707_v40 = vpop.f32.mrf.mxu0  ;;  %v18710_v14 = vadd.f32 %v13861_v53, %v18458_v56  ;;  %v8875_v58 = vadd.f32 %v18486_v46, %v18491_v44  ;;  %v8876_v46 = vadd.f32 %v18494_v30, %v18499_v18 }
 0x805   :  { %v9189_v49 = vpop.f32.mrf.mxu1 }
 0x806   :  { %v18712_v39 = vpop.f32.mrf.mxu0  ;;  %v18715_v27 = vadd.f32 %v9189_v49, %v18463_v59  ;;  %v10074_v59 = vld [vmem:[#allocation2 + $0x2c2] sm:$0xff] }
 0x807   :  { %21764 = vst [vmem:[#allocation75_spill] sm:$0xff] %v18712_v39  ;;  %v13864_v25 = vpop.f32.mrf.mxu1  ;;  %14027 = vmatmul.mubr.msk.bf16.gmra.mxu1 %vm27_vm1, %v10110_v21 }
 0x808   :  { %21765 = vst [vmem:[#allocation19_spill] sm:$0xff] %v18715_v27  ;;  %v18717_v35 = vpop.f32.mrf.mxu0  ;;  %v18721_v36 = vadd.f32 %v13864_v25, %v18469_v33  ;;  %14030 = vmatprep.mubr.msk.bf16.mxu1 %vm27_vm1, %v10111_v63  ;;  %v10112_v63 = vpack.c.bf16 %v10074_v59, %v10073_v13  ;;  %v10078_v59 = vld [vmem:[#allocation2 + $0x2f2] sm:$0xff] }
 0x809   :  { %v9202_v56 = vpop.f32.mrf.mxu1 }
 0x80a   :  { %v18724_v38 = vpop.f32.mrf.mxu0  ;;  %v18727_v11 = vadd.f32 %v9202_v56, %v18472_v51 }
 0x80b   :  { %v13865_v23 = vpop.f32.mrf.mxu1 }
 0x80c   :  { %v18729_v53 = vpop.f32.mrf.mxu0  ;;  %v18732_v49 = vadd.f32 %v13865_v23, %v18475_v2 }
 0x80d   :  { %v9205_v33 = vpop.f32.mrf.mxu1 }
 0x80e   :  { %v18734_v21 = vpop.f32.mrf.mxu0  ;;  %v18737_v25 = vadd.f32 %v9205_v33, %v18480_v19  ;;  %v10077_v19 = vld [vmem:[#allocation2 + $0x2ea] sm:$0xff]  ;;  %v10079_v33 = vld [vmem:[#allocation2 + $0x302] sm:$0xff] }
 0x80f   :  { %v13868_v51 = vpop.f32.mrf.mxu1  ;;  %14031 = vmatmul.mubr.msk.bf16.gmra.mxu1 %vm27_vm1, %v10112_v63  ;;  %v10080_v63 = vld [vmem:[#allocation2 + $0x30a] sm:$0xff] }
 0x810   :  { %v18739_v56 = vpop.f32.mrf.mxu0  ;;  %v18745_v39 = vadd.f32 %v13868_v51, %v18488_v43  ;;  %14034 = vmatprep.mubr.msk.bf16.mxu1 %vm27_vm1, %v10113_v15  ;;  %v10114_v51 = vpack.c.bf16 %v10078_v59, %v10077_v19  ;;  %v10081_v59 = vld [vmem:[#allocation2 + $0x31a] sm:$0xff] }
 0x811   :  { %21766 = vst [vmem:[#allocation74_spill] sm:$0xff] %v18739_v56  ;;  %v9218_v2 = vpop.f32.mrf.mxu1  ;;  %v21775_v56 = vld [vmem:[#allocation56_spill] sm:$0xff] }
 0x812   :  { %21767 = vst [vmem:[#allocation5_spill] sm:$0xff] %v18745_v39  ;;  %v18748_v23 = vpop.f32.mrf.mxu0  ;;  %v18750_v13 = vadd.f32 %v9218_v2, %v8875_v58  ;;  %v10115_v58 = vpack.c.bf16 %v10080_v63, %v10079_v33  ;;  %v8879_v39 = vadd.f32 %v21775_v56, %v18512_v12  ;;  %v21783_v56 = vld [vmem:[#allocation21_spill] sm:$0xff] }
 0x813   :  { %21768 = vst [vmem:[#allocation47_spill] sm:$0xff] %v18748_v23  ;;  %v13869_v50 = vpop.f32.mrf.mxu1 }
 0x814   :  { %21769 = vst [vmem:[#allocation93_spill] sm:$0xff] %v18750_v13  ;;  %v18752_v45 = vpop.f32.mrf.mxu0  ;;  %v18757_v43 = vadd.f32 %v13869_v50, %v18496_v5  ;;  %v10082_v50 = vld [vmem:[#allocation2 + $0x322] sm:$0xff] }
 0x815   :  { %21770 = vst [vmem:[#allocation88_spill] sm:$0xff] %v18752_v45  ;;  %v9221_v44 = vpop.f32.mrf.mxu1  ;;  %v21776_v45 = vld [vmem:[#allocation57_spill] sm:$0xff] }
 0x816   :  { %21771 = vst [vmem:[#allocation72_spill] sm:$0xff] %v18757_v43  ;;  %v18759_v15 = vpop.f32.mrf.mxu0  ;;  %v18761_v23 = vadd.f32 %v9221_v44, %v8876_v46  ;;  %v10083_v46 = vld [vmem:[#allocation2 + $0x332] sm:$0xff]  ;;  %v10084_v44 = vld [vmem:[#allocation2 + $0x33a] sm:$0xff] }
 0x817   :  { %21772 = vst [vmem:[#allocation46_spill] sm:$0xff] %v18759_v15  ;;  %v13872_v2 = vpop.f32.mrf.mxu1  ;;  %14035 = vmatmul.mubr.msk.bf16.gmra.mxu1 %vm27_vm1, %v10114_v51  ;;  %v21781_v51 = vld [vmem:[#allocation90_spill] sm:$0xff]  ;;  %v21782_v15 = vld [vmem:[#allocation31_spill] sm:$0xff] }
 0x818   :  { %21773 = vst [vmem:[#allocation94_spill] sm:$0xff] %v18761_v23  ;;  %v18763_v13 = vpop.f32.mrf.mxu0  ;;  %v18769_v30 = vadd.f32 %v13872_v2, %v21776_v45  ;;  %14038 = vmatprep.mubr.msk.bf16.mxu1 %vm27_vm1, %v10115_v58  ;;  %v8880_v12 = vadd.f32 %v21782_v15, %v21781_v51  ;;  %v10116_v23 = vpack.c.bf16 %v10082_v50, %v10081_v59  ;;  %v10085_v15 = vld [vmem:[#allocation2 + $0x34a] sm:$0xff] }
 0x819   :  { %21774 = vst [vmem:[#allocation16_spill] sm:$0xff] %v18763_v13  ;;  %v9234_v5 = vpop.f32.mrf.mxu1 }
 0x81a   :  { %21777 = vst [vmem:[#allocation17_spill] sm:$0xff] %v18769_v30  ;;  %v18772_v18 = vpop.f32.mrf.mxu0  ;;  %v18774_v19 = vadd.f32 %v9234_v5, %v8879_v39  ;;  %v10117_v39 = vpack.c.bf16 %v10084_v44, %v10083_v46 }
 0x81b   :  { %21778 = vst [vmem:[#allocation73_spill] sm:$0xff] %v18772_v18  ;;  %v13873_v33 = vpop.f32.mrf.mxu1 }
 0x81c   :  { %21779 = vst [vmem:[#allocation45_spill] sm:$0xff] %v18774_v19  ;;  %v18776_v63 = vpop.f32.mrf.mxu0  ;;  %v18781_v45 = vadd.f32 %v13873_v33, %v21783_v56  ;;  %v21787_v19 = vld [vmem:[#allocation83_spill] sm:$0xff]  ;;  %v10086_v33 = vld [vmem:[#allocation2 + $0x352] sm:$0xff] }
 0x81d   :  { %21780 = vst [vmem:[#allocation44_spill] sm:$0xff] %v18776_v63  ;;  %v9237_v2 = vpop.f32.mrf.mxu1  ;;  %v10118_v44 = vpack.c.bf16 %v10086_v33, %v10085_v15 }
 0x81e   :  { %21784 = vst [vmem:[#allocation48_spill] sm:$0xff] %v18781_v45  ;;  %v18783_v58 = vpop.f32.mrf.mxu0  ;;  %v18785_v43 = vadd.f32 %v9237_v2, %v8880_v12 }
 0x81f   :  { %21785 = vst [vmem:[#allocation91_spill] sm:$0xff] %v18783_v58  ;;  %v13876_v5 = vpop.f32.mrf.mxu1  ;;  %14039 = vmatmul.mubr.msk.bf16.gmra.mxu1 %vm27_vm1, %v10116_v23 }
 0x820   :  { %21786 = vst [vmem:[#allocation71_spill] sm:$0xff] %v18785_v43  ;;  %v18787_v18 = vpop.f32.mrf.mxu0  ;;  %v18791_v13 = vadd.f32 %v13876_v5, %v21787_v19  ;;  %14042 = vmatprep.mubr.msk.bf16.mxu1 %vm27_vm1, %v10117_v39  ;;  %v21792_v43 = vld [vmem:[#allocation92_spill] sm:$0xff] }
 0x821   :  { %v9250_v51 = vpop.f32.mrf.mxu1 }
 0x822   :  { %v18794_v56 = vpop.f32.mrf.mxu0  ;;  %v18797_v59 = vadd.f32 %v9250_v51, %v18531_v32 }
 0x823   :  { %21788 = vst [vmem:[#allocation70_spill] sm:$0xff] %v18794_v56  ;;  %v13877_v50 = vpop.f32.mrf.mxu1 }
 0x824   :  { %21789 = vst [vmem:[#allocation43_spill] sm:$0xff] %v18797_v59  ;;  %v18799_v46 = vpop.f32.mrf.mxu0  ;;  %v18802_v12 = vadd.f32 %v13877_v50, %v18534_v41 }
 0x825   :  { %v9253_v23 = vpop.f32.mrf.mxu1 }
 0x826   :  { %v18804_v19 = vpop.f32.mrf.mxu0  ;;  %v18807_v2 = vadd.f32 %v9253_v23, %v18539_v52 }
 0x827   :  { %21790 = vst [vmem:[#allocation68_spill] sm:$0xff] %v18804_v19  ;;  %v13880_v39 = vpop.f32.mrf.mxu1  ;;  %14043 = vmatmul.mubr.msk.bf16.gmra.mxu1 %vm27_vm1, %v10118_v44 }
 0x828   :  { %21791 = vst [vmem:[#allocation87_spill] sm:$0xff] %v18807_v2  ;;  %v18809_v5 = vpop.f32.mrf.mxu0  ;;  %v18813_v32 = vadd.f32 %v13880_v39, %v18544_v20 }
 0x829   :  { %v9266_v51 = vpop.f32.mrf.mxu1 }
 0x82a   :  { %v18815_v58 = vpop.f32.mrf.mxu0  ;;  %v18818_v41 = vadd.f32 %v9266_v51, %v18547_v22 }
 0x82b   :  { %v13881_v15 = vpop.f32.mrf.mxu1 }
 0x82c   :  { %v18820_v33 = vpop.f32.mrf.mxu0  ;;  %v18823_v52 = vadd.f32 %v13881_v15, %v18550_v28 }
 0x82d   :  { %v9269_v50 = vpop.f32.mrf.mxu1 }
 0x82e   :  { %v18825_v23 = vpop.f32.mrf.mxu0  ;;  %v18828_v44 = vadd.f32 %v9269_v50, %v18554_v9  ;;  %v21793_v50 = vld [vmem:[#allocation49_spill] sm:$0xff] }
 0x82f   :  { %v13884_v20 = vpop.f32.mrf.mxu1 }
 0x830   :  { %v13950_v39 = vpop.f32.mrf.mxu0  ;;  %v9443_v30 = vadd.f32 %v13884_v20, %v21792_v43 }
 0x831   :  { %v9282_v63 = vpop.f32.mrf.mxu1 }
 0x832   :  { %v9832_v45 = vpop.f32.mrf.mxu0  ;;  %v18831_v22 = vadd.f32 %v13950_v39, %v9443_v30  ;;  %v9441_v51 = vadd.f32 %v9282_v63, %v18561_v6  ;;  %v21795_v30 = vld [vmem:[#allocation50_spill] sm:$0xff] }
 0x833   :  { %v13885_v56 = vpop.f32.mrf.mxu1 }
 0x834   :  { %v13951_v59 = vpop.f32.mrf.mxu0  ;;  %v18834_v28 = vadd.f32 %v9832_v45, %v9441_v51  ;;  %v9444_v15 = vadd.f32 %v13885_v56, %v18564_v61 }
 0x835   :  { %v9285_v27 = vpop.f32.mrf.mxu1 }
 0x836   :  { %v9835_v19 = vpop.f32.mrf.mxu0  ;;  %v18837_v9 = vadd.f32 %v13951_v59, %v9444_v15  ;;  %v9442_v2 = vadd.f32 %v9285_v27, %v21793_v50  ;;  %v21796_v50 = vld [vmem:[#allocation22_spill] sm:$0xff] }
 0x837   :  { %v13888_v29 = vpop.f32.mrf.mxu1 }
 0x838   :  { %v13954_v43 = vpop.f32.mrf.mxu0  ;;  %v18840_v20 = vadd.f32 %v9835_v19, %v9442_v2  ;;  %v9447_v39 = vadd.f32 %v13888_v29, %v21795_v30  ;;  %v21797_v30 = vld [vmem:[#allocation10_spill] sm:$0xff] }
 0x839   :  { %v9298_v31 = vpop.f32.mrf.mxu1 }
 0x83a   :  { %21794 = vst [vmem:[#allocation14_spill] sm:$0xff] %v18840_v20  ;;  %v9848_v6 = vpop.f32.mrf.mxu0  ;;  %v18843_v63 = vadd.f32 %v13954_v43, %v9447_v39  ;;  %v9445_v45 = vadd.f32 %v9298_v31, %v18575_v57 }
 0x83b   :  { %v13889_v51 = vpop.f32.mrf.mxu1 }
 0x83c   :  { %v13955_v61 = vpop.f32.mrf.mxu0  ;;  %v18846_v56 = vadd.f32 %v9848_v6, %v9445_v45  ;;  %v9448_v59 = vadd.f32 %v13889_v51, %v18578_v7  ;;  %v21801_v45 = vld [vmem:[#allocation8_spill] sm:$0xff] }
 0x83d   :  { %v9301_v15 = vpop.f32.mrf.mxu1 }
 0x83e   :  { %v18849_v27 = vadd.f32 %v13955_v61, %v9448_v59  ;;  %v9446_v19 = vadd.f32 %v9301_v15, %v21796_v50  ;;  %v9851_v2 = vpop.f32.mrf.mxu0  ;;  %v21803_v59 = vld [vmem:[#allocation79_spill] sm:$0xff] }
 0x83f   :  { %v13892_v20 = vpop.f32.mrf.mxu1 }
 0x840   :  { %v18852_v29 = vadd.f32 %v9851_v2, %v9446_v19  ;;  %v18855_v43 = vadd.f32 %v13892_v20, %v21797_v30  ;;  %v21805_v19 = vld [vmem:[#allocation78_spill] sm:$0xff] }
 0x841   :  { %v9314_v39 = vpop.f32.mrf.mxu1  ;;  %v21807_v30 = vld [vmem:[#allocation66_spill] sm:$0xff] }
 0x842   :  { %21798 = vst [vmem:[#allocation13_spill] sm:$0xff] %v18855_v43  ;;  %v18858_v57 = vadd.f32 %v9314_v39, %v18589_v62  ;;  %v21811_v43 = vld [vmem:[#allocation97_spill] sm:$0xff] }
 0x843   :  { %v13893_v31 = vpop.f32.mrf.mxu1 }
 0x844   :  { %21799 = vst [vmem:[#allocation69_spill] sm:$0xff] %v18858_v57  ;;  %v18861_v6 = vadd.f32 %v13893_v31, %v18592_v8  ;;  %v21809_v57 = vld [vmem:[#allocation9_spill] sm:$0xff] }
 0x845   :  { %v9317_v7 = vpop.f32.mrf.mxu1 }
 0x846   :  { %21800 = vst [vmem:[#allocation41_spill] sm:$0xff] %v18861_v6  ;;  %v18864_v51 = vadd.f32 %v9317_v7, %v21801_v45  ;;  %v21815_v6 = vld [vmem:[#allocation4_spill] sm:$0xff] }
 0x847   :  { %v13896_v61 = vpop.f32.mrf.mxu1 }
 0x848   :  { %21802 = vst [vmem:[#allocation42_spill] sm:$0xff] %v18864_v51  ;;  %v18867_v15 = vadd.f32 %v13896_v61, %v21803_v59  ;;  %v21813_v51 = vld [vmem:[#allocation76_spill] sm:$0xff] }
 0x849   :  { %v9330_v50 = vpop.f32.mrf.mxu1 }
 0x84a   :  { %21804 = vst [vmem:[#allocation67_spill] sm:$0xff] %v18867_v15  ;;  %v18870_v20 = vadd.f32 %v9330_v50, %v21805_v19  ;;  %v21819_v15 = vld [vmem:[#allocation20_spill] sm:$0xff] }
 0x84b   :  { %v13897_v2 = vpop.f32.mrf.mxu1 }
 0x84c   :  { %21806 = vst [vmem:[#allocation15_spill] sm:$0xff] %v18870_v20  ;;  %v18873_v62 = vadd.f32 %v13897_v2, %v21807_v30  ;;  %v21817_v20 = vld [vmem:[#allocation95_spill] sm:$0xff] }
 0x84d   :  { %v9333_v39 = vpop.f32.mrf.mxu1 }
 0x84e   :  { %21808 = vst [vmem:[#allocation64_spill] sm:$0xff] %v18873_v62  ;;  %v18876_v8 = vadd.f32 %v9333_v39, %v21809_v57 }
 0x84f   :  { %v13900_v31 = vpop.f32.mrf.mxu1 }
 0x850   :  { %21810 = vst [vmem:[#allocation12_spill] sm:$0xff] %v18876_v8  ;;  %v18879_v7 = vadd.f32 %v13900_v31, %v21811_v43 }
 0x851   :  { %v9346_v45 = vpop.f32.mrf.mxu1 }
 0x852   :  { %21812 = vst [vmem:[#allocation65_spill] sm:$0xff] %v18879_v7  ;;  %v18882_v61 = vadd.f32 %v9346_v45, %v21813_v51 }
 0x853   :  { %v13901_v59 = vpop.f32.mrf.mxu1 }
 0x854   :  { %21814 = vst [vmem:[#allocation11_spill] sm:$0xff] %v18882_v61  ;;  %v18885_v50 = vadd.f32 %v13901_v59, %v21815_v6  ;;  %v21823_v61 = vld [vmem:[#allocation18_spill] sm:$0xff] }
 0x855   :  { %v9349_v19 = vpop.f32.mrf.mxu1 }
 0x856   :  { %21816 = vst [vmem:[#allocation36_spill] sm:$0xff] %v18885_v50  ;;  %v18888_v2 = vadd.f32 %v9349_v19, %v21817_v20 }
 0x857   :  { %v13904_v30 = vpop.f32.mrf.mxu1 }
 0x858   :  { %21818 = vst [vmem:[#allocation23_spill] sm:$0xff] %v18888_v2  ;;  %v18891_v57 = vadd.f32 %v13904_v30, %v21819_v15  ;;  %v21829_v2 = vld [vmem:[#allocation77_spill] sm:$0xff] }
 0x859   :  { %v9362_v39 = vpop.f32.mrf.mxu1 }
 0x85a   :  { %21820 = vst [vmem:[#allocation102_spill] sm:$0xff] %v18891_v57  ;;  %v18894_v43 = vadd.f32 %v9362_v39, %v18631_v26 }
 0x85b   :  { %v13905_v31 = vpop.f32.mrf.mxu1 }
 0x85c   :  { %21821 = vst [vmem:[#allocation39_spill] sm:$0xff] %v18894_v43  ;;  %v18897_v51 = vadd.f32 %v13905_v31, %v18634_v60 }
 0x85d   :  { %v9365_v45 = vpop.f32.mrf.mxu1 }
 0x85e   :  { %21822 = vst [vmem:[#allocation99_spill] sm:$0xff] %v18897_v51  ;;  %v18900_v6 = vadd.f32 %v9365_v45, %v21823_v61 }
 0x85f   :  { %v13908_v59 = vpop.f32.mrf.mxu1 }
 0x860   :  { %21824 = vst [vmem:[#allocation40_spill] sm:$0xff] %v18900_v6  ;;  %v18903_v20 = vadd.f32 %v13908_v59, %v18642_v24 }
 0x861   :  { %v9378_v19 = vpop.f32.mrf.mxu1 }
 0x862   :  { %21825 = vst [vmem:[#allocation98_spill] sm:$0xff] %v18903_v20  ;;  %v18906_v15 = vadd.f32 %v9378_v19, %v18645_v47 }
 0x863   :  { %v13909_v30 = vpop.f32.mrf.mxu1 }
 0x864   :  { %21826 = vst [vmem:[#allocation38_spill] sm:$0xff] %v18906_v15  ;;  %v18909_v26 = vadd.f32 %v13909_v30, %v18648_v4 }
 0x865   :  { %v9381_v39 = vpop.f32.mrf.mxu1 }
 0x866   :  { %21827 = vst [vmem:[#allocation100_spill] sm:$0xff] %v18909_v26  ;;  %v18912_v60 = vadd.f32 %v9381_v39, %v18652_v3 }
 0x867   :  { %v13912_v31 = vpop.f32.mrf.mxu1 }
 0x868   :  { %21828 = vst [vmem:[#allocation101_spill] sm:$0xff] %v18912_v60  ;;  %v18915_v61 = vadd.f32 %v13912_v31, %v21829_v2 }
 0x869   :  { %v9394_v45 = vpop.f32.mrf.mxu1 }
 0x86a   :  { %21830 = vst [vmem:[#allocation103_spill] sm:$0xff] %v18915_v61  ;;  %v18918_v24 = vadd.f32 %v9394_v45, %v18659_v10 }
 0x86b   :  { %v13913_v59 = vpop.f32.mrf.mxu1 }
 0x86c   :  { %21831 = vst [vmem:[#allocation104_spill] sm:$0xff] %v18918_v24  ;;  %v18921_v47 = vadd.f32 %v13913_v59, %v18662_v42 }
 0x86d   :  { %v9397_v19 = vpop.f32.mrf.mxu1 }
 0x86e   :  { %21832 = vst [vmem:[#allocation105_spill] sm:$0xff] %v18921_v47  ;;  %v18924_v4 = vadd.f32 %v9397_v19, %v18666_v17  ;;  %v9990_v47 = vadd.f32 %v18820_v33, %v18823_v52  ;;  %v9988_v33 = vadd.f32 %v18825_v23, %v18828_v44  ;;  %v9971_v23 = vadd.f32 %v18724_v38, %v18727_v11 }
 0x86f   :  { %v13984_v30 = vpop.f32.mrf.mxu1  ;;  %v9970_v38 = vadd.f32 %v18707_v40, %v18710_v14 }
 0x870   :  { %21833 = vst [vmem:[#allocation106_spill] sm:$0xff] %v18924_v4  ;;  %v18927_v3 = vadd.f32 %v13984_v30, %v18670_v34 }
 0x871   :  { %v10254_v39 = vpop.f32.mrf.mxu1 }
 0x872   :  { %21834 = vst [vmem:[#allocation29_spill] sm:$0xff] %v18927_v3  ;;  %v18930_v2 = vadd.f32 %v10254_v39, %v18673_v0 }
 0x873   :  { %v13985_v31 = vpop.f32.mrf.mxu1 }
 0x874   :  { %21835 = vst [vmem:[#allocation27_spill] sm:$0xff] %v18930_v2  ;;  %v18933_v10 = vadd.f32 %v13985_v31, %v18676_v55 }
 0x875   :  { %v10257_v45 = vpop.f32.mrf.mxu1 }
 0x876   :  { %21836 = vst [vmem:[#allocation37_spill] sm:$0xff] %v18933_v10  ;;  %v18936_v42 = vadd.f32 %v10257_v45, %v18680_v54 }
 0x877   :  { %v13988_v59 = vpop.f32.mrf.mxu1 }
 0x878   :  { %21837 = vst [vmem:[#allocation35_spill] sm:$0xff] %v18936_v42  ;;  %v18939_v17 = vadd.f32 %v13988_v59, %v18684_v37 }
 0x879   :  { %v10270_v19 = vpop.f32.mrf.mxu1 }
 0x87a   :  { %21838 = vst [vmem:[#allocation63_spill] sm:$0xff] %v18939_v17  ;;  %v18942_v34 = vadd.f32 %v10270_v19, %v18687_v1 }
 0x87b   :  { %v13989_v30 = vpop.f32.mrf.mxu1 }
 0x87c   :  { %21839 = vst [vmem:[#allocation62_spill] sm:$0xff] %v18942_v34  ;;  %v18945_v0 = vadd.f32 %v13989_v30, %v18690_v16  ;;  %v18960_v16 = vpop.f32.mrf.mxu0 }
 0x87d   :  { %v10273_v39 = vpop.f32.mrf.mxu1  ;;  %21842 = vst [vmem:[#allocation84_spill] sm:$0xff] %v18960_v16 }
 0x87e   :  { %21840 = vst [vmem:[#allocation86_spill] sm:$0xff] %v18945_v0  ;;  %v18948_v55 = vadd.f32 %v10273_v39, %v18696_v48  ;;  %v18966_v39 = vpop.f32.mrf.mxu0 }
 0x87f   :  { %v18950_v31 = vpop.f32.mrf.mxu1  ;;  %21844 = vst [vmem:[#allocation60_spill] sm:$0xff] %v18966_v39 }
 0x880   :  { %21841 = vst [vmem:[#allocation28_spill] sm:$0xff] %v18948_v55  ;;  %v18972_v57 = vpop.f32.mrf.mxu0 }
 0x881   :  { %v18952_v54 = vpop.f32.mrf.mxu1  ;;  %21845 = vst [vmem:[#allocation59_spill] sm:$0xff] %v18972_v57 }
 0x882   :  { %v18978_v60 = vpop.f32.mrf.mxu0 }
 0x883   :  { %v18954_v45 = vpop.f32.mrf.mxu1  ;;  %21846 = vst [vmem:[#allocation85_spill] sm:$0xff] %v18978_v60  ;;  %v9974_v60 = vadd.f32 %v18729_v53, %v18732_v49  ;;  %v9972_v53 = vadd.f32 %v18734_v21, %v18737_v25 }
 0x884   :  { %v18982_v26 = vpop.f32.mrf.mxu0  ;;  %v19055_v40 = vadd.f32 %v18954_v45, %v9970_v38 }
 0x885   :  { %v18956_v37 = vpop.f32.mrf.mxu1  ;;  %21847 = vst [vmem:[#allocation58_spill] sm:$0xff] %v18982_v26  ;;  %v9989_v26 = vadd.f32 %v18809_v5, %v18813_v32 }
 0x886   :  { %v18986_v8 = vpop.f32.mrf.mxu0  ;;  %21861 = vst [vmem:[#allocation32_spill] sm:$0xff] %v19055_v40 }
 0x887   :  { %v13996_v59 = vpop.f32.mrf.mxu1  ;;  %21848 = vst [vmem:[#allocation82_spill] sm:$0xff] %v18986_v8  ;;  %v9973_v8 = vadd.f32 %v18717_v35, %v18721_v36  ;;  %v9987_v35 = vadd.f32 %v18815_v58, %v18818_v41  ;;  %v9986_v58 = vadd.f32 %v18799_v46, %v18802_v12  ;;  %v21859_v12 = vld [vmem:[#allocation3_spill] sm:$0xff] }
 0x888   :  { %v18988_v62 = vpop.f32.mrf.mxu0 }
 0x889   :  { %v10302_v7 = vpop.f32.mrf.mxu1  ;;  %21849 = vst [vmem:[#allocation34_spill] sm:$0xff] %v18988_v62  ;;  %v19011_v49 = vadd.f32 %v13996_v59, %v9973_v8  ;;  %v9985_v8 = vadd.f32 %v18787_v18, %v18791_v13  ;;  %v21863_v13 = vld [vmem:[#allocation68_spill] sm:$0xff]  ;;  %v21867_v59 = vld [vmem:[#allocation75_spill] sm:$0xff] }
 0x88a   :  { %v19039_v11 = vadd.f32 %v10302_v7, %v9971_v23  ;;  %v21862_v7 = vld [vmem:[#allocation87_spill] sm:$0xff] }
 0x88b   :  { %v13997_v1 = vpop.f32.mrf.mxu1  ;;  %21853 = vst [vmem:[#allocation25_spill] sm:$0xff] %v19011_v49  ;;  %v9984_v18 = vadd.f32 %v21863_v13, %v21862_v7  ;;  %v21873_v23 = vld [vmem:[#allocation7_spill] sm:$0xff] }
 0x88c   :  { %v19002_v3 = vadd.f32 %v13997_v1, %v9974_v60  ;;  %21857 = vst [vmem:[#allocation54_spill] sm:$0xff] %v19039_v11 }
 0x88d   :  { %v10305_v19 = vpop.f32.mrf.mxu1 }
 0x88e   :  { %21851 = vst [vmem:[#allocation55_spill] sm:$0xff] %v19002_v3  ;;  %v19026_v21 = vadd.f32 %v10305_v19, %v9972_v53 }
 0x88f   :  { %v18958_v50 = vpop.f32.mrf.mxu1 }
 0x890   :  { %21855 = vst [vmem:[#allocation24_spill] sm:$0xff] %v19026_v21 }
 0x891   :  { %v18962_v30 = vpop.f32.mrf.mxu1 }
 0x892   :  { %21843 = vst [vmem:[#allocation26_spill] sm:$0xff] %v18962_v30  ;;  %v19000_v30 = vpop.f32.mrf.mxu0 }
 0x893   :  { %v18964_v48 = vpop.f32.mrf.mxu1 }
 0x894   :  { %v19024_v44 = vpop.f32.mrf.mxu0 }
 0x895   :  { %v18968_v43 = vpop.f32.mrf.mxu1 }
 0x896   :  { %v19052_v60 = vpop.f32.mrf.mxu0 }
 0x897   :  { %v18970_v6 = vpop.f32.mrf.mxu1 }
 0x899   :  { %v18974_v51 = vpop.f32.mrf.mxu1 }
 0x89b   :  { %v18976_v15 = vpop.f32.mrf.mxu1 }
 0x89d   :  { %v18980_v20 = vpop.f32.mrf.mxu1 }
 0x89f   :  { %v14008_v16 = vpop.f32.mrf.mxu1 }
 0x8a1   :  { %v18984_v24 = vpop.f32.mrf.mxu1 }
 0x8a3   :  { %v14009_v39 = vpop.f32.mrf.mxu1 }
 0x8a5   :  { %v10353_v4 = vpop.f32.mrf.mxu1 }
 0x8a7   :  { %v14012_v61 = vpop.f32.mrf.mxu1 }
 0x8a8   :  { %v19006_v52 = vadd.f32 %v14012_v61, %v9989_v26  ;;  %v19044_v26 = vadd.f32 %v14009_v39, %v9986_v58  ;;  %v19060_v61 = vadd.f32 %v14008_v16, %v9985_v8  ;;  %v21869_v39 = vld [vmem:[#allocation43_spill] sm:$0xff]  ;;  %v19082_v58 = vpop.f32.mrf.mxu0  ;;  %v21876_v8 = vld [vmem:[#allocation44_spill] sm:$0xff] }
 0x8a9   :  { %v10366_v57 = vpop.f32.mrf.mxu1 }
 0x8aa   :  { %21852 = vst [vmem:[#allocation61_spill] sm:$0xff] %v19006_v52  ;;  %v19031_v41 = vadd.f32 %v10366_v57, %v9987_v35  ;;  %21858 = vst [vmem:[#allocation30_spill] sm:$0xff] %v19044_v26  ;;  %v21872_v35 = vld [vmem:[#allocation96_spill] sm:$0xff] }
 0x8ab   :  { %v14013_v2 = vpop.f32.mrf.mxu1  ;;  %21864 = vst [vmem:[#allocation51_spill] sm:$0xff] %v19060_v61 }
 0x8ac   :  { %v18996_v42 = vadd.f32 %v14013_v2, %v9990_v47  ;;  %21856 = vst [vmem:[#allocation89_spill] sm:$0xff] %v19031_v41  ;;  %v21866_v2 = vld [vmem:[#allocation19_spill] sm:$0xff] }
 0x8ad   :  { %v10369_v62 = vpop.f32.mrf.mxu1  ;;  %v9968_v1 = vadd.f32 %v21867_v59, %v21866_v2 }
 0x8ae   :  { %21850 = vst [vmem:[#allocation80_spill] sm:$0xff] %v18996_v42  ;;  %12718 = vmatprep.subr.mxu0 %v18996_v42  ;;  %v19016_v36 = vadd.f32 %v10369_v62, %v9988_v33  ;;  %v21870_v33 = vld [vmem:[#allocation70_spill] sm:$0xff] }
 0x8af   :  { %v14016_v5 = vpop.f32.mrf.mxu1  ;;  %12719 = vmatpush3.msra.mxu0 %v19002_v3  ;;  %v9983_v53 = vadd.f32 %v21870_v33, %v21869_v39  ;;  %v21912_v42 = vld [vmem:[#allocation106_spill] sm:$0xff] }
 0x8b0   :  { %21854 = vst [vmem:[#allocation81_spill] sm:$0xff] %v19016_v36  ;;  %v19019_v32 = vadd.f32 %v14016_v5, %v18831_v22  ;;  %12720 = vmatprep.subr.mxu0 %v19006_v52  ;;  %v19074_v5 = vadd.f32 %v10353_v4, %v9984_v18 }
 0x8b1   :  { %v10382_v25 = vpop.f32.mrf.mxu1  ;;  %12721 = vmatpush3.msra.mxu0 %v19011_v49 }
 0x8b2   :  { %v19034_v22 = vadd.f32 %v10382_v25, %v18834_v28  ;;  %12722 = vmatprep.subr.mxu0 %v19016_v36  ;;  %v21860_v28 = vld [vmem:[#allocation6_spill] sm:$0xff]  ;;  %21871 = vst [vmem:[#allocation53_spill] sm:$0xff] %v19074_v5  ;;  %v9967_v25 = vadd.f32 %v21873_v23, %v21872_v35  ;;  %v21889_v35 = vld [vmem:[#allocation88_spill] sm:$0xff] }
 0x8b3   :  { %v14017_v62 = vpop.f32.mrf.mxu1  ;;  %12723 = vmatpush3.msra.mxu0 %v19026_v21  ;;  %v9969_v57 = vadd.f32 %v21860_v28, %v21859_v12  ;;  %v19091_v12 = vadd.f32 %v18984_v24, %v9983_v53  ;;  %v21911_v21 = vld [vmem:[#allocation58_spill] sm:$0xff] }
 0x8b4   :  { %v19047_v46 = vadd.f32 %v14017_v62, %v18837_v9  ;;  %12724 = vmatprep.subr.mxu0 %v19031_v41  ;;  %v21865_v9 = vld [vmem:[#allocation14_spill] sm:$0xff]  ;;  %v21875_v62 = vld [vmem:[#allocation48_spill] sm:$0xff]  ;;  %v19098_v28 = vadd.f32 %v18952_v54, %v9967_v25  ;;  %v21882_v54 = vld [vmem:[#allocation71_spill] sm:$0xff] }
 0x8b5   :  { %v10385_v14 = vpop.f32.mrf.mxu1  ;;  %12725 = vmatpush3.msra.mxu0 %v19039_v11  ;;  %v19069_v19 = vadd.f32 %v18950_v31, %v9969_v57  ;;  %v19085_v31 = vadd.f32 %v18956_v37, %v9968_v1  ;;  %v9982_v4 = vadd.f32 %v21876_v8, %v21875_v62  ;;  %21877 = vst [vmem:[#allocation57_spill] sm:$0xff] %v19091_v12  ;;  %v21879_v37 = vld [vmem:[#allocation17_spill] sm:$0xff]  ;;  %v21892_v62 = vld [vmem:[#allocation74_spill] sm:$0xff]  ;;  %v21910_v41 = vld [vmem:[#allocation67_spill] sm:$0xff] }
 0x8b6   :  { %v19063_v47 = vadd.f32 %v10385_v14, %v21865_v9  ;;  %12726 = vmatprep.subr.mxu0 %v19044_v26  ;;  %21878 = vst [vmem:[#allocation90_spill] sm:$0xff] %v19098_v28  ;;  %v21880_v14 = vld [vmem:[#allocation16_spill] sm:$0xff]  ;;  %v21883_v9 = vld [vmem:[#allocation91_spill] sm:$0xff]  ;;  %v10005_v36 = vadd.f32 %v21911_v21, %v21910_v41  ;;  %v21916_v41 = vld [vmem:[#allocation82_spill] sm:$0xff] }
 0x8b7   :  { %21868 = vst [vmem:[#allocation52_spill] sm:$0xff] %v19069_v19  ;;  %v14020_v45 = vpop.f32.mrf.mxu1  ;;  %12727 = vmatpush3.msra.mxu0 %v19055_v40  ;;  %21874 = vst [vmem:[#allocation56_spill] sm:$0xff] %v19085_v31  ;;  %v9981_v7 = vadd.f32 %v21880_v14, %v21879_v37  ;;  %v19104_v13 = vadd.f32 %v18976_v15, %v9982_v4  ;;  %v9980_v2 = vadd.f32 %v21883_v9, %v21882_v54  ;;  %v21885_v15 = vld [vmem:[#allocation45_spill] sm:$0xff]  ;;  %v21895_v14 = vld [vmem:[#allocation46_spill] sm:$0xff] }
 0x8b8   :  { %v19077_v16 = vadd.f32 %v14020_v45, %v18843_v63  ;;  %12728 = vmatprep.subr.mxu0 %v19060_v61  ;;  %v21886_v45 = vld [vmem:[#allocation73_spill] sm:$0xff]  ;;  %v21898_v9 = vld [vmem:[#allocation47_spill] sm:$0xff] }
 0x8b9   :  { %v10398_v38 = vpop.f32.mrf.mxu1  ;;  %12729 = vmatpush3.msra.mxu0 %v19069_v19  ;;  %21881 = vst [vmem:[#allocation31_spill] sm:$0xff] %v19104_v13  ;;  %v19116_v59 = vadd.f32 %v18970_v6, %v9981_v7  ;;  %v9979_v39 = vadd.f32 %v21886_v45, %v21885_v15  ;;  %v19128_v33 = vadd.f32 %v18980_v20, %v9980_v2  ;;  %v21891_v20 = vld [vmem:[#allocation5_spill] sm:$0xff]  ;;  %v21909_v40 = vld [vmem:[#allocation103_spill] sm:$0xff] }
 0x8ba   :  { %v19094_v63 = vadd.f32 %v10398_v38, %v18846_v56  ;;  %12730 = vmatprep.subr.mxu0 %v19074_v5  ;;  %v19110_v56 = vpop.f32.mrf.mxu0  ;;  %v9977_v8 = vadd.f32 %v21892_v62, %v21891_v20  ;;  %v21903_v20 = vld [vmem:[#allocation35_spill] sm:$0xff] }
 0x8bb   :  { %v14021_v57 = vpop.f32.mrf.mxu1  ;;  %12731 = vmatpush3.msra.mxu0 %v19085_v31  ;;  %21884 = vst [vmem:[#allocation21_spill] sm:$0xff] %v19116_v59  ;;  %21887 = vst [vmem:[#allocation83_spill] sm:$0xff] %v19128_v33  ;;  %v19139_v25 = vadd.f32 %v18974_v51, %v9979_v39  ;;  %v21894_v51 = vld [vmem:[#allocation94_spill] sm:$0xff]  ;;  %v21915_v21 = vld [vmem:[#allocation15_spill] sm:$0xff] }
 0x8bc   :  { %v19107_v24 = vadd.f32 %v14021_v57, %v18849_v27  ;;  %12732 = vmatprep.subr.mxu0 %v19091_v12  ;;  %v19131_v53 = vpop.f32.mrf.mxu0  ;;  %v9976_v7 = vadd.f32 %v21895_v14, %v21894_v51  ;;  %v21905_v51 = vmov 1.0   ;;  %v21907_v12 = vld [vmem:[#allocation64_spill] sm:$0xff]  ;;  %v21908_v31 = vld [vmem:[#allocation34_spill] sm:$0xff] }
 0x8bd   :  { %v10401_v18 = vpop.f32.mrf.mxu1  ;;  %12733 = vmatpush3.msra.mxu0 %v19098_v28  ;;  %21890 = vst [vmem:[#allocation92_spill] sm:$0xff] %v19139_v25  ;;  %v10006_v5 = vadd.f32 %v21908_v31, %v21907_v12 }
 0x8be   :  { %v19119_v1 = vadd.f32 %v10401_v18, %v18852_v29  ;;  %12734 = vmatprep.subr.mxu0 %v19104_v13  ;;  %v21888_v29 = vld [vmem:[#allocation72_spill] sm:$0xff]  ;;  %v19151_v57 = vpop.f32.mrf.mxu0  ;;  %v19159_v18 = vadd.f32 %v18958_v50, %v9977_v8  ;;  %v19166_v15 = vadd.f32 %v18968_v43, %v9976_v7  ;;  %v21901_v50 = vld [vmem:[#allocation26_spill] sm:$0xff]  ;;  %v21904_v8 = vld [vmem:[#allocation27_spill] sm:$0xff] }
 0x8bf   :  { %v19122_v27 = vpop.f32.mrf.mxu1  ;;  %12735 = vmatpush3.msra.mxu0 %v18945_v0  ;;  %v9978_v23 = vadd.f32 %v21889_v35, %v21888_v29  ;;  %v21900_v29 = vld [vmem:[#allocation29_spill] sm:$0xff] }
 0x8c0   :  { %12736 = vmatprep.subr.mxu0 %v19116_v59  ;;  %21896 = vst [vmem:[#allocation50_spill] sm:$0xff] %v19159_v18  ;;  %21899 = vst [vmem:[#allocation22_spill] sm:$0xff] %v19166_v15  ;;  %v19169_v45 = vpop.f32.mrf.mxu0  ;;  %v21906_v13 = vld [vmem:[#allocation105_spill] sm:$0xff] }
 0x8c1   :  { %v19133_v6 = vpop.f32.mrf.mxu1  ;;  %12737 = vmatpush3.msra.mxu0 %v18939_v17  ;;  %v19148_v4 = vadd.f32 %v18964_v48, %v9978_v23  ;;  %v21897_v48 = vld [vmem:[#allocation93_spill] sm:$0xff] }
 0x8c2   :  { %12738 = vmatprep.subr.mxu0 %v19128_v33  ;;  %v9975_v2 = vadd.f32 %v21898_v9, %v21897_v48  ;;  %v19178_v62 = vpop.f32.mrf.mxu0 }
 0x8c3   :  { %v19142_v38 = vpop.f32.mrf.mxu1  ;;  %12739 = vmatpush3.msra.mxu0 %v18948_v55  ;;  %21893 = vst [vmem:[#allocation49_spill] sm:$0xff] %v19148_v4 }
 0x8c4   :  { %12740 = vmatprep.subr.mxu0 %v19139_v25  ;;  %v19173_v35 = vadd.f32 %v21901_v50, %v9975_v2  ;;  %v13974_v7 = vpop.f32.mrf.mxu0 }
 0x8c5   :  { %v19153_v37 = vpop.f32.mrf.mxu1  ;;  %12741 = vmatpush3.msra.mxu0 %v18942_v34 }
 0x8c6   :  { %12742 = vmatprep.subr.mxu0 %v19148_v4  ;;  %21902 = vst [vmem:[#allocation10_spill] sm:$0xff] %v19173_v35  ;;  %v9928_v2 = vpop.f32.mrf.mxu0 }
 0x8c7   :  { %v14028_v54 = vpop.f32.mrf.mxu1  ;;  %12743 = vmatpush3.msra.mxu0 %v18933_v10 }
 0x8c8   :  { %12744 = vmatprep.subr.mxu0 %v19159_v18  ;;  %v19215_v12 = vadd.f32 %v14028_v54, %v10005_v36  ;;  %v21918_v36 = vld [vmem:[#allocation41_spill] sm:$0xff] }
 0x8c9   :  { %v10430_v39 = vpop.f32.mrf.mxu1  ;;  %12745 = vmatpush3.msra.mxu0 %v21900_v29  ;;  %v21921_v54 = vld [vmem:[#allocation13_spill] sm:$0xff] }
 0x8ca   :  { %12746 = vmatprep.subr.mxu0 %v19166_v15 }
 0x8cb   :  { %v14029_v23 = vpop.f32.mrf.mxu1  ;;  %12747 = vmatpush3.msra.mxu0 %v21903_v20  ;;  %v13975_v20 = vpop.f32.mrf.mxu0 }
 0x8cc   :  { %12748 = vmatprep.subr.mxu0 %v19173_v35  ;;  %v19207_v49 = vadd.f32 %v14029_v23, %v10006_v5  ;;  %v21922_v23 = vld [vmem:[#allocation84_spill] sm:$0xff] }
 0x8cd   :  { %v10433_v43 = vpop.f32.mrf.mxu1  ;;  %12749 = vmatpush3.msra.mxu0 %v21904_v8  ;;  %v9931_v29 = vpop.f32.mrf.mxu0 }
 0x8ce   :  { %10640 = vmatmul.mubr.f32.vlgmr.msra.gmra.mxu0 %v21905_v51 }
 0x8cf   :  { %v19182_v14 = vpop.f32.mrf.mxu1  ;;  %10709 = vmatprep.mubr.f32.mxu0 %v21905_v51  ;;  %v13978_v10 = vpop.f32.mrf.mxu0 }
 0x8d0   :  { %v10021_v26 = vadd.f32 %v13978_v10, %v21909_v40  ;;  %v21914_v10 = vld [vmem:[#allocation104_spill] sm:$0xff] }
 0x8d1   :  { %v19185_v48 = vpop.f32.mrf.mxu1  ;;  %v9944_v25 = vpop.f32.mrf.mxu0 }
 0x8d2   :  { %v10019_v40 = vadd.f32 %v9944_v25, %v21914_v10 }
 0x8d3   :  { %v19187_v9 = vpop.f32.mrf.mxu1  ;;  %v13979_v17 = vpop.f32.mrf.mxu0 }
 0x8d4   :  { %v10022_v28 = vadd.f32 %v13979_v17, %v21906_v13  ;;  %v21913_v17 = vld [vmem:[#allocation12_spill] sm:$0xff] }
 0x8d5   :  { %v19189_v50 = vpop.f32.mrf.mxu1  ;;  %v9947_v19 = vpop.f32.mrf.mxu0  ;;  %v10004_v31 = vadd.f32 %v19000_v30, %v21913_v17 }
 0x8d6   :  { %v10020_v3 = vadd.f32 %v9947_v19, %v21912_v42  ;;  %v10003_v42 = vadd.f32 %v21916_v41, %v21915_v21  ;;  %v21917_v19 = vld [vmem:[#allocation100_spill] sm:$0xff]  ;;  %v21927_v41 = vld [vmem:[#allocation69_spill] sm:$0xff] }
 0x8d7   :  { %v19191_v35 = vpop.f32.mrf.mxu1  ;;  %v10018_v5 = vadd.f32 %v13975_v20, %v21917_v19  ;;  %v10001_v20 = vadd.f32 %v21922_v23, %v21921_v54  ;;  %v21929_v19 = vld [vmem:[#allocation99_spill] sm:$0xff] }
 0x8d8   :  { %v21936_v54 = vld [vmem:[#allocation11_spill] sm:$0xff] }
 0x8d9   :  { %v19193_v15 = vpop.f32.mrf.mxu1  ;;  %v19253_v10 = vadd.f32 %v19122_v27, %v10001_v20  ;;  %v10014_v27 = vadd.f32 %v19169_v45, %v21929_v19  ;;  %v21931_v45 = vld [vmem:[#allocation40_spill] sm:$0xff]  ;;  %v21942_v19 = vld [vmem:[#allocation61_spill] sm:$0xff] }
 0x8db   :  { %v19195_v8 = vpop.f32.mrf.mxu1 }
 0x8dd   :  { %v19197_v18 = vpop.f32.mrf.mxu1 }
 0x8df   :  { %v14040_v4 = vpop.f32.mrf.mxu1 }
 0x8e1   :  { %v10478_v34 = vpop.f32.mrf.mxu1 }
 0x8e3   :  { %v14041_v55 = vpop.f32.mrf.mxu1 }
 0x8e4   :  { %v19237_v25 = vadd.f32 %v14041_v55, %v10018_v5 }
 0x8e5   :  { %v10481_v33 = vpop.f32.mrf.mxu1 }
 0x8e7   :  { %v14044_v59 = vpop.f32.mrf.mxu1 }
 0x8e8   :  { %v19210_v51 = vadd.f32 %v14044_v59, %v10021_v26  ;;  %v19224_v26 = vadd.f32 %v10433_v43, %v10004_v31  ;;  %v21923_v43 = vld [vmem:[#allocation101_spill] sm:$0xff]  ;;  %v21924_v31 = vld [vmem:[#allocation42_spill] sm:$0xff] }
 0x8e9   :  { %v10494_v0 = vpop.f32.mrf.mxu1  ;;  %v10016_v17 = vadd.f32 %v9931_v29, %v21923_v43  ;;  %v21928_v29 = vld [vmem:[#allocation60_spill] sm:$0xff] }
 0x8ea   :  { %v19228_v30 = vadd.f32 %v10494_v0, %v10019_v40  ;;  %v21926_v40 = vld [vmem:[#allocation38_spill] sm:$0xff] }
 0x8eb   :  { %v14045_v61 = vpop.f32.mrf.mxu1  ;;  %v10015_v21 = vadd.f32 %v9928_v2, %v21926_v40  ;;  %v21930_v2 = vld [vmem:[#allocation102_spill] sm:$0xff]  ;;  %v21939_v40 = vld [vmem:[#allocation55_spill] sm:$0xff] }
 0x8ec   :  { %v19203_v11 = vadd.f32 %v14045_v61, %v10022_v28  ;;  %v21919_v28 = vld [vmem:[#allocation59_spill] sm:$0xff] }
 0x8ed   :  { %v10497_v52 = vpop.f32.mrf.mxu1  ;;  %v10002_v13 = vadd.f32 %v21919_v28, %v21918_v36  ;;  %v19268_v5 = vadd.f32 %v10478_v34, %v10015_v21  ;;  %v10013_v36 = vadd.f32 %v19131_v53, %v21930_v2  ;;  %v10012_v34 = vadd.f32 %v19178_v62, %v21931_v45 }
 0x8ee   :  { %12753 = vmatprep.subr.mxu0 %v19203_v11  ;;  %v19219_v61 = vadd.f32 %v10497_v52, %v10020_v3  ;;  %v19233_v3 = vadd.f32 %v10430_v39, %v10003_v42  ;;  %v21920_v52 = vld [vmem:[#allocation98_spill] sm:$0xff] }
 0x8ef   :  { %12754 = vmatpush3.msra.mxu0 %v19207_v49  ;;  %v10017_v59 = vadd.f32 %v13974_v7, %v21920_v52  ;;  %v19243_v0 = vadd.f32 %v19142_v38, %v10002_v13  ;;  %v21925_v7 = vld [vmem:[#allocation85_spill] sm:$0xff]  ;;  %v19257_v38 = vadd.f32 %v10481_v33, %v10016_v17  ;;  %v19285_v28 = vadd.f32 %v19191_v35, %v10013_v36  ;;  %v21933_v13 = vld [vmem:[#allocation36_spill] sm:$0xff] }
 0x8f0   :  { %12755 = vmatprep.subr.mxu0 %v19210_v51  ;;  %v10000_v55 = vadd.f32 %v21925_v7, %v21924_v31  ;;  %v10010_v62 = vadd.f32 %v19082_v58, %v21933_v13  ;;  %v21934_v52 = vld [vmem:[#allocation65_spill] sm:$0xff] }
 0x8f1   :  { %12756 = vmatpush3.msra.mxu0 %v19215_v12  ;;  %v19247_v39 = vadd.f32 %v14040_v4, %v10017_v59  ;;  %v9999_v4 = vadd.f32 %v21928_v29, %v21927_v41  ;;  %v21935_v59 = vld [vmem:[#allocation23_spill] sm:$0xff]  ;;  %v21938_v7 = vld [vmem:[#allocation33_spill] sm:$0xff]  ;;  %v21940_v41 = vld [vmem:[#allocation80_spill] sm:$0xff] }
 0x8f2   :  { %12757 = vmatprep.subr.mxu0 %v19219_v61  ;;  %v19263_v42 = vadd.f32 %v19153_v37, %v10000_v55  ;;  %v19278_v37 = vadd.f32 %v19195_v8, %v10014_v27  ;;  %v19292_v8 = vadd.f32 %v19197_v18, %v10012_v34  ;;  %v19306_v18 = vadd.f32 %v19187_v9, %v10010_v62  ;;  %v21944_v36 = vld [vmem:[#allocation25_spill] sm:$0xff] }
 0x8f3   :  { %12758 = vmatpush3.msra.mxu0 %v19224_v26  ;;  %v19272_v33 = vadd.f32 %v19133_v6, %v9999_v4  ;;  %v21932_v6 = vld [vmem:[#allocation39_spill] sm:$0xff]  ;;  %v10008_v58 = vadd.f32 %v19110_v56, %v21935_v59  ;;  %v21937_v56 = vmov 1.0   ;;  %v21945_v34 = vld [vmem:[#allocation81_spill] sm:$0xff]  ;;  %v21950_v59 = vld [vmem:[#allocation54_spill] sm:$0xff] }
 0x8f4   :  { %12759 = vmatprep.subr.mxu0 %v19228_v30  ;;  %v10011_v53 = vadd.f32 %v19151_v57, %v21932_v6  ;;  %v10009_v57 = vadd.f32 %v19024_v44, %v21934_v52  ;;  %v10007_v44 = vadd.f32 %v19052_v60, %v21936_v54  ;;  %v21948_v62 = vld [vmem:[#allocation89_spill] sm:$0xff] }
 0x8f5   :  { %12760 = vmatpush3.msra.mxu0 %v19233_v3  ;;  %v19320_v9 = vadd.f32 %v19189_v50, %v10008_v58 }
 0x8f6   :  { %12761 = vmatprep.subr.mxu0 %v19237_v25  ;;  %v19299_v35 = vadd.f32 %v19193_v15, %v10011_v53  ;;  %v19313_v15 = vadd.f32 %v19182_v14, %v10009_v57  ;;  %v19325_v23 = vadd.f32 %v19185_v48, %v10007_v44  ;;  %v21947_v53 = vld [vmem:[#allocation24_spill] sm:$0xff]  ;;  %v21951_v44 = vld [vmem:[#allocation30_spill] sm:$0xff] }
 0x8f7   :  { %12762 = vmatpush3.msra.mxu0 %v19243_v0 }
 0x8f8   :  { %12763 = vmatprep.subr.mxu0 %v19247_v39 }
 0x8f9   :  { %12764 = vmatpush3.msra.mxu0 %v19253_v10 }
 0x8fa   :  { %12765 = vmatprep.subr.mxu0 %v19257_v38 }
 0x8fb   :  { %12766 = vmatpush3.msra.mxu0 %v19263_v42 }
 0x8fc   :  { %12767 = vmatprep.subr.mxu0 %v19268_v5 }
 0x8fd   :  { %12768 = vmatpush3.msra.mxu0 %v19272_v33 }
 0x8fe   :  { %12769 = vmatprep.subr.mxu0 %v19278_v37 }
 0x8ff   :  { %12770 = vmatpush3.msra.mxu0 %v19107_v24 }
 0x900   :  { %12771 = vmatprep.subr.mxu0 %v19285_v28 }
 0x901   :  { %12772 = vmatpush3.msra.mxu0 %v19077_v16 }
 0x902   :  { %12773 = vmatprep.subr.mxu0 %v19292_v8 }
 0x903   :  { %12774 = vmatpush3.msra.mxu0 %v19119_v1 }
 0x904   :  { %12775 = vmatprep.subr.mxu0 %v19299_v35 }
 0x905   :  { %12776 = vmatpush3.msra.mxu0 %v19094_v63 }
 0x906   :  { %12777 = vmatprep.subr.mxu0 %v19306_v18 }
 0x907   :  { %12778 = vmatpush3.msra.mxu0 %v19047_v46 }
 0x908   :  { %12779 = vmatprep.subr.mxu0 %v19313_v15 }
 0x909   :  { %12780 = vmatpush3.msra.mxu0 %v19019_v32 }
 0x90a   :  { %12781 = vmatprep.subr.mxu0 %v19320_v9 }
 0x90b   :  { %12782 = vmatpush3.msra.mxu0 %v19063_v47 }
 0x90c   :  { %12783 = vmatprep.subr.mxu0 %v19325_v23 }
 0x90d   :  { %12784 = vmatpush3.msra.mxu0 %v19034_v22 }
 0x90e   :  { %10710 = vmatmul.mubr.f32.vlgmr.msra.gmra.mxu0 %v21937_v56 }
 0x90f   :  { %10912 = vmatprep.mubr.f32.mxu0 %v21937_v56 }
 0x98e   :  { %v12750_v60 = vpop.f32.mrf.mxu0 }
 0x990   :  { %v12751_v14 = vpop.f32.mrf.mxu0 }
 0x991   :  { %v12752_v17 = vadd.f32 %v12751_v14, %v12750_v60 }
 0x9ce   :  { %v12785_v50 = vpop.f32.mrf.mxu0 }
 0x9d0   :  { %v12786_v20 = vpop.f32.mrf.mxu0 }
 0x9d1   :  { %v12787_v43 = vadd.f32 %v12786_v20, %v12785_v50  ;;  %v21953_v50 = vld [vmem:[#allocation32_spill] sm:$0xff] }
 0x9d3   :  { %v10712_v48 = vadd.f32 %v12787_v43, %v12752_v17  ;;  %v21954_v17 = vld [vmem:[#allocation51_spill] sm:$0xff] }
 0x9d5   :  { %v10715_v31 = vmul.f32 0.001953125, %v10712_v48 }
 0x9d7   :  { %v19334_v55 = vrot.slane %v10715_v31, %v21938_v7 }
 0x9d9   :  { %v19338_v21 = vsub.f32 %v21939_v40, %v19334_v55  ;;  %v19342_v29 = vsub.f32 %v21940_v41, %v19334_v55  ;;  %v19348_v27 = vsub.f32 %v21942_v19, %v19334_v55  ;;  %v19354_v45 = vsub.f32 %v21944_v36, %v19334_v55  ;;  %v21956_v40 = vld [vmem:[#allocation52_spill] sm:$0xff]  ;;  %v21957_v19 = vld [vmem:[#allocation53_spill] sm:$0xff] }
 0x9da   :  { %v19358_v6 = vsub.f32 %v21945_v34, %v19334_v55  ;;  %v19362_v13 = vsub.f32 %v21947_v53, %v19334_v55  ;;  %v19366_v52 = vsub.f32 %v21948_v62, %v19334_v55  ;;  %v19372_v58 = vsub.f32 %v21950_v59, %v19334_v55  ;;  %v21959_v34 = vld [vmem:[#allocation56_spill] sm:$0xff] }
 0x9db   :  { %21941 = vst [vmem:[#allocation8_spill] sm:$0xff] %v19342_v29  ;;  %v10799_v4 = vmul.f32 %v19338_v21, %v19338_v21  ;;  %21943 = vst [vmem:[#allocation79_spill] sm:$0xff] %v19348_v27  ;;  %v10815_v2 = vmul.f32 %v19342_v29, %v19342_v29  ;;  %v10814_v57 = vmul.f32 %v19348_v27, %v19348_v27  ;;  %v21972_v29 = vld [vmem:[#allocation92_spill] sm:$0xff] }
 0x9dc   :  { %21946 = vst [vmem:[#allocation78_spill] sm:$0xff] %v19358_v6  ;;  %21949 = vst [vmem:[#allocation66_spill] sm:$0xff] %v19366_v52  ;;  %v10798_v54 = vmul.f32 %v19354_v45, %v19354_v45  ;;  %v19378_v60 = vsub.f32 %v21951_v44, %v19334_v55  ;;  %v10813_v14 = vmul.f32 %v19358_v6, %v19358_v6  ;;  %v21962_v44 = vld [vmem:[#allocation90_spill] sm:$0xff]  ;;  %v21974_v6 = vld [vmem:[#allocation49_spill] sm:$0xff] }
 0x9dd   :  { %12788 = vmatprep.subr.mxu0 %v10815_v2  ;;  %v19384_v20 = vsub.f32 %v21953_v50, %v19334_v55  ;;  %v10797_v43 = vmul.f32 %v19362_v13, %v19362_v13  ;;  %v19390_v48 = vsub.f32 %v21954_v17, %v19334_v55  ;;  %v10812_v31 = vmul.f32 %v19366_v52, %v19366_v52 }
 0x9de   :  { %12789 = vmatpush3.msra.mxu0 %v10799_v4  ;;  %21952 = vst [vmem:[#allocation9_spill] sm:$0xff] %v19378_v60  ;;  %v19396_v41 = vsub.f32 %v21956_v40, %v19334_v55  ;;  %v10796_v4 = vmul.f32 %v19372_v58, %v19372_v58  ;;  %v19402_v2 = vsub.f32 %v21957_v19, %v19334_v55  ;;  %v21965_v40 = vld [vmem:[#allocation86_spill] sm:$0xff] }
 0x9df   :  { %12790 = vmatprep.subr.mxu0 %v10814_v57  ;;  %21955 = vst [vmem:[#allocation97_spill] sm:$0xff] %v19390_v48  ;;  %v10811_v36 = vmul.f32 %v19378_v60, %v19378_v60  ;;  %v19408_v53 = vsub.f32 %v21959_v34, %v19334_v55  ;;  %v10795_v62 = vmul.f32 %v19384_v20, %v19384_v20  ;;  %v21960_v57 = vld [vmem:[#allocation57_spill] sm:$0xff]  ;;  %v21976_v60 = vld [vmem:[#allocation50_spill] sm:$0xff] }
 0x9e0   :  { %12791 = vmatpush3.msra.mxu0 %v10798_v54  ;;  %21958 = vst [vmem:[#allocation76_spill] sm:$0xff] %v19402_v2  ;;  %v19414_v59 = vsub.f32 %v21960_v57, %v19334_v55  ;;  %v10810_v54 = vmul.f32 %v19390_v48, %v19390_v48  ;;  %v10794_v50 = vmul.f32 %v19396_v41, %v19396_v41  ;;  %v21968_v57 = vld [vmem:[#allocation63_spill] sm:$0xff] }
 0x9e1   :  { %12792 = vmatprep.subr.mxu0 %v10813_v14  ;;  %v19420_v14 = vsub.f32 %v21962_v44, %v19334_v55  ;;  %v10793_v19 = vmul.f32 %v19408_v53, %v19408_v53  ;;  %v19462_v27 = vsub.f32 %v21972_v29, %v19334_v55  ;;  %v19474_v52 = vsub.f32 %v21974_v6, %v19334_v55 }
 0x9e2   :  { %12793 = vmatpush3.msra.mxu0 %v10797_v43  ;;  %21961 = vst [vmem:[#allocation4_spill] sm:$0xff] %v19414_v59  ;;  %v21963_v43 = vld [vmem:[#allocation31_spill] sm:$0xff]  ;;  %v19486_v48 = vsub.f32 %v21976_v60, %v19334_v55 }
 0x9e3   :  { %12794 = vmatprep.subr.mxu0 %v10812_v31  ;;  %v19426_v17 = vsub.f32 %v21963_v43, %v19334_v55  ;;  %v10809_v31 = vmul.f32 %v19402_v2, %v19402_v2  ;;  %v10792_v44 = vmul.f32 %v19420_v14, %v19420_v14  ;;  %v21969_v43 = vld [vmem:[#allocation83_spill] sm:$0xff]  ;;  %v10804_v6 = vmul.f32 %v19462_v27, %v19462_v27  ;;  %v21978_v2 = vld [vmem:[#allocation22_spill] sm:$0xff] }
 0x9e4   :  { %12795 = vmatpush3.msra.mxu0 %v10796_v4  ;;  %v19432_v4 = vsub.f32 %v21965_v40, %v19334_v55  ;;  %v19450_v40 = vsub.f32 %v21969_v43, %v19334_v55  ;;  %v10803_v60 = vmul.f32 %v19474_v52, %v19474_v52 }
 0x9e5   :  { %12796 = vmatprep.subr.mxu0 %v10811_v36  ;;  %21964 = vst [vmem:[#allocation95_spill] sm:$0xff] %v19426_v17  ;;  %v21966_v36 = vld [vmem:[#allocation21_spill] sm:$0xff] }
 0x9e6   :  { %12797 = vmatpush3.msra.mxu0 %v10795_v62  ;;  %v19438_v34 = vsub.f32 %v21966_v36, %v19334_v55  ;;  %v10808_v62 = vmul.f32 %v19414_v59, %v19414_v59  ;;  %21970 = vst [vmem:[#allocation18_spill] sm:$0xff] %v19450_v40  ;;  %v10805_v29 = vmul.f32 %v19450_v40, %v19450_v40 }
 0x9e7   :  { %12798 = vmatprep.subr.mxu0 %v10810_v54  ;;  %v19444_v54 = vsub.f32 %v21968_v57, %v19334_v55  ;;  %v10791_v57 = vmul.f32 %v19432_v4, %v19432_v4  ;;  %v19498_v59 = vsub.f32 %v21978_v2, %v19334_v55  ;;  %v10802_v2 = vmul.f32 %v19486_v48, %v19486_v48 }
 0x9e8   :  { %12799 = vmatpush3.msra.mxu0 %v10794_v50  ;;  %21967 = vst [vmem:[#allocation20_spill] sm:$0xff] %v19438_v34  ;;  %v10807_v50 = vmul.f32 %v19426_v17, %v19426_v17  ;;  %v21980_v17 = vld [vmem:[#allocation10_spill] sm:$0xff]  ;;  %v19522_v40 = vsub.f32 %v19203_v11, %v19334_v55 }
 0x9e9   :  { %12800 = vmatprep.subr.mxu0 %v10809_v31  ;;  %v21971_v31 = vld [vmem:[#allocation28_spill] sm:$0xff] }
 0x9ea   :  { %12801 = vmatpush3.msra.mxu0 %v10793_v19  ;;  %v19456_v36 = vsub.f32 %v21971_v31, %v19334_v55  ;;  %v10806_v19 = vmul.f32 %v19438_v34, %v19438_v34  ;;  %v10790_v31 = vmul.f32 %v19444_v54, %v19444_v54  ;;  %v19510_v34 = vsub.f32 %v21980_v17, %v19334_v55 }
 0x9eb   :  { %12802 = vmatprep.subr.mxu0 %v10808_v62  ;;  %v21973_v62 = vld [vmem:[#allocation62_spill] sm:$0xff]  ;;  %21982 = vst [vmem:[#allocation77_spill] sm:$0xff] %v19522_v40  ;;  %v10801_v17 = vmul.f32 %v19498_v59, %v19498_v59 }
 0x9ec   :  { %12803 = vmatpush3.msra.mxu0 %v10792_v44  ;;  %v19468_v43 = vsub.f32 %v21973_v62, %v19334_v55  ;;  %v21975_v44 = vld [vmem:[#allocation37_spill] sm:$0xff]  ;;  %v10789_v62 = vmul.f32 %v19456_v36, %v19456_v36  ;;  %v10800_v11 = vmul.f32 %v19510_v34, %v19510_v34 }
 0x9ed   :  { %12804 = vmatprep.subr.mxu0 %v10807_v50  ;;  %v19480_v50 = vsub.f32 %v21975_v44, %v19334_v55 }
 0x9ee   :  { %12805 = vmatpush3.msra.mxu0 %v10791_v57  ;;  %v21977_v57 = vld [vmem:[#allocation29_spill] sm:$0xff]  ;;  %v10788_v44 = vmul.f32 %v19468_v43, %v19468_v43 }
 0x9ef   :  { %12806 = vmatprep.subr.mxu0 %v10806_v19  ;;  %v19492_v19 = vsub.f32 %v21977_v57, %v19334_v55  ;;  %v10787_v57 = vmul.f32 %v19480_v50, %v19480_v50 }
 0x9f0   :  { %12807 = vmatpush3.msra.mxu0 %v10790_v31  ;;  %v21979_v31 = vld [vmem:[#allocation35_spill] sm:$0xff] }
 0x9f1   :  { %12808 = vmatprep.subr.mxu0 %v10805_v29  ;;  %v19504_v29 = vsub.f32 %v21979_v31, %v19334_v55  ;;  %v10786_v31 = vmul.f32 %v19492_v19, %v19492_v19 }
 0x9f2   :  { %12809 = vmatpush3.msra.mxu0 %v10789_v62  ;;  %v21981_v62 = vld [vmem:[#allocation27_spill] sm:$0xff] }
 0x9f3   :  { %12810 = vmatprep.subr.mxu0 %v10804_v6  ;;  %v19516_v6 = vsub.f32 %v21981_v62, %v19334_v55  ;;  %v19534_v62 = vsub.f32 %v19210_v51, %v19334_v55  ;;  %v10847_v51 = vmul.f32 %v19522_v40, %v19522_v40 }
 0x9f4   :  { %12811 = vmatpush3.msra.mxu0 %v10788_v44  ;;  %v19528_v44 = vsub.f32 %v19207_v49, %v19334_v55 }
 0x9f5   :  { %12812 = vmatprep.subr.mxu0 %v10803_v60  ;;  %v10785_v60 = vmul.f32 %v19504_v29, %v19504_v29  ;;  %21983 = vst [vmem:[#allocation3_spill] sm:$0xff] %v19534_v62  ;;  %v10784_v49 = vmul.f32 %v19516_v6, %v19516_v6 }
 0x9f6   :  { %12813 = vmatpush3.msra.mxu0 %v10787_v57  ;;  %v19540_v57 = vsub.f32 %v19215_v12, %v19334_v55  ;;  %v10831_v12 = vmul.f32 %v19528_v44, %v19528_v44 }
 0x9f7   :  { %12814 = vmatprep.subr.mxu0 %v10802_v2  ;;  %v19546_v2 = vsub.f32 %v19219_v61, %v19334_v55  ;;  %v10846_v61 = vmul.f32 %v19534_v62, %v19534_v62 }
 0x9f8   :  { %12815 = vmatpush3.msra.mxu0 %v10786_v31  ;;  %v19552_v31 = vsub.f32 %v19224_v26, %v19334_v55  ;;  %v10830_v26 = vmul.f32 %v19540_v57, %v19540_v57 }
 0x9f9   :  { %12816 = vmatprep.subr.mxu0 %v10801_v17  ;;  %21984 = vst [vmem:[#allocation6_spill] sm:$0xff] %v19546_v2  ;;  %v19558_v17 = vsub.f32 %v19228_v30, %v19334_v55  ;;  %v19572_v30 = vsub.f32 %v19237_v25, %v19334_v55 }
 0x9fa   :  { %12817 = vmatpush3.msra.mxu0 %v10785_v60  ;;  %v19565_v60 = vsub.f32 %v19233_v3, %v19334_v55  ;;  %v10829_v3 = vmul.f32 %v19552_v31, %v19552_v31 }
 0x9fb   :  { %12818 = vmatprep.subr.mxu0 %v10800_v11  ;;  %21985 = vst [vmem:[#allocation87_spill] sm:$0xff] %v19558_v17  ;;  %21986 = vst [vmem:[#allocation68_spill] sm:$0xff] %v19572_v30  ;;  %v10845_v11 = vmul.f32 %v19546_v2, %v19546_v2  ;;  %v10844_v25 = vmul.f32 %v19558_v17, %v19558_v17 }
 0x9fc   :  { %12819 = vmatpush3.msra.mxu0 %v10784_v49  ;;  %v19578_v49 = vsub.f32 %v19243_v0, %v19334_v55  ;;  %v10828_v0 = vmul.f32 %v19565_v60, %v19565_v60 }
 0x9fd   :  { %12823 = vmatprep.subr.mxu0 %v10847_v51  ;;  %10913 = vmatmul.mubr.f32.vlgmr.msra.gmra.mxu0 %v21937_v56  ;;  %v19584_v51 = vsub.f32 %v19247_v39, %v19334_v55  ;;  %v10843_v39 = vmul.f32 %v19572_v30, %v19572_v30 }
 0x9fe   :  { %12824 = vmatpush3.msra.mxu0 %v10831_v12  ;;  %10982 = vmatprep.mubr.f32.mxu0 %v21937_v56  ;;  %v19590_v12 = vsub.f32 %v19253_v10, %v19334_v55  ;;  %v10827_v10 = vmul.f32 %v19578_v49, %v19578_v49 }
 0x9ff   :  { %12825 = vmatprep.subr.mxu0 %v10846_v61  ;;  %v19596_v61 = vsub.f32 %v19257_v38, %v19334_v55  ;;  %v10842_v38 = vmul.f32 %v19584_v51, %v19584_v51 }
 0xa00   :  { %12826 = vmatpush3.msra.mxu0 %v10830_v26  ;;  %v19602_v26 = vsub.f32 %v19263_v42, %v19334_v55  ;;  %v10826_v42 = vmul.f32 %v19590_v12, %v19590_v12 }
 0xa01   :  { %12827 = vmatprep.subr.mxu0 %v10845_v11  ;;  %v19608_v11 = vsub.f32 %v19268_v5, %v19334_v55  ;;  %v10841_v5 = vmul.f32 %v19596_v61, %v19596_v61 }
 0xa02   :  { %12828 = vmatpush3.msra.mxu0 %v10829_v3  ;;  %v19614_v3 = vsub.f32 %v19272_v33, %v19334_v55  ;;  %v10825_v33 = vmul.f32 %v19602_v26, %v19602_v26 }
 0xa03   :  { %12829 = vmatprep.subr.mxu0 %v10844_v25  ;;  %v19620_v25 = vsub.f32 %v19278_v37, %v19334_v55  ;;  %v10840_v37 = vmul.f32 %v19608_v11, %v19608_v11 }
 0xa04   :  { %12830 = vmatpush3.msra.mxu0 %v10828_v0  ;;  %v19626_v0 = vsub.f32 %v19107_v24, %v19334_v55  ;;  %v10824_v24 = vmul.f32 %v19614_v3, %v19614_v3 }
 0xa05   :  { %12831 = vmatprep.subr.mxu0 %v10843_v39  ;;  %v19632_v39 = vsub.f32 %v19285_v28, %v19334_v55  ;;  %v10839_v28 = vmul.f32 %v19620_v25, %v19620_v25 }
 0xa06   :  { %12832 = vmatpush3.msra.mxu0 %v10827_v10  ;;  %v19638_v10 = vsub.f32 %v19077_v16, %v19334_v55  ;;  %v10823_v16 = vmul.f32 %v19626_v0, %v19626_v0 }
 0xa07   :  { %12833 = vmatprep.subr.mxu0 %v10842_v38  ;;  %v19644_v38 = vsub.f32 %v19292_v8, %v19334_v55  ;;  %v10838_v8 = vmul.f32 %v19632_v39, %v19632_v39 }
 0xa08   :  { %12834 = vmatpush3.msra.mxu0 %v10826_v42  ;;  %v19650_v42 = vsub.f32 %v19119_v1, %v19334_v55  ;;  %v10822_v1 = vmul.f32 %v19638_v10, %v19638_v10 }
 0xa09   :  { %12835 = vmatprep.subr.mxu0 %v10841_v5  ;;  %v19656_v5 = vsub.f32 %v19299_v35, %v19334_v55  ;;  %v10837_v35 = vmul.f32 %v19644_v38, %v19644_v38 }
 0xa0a   :  { %12836 = vmatpush3.msra.mxu0 %v10825_v33  ;;  %v19662_v33 = vsub.f32 %v19094_v63, %v19334_v55  ;;  %v10821_v63 = vmul.f32 %v19650_v42, %v19650_v42 }
 0xa0b   :  { %12837 = vmatprep.subr.mxu0 %v10840_v37  ;;  %v19668_v37 = vsub.f32 %v19306_v18, %v19334_v55  ;;  %v10836_v18 = vmul.f32 %v19656_v5, %v19656_v5 }
 0xa0c   :  { %12838 = vmatpush3.msra.mxu0 %v10824_v24  ;;  %v19674_v24 = vsub.f32 %v19047_v46, %v19334_v55  ;;  %v10820_v46 = vmul.f32 %v19662_v33, %v19662_v33 }
 0xa0d   :  { %12839 = vmatprep.subr.mxu0 %v10839_v28  ;;  %v19680_v28 = vsub.f32 %v19313_v15, %v19334_v55  ;;  %v10835_v15 = vmul.f32 %v19668_v37, %v19668_v37 }
 0xa0e   :  { %12840 = vmatpush3.msra.mxu0 %v10823_v16  ;;  %v19686_v16 = vsub.f32 %v19019_v32, %v19334_v55  ;;  %v10819_v32 = vmul.f32 %v19674_v24, %v19674_v24 }
 0xa0f   :  { %12841 = vmatprep.subr.mxu0 %v10838_v8  ;;  %v19692_v8 = vsub.f32 %v19320_v9, %v19334_v55  ;;  %v10834_v9 = vmul.f32 %v19680_v28, %v19680_v28 }
 0xa10   :  { %12842 = vmatpush3.msra.mxu0 %v10822_v1  ;;  %v19698_v1 = vsub.f32 %v19063_v47, %v19334_v55 }
 0xa11   :  { %12843 = vmatprep.subr.mxu0 %v10837_v35  ;;  %v19704_v35 = vsub.f32 %v19325_v23, %v19334_v55  ;;  %v10833_v47 = vmul.f32 %v19692_v8, %v19692_v8 }
 0xa12   :  { %12844 = vmatpush3.msra.mxu0 %v10821_v63  ;;  %v10752_v63 = vsub.f32 %v19034_v22, %v19334_v55 }
 0xa13   :  { %12845 = vmatprep.subr.mxu0 %v10836_v18  ;;  %v10818_v18 = vmul.f32 %v19686_v16, %v19686_v16  ;;  %v10832_v23 = vmul.f32 %v19704_v35, %v19704_v35 }
 0xa14   :  { %12846 = vmatpush3.msra.mxu0 %v10820_v46  ;;  %v10817_v46 = vmul.f32 %v19698_v1, %v19698_v1 }
 0xa15   :  { %12847 = vmatprep.subr.mxu0 %v10835_v15  ;;  %v10816_v15 = vmul.f32 %v10752_v63, %v10752_v63 }
 0xa16   :  { %12848 = vmatpush3.msra.mxu0 %v10819_v32 }
 0xa17   :  { %12849 = vmatprep.subr.mxu0 %v10834_v9 }
 0xa18   :  { %12850 = vmatpush3.msra.mxu0 %v10818_v18  ;;  %v10573_v18 = vld [vmem:[%s20950_s5] sm:$0x1] }
 0xa19   :  { %12851 = vmatprep.subr.mxu0 %v10833_v47 }
 0xa1a   :  { %12852 = vmatpush3.msra.mxu0 %v10817_v46 }
 0xa1b   :  { %12853 = vmatprep.subr.mxu0 %v10832_v23 }
 0xa1c   :  { %12854 = vmatpush3.msra.mxu0 %v10816_v15 }
 0xa1d   :  { %10983 = vmatmul.mubr.f32.vlgmr.msra.gmra.mxu0 %v21937_v56 }
 0xabd   :  { %v12820_v22 = vpop.f32.mrf.mxu0 }
 0xabf   :  { %v12821_v55 = vpop.f32.mrf.mxu0 }
 0xac0   :  { %v12822_v40 = vadd.f32 %v12821_v55, %v12820_v22  ;;  %v21990_v22 = vld [vmem:[#allocation4_spill] sm:$0xff] }
 0xac1   :  { %v21991_v55 = vld [vmem:[#allocation76_spill] sm:$0xff] }
 0xadd   :  { %v12855_v32 = vpop.f32.mrf.mxu0 }
 0xadf   :  { %v12856_v9 = vpop.f32.mrf.mxu0 }
 0xae0   :  { %v12857_v62 = vadd.f32 %v12856_v9, %v12855_v32  ;;  %v21993_v32 = vld [vmem:[#allocation97_spill] sm:$0xff] }
 0xae2   :  { %v10985_v2 = vadd.f32 %v12857_v62, %v12822_v40 }
 0xae4   :  { %v10988_v17 = vmul.f32 0.001953125, %v10985_v2  ;;  %v21987_v2 = vld [vmem:[#allocation18_spill] sm:$0xff] }
 0xae6   :  { %v10989_v30 = vadd.f32 1e-05, %v10988_v17  ;;  %v21988_v17 = vld [vmem:[#allocation20_spill] sm:$0xff] }
 0xae8   :  { %14068 = vrsqrt.f32 %v10989_v30  ;;  %v21989_v30 = vld [vmem:[#allocation95_spill] sm:$0xff] }
 0xaf5   :  { %v14069_v47 = vpop.eup %14068 }
 0xaf6   :  { %v10991_v46 = vmul.f32 %v14069_v47, %v10573_v18  ;;  %v21995_v18 = vld [vmem:[#allocation9_spill] sm:$0xff] }
 0xaf8   :  { %v19723_v23 = vrot.slane %v10991_v46, %v21938_v7  ;;  %v21996_v46 = vld [vmem:[#allocation66_spill] sm:$0xff] }
 0xafa   :  { %v19727_v56 = vmul.f32 %v19723_v23, %v19516_v6  ;;  %v19731_v15 = vmul.f32 %v19723_v23, %v19504_v29  ;;  %v19735_v40 = vmul.f32 %v19723_v23, %v19492_v19  ;;  %v19739_v62 = vmul.f32 %v19723_v23, %v19480_v50 }
 0xafb   :  { %v19743_v7 = vmul.f32 %v19723_v23, %v19468_v43  ;;  %v19747_v6 = vmul.f32 %v19723_v23, %v19456_v36  ;;  %v19751_v29 = vmul.f32 %v19723_v23, %v19444_v54  ;;  %v19755_v19 = vmul.f32 %v19723_v23, %v19432_v4 }
 0xafc   :  { %v19759_v50 = vmul.f32 %v19723_v23, %v19420_v14  ;;  %v19763_v43 = vmul.f32 %v19723_v23, %v19408_v53  ;;  %v19767_v36 = vmul.f32 %v19723_v23, %v19396_v41  ;;  %v19771_v54 = vmul.f32 %v19723_v23, %v19384_v20 }
 0xafd   :  { %v19775_v4 = vmul.f32 %v19723_v23, %v19372_v58  ;;  %v19779_v14 = vmul.f32 %v19723_v23, %v19362_v13  ;;  %v19783_v53 = vmul.f32 %v19723_v23, %v19354_v45  ;;  %v19787_v41 = vmul.f32 %v19723_v23, %v19338_v21 }
 0xafe   :  { %v19791_v20 = vmul.f32 %v19723_v23, %v19510_v34  ;;  %v19795_v58 = vmul.f32 %v19723_v23, %v19498_v59  ;;  %v19799_v13 = vmul.f32 %v19723_v23, %v19486_v48  ;;  %v19803_v45 = vmul.f32 %v19723_v23, %v19474_v52 }
 0xaff   :  { %v19807_v21 = vmul.f32 %v19723_v23, %v19462_v27  ;;  %v19811_v34 = vmul.f32 %v19723_v23, %v21987_v2  ;;  %v19815_v59 = vmul.f32 %v19723_v23, %v21988_v17  ;;  %v19819_v48 = vmul.f32 %v19723_v23, %v21989_v30  ;;  %v21997_v17 = vld [vmem:[#allocation78_spill] sm:$0xff] }
 0xb00   :  { %v19823_v52 = vmul.f32 %v19723_v23, %v21990_v22  ;;  %v19827_v27 = vmul.f32 %v19723_v23, %v21991_v55  ;;  %v19831_v9 = vmul.f32 %v19723_v23, %v21993_v32  ;;  %v19835_v47 = vmul.f32 %v19723_v23, %v21995_v18  ;;  %v21998_v22 = vld [vmem:[#allocation79_spill] sm:$0xff] }
 0xb01   :  { %v19839_v2 = vmul.f32 %v19723_v23, %v21996_v46  ;;  %v19843_v30 = vmul.f32 %v19723_v23, %v21997_v17  ;;  %v19847_v55 = vmul.f32 %v19723_v23, %v21998_v22  ;;  %v19858_v18 = vmul.f32 %v19723_v23, %v19698_v1 }
 0xb02   :  { %21992 = vst [vmem:[#allocation14_spill] sm:$0xff] %v19827_v27  ;;  %21994 = vst [vmem:[#allocation19_spill] sm:$0xff] %v19831_v9  ;;  %v21999_v27 = vld [vmem:[#allocation8_spill] sm:$0xff]  ;;  %v19854_v9 = vmul.f32 %v19723_v23, %v10752_v63  ;;  %v19862_v46 = vmul.f32 %v19723_v23, %v19686_v16  ;;  %v19866_v17 = vmul.f32 %v19723_v23, %v19674_v24 }
 0xb03   :  { %v19851_v32 = vmul.f32 %v19723_v23, %v21999_v27  ;;  %v19870_v22 = vmul.f32 %v19723_v23, %v19662_v33  ;;  %v19874_v63 = vmul.f32 %v19723_v23, %v19650_v42  ;;  %v19878_v1 = vmul.f32 %v19723_v23, %v19638_v10 }
 0xb04   :  { %v19882_v16 = vmul.f32 %v19723_v23, %v19626_v0  ;;  %v19886_v24 = vmul.f32 %v19723_v23, %v19614_v3  ;;  %v19890_v33 = vmul.f32 %v19723_v23, %v19602_v26  ;;  %v19894_v42 = vmul.f32 %v19723_v23, %v19590_v12 }
 0xb05   :  { %v19898_v10 = vmul.f32 %v19723_v23, %v19578_v49  ;;  %v19902_v0 = vmul.f32 %v19723_v23, %v19565_v60  ;;  %v19906_v3 = vmul.f32 %v19723_v23, %v19552_v31  ;;  %v19910_v26 = vmul.f32 %v19723_v23, %v19540_v57 }
 0xb06   :  { %v19914_v12 = vmul.f32 %v19723_v23, %v19528_v44  ;;  %v19918_v49 = vmul.f32 %v19723_v23, %v19704_v35  ;;  %v19922_v60 = vmul.f32 %v19723_v23, %v19692_v8  ;;  %v19926_v31 = vmul.f32 %v19723_v23, %v19680_v28  ;;  %v19935_v44 = vld [vmem:[%s20951_s6] ss:$0 sm:$0xff] }
 0xb07   :  { %v19930_v57 = vmul.f32 %v19723_v23, %v19668_v37  ;;  %v19939_v35 = vmul.f32 %v19723_v23, %v19656_v5  ;;  %v19943_v8 = vmul.f32 %v19723_v23, %v19644_v38  ;;  %v19947_v28 = vmul.f32 %v19723_v23, %v19632_v39 }
 0xb08   :  { %v19951_v37 = vmul.f32 %v19723_v23, %v19620_v25  ;;  %v19955_v27 = vmul.f32 %v19723_v23, %v19608_v11  ;;  %v19959_v5 = vmul.f32 %v19723_v23, %v19596_v61  ;;  %v19963_v38 = vmul.f32 %v19723_v23, %v19584_v51 }
 0xb09   :  { %22000 = vst [vmem:[#allocation75_spill] sm:$0xff] %v19943_v8  ;;  %22001 = vst [vmem:[#allocation43_spill] sm:$0xff] %v19947_v28  ;;  %v22005_v8 = vld [vmem:[#allocation68_spill] sm:$0xff]  ;;  %v22006_v28 = vld [vmem:[#allocation87_spill] sm:$0xff] }
 0xb0a   :  { %22002 = vst [vmem:[#allocation70_spill] sm:$0xff] %v19951_v37  ;;  %22003 = vst [vmem:[#allocation96_spill] sm:$0xff] %v19955_v27  ;;  %v19967_v39 = vmul.f32 %v19723_v23, %v22005_v8  ;;  %v19971_v25 = vmul.f32 %v19723_v23, %v22006_v28  ;;  %v22007_v37 = vld [vmem:[#allocation6_spill] sm:$0xff]  ;;  %v22008_v27 = vld [vmem:[#allocation3_spill] sm:$0xff]  ;;  %v19987_v8 = vadd.f32 %v19935_v44, %v19727_v56 }
 0xb0b   :  { %22004 = vst [vmem:[#allocation7_spill] sm:$0xff] %v19959_v5  ;;  %v19975_v11 = vmul.f32 %v19723_v23, %v22007_v37  ;;  %v19979_v61 = vmul.f32 %v19723_v23, %v22008_v27  ;;  %v22009_v5 = vld [vmem:[#allocation77_spill] sm:$0xff]  ;;  %v19991_v28 = vadd.f32 %v19935_v44, %v19731_v15  ;;  %v19995_v37 = vadd.f32 %v19935_v44, %v19735_v40 }
 0xb0c   :  { %v19983_v51 = vmul.f32 %v19723_v23, %v22009_v5  ;;  %v19999_v27 = vadd.f32 %v19935_v44, %v19739_v62  ;;  %v20003_v23 = vadd.f32 %v19935_v44, %v19743_v7  ;;  %v20007_v56 = vadd.f32 %v19935_v44, %v19747_v6  ;;  %v22011_v5 = vld [vmem:[#allocation14_spill] sm:$0xff] }
 0xb0d   :  { %v20011_v15 = vadd.f32 %v19935_v44, %v19751_v29  ;;  %v20015_v40 = vadd.f32 %v19935_v44, %v19755_v19  ;;  %v20019_v62 = vadd.f32 %v19935_v44, %v19759_v50  ;;  %v20023_v7 = vadd.f32 %v19935_v44, %v19763_v43 }
 0xb0e   :  { %v20027_v6 = vadd.f32 %v19935_v44, %v19767_v36  ;;  %v20031_v29 = vadd.f32 %v19935_v44, %v19771_v54  ;;  %v20035_v19 = vadd.f32 %v19935_v44, %v19775_v4  ;;  %v20039_v50 = vadd.f32 %v19935_v44, %v19779_v14 }
 0xb0f   :  { %v20043_v43 = vadd.f32 %v19935_v44, %v19783_v53  ;;  %v20047_v36 = vadd.f32 %v19935_v44, %v19787_v41  ;;  %v20051_v54 = vadd.f32 %v19935_v44, %v19791_v20  ;;  %v20055_v4 = vadd.f32 %v19935_v44, %v19795_v58 }
 0xb10   :  { %v20059_v14 = vadd.f32 %v19935_v44, %v19799_v13  ;;  %v20063_v53 = vadd.f32 %v19935_v44, %v19803_v45  ;;  %v20067_v41 = vadd.f32 %v19935_v44, %v19807_v21  ;;  %v20071_v20 = vadd.f32 %v19935_v44, %v19811_v34 }
 0xb11   :  { %v20075_v58 = vadd.f32 %v19935_v44, %v19815_v59  ;;  %v20079_v13 = vadd.f32 %v19935_v44, %v19819_v48  ;;  %v20083_v45 = vadd.f32 %v19935_v44, %v19823_v52  ;;  %v20087_v21 = vadd.f32 %v19935_v44, %v22011_v5 }
 0xb12   :  { %22010 = vst [vmem:[#allocation48_spill] sm:$0xff] %v20067_v41  ;;  %v22012_v41 = vld [vmem:[#allocation19_spill] sm:$0xff]  ;;  %v20095_v59 = vadd.f32 %v19935_v44, %v19835_v47  ;;  %v20099_v48 = vadd.f32 %v19935_v44, %v19839_v2  ;;  %v20103_v52 = vadd.f32 %v19935_v44, %v19843_v30  ;;  %v20107_v5 = vadd.f32 %v19935_v44, %v19847_v55 }
 0xb13   :  { %v20091_v34 = vadd.f32 %v19935_v44, %v22012_v41  ;;  %v20111_v41 = vadd.f32 %v19935_v44, %v19851_v32  ;;  %v20115_v47 = vadd.f32 %v19935_v44, %v19854_v9  ;;  %v20119_v2 = vadd.f32 %v19935_v44, %v19858_v18 }
 0xb14   :  { %v20123_v30 = vadd.f32 %v19935_v44, %v19862_v46  ;;  %v20127_v55 = vadd.f32 %v19935_v44, %v19866_v17  ;;  %v20131_v32 = vadd.f32 %v19935_v44, %v19870_v22  ;;  %v20135_v9 = vadd.f32 %v19935_v44, %v19874_v63 }
 0xb15   :  { %v20139_v18 = vadd.f32 %v19935_v44, %v19878_v1  ;;  %v20143_v46 = vadd.f32 %v19935_v44, %v19882_v16  ;;  %v20147_v17 = vadd.f32 %v19935_v44, %v19886_v24  ;;  %v20151_v22 = vadd.f32 %v19935_v44, %v19890_v33 }
 0xb16   :  { %22013 = vst [vmem:[#allocation44_spill] sm:$0xff] %v20127_v55  ;;  %22014 = vst [vmem:[#allocation17_spill] sm:$0xff] %v20131_v32  ;;  %v20155_v63 = vadd.f32 %v19935_v44, %v19894_v42  ;;  %v20159_v1 = vadd.f32 %v19935_v44, %v19898_v10  ;;  %v20163_v16 = vadd.f32 %v19935_v44, %v19902_v0  ;;  %v11130_v10 = vld [vmem:[%s20946_s0] sm:$0xff]  ;;  %v11131_v0 = vld [vmem:[%s20946_s0 + $0x8] sm:$0xff] }
 0xb17   :  { %22015 = vst [vmem:[#allocation16_spill] sm:$0xff] %v20135_v9  ;;  %22016 = vst [vmem:[#allocation71_spill] sm:$0xff] %v20139_v18  ;;  %v20167_v24 = vadd.f32 %v19935_v44, %v19906_v3  ;;  %v20171_v33 = vadd.f32 %v19935_v44, %v19910_v26  ;;  %v20175_v42 = vadd.f32 %v19935_v44, %v19914_v12  ;;  %v11132_v3 = vld [vmem:[%s20946_s0 + $0x10] sm:$0xff]  ;;  %v11133_v26 = vld [vmem:[%s20946_s0 + $0x18] sm:$0xff] }
 0xb18   :  { %22017 = vst [vmem:[#allocation91_spill] sm:$0xff] %v20143_v46  ;;  %22018 = vst [vmem:[#allocation45_spill] sm:$0xff] %v20147_v17  ;;  %v20191_v12 = vadd.f32 %v19935_v44, %v19918_v49  ;;  %v11135_v49 = vld [vmem:[%s20946_s0 + $0x28] sm:$0xff]  ;;  %v20259_v17 = vadd.f32 %v19935_v44, %v19967_v39  ;;  %v11142_v46 = vld [vmem:[%s20946_s0 + $0x60] sm:$0xff]  ;;  %v20275_v39 = vadd.f32 %v19935_v44, %v19971_v25 }
 0xb19   :  { %22019 = vst [vmem:[#allocation73_spill] sm:$0xff] %v20151_v22  ;;  %22020 = vst [vmem:[#allocation72_spill] sm:$0xff] %v20155_v63  ;;  %v11138_v22 = vld [vmem:[%s20946_s0 + $0x40] sm:$0xff]  ;;  %v11147_v25 = vld [vmem:[%s20946_s0 + $0x88] sm:$0xff]  ;;  %v20320_v18 = vadd.f32 %v11132_v3, %v19995_v37  ;;  %v20323_v9 = vadd.f32 %v11133_v26, %v19999_v27  ;;  %v20341_v27 = vadd.f32 %v11135_v49, %v20007_v56 }
 0xb1a   :  { %22021 = vst [vmem:[#allocation88_spill] sm:$0xff] %v20159_v1  ;;  %22022 = vst [vmem:[#allocation5_spill] sm:$0xff] %v20163_v16  ;;  %v11134_v16 = vld [vmem:[%s20946_s0 + $0x20] sm:$0xff]  ;;  %v22035_v1 = vld [vmem:[#allocation70_spill] sm:$0xff] }
 0xb1b   :  { %22023 = vst [vmem:[#allocation74_spill] sm:$0xff] %v20167_v24  ;;  %22024 = vst [vmem:[#allocation94_spill] sm:$0xff] %v20171_v33  ;;  %v20199_v33 = vadd.f32 %v19935_v44, %v19926_v31  ;;  %v20203_v24 = vadd.f32 %v19935_v44, %v19930_v57  ;;  %v11137_v31 = vld [vmem:[%s20946_s0 + $0x38] sm:$0xff]  ;;  %v20219_v57 = vadd.f32 %v19935_v44, %v19939_v35  ;;  %v11139_v35 = vld [vmem:[%s20946_s0 + $0x48] sm:$0xff] }
 0xb1c   :  { %22025 = vst [vmem:[#allocation46_spill] sm:$0xff] %v20175_v42  ;;  %22026 = vst [vmem:[#allocation93_spill] sm:$0xff] %v20191_v12  ;;  %v20195_v42 = vadd.f32 %v19935_v44, %v19922_v60  ;;  %v11136_v60 = vld [vmem:[%s20946_s0 + $0x30] sm:$0xff]  ;;  %v20231_v63 = vadd.f32 %v19935_v44, %v22035_v1  ;;  %v11154_v32 = vld [vmem:[%s20946_s0 + $0xc0] sm:$0xff]  ;;  %v20338_v37 = vadd.f32 %v11134_v16, %v20003_v23 }
 0xb1d   :  { %22028 = vst [vmem:[#allocation26_spill] sm:$0xff] %v20199_v33  ;;  %22029 = vst [vmem:[#allocation105_spill] sm:$0xff] %v20203_v24  ;;  %v22031_v24 = vld [vmem:[#allocation75_spill] sm:$0xff]  ;;  %v11155_v55 = vld [vmem:[%s20946_s0 + $0xc8] sm:$0xff] }
 0xb1e   :  { %22027 = vst [vmem:[#allocation47_spill] sm:$0xff] %v20195_v42  ;;  %22030 = vst [vmem:[#allocation64_spill] sm:$0xff] %v20219_v57  ;;  %v20223_v33 = vadd.f32 %v19935_v44, %v22031_v24  ;;  %v22033_v42 = vld [vmem:[#allocation43_spill] sm:$0xff]  ;;  %v11140_v24 = vld [vmem:[%s20946_s0 + $0x50] sm:$0xff]  ;;  %v20255_v57 = vadd.f32 %v19935_v44, %v19963_v38 }
 0xb1f   :  { %v20227_v12 = vadd.f32 %v19935_v44, %v22033_v42  ;;  %22036 = vst [vmem:[#allocation67_spill] sm:$0xff] %v20231_v63  ;;  %v11141_v42 = vld [vmem:[%s20946_s0 + $0x58] sm:$0xff]  ;;  %v22039_v63 = vld [vmem:[#allocation7_spill] sm:$0xff]  ;;  %22042 = vst [vmem:[#allocation104_spill] sm:$0xff] %v20259_v17  ;;  %v20279_v17 = vadd.f32 %v19935_v44, %v19975_v11  ;;  %v20368_v16 = vadd.f32 %v11140_v24, %v20027_v6 }
 0xb20   :  { %22032 = vst [vmem:[#allocation34_spill] sm:$0xff] %v20223_v33  ;;  %v20251_v33 = vadd.f32 %v19935_v44, %v22039_v63  ;;  %22041 = vst [vmem:[#allocation12_spill] sm:$0xff] %v20255_v57  ;;  %v11144_v63 = vld [vmem:[%s20946_s0 + $0x70] sm:$0xff]  ;;  %v11145_v38 = vld [vmem:[%s20946_s0 + $0x78] sm:$0xff]  ;;  %v20283_v57 = vadd.f32 %v19935_v44, %v19979_v61  ;;  %v20371_v49 = vadd.f32 %v11141_v42, %v20031_v29 }
 0xb21   :  { %22034 = vst [vmem:[#allocation103_spill] sm:$0xff] %v20227_v12  ;;  %v22037_v12 = vld [vmem:[#allocation96_spill] sm:$0xff]  ;;  %22043 = vst [vmem:[#allocation15_spill] sm:$0xff] %v20275_v39  ;;  %v11148_v11 = vld [vmem:[%s20946_s0 + $0x90] sm:$0xff]  ;;  %v20317_v39 = vadd.f32 %v11131_v0, %v19991_v28  ;;  %v20347_v0 = vadd.f32 %v11137_v31, %v20015_v40  ;;  %v20365_v40 = vadd.f32 %v11139_v35, %v20023_v7 }
 0xb22   :  { %v20247_v1 = vadd.f32 %v19935_v44, %v22037_v12  ;;  %22040 = vst [vmem:[#allocation106_spill] sm:$0xff] %v20251_v33  ;;  %v11143_v12 = vld [vmem:[%s20946_s0 + $0x68] sm:$0xff]  ;;  %22044 = vst [vmem:[#allocation82_spill] sm:$0xff] %v20279_v17  ;;  %v20287_v33 = vadd.f32 %v19935_v44, %v19983_v51  ;;  %v11149_v61 = vld [vmem:[%s20946_s0 + $0x98] sm:$0xff]  ;;  %v20314_v17 = vadd.f32 %v11130_v10, %v19987_v8 }
 0xb23   :  { %22045 = vst [vmem:[#allocation100_spill] sm:$0xff] %v20283_v57  ;;  %v11150_v44 = vld [vmem:[%s20946_s0 + $0xa0] sm:$0xff]  ;;  %v11151_v51 = vld [vmem:[%s20946_s0 + $0xa8] sm:$0xff]  ;;  %v11153_v57 = vld [vmem:[%s20946_s0 + $0xb8] sm:$0xff]  ;;  %v20344_v10 = vadd.f32 %v11136_v60, %v20011_v15  ;;  %v20362_v15 = vadd.f32 %v11138_v22, %v20019_v62  ;;  %v20386_v6 = vadd.f32 %v11142_v46, %v20035_v19  ;;  %v20389_v29 = vadd.f32 %v11143_v12, %v20039_v50 }
 0xb24   :  { %22038 = vst [vmem:[#allocation58_spill] sm:$0xff] %v20247_v1  ;;  %22046 = vst [vmem:[#allocation41_spill] sm:$0xff] %v20287_v33  ;;  %v11146_v1 = vld [vmem:[%s20946_s0 + $0x80] sm:$0xff]  ;;  %v11152_v33 = vld [vmem:[%s20946_s0 + $0xb0] sm:$0xff]  ;;  %v20392_v22 = vadd.f32 %v11144_v63, %v20043_v43  ;;  %v20395_v35 = vadd.f32 %v11145_v38, %v20047_v36  ;;  %v20413_v36 = vadd.f32 %v11147_v25, %v20055_v4 }
 0xb25   :  { %v11156_v8 = vld [vmem:[%s20946_s0 + $0xd0] sm:$0xff]  ;;  %v11157_v28 = vld [vmem:[%s20946_s0 + $0xd8] sm:$0xff]  ;;  %v11158_v3 = vld [vmem:[%s20946_s0 + $0xe0] sm:$0xff]  ;;  %v20410_v43 = vadd.f32 %v11146_v1, %v20051_v54  ;;  %v20416_v46 = vadd.f32 %v11148_v11, %v20059_v14  ;;  %v20419_v12 = vadd.f32 %v11149_v61, %v20063_v53  ;;  %v20434_v14 = vadd.f32 %v11151_v51, %v20071_v20 }
 0xb26   :  { %v11159_v26 = vld [vmem:[%s20946_s0 + $0xe8] sm:$0xff]  ;;  %v11160_v23 = vld [vmem:[%s20946_s0 + $0xf0] sm:$0xff]  ;;  %v11161_v56 = vld [vmem:[%s20946_s0 + $0xf8] sm:$0xff]  ;;  %v20437_v53 = vadd.f32 %v11152_v33, %v20075_v58  ;;  %v20440_v25 = vadd.f32 %v11153_v57, %v20079_v13  ;;  %v20452_v20 = vadd.f32 %v11154_v32, %v20083_v45  ;;  %v20455_v58 = vadd.f32 %v11155_v55, %v20087_v21 }
 0xb27   :  { %v11162_v60 = vld [vmem:[%s20946_s0 + $0x100] sm:$0xff]  ;;  %v11163_v31 = vld [vmem:[%s20946_s0 + $0x108] sm:$0xff]  ;;  %v11164_v62 = vld [vmem:[%s20946_s0 + $0x110] sm:$0xff]  ;;  %v20458_v13 = vadd.f32 %v11156_v8, %v20091_v34  ;;  %v20461_v33 = vadd.f32 %v11157_v28, %v20095_v59  ;;  %v20473_v21 = vadd.f32 %v11158_v3, %v20099_v48  ;;  %v20476_v34 = vadd.f32 %v11159_v26, %v20103_v52 }
 0xb28   :  { %v11165_v7 = vld [vmem:[%s20946_s0 + $0x118] sm:$0xff]  ;;  %v11166_v24 = vld [vmem:[%s20946_s0 + $0x120] sm:$0xff]  ;;  %v11167_v42 = vld [vmem:[%s20946_s0 + $0x128] sm:$0xff]  ;;  %v20479_v59 = vadd.f32 %v11160_v23, %v20107_v5  ;;  %v20482_v55 = vadd.f32 %v11161_v56, %v20111_v41  ;;  %v20494_v52 = vadd.f32 %v11162_v60, %v20115_v47  ;;  %v20497_v5 = vadd.f32 %v11163_v31, %v20119_v2 }
 0xb29   :  { %v11168_v19 = vld [vmem:[%s20946_s0 + $0x130] sm:$0xff]  ;;  %v11169_v50 = vld [vmem:[%s20946_s0 + $0x138] sm:$0xff]  ;;  %v11170_v63 = vld [vmem:[%s20946_s0 + $0x140] sm:$0xff]  ;;  %v20500_v41 = vadd.f32 %v11164_v62, %v20123_v30 }
 0xb2a   :  { %v11171_v38 = vld [vmem:[%s20946_s0 + $0x148] sm:$0xff]  ;;  %v11172_v54 = vld [vmem:[%s20946_s0 + $0x150] sm:$0xff]  ;;  %v11173_v11 = vld [vmem:[%s20946_s0 + $0x158] sm:$0xff] }
 0xb2b   :  { %v22047_v4 = vld [vmem:[#allocation48_spill] sm:$0xff]  ;;  %v11174_v61 = vld [vmem:[%s20946_s0 + $0x160] sm:$0xff]  ;;  %v11176_v57 = vld [vmem:[%s20946_s0 + $0x170] sm:$0xff]  ;;  %22048 = vst [vmem:[#allocation59_spill] sm:$0xff] %v20500_v41 }
 0xb2c   :  { %v20431_v1 = vadd.f32 %v11150_v44, %v22047_v4  ;;  %v11175_v44 = vld [vmem:[%s20946_s0 + $0x168] sm:$0xff]  ;;  %v11177_v51 = vld [vmem:[%s20946_s0 + $0x178] sm:$0xff]  ;;  %v11178_v45 = vld [vmem:[%s20946_s0 + $0x180] sm:$0xff] }
 0xb2d   :  { %v11179_v32 = vld [vmem:[%s20946_s0 + $0x188] sm:$0xff]  ;;  %v11180_v8 = vld [vmem:[%s20946_s0 + $0x190] sm:$0xff]  ;;  %v11181_v48 = vld [vmem:[%s20946_s0 + $0x198] sm:$0xff] }
 0xb2e   :  { %v22049_v28 = vld [vmem:[#allocation44_spill] sm:$0xff]  ;;  %v11182_v26 = vld [vmem:[%s20946_s0 + $0x1a0] sm:$0xff]  ;;  %v11184_v47 = vld [vmem:[%s20946_s0 + $0x1b0] sm:$0xff] }
 0xb2f   :  { %v20503_v3 = vadd.f32 %v11165_v7, %v22049_v28  ;;  %v11183_v23 = vld [vmem:[%s20946_s0 + $0x1a8] sm:$0xff]  ;;  %v22051_v2 = vld [vmem:[#allocation17_spill] sm:$0xff]  ;;  %v22055_v31 = vld [vmem:[#allocation71_spill] sm:$0xff] }
 0xb30   :  { %v20515_v56 = vadd.f32 %v11166_v24, %v22051_v2  ;;  %v22053_v30 = vld [vmem:[#allocation16_spill] sm:$0xff]  ;;  %v20521_v62 = vadd.f32 %v11168_v19, %v22055_v31  ;;  %v22057_v7 = vld [vmem:[#allocation91_spill] sm:$0xff]  ;;  %v11185_v28 = vld [vmem:[%s20946_s0 + $0x1b8] sm:$0xff] }
 0xb31   :  { %22050 = vst [vmem:[#allocation98_spill] sm:$0xff] %v20503_v3  ;;  %v20518_v60 = vadd.f32 %v11167_v42, %v22053_v30  ;;  %v20524_v4 = vadd.f32 %v11169_v50, %v22057_v7  ;;  %v11186_v3 = vld [vmem:[%s20946_s0 + $0x1c0] sm:$0xff]  ;;  %v11187_v24 = vld [vmem:[%s20946_s0 + $0x1c8] sm:$0xff]  ;;  %v22059_v42 = vld [vmem:[#allocation45_spill] sm:$0xff] }
 0xb32   :  { %22052 = vst [vmem:[#allocation13_spill] sm:$0xff] %v20515_v56  ;;  %22056 = vst [vmem:[#allocation101_spill] sm:$0xff] %v20521_v62  ;;  %v20536_v2 = vadd.f32 %v11170_v63, %v22059_v42  ;;  %v22061_v19 = vld [vmem:[#allocation73_spill] sm:$0xff]  ;;  %v22063_v50 = vld [vmem:[#allocation72_spill] sm:$0xff] }
 0xb33   :  { %22054 = vst [vmem:[#allocation84_spill] sm:$0xff] %v20518_v60  ;;  %22058 = vst [vmem:[#allocation42_spill] sm:$0xff] %v20524_v4  ;;  %v20539_v30 = vadd.f32 %v11171_v38, %v22061_v19  ;;  %v20542_v31 = vadd.f32 %v11172_v54, %v22063_v50  ;;  %v22065_v7 = vld [vmem:[#allocation88_spill] sm:$0xff]  ;;  %v11188_v62 = vld [vmem:[%s20946_s0 + $0x1d0] sm:$0xff] }
 0xb34   :  { %22060 = vst [vmem:[#allocation85_spill] sm:$0xff] %v20536_v2  ;;  %v20545_v4 = vadd.f32 %v11173_v11, %v22065_v7  ;;  %v11189_v60 = vld [vmem:[%s20946_s0 + $0x1d8] sm:$0xff]  ;;  %v11190_v63 = vld [vmem:[%s20946_s0 + $0x1e0] sm:$0xff]  ;;  %v22067_v38 = vld [vmem:[#allocation5_spill] sm:$0xff] }
 0xb35   :  { %22062 = vst [vmem:[#allocation38_spill] sm:$0xff] %v20539_v30  ;;  %22064 = vst [vmem:[#allocation69_spill] sm:$0xff] %v20542_v31  ;;  %v20557_v42 = vadd.f32 %v11174_v61, %v22067_v38  ;;  %v22069_v54 = vld [vmem:[#allocation74_spill] sm:$0xff]  ;;  %v11191_v31 = vld [vmem:[%s20946_s0 + $0x1e8] sm:$0xff] }
 0xb36   :  { %22066 = vst [vmem:[#allocation60_spill] sm:$0xff] %v20545_v4  ;;  %v20560_v19 = vadd.f32 %v11175_v44, %v22069_v54  ;;  %v22071_v11 = vld [vmem:[#allocation94_spill] sm:$0xff]  ;;  %v11192_v30 = vld [vmem:[%s20946_s0 + $0x1f0] sm:$0xff]  ;;  %v22081_v56 = vld [vmem:[#allocation103_spill] sm:$0xff] }
 0xb37   :  { %22068 = vst [vmem:[#allocation99_spill] sm:$0xff] %v20557_v42  ;;  %v20563_v50 = vadd.f32 %v11176_v57, %v22071_v11  ;;  %v22073_v7 = vld [vmem:[#allocation46_spill] sm:$0xff]  ;;  %v22075_v44 = vld [vmem:[#allocation93_spill] sm:$0xff]  ;;  %v22076_v57 = vld [vmem:[#allocation47_spill] sm:$0xff]  ;;  %v20596_v41 = vadd.f32 %v11184_v47, %v22081_v56 }
 0xb38   :  { %22070 = vst [vmem:[#allocation102_spill] sm:$0xff] %v20560_v19  ;;  %v20566_v4 = vadd.f32 %v11177_v51, %v22073_v7  ;;  %v11193_v61 = vld [vmem:[%s20946_s0 + $0x1f8] sm:$0xff]  ;;  %v20578_v38 = vadd.f32 %v11178_v45, %v22075_v44  ;;  %v20581_v54 = vadd.f32 %v11179_v32, %v22076_v57  ;;  %v22078_v7 = vld [vmem:[#allocation105_spill] sm:$0xff]  ;;  %v22082_v45 = vld [vmem:[#allocation67_spill] sm:$0xff] }
 0xb39   :  { %22072 = vst [vmem:[#allocation40_spill] sm:$0xff] %v20563_v50  ;;  %v22077_v51 = vld [vmem:[#allocation26_spill] sm:$0xff]  ;;  %v22079_v50 = vld [vmem:[#allocation64_spill] sm:$0xff]  ;;  %v20599_v44 = vadd.f32 %v11185_v28, %v22082_v45 }
 0xb3a   :  { %22074 = vst [vmem:[#allocation39_spill] sm:$0xff] %v20566_v4  ;;  %v20584_v11 = vadd.f32 %v11180_v8, %v22077_v51  ;;  %v20587_v4 = vadd.f32 %v11181_v48, %v22078_v7  ;;  %v20590_v19 = vadd.f32 %v11182_v26, %v22079_v50  ;;  %v22080_v42 = vld [vmem:[#allocation34_spill] sm:$0xff]  ;;  %v22085_v48 = vld [vmem:[#allocation12_spill] sm:$0xff] }
 0xb3b   :  { %v20593_v2 = vadd.f32 %v11183_v23, %v22080_v42  ;;  %v22083_v32 = vld [vmem:[#allocation58_spill] sm:$0xff]  ;;  %v20608_v7 = vadd.f32 %v11188_v62, %v22085_v48  ;;  %v22086_v26 = vld [vmem:[#allocation104_spill] sm:$0xff]  ;;  %v22087_v23 = vld [vmem:[#allocation15_spill] sm:$0xff]  ;;  %v11259_v62 = vmax.f32 %v20317_v39, 0.0  ;;  %v11263_v48 = vmax.f32 %v20341_v27, 0.0 }
 0xb3c   :  { %v20602_v57 = vadd.f32 %v11186_v3, %v22083_v32  ;;  %v22084_v8 = vld [vmem:[#allocation106_spill] sm:$0xff]  ;;  %v20611_v50 = vadd.f32 %v11189_v60, %v22086_v26  ;;  %v20614_v42 = vadd.f32 %v11190_v63, %v22087_v23  ;;  %v22089_v28 = vld [vmem:[#allocation100_spill] sm:$0xff]  ;;  %v22090_v3 = vld [vmem:[#allocation41_spill] sm:$0xff]  ;;  %v11261_v60 = vmax.f32 %v20323_v9, 0.0 }
 0xb3d   :  { %v20605_v51 = vadd.f32 %v11187_v24, %v22084_v8  ;;  %v22088_v47 = vld [vmem:[#allocation82_spill] sm:$0xff]  ;;  %v20620_v45 = vadd.f32 %v11192_v30, %v22089_v28  ;;  %v20623_v32 = vadd.f32 %v11193_v61, %v22090_v3  ;;  %v11258_v24 = vmax.f32 %v20314_v17, 0.0  ;;  %11323 = vst.msk [vmem:[%s20952_s7 + $0x8] sm:$0xff] %vm27_vm1, %v11259_v62  ;;  %11327 = vst.msk [vmem:[%s20952_s7 + $0x28] sm:$0xff] %vm27_vm1, %v11263_v48  ;;  %v22097_v28 = vld [vmem:[#allocation85_spill] sm:$0xff] }
 0xb3e   :  { %v20617_v56 = vadd.f32 %v11191_v31, %v22088_v47  ;;  %v11260_v8 = vmax.f32 %v20320_v18, 0.0  ;;  %v11262_v63 = vmax.f32 %v20338_v37, 0.0  ;;  %v11264_v31 = vmax.f32 %v20344_v10, 0.0  ;;  %11325 = vst.msk [vmem:[%s20952_s7 + $0x18] sm:$0xff] %vm27_vm1, %v11261_v60  ;;  %v22096_v23 = vld [vmem:[#allocation42_spill] sm:$0xff] }
 0xb3f   :  { %v11265_v30 = vmax.f32 %v20347_v0, 0.0  ;;  %v11266_v26 = vmax.f32 %v20362_v15, 0.0  ;;  %v11267_v61 = vmax.f32 %v20365_v40, 0.0  ;;  %v11268_v17 = vmax.f32 %v20368_v16, 0.0  ;;  %11322 = vst.msk [vmem:[%s20952_s7] sm:$0xff] %vm27_vm1, %v11258_v24  ;;  %v22098_v24 = vld [vmem:[#allocation38_spill] sm:$0xff] }
 0xb40   :  { %v11269_v39 = vmax.f32 %v20371_v49, 0.0  ;;  %11324 = vst.msk [vmem:[%s20952_s7 + $0x10] sm:$0xff] %vm27_vm1, %v11260_v8  ;;  %v11270_v9 = vmax.f32 %v20386_v6, 0.0  ;;  %v11271_v18 = vmax.f32 %v20389_v29, 0.0  ;;  %v11272_v37 = vmax.f32 %v20392_v22, 0.0  ;;  %11326 = vst.msk [vmem:[%s20952_s7 + $0x20] sm:$0xff] %vm27_vm1, %v11262_v63 }
 0xb41   :  { %v11273_v27 = vmax.f32 %v20395_v35, 0.0  ;;  %11328 = vst.msk [vmem:[%s20952_s7 + $0x30] sm:$0xff] %vm27_vm1, %v11264_v31  ;;  %11329 = vst.msk [vmem:[%s20952_s7 + $0x38] sm:$0xff] %vm27_vm1, %v11265_v30  ;;  %v11274_v10 = vmax.f32 %v20410_v43, 0.0  ;;  %v11275_v0 = vmax.f32 %v20413_v36, 0.0  ;;  %v11276_v15 = vmax.f32 %v20416_v46, 0.0 }
 0xb42   :  { %v11277_v40 = vmax.f32 %v20419_v12, 0.0  ;;  %11330 = vst.msk [vmem:[%s20952_s7 + $0x40] sm:$0xff] %vm27_vm1, %v11266_v26  ;;  %11331 = vst.msk [vmem:[%s20952_s7 + $0x48] sm:$0xff] %vm27_vm1, %v11267_v61  ;;  %v11278_v16 = vmax.f32 %v20431_v1, 0.0  ;;  %v11279_v49 = vmax.f32 %v20434_v14, 0.0  ;;  %v11280_v6 = vmax.f32 %v20437_v53, 0.0 }
 0xb43   :  { %11332 = vst.msk [vmem:[%s20952_s7 + $0x50] sm:$0xff] %vm27_vm1, %v11268_v17  ;;  %11333 = vst.msk [vmem:[%s20952_s7 + $0x58] sm:$0xff] %vm27_vm1, %v11269_v39  ;;  %v11281_v29 = vmax.f32 %v20440_v25, 0.0  ;;  %v11282_v22 = vmax.f32 %v20452_v20, 0.0  ;;  %v11283_v35 = vmax.f32 %v20455_v58, 0.0  ;;  %v11284_v43 = vmax.f32 %v20458_v13, 0.0 }
 0xb44   :  { %11334 = vst.msk [vmem:[%s20952_s7 + $0x60] sm:$0xff] %vm27_vm1, %v11270_v9  ;;  %11335 = vst.msk [vmem:[%s20952_s7 + $0x68] sm:$0xff] %vm27_vm1, %v11271_v18  ;;  %v11285_v36 = vmax.f32 %v20461_v33, 0.0  ;;  %v11286_v46 = vmax.f32 %v20473_v21, 0.0  ;;  %v11287_v12 = vmax.f32 %v20476_v34, 0.0  ;;  %v11288_v1 = vmax.f32 %v20479_v59, 0.0 }
 0xb45   :  { %11336 = vst.msk [vmem:[%s20952_s7 + $0x70] sm:$0xff] %vm27_vm1, %v11272_v37  ;;  %11337 = vst.msk [vmem:[%s20952_s7 + $0x78] sm:$0xff] %vm27_vm1, %v11273_v27  ;;  %v11289_v14 = vmax.f32 %v20482_v55, 0.0  ;;  %v11290_v53 = vmax.f32 %v20494_v52, 0.0  ;;  %v11291_v25 = vmax.f32 %v20497_v5, 0.0  ;;  %v22091_v20 = vld [vmem:[#allocation59_spill] sm:$0xff] }
 0xb46   :  { %11338 = vst.msk [vmem:[%s20952_s7 + $0x80] sm:$0xff] %vm27_vm1, %v11274_v10  ;;  %11339 = vst.msk [vmem:[%s20952_s7 + $0x88] sm:$0xff] %vm27_vm1, %v11275_v0  ;;  %v11292_v58 = vmax.f32 %v22091_v20, 0.0  ;;  %v22092_v13 = vld [vmem:[#allocation98_spill] sm:$0xff]  ;;  %v22093_v21 = vld [vmem:[#allocation13_spill] sm:$0xff]  ;;  %v11297_v47 = vmax.f32 %v22096_v23, 0.0 }
 0xb47   :  { %11340 = vst.msk [vmem:[%s20952_s7 + $0x90] sm:$0xff] %vm27_vm1, %v11276_v15  ;;  %11341 = vst.msk [vmem:[%s20952_s7 + $0x98] sm:$0xff] %vm27_vm1, %v11277_v40  ;;  %v11293_v33 = vmax.f32 %v22092_v13, 0.0  ;;  %v11294_v34 = vmax.f32 %v22093_v21, 0.0  ;;  %v22094_v59 = vld [vmem:[#allocation84_spill] sm:$0xff]  ;;  %v22095_v52 = vld [vmem:[#allocation101_spill] sm:$0xff] }
 0xb48   :  { %11342 = vst.msk [vmem:[%s20952_s7 + $0xa0] sm:$0xff] %vm27_vm1, %v11278_v16  ;;  %11343 = vst.msk [vmem:[%s20952_s7 + $0xa8] sm:$0xff] %vm27_vm1, %v11279_v49  ;;  %v11295_v55 = vmax.f32 %v22094_v59, 0.0  ;;  %v11296_v5 = vmax.f32 %v22095_v52, 0.0  ;;  %v11298_v3 = vmax.f32 %v22097_v28, 0.0  ;;  %v11299_v62 = vmax.f32 %v22098_v24, 0.0 }
 0xb49   :  { %11344 = vst.msk [vmem:[%s20952_s7 + $0xb0] sm:$0xff] %vm27_vm1, %v11280_v6  ;;  %11345 = vst.msk [vmem:[%s20952_s7 + $0xb8] sm:$0xff] %vm27_vm1, %v11281_v29  ;;  %v22099_v8 = vld [vmem:[#allocation69_spill] sm:$0xff]  ;;  %v22100_v63 = vld [vmem:[#allocation60_spill] sm:$0xff]  ;;  %v11306_v37 = vmax.f32 %v20578_v38, 0.0  ;;  %v11307_v27 = vmax.f32 %v20581_v54, 0.0 }
 0xb4a   :  { %11346 = vst.msk [vmem:[%s20952_s7 + $0xc0] sm:$0xff] %vm27_vm1, %v11282_v22  ;;  %11347 = vst.msk [vmem:[%s20952_s7 + $0xc8] sm:$0xff] %vm27_vm1, %v11283_v35  ;;  %v11300_v60 = vmax.f32 %v22099_v8, 0.0  ;;  %v11301_v48 = vmax.f32 %v22100_v63, 0.0  ;;  %v22101_v31 = vld [vmem:[#allocation99_spill] sm:$0xff]  ;;  %v22102_v26 = vld [vmem:[#allocation102_spill] sm:$0xff] }
 0xb4b   :  { %11348 = vst.msk [vmem:[%s20952_s7 + $0xd0] sm:$0xff] %vm27_vm1, %v11284_v43  ;;  %11349 = vst.msk [vmem:[%s20952_s7 + $0xd8] sm:$0xff] %vm27_vm1, %v11285_v36  ;;  %v11302_v30 = vmax.f32 %v22101_v31, 0.0  ;;  %v11303_v61 = vmax.f32 %v22102_v26, 0.0  ;;  %v22103_v17 = vld [vmem:[#allocation40_spill] sm:$0xff]  ;;  %v22104_v9 = vld [vmem:[#allocation39_spill] sm:$0xff] }
 0xb4c   :  { %11350 = vst.msk [vmem:[%s20952_s7 + $0xe0] sm:$0xff] %vm27_vm1, %v11286_v46  ;;  %11351 = vst.msk [vmem:[%s20952_s7 + $0xe8] sm:$0xff] %vm27_vm1, %v11287_v12  ;;  %v11304_v39 = vmax.f32 %v22103_v17, 0.0  ;;  %v11305_v18 = vmax.f32 %v22104_v9, 0.0  ;;  %v11308_v10 = vmax.f32 %v20584_v11, 0.0  ;;  %v11309_v0 = vmax.f32 %v20587_v4, 0.0 }
 0xb4d   :  { %11352 = vst.msk [vmem:[%s20952_s7 + $0xf0] sm:$0xff] %vm27_vm1, %v11288_v1  ;;  %11353 = vst.msk [vmem:[%s20952_s7 + $0xf8] sm:$0xff] %vm27_vm1, %v11289_v14  ;;  %v11310_v4 = vmax.f32 %v20590_v19, 0.0  ;;  %v11311_v38 = vmax.f32 %v20593_v2, 0.0  ;;  %v11312_v54 = vmax.f32 %v20596_v41, 0.0  ;;  %v11313_v11 = vmax.f32 %v20599_v44, 0.0 }
 0xb4e   :  { %11354 = vst.msk [vmem:[%s20952_s7 + $0x100] sm:$0xff] %vm27_vm1, %v11290_v53  ;;  %11355 = vst.msk [vmem:[%s20952_s7 + $0x108] sm:$0xff] %vm27_vm1, %v11291_v25  ;;  %v11314_v41 = vmax.f32 %v20602_v57, 0.0  ;;  %v11315_v2 = vmax.f32 %v20605_v51, 0.0  ;;  %v11316_v19 = vmax.f32 %v20608_v7, 0.0  ;;  %v11317_v44 = vmax.f32 %v20611_v50, 0.0 }
 0xb4f   :  { %11356 = vst.msk [vmem:[%s20952_s7 + $0x110] sm:$0xff] %vm27_vm1, %v11292_v58  ;;  %11357 = vst.msk [vmem:[%s20952_s7 + $0x118] sm:$0xff] %vm27_vm1, %v11293_v33  ;;  %v11318_v57 = vmax.f32 %v20614_v42, 0.0  ;;  %v11319_v51 = vmax.f32 %v20617_v56, 0.0  ;;  %v11320_v7 = vmax.f32 %v20620_v45, 0.0  ;;  %v11321_v50 = vmax.f32 %v20623_v32, 0.0 }
 0xb50   :  { %11358 = vst.msk [vmem:[%s20952_s7 + $0x120] sm:$0xff] %vm27_vm1, %v11294_v34  ;;  %11359 = vst.msk [vmem:[%s20952_s7 + $0x128] sm:$0xff] %vm27_vm1, %v11295_v55 }
 0xb51   :  { %11360 = vst.msk [vmem:[%s20952_s7 + $0x130] sm:$0xff] %vm27_vm1, %v11296_v5  ;;  %11361 = vst.msk [vmem:[%s20952_s7 + $0x138] sm:$0xff] %vm27_vm1, %v11297_v47 }
 0xb52   :  { %11362 = vst.msk [vmem:[%s20952_s7 + $0x140] sm:$0xff] %vm27_vm1, %v11298_v3  ;;  %11363 = vst.msk [vmem:[%s20952_s7 + $0x148] sm:$0xff] %vm27_vm1, %v11299_v62 }
 0xb53   :  { %11364 = vst.msk [vmem:[%s20952_s7 + $0x150] sm:$0xff] %vm27_vm1, %v11300_v60  ;;  %11365 = vst.msk [vmem:[%s20952_s7 + $0x158] sm:$0xff] %vm27_vm1, %v11301_v48 }
 0xb54   :  { %11366 = vst.msk [vmem:[%s20952_s7 + $0x160] sm:$0xff] %vm27_vm1, %v11302_v30  ;;  %11367 = vst.msk [vmem:[%s20952_s7 + $0x168] sm:$0xff] %vm27_vm1, %v11303_v61 }
 0xb55   :  { %11368 = vst.msk [vmem:[%s20952_s7 + $0x170] sm:$0xff] %vm27_vm1, %v11304_v39  ;;  %11369 = vst.msk [vmem:[%s20952_s7 + $0x178] sm:$0xff] %vm27_vm1, %v11305_v18 }
 0xb56   :  { %11370 = vst.msk [vmem:[%s20952_s7 + $0x180] sm:$0xff] %vm27_vm1, %v11306_v37  ;;  %11371 = vst.msk [vmem:[%s20952_s7 + $0x188] sm:$0xff] %vm27_vm1, %v11307_v27 }
 0xb57   :  { %11372 = vst.msk [vmem:[%s20952_s7 + $0x190] sm:$0xff] %vm27_vm1, %v11308_v10  ;;  %11373 = vst.msk [vmem:[%s20952_s7 + $0x198] sm:$0xff] %vm27_vm1, %v11309_v0 }
 0xb58   :  { %11374 = vst.msk [vmem:[%s20952_s7 + $0x1a0] sm:$0xff] %vm27_vm1, %v11310_v4  ;;  %11375 = vst.msk [vmem:[%s20952_s7 + $0x1a8] sm:$0xff] %vm27_vm1, %v11311_v38 }
 0xb59   :  { %11376 = vst.msk [vmem:[%s20952_s7 + $0x1b0] sm:$0xff] %vm27_vm1, %v11312_v54  ;;  %11377 = vst.msk [vmem:[%s20952_s7 + $0x1b8] sm:$0xff] %vm27_vm1, %v11313_v11 }
 0xb5a   :  { %11378 = vst.msk [vmem:[%s20952_s7 + $0x1c0] sm:$0xff] %vm27_vm1, %v11314_v41  ;;  %11379 = vst.msk [vmem:[%s20952_s7 + $0x1c8] sm:$0xff] %vm27_vm1, %v11315_v2 }
 0xb5b   :  { %11380 = vst.msk [vmem:[%s20952_s7 + $0x1d0] sm:$0xff] %vm27_vm1, %v11316_v19  ;;  %11381 = vst.msk [vmem:[%s20952_s7 + $0x1d8] sm:$0xff] %vm27_vm1, %v11317_v44 }
 0xb5c   :  { %11382 = vst.msk [vmem:[%s20952_s7 + $0x1e0] sm:$0xff] %vm27_vm1, %v11318_v57  ;;  %11383 = vst.msk [vmem:[%s20952_s7 + $0x1e8] sm:$0xff] %vm27_vm1, %v11319_v51 }
 0xb5d   :  { %11384 = vst.msk [vmem:[%s20952_s7 + $0x1f0] sm:$0xff] %vm27_vm1, %v11320_v7  ;;  %11385 = vst.msk [vmem:[%s20952_s7 + $0x1f8] sm:$0xff] %vm27_vm1, %v11321_v50 }

</bundles_post_ra>
